<compile_context>
chip_gen: v7x
topology: tpu7x:2x2x1
jax: 0.10.0
libtpu: 0.0.40
codegen_flags: <defaults>
</compile_context>

<pallas_src>
import math

import jax
import jax.numpy as jnp
from jax.experimental import pallas as pl
from jax.experimental.pallas import tpu as pltpu

LANE = 128
K1 = 32                      # layer-1 im2col K: 27 real taps zero-padded to 32
CONV_CFG = [(3, 64), (64, 128), (128, 256), (256, 256)]
FC_CFG = [(256, 1024), (1024, 512), (512, 10)]


# ---------------------------------------------------------------------------
# Fused kernel: conv1..conv4 (+ReLU+maxpool) -> flatten -> FC1/ReLU -> FC2/ReLU -> FC3
# One grid step processes one batch tile of TB images.
# ---------------------------------------------------------------------------
def vgg_fused_kernel(p1_ref,                        # (TB*256, 32)  bf16 layer-1 im2col
                     w1_ref, b1_ref,                # (32, 128) bf16, (1, 128) f32   (Cout 64->128 pad)
                     w2_ref, b2_ref,                # (1152, 128) bf16, (1, 128) f32 (Cin 64->128 pad)
                     w3_ref, b3_ref,                # (1152, 256) bf16, (1, 256) f32
                     w4_ref, b4_ref,                # (2304, 256) bf16, (1, 256) f32
                     wf1_ref, bf1_ref,              # (256, 1024) bf16, (1, 1024) f32
                     wf2_ref, bf2_ref,              # (1024, 512) bf16, (1, 512) f32
                     wf3_ref, bf3_ref,              # (512, 128) bf16, (1, 128) f32  (classes 10->128 pad)
                     o_ref,                         # (TB, 128) f32, lane-dense
                     pad2_ref, pad3_ref, pad4_ref):  # f32 VMEM padded-activation scratch
    TB = o_ref.shape[0]

    def mm_bias_relu(x, w_ref, b_ref):
        acc = jnp.dot(x.astype(jnp.bfloat16), w_ref[...],
                      preferred_element_type=jnp.float32)
        return jnp.maximum(acc + b_ref[...], 0.0)           # f32 elementwise

    def maxpool2x2(y, H, W, C):
        # y: (TB*H*W, C) f32, rows ordered (n, h, w)
        y = y.reshape(TB, H, W // 2, 2, C)
        y = jnp.maximum(y[:, :, :, 0, :], y[:, :, :, 1, :])     # pool along W
        y = y.reshape(TB, H // 2, 2, W // 2, C)
        return jnp.maximum(y[:, :, 0, :, :], y[:, :, 1, :, :])  # pool along H

    def conv_block(x, pad_ref, w_ref, b_ref):
        # x: (TB, H, W, C) f32 ; pad_ref: (TB, H+2, W+2, C) f32 scratch.
        _, H, W, C = x.shape
        # Zero only the halo; the interior is fully overwritten just below.
        zrow = jnp.zeros((TB, 1, W + 2, C), jnp.float32)
        zcol = jnp.zeros((TB, H + 2, 1, C), jnp.float32)
        pad_ref[:, 0:1, :, :] = zrow
        pad_ref[:, H + 1:H + 2, :, :] = zrow
        pad_ref[:, :, 0:1, :] = zcol
        pad_ref[:, :, W + 1:W + 2, :] = zcol
        pad_ref[:, 1:H + 1, 1:W + 1, :] = x
        xp = pad_ref[...]
        taps = [xp[:, dy:dy + H, dx:dx + W, :]
                for dy in range(3) for dx in range(3)]           # 9 shifted views
        patches = jnp.concatenate(taps, axis=-1)                 # (TB,H,W,9C) 128-aligned concat
        patches = patches.reshape(TB * H * W, 9 * C)             # single K=9C matmul
        y = mm_bias_relu(patches, w_ref, b_ref)
        return maxpool2x2(y, H, W, y.shape[-1])

    # layer 1: im2col prebuilt lane-compactly outside; one matmul + pool.
    y1 = mm_bias_relu(p1_ref[...], w1_ref, b1_ref)               # (TB*256, 128)
    x = maxpool2x2(y1, 16, 16, 128)                              # (TB, 8, 8, 128)

    x = conv_block(x, pad2_ref, w2_ref, b2_ref)                  # (TB, 4, 4, 128)
    x = conv_block(x, pad3_ref, w3_ref, b3_ref)                  # (TB, 2, 2, 256)
    x = conv_block(x, pad4_ref, w4_ref, b4_ref)                  # (TB, 1, 1, 256)

    # flatten (spatial is 1x1, so NHWC flatten == PyTorch NCHW view)
    h = x.reshape(TB, 256)
    h = mm_bias_relu(h, wf1_ref, bf1_ref)                        # (TB, 1024)
    # TODO(synk): nn.Dropout is identity in eval mode; training-mode random
    # masking is not implemented here.
    h = mm_bias_relu(h, wf2_ref, bf2_ref)                        # (TB, 512)
    o = jnp.dot(h.astype(jnp.bfloat16), wf3_ref[...],
                preferred_element_type=jnp.float32) + bf3_ref[...]
    o_ref[...] = o                                               # (TB, 128) lane-dense


# ---------------------------------------------------------------------------
# Parameter init (matches PyTorch _initialize_weights statistics)
# NOTE: conv weights are created directly in HWIO (kh,kw,Cin,Cout). If real
# PyTorch OIHW weights are loaded instead, transpose (2,3,1,0) first.
# ---------------------------------------------------------------------------
def init_params(key):
    params = {"conv": [], "fc": []}
    for cin, cout in CONV_CFG:
        key, kw = jax.random.split(key)
        std = math.sqrt(2.0 / (3 * 3 * cout))                    # normal_(0, sqrt(2/n))
        w = jax.random.normal(kw, (3, 3, cin, cout), jnp.float32) * std
        b = jnp.zeros((cout,), jnp.float32)                      # bias.zero_()
        params["conv"].append((w, b))
    for din, dout in FC_CFG:
        key, kw = jax.random.split(key)
        w = jax.random.normal(kw, (din, dout), jnp.float32) * 0.01   # N(0, .01)
        b = jnp.zeros((dout,), jnp.float32)
        params["fc"].append((w, b))
    return params


def prepare_params(params):
    """One-time layout prep: im2col weight reshape, lane padding, bf16 cast."""
    (w1, b1), (w2, b2), (w3, b3), (w4, b4) = params["conv"]
    (wf1, bf1), (wf2, bf2), (wf3, bf3) = params["fc"]
    bf16 = jnp.bfloat16

    # layer 1: (3,3,3,64) -> (27,64); pad K 27->32 (tiny) and Cout 64->128
    w1p = jnp.zeros((K1, LANE), jnp.float32).at[:27, :64].set(w1.reshape(27, 64))
    b1p = jnp.zeros((1, LANE), jnp.float32).at[0, :64].set(b1)

    # layer 2: pad Cin 64->128 (padded input channels are exactly zero post-ReLU)
    w2p = jnp.zeros((9, 128, 128), jnp.float32).at[:, :64, :].set(w2.reshape(9, 64, 128))
    w2p = w2p.reshape(9 * 128, 128)
    b2p = b2.reshape(1, 128)

    w3p = w3.reshape(9 * 128, 256)
    b3p = b3.reshape(1, 256)
    w4p = w4.reshape(9 * 256, 256)
    b4p = b4.reshape(1, 256)

    # classifier: pad final Cout 10 -> 128 lanes (lane-dense output writeback)
    wf3p = jnp.zeros((512, LANE), jnp.float32).at[:, :10].set(wf3)
    bf3p = jnp.zeros((1, LANE), jnp.float32).at[0, :10].set(bf3)

    return (w1p.astype(bf16), b1p,
            w2p.astype(bf16), b2p,
            w3p.astype(bf16), b3p,
            w4p.astype(bf16), b4p,
            wf1.astype(bf16), bf1.reshape(1, -1),
            wf2.astype(bf16), bf2.reshape(1, -1),
            wf3p.astype(bf16), bf3p)


# ---------------------------------------------------------------------------
# Forward pass: one fused, batch-tiled pallas_call
# ---------------------------------------------------------------------------
def vgg_forward(x_nchw, prepped, *, block_n=64):
    # block_n: batch tile. Default 64 keeps per-step VMEM well under v7x's
    # 64 MiB; raise to 128-256 on v6e/v5e for larger FC-matmul M.
    assert block_n % 8 == 0
    N = x_nchw.shape[0]
    H = W = 16
    if N <= block_n:
        TB, n_pad = N, N
    else:
        TB = block_n
        n_pad = ((N + TB - 1) // TB) * TB

    x = jnp.transpose(x_nchw, (0, 2, 3, 1)).astype(jnp.float32)   # NCHW -> NHWC
    if n_pad != N:
        x = jnp.pad(x, ((0, n_pad - N), (0, 0), (0, 0), (0, 0)))

    # Layer-1 im2col in the wrapper (tiny XLA fusion). Shipped as bf16 with
    # K kept at 32 (27 real taps): same single MXU K-tile, ~8x less HBM.
    xp = jnp.pad(x, ((0, 0), (1, 1), (1, 1), (0, 0)))
    taps = [xp[:, dy:dy + H, dx:dx + W, :] for dy in range(3) for dx in range(3)]
    p1 = jnp.concatenate(taps, axis=-1).reshape(n_pad * H * W, 27)
    p1 = jnp.pad(p1, ((0, 0), (0, K1 - 27))).astype(jnp.bfloat16)  # (n_pad*256, 32)

    flops = 2 * n_pad * (256 * K1 * 128 + 64 * 1152 * 128 + 16 * 1152 * 256
                         + 4 * 2304 * 256 + 256 * 1024 + 1024 * 512 + 512 * 128)
    bytes_accessed = (p1.size * p1.dtype.itemsize
                      + sum(a.size * a.dtype.itemsize for a in prepped)
                      + n_pad * LANE * 4)

    grid = (n_pad // TB,)
    in_specs = [pl.BlockSpec((TB * 256, K1), lambda i: (i, 0))]          # batch-tiled im2col
    in_specs += [pl.BlockSpec(a.shape, lambda i: (0, 0)) for a in prepped]  # VMEM-resident weights

    logits_padded = pl.pallas_call(
        vgg_fused_kernel,
        grid=grid,
        in_specs=in_specs,
        out_specs=pl.BlockSpec((TB, LANE), lambda i: (i, 0)),
        out_shape=jax.ShapeDtypeStruct((n_pad, LANE), jnp.float32),
        scratch_shapes=[
            pltpu.VMEM((TB, 10, 10, 128), jnp.float32),   # conv2 padded input
            pltpu.VMEM((TB, 6, 6, 128), jnp.float32),     # conv3 padded input
            pltpu.VMEM((TB, 4, 4, 256), jnp.float32),     # conv4 padded input
        ],
        compiler_params=pltpu.CompilerParams(
            dimension_semantics=("parallel",),            # v7x: split batch tiles across 2 TCs
            vmem_limit_bytes=48 * 1024 * 1024),           # v7x-safe (64 MiB physical)
        cost_estimate=pl.CostEstimate(flops=flops, transcendentals=0,
                                      bytes_accessed=bytes_accessed),
    )(p1, *prepped)

    return logits_padded[:N, :FC_CFG[-1][1]]              # (N, 10)


if __name__ == "__main__":
    key = jax.random.PRNGKey(0)
    kp, kx = jax.random.split(key)
    params = init_params(kp)
    prepped = prepare_params(params)
    x = jax.random.normal(kx, (2, 3, 16, 16), jnp.float32)           # NCHW, like PyTorch

    fwd = jax.jit(vgg_forward)
    out = jax.block_until_ready(fwd(x, prepped))
    assert out.shape == (2, 10), out.shape
    assert bool(jnp.all(jnp.isfinite(out)))
    print("KERNEL_OK")
</pallas_src>

<mosaic_0001>
module attributes {stable_mosaic.version = 11 : i64} {
  func.func @vgg_fused_kernel(%arg0: i32, %arg1: memref<512x32xbf16, #tpu.memory_space<vmem>>, %arg2: memref<32x128xbf16, #tpu.memory_space<vmem>>, %arg3: memref<1x128xf32, #tpu.memory_space<vmem>>, %arg4: memref<1152x128xbf16, #tpu.memory_space<vmem>>, %arg5: memref<1x128xf32, #tpu.memory_space<vmem>>, %arg6: memref<1152x256xbf16, #tpu.memory_space<vmem>>, %arg7: memref<1x256xf32, #tpu.memory_space<vmem>>, %arg8: memref<2304x256xbf16, #tpu.memory_space<vmem>>, %arg9: memref<1x256xf32, #tpu.memory_space<vmem>>, %arg10: memref<256x1024xbf16, #tpu.memory_space<vmem>>, %arg11: memref<1x1024xf32, #tpu.memory_space<vmem>>, %arg12: memref<1024x512xbf16, #tpu.memory_space<vmem>>, %arg13: memref<1x512xf32, #tpu.memory_space<vmem>>, %arg14: memref<512x128xbf16, #tpu.memory_space<vmem>>, %arg15: memref<1x128xf32, #tpu.memory_space<vmem>>, %arg16: memref<2x128xf32, #tpu.memory_space<vmem>>, %arg17: memref<2x10x10x128xf32, #tpu.memory_space<vmem>>, %arg18: memref<2x6x6x128xf32, #tpu.memory_space<vmem>>, %arg19: memref<2x4x4x256xf32, #tpu.memory_space<vmem>>) attributes {dimension_semantics = [#tpu.dimension_semantics<parallel>], iteration_bounds = array<i64: 1>, scalar_prefetch = 0 : i64, scratch_operands = 3 : i64, tpu.core_type = #tpu.core_type<tc>, window_params = [{transform_indices = @transform_0, window_bounds = array<i64: 512, 32>}, {pipeline_mode = #tpu.pipeline_mode<synchronous>, transform_indices = @transform_1, window_bounds = array<i64: 32, 128>}, {pipeline_mode = #tpu.pipeline_mode<synchronous>, transform_indices = @transform_2, window_bounds = array<i64: 1, 128>}, {pipeline_mode = #tpu.pipeline_mode<synchronous>, transform_indices = @transform_3, window_bounds = array<i64: 1152, 128>}, {pipeline_mode = #tpu.pipeline_mode<synchronous>, transform_indices = @transform_4, window_bounds = array<i64: 1, 128>}, {pipeline_mode = #tpu.pipeline_mode<synchronous>, transform_indices = @transform_5, window_bounds = array<i64: 1152, 256>}, {pipeline_mode = #tpu.pipeline_mode<synchronous>, transform_indices = @transform_6, window_bounds = array<i64: 1, 256>}, {pipeline_mode = #tpu.pipeline_mode<synchronous>, transform_indices = @transform_7, window_bounds = array<i64: 2304, 256>}, {pipeline_mode = #tpu.pipeline_mode<synchronous>, transform_indices = @transform_8, window_bounds = array<i64: 1, 256>}, {pipeline_mode = #tpu.pipeline_mode<synchronous>, transform_indices = @transform_9, window_bounds = array<i64: 256, 1024>}, {pipeline_mode = #tpu.pipeline_mode<synchronous>, transform_indices = @transform_10, window_bounds = array<i64: 1, 1024>}, {pipeline_mode = #tpu.pipeline_mode<synchronous>, transform_indices = @transform_11, window_bounds = array<i64: 1024, 512>}, {pipeline_mode = #tpu.pipeline_mode<synchronous>, transform_indices = @transform_12, window_bounds = array<i64: 1, 512>}, {pipeline_mode = #tpu.pipeline_mode<synchronous>, transform_indices = @transform_13, window_bounds = array<i64: 512, 128>}, {pipeline_mode = #tpu.pipeline_mode<synchronous>, transform_indices = @transform_14, window_bounds = array<i64: 1, 128>}, {transform_indices = @transform_15, window_bounds = array<i64: 2, 128>}]} {
    %c0 = arith.constant 0 : index
    %c0_0 = arith.constant 0 : index
    %0 = vector.load %arg1[%c0, %c0_0] : memref<512x32xbf16, #tpu.memory_space<vmem>>, vector<512x32xbf16>
    %c0_1 = arith.constant 0 : index
    %c0_2 = arith.constant 0 : index
    %1 = vector.load %arg2[%c0_1, %c0_2] : memref<32x128xbf16, #tpu.memory_space<vmem>>, vector<32x128xbf16>
    %cst = arith.constant dense<0.000000e+00> : vector<512x128xf32>
    %2 = tpu.matmul %0, %1, %cst {dimension_numbers = #tpu.dot_dimension_numbers<[1], [0], [0], [1], [0, 0, 1, 1], [], []>} : vector<512x32xbf16>, vector<32x128xbf16>, vector<512x128xf32> -> vector<512x128xf32>
    %c0_3 = arith.constant 0 : index
    %c0_4 = arith.constant 0 : index
    %3 = vector.load %arg3[%c0_3, %c0_4] : memref<1x128xf32, #tpu.memory_space<vmem>>, vector<1x128xf32>
    %4 = vector.broadcast %3 : vector<1x128xf32> to vector<512x128xf32>
    %5 = arith.addf %2, %4 : vector<512x128xf32>
    %cst_5 = arith.constant 0.000000e+00 : f32
    %6 = vector.broadcast %cst_5 : f32 to vector<512x128xf32>
    %7 = arith.maximumf %5, %6 : vector<512x128xf32>
    %8 = vector.shape_cast %7 : vector<512x128xf32> to vector<2x16x8x2x128xf32>
    %9 = vector.extract_strided_slice %8 {offsets = [0, 0, 0, 0, 0], sizes = [2, 16, 8, 1, 128], strides = [1, 1, 1, 1, 1]} : vector<2x16x8x2x128xf32> to vector<2x16x8x1x128xf32>
    %10 = vector.shape_cast %9 : vector<2x16x8x1x128xf32> to vector<2x16x8x128xf32>
    %11 = vector.extract_strided_slice %8 {offsets = [0, 0, 0, 1, 0], sizes = [2, 16, 8, 1, 128], strides = [1, 1, 1, 1, 1]} : vector<2x16x8x2x128xf32> to vector<2x16x8x1x128xf32>
    %12 = vector.shape_cast %11 : vector<2x16x8x1x128xf32> to vector<2x16x8x128xf32>
    %13 = arith.maximumf %10, %12 : vector<2x16x8x128xf32>
    %14 = vector.shape_cast %13 : vector<2x16x8x128xf32> to vector<2x8x2x8x128xf32>
    %15 = vector.extract_strided_slice %14 {offsets = [0, 0, 0, 0, 0], sizes = [2, 8, 1, 8, 128], strides = [1, 1, 1, 1, 1]} : vector<2x8x2x8x128xf32> to vector<2x8x1x8x128xf32>
    %16 = vector.shape_cast %15 : vector<2x8x1x8x128xf32> to vector<2x8x8x128xf32>
    %17 = vector.extract_strided_slice %14 {offsets = [0, 0, 1, 0, 0], sizes = [2, 8, 1, 8, 128], strides = [1, 1, 1, 1, 1]} : vector<2x8x2x8x128xf32> to vector<2x8x1x8x128xf32>
    %18 = vector.shape_cast %17 : vector<2x8x1x8x128xf32> to vector<2x8x8x128xf32>
    %19 = arith.maximumf %16, %18 : vector<2x8x8x128xf32>
    %cst_6 = arith.constant 0.000000e+00 : f32
    %20 = vector.broadcast %cst_6 : f32 to vector<2x1x10x128xf32>
    %cst_7 = arith.constant 0.000000e+00 : f32
    %21 = vector.broadcast %cst_7 : f32 to vector<2x10x1x128xf32>
    %c0_8 = arith.constant 0 : index
    %c0_9 = arith.constant 0 : index
    %c0_10 = arith.constant 0 : index
    %c0_11 = arith.constant 0 : index
    %22 = vector.load %arg17[%c0_8, %c0_9, %c0_10, %c0_11] : memref<2x10x10x128xf32, #tpu.memory_space<vmem>>, vector<2x1x10x128xf32>
    tpu.vector_store %arg17[%c0_8, %c0_9, %c0_10, %c0_11], %20 {strides = array<i32>} : memref<2x10x10x128xf32, #tpu.memory_space<vmem>>, vector<2x1x10x128xf32>,
    %c0_12 = arith.constant 0 : index
    %c9 = arith.constant 9 : index
    %c0_13 = arith.constant 0 : index
    %c0_14 = arith.constant 0 : index
    %23 = vector.load %arg17[%c0_12, %c9, %c0_13, %c0_14] : memref<2x10x10x128xf32, #tpu.memory_space<vmem>>, vector<2x1x10x128xf32>
    tpu.vector_store %arg17[%c0_12, %c9, %c0_13, %c0_14], %20 {strides = array<i32>} : memref<2x10x10x128xf32, #tpu.memory_space<vmem>>, vector<2x1x10x128xf32>,
    %c0_15 = arith.constant 0 : index
    %c0_16 = arith.constant 0 : index
    %c0_17 = arith.constant 0 : index
    %c0_18 = arith.constant 0 : index
    %24 = vector.load %arg17[%c0_15, %c0_16, %c0_17, %c0_18] : memref<2x10x10x128xf32, #tpu.memory_space<vmem>>, vector<2x10x1x128xf32>
    tpu.vector_store %arg17[%c0_15, %c0_16, %c0_17, %c0_18], %21 {strides = array<i32>} : memref<2x10x10x128xf32, #tpu.memory_space<vmem>>, vector<2x10x1x128xf32>,
    %c0_19 = arith.constant 0 : index
    %c0_20 = arith.constant 0 : index
    %c9_21 = arith.constant 9 : index
    %c0_22 = arith.constant 0 : index
    %25 = vector.load %arg17[%c0_19, %c0_20, %c9_21, %c0_22] : memref<2x10x10x128xf32, #tpu.memory_space<vmem>>, vector<2x10x1x128xf32>
    tpu.vector_store %arg17[%c0_19, %c0_20, %c9_21, %c0_22], %21 {strides = array<i32>} : memref<2x10x10x128xf32, #tpu.memory_space<vmem>>, vector<2x10x1x128xf32>,
    %c0_23 = arith.constant 0 : index
    %c1 = arith.constant 1 : index
    %c1_24 = arith.constant 1 : index
    %c0_25 = arith.constant 0 : index
    %26 = vector.load %arg17[%c0_23, %c1, %c1_24, %c0_25] : memref<2x10x10x128xf32, #tpu.memory_space<vmem>>, vector<2x8x8x128xf32>
    tpu.vector_store %arg17[%c0_23, %c1, %c1_24, %c0_25], %19 {strides = array<i32>} : memref<2x10x10x128xf32, #tpu.memory_space<vmem>>, vector<2x8x8x128xf32>,
    %c0_26 = arith.constant 0 : index
    %c0_27 = arith.constant 0 : index
    %c0_28 = arith.constant 0 : index
    %c0_29 = arith.constant 0 : index
    %27 = vector.load %arg17[%c0_26, %c0_27, %c0_28, %c0_29] : memref<2x10x10x128xf32, #tpu.memory_space<vmem>>, vector<2x10x10x128xf32>
    %28 = vector.extract_strided_slice %27 {offsets = [0, 0, 0, 0], sizes = [2, 8, 8, 128], strides = [1, 1, 1, 1]} : vector<2x10x10x128xf32> to vector<2x8x8x128xf32>
    %29 = vector.extract_strided_slice %27 {offsets = [0, 0, 1, 0], sizes = [2, 8, 8, 128], strides = [1, 1, 1, 1]} : vector<2x10x10x128xf32> to vector<2x8x8x128xf32>
    %30 = vector.extract_strided_slice %27 {offsets = [0, 0, 2, 0], sizes = [2, 8, 8, 128], strides = [1, 1, 1, 1]} : vector<2x10x10x128xf32> to vector<2x8x8x128xf32>
    %31 = vector.extract_strided_slice %27 {offsets = [0, 1, 0, 0], sizes = [2, 8, 8, 128], strides = [1, 1, 1, 1]} : vector<2x10x10x128xf32> to vector<2x8x8x128xf32>
    %32 = vector.extract_strided_slice %27 {offsets = [0, 1, 1, 0], sizes = [2, 8, 8, 128], strides = [1, 1, 1, 1]} : vector<2x10x10x128xf32> to vector<2x8x8x128xf32>
    %33 = vector.extract_strided_slice %27 {offsets = [0, 1, 2, 0], sizes = [2, 8, 8, 128], strides = [1, 1, 1, 1]} : vector<2x10x10x128xf32> to vector<2x8x8x128xf32>
    %34 = vector.extract_strided_slice %27 {offsets = [0, 2, 0, 0], sizes = [2, 8, 8, 128], strides = [1, 1, 1, 1]} : vector<2x10x10x128xf32> to vector<2x8x8x128xf32>
    %35 = vector.extract_strided_slice %27 {offsets = [0, 2, 1, 0], sizes = [2, 8, 8, 128], strides = [1, 1, 1, 1]} : vector<2x10x10x128xf32> to vector<2x8x8x128xf32>
    %36 = vector.extract_strided_slice %27 {offsets = [0, 2, 2, 0], sizes = [2, 8, 8, 128], strides = [1, 1, 1, 1]} : vector<2x10x10x128xf32> to vector<2x8x8x128xf32>
    %37 = tpu.concatenate %28, %29, %30, %31, %32, %33, %34, %35, %36 in 3 : vector<2x8x8x128xf32>, vector<2x8x8x128xf32>, vector<2x8x8x128xf32>, vector<2x8x8x128xf32>, vector<2x8x8x128xf32>, vector<2x8x8x128xf32>, vector<2x8x8x128xf32>, vector<2x8x8x128xf32>, vector<2x8x8x128xf32> -> vector<2x8x8x1152xf32>
    %38 = vector.shape_cast %37 : vector<2x8x8x1152xf32> to vector<128x1152xf32>
    %39 = arith.truncf %38 : vector<128x1152xf32> to vector<128x1152xbf16>
    %c0_30 = arith.constant 0 : index
    %c0_31 = arith.constant 0 : index
    %40 = vector.load %arg4[%c0_30, %c0_31] : memref<1152x128xbf16, #tpu.memory_space<vmem>>, vector<1152x128xbf16>
    %cst_32 = arith.constant dense<0.000000e+00> : vector<128x128xf32>
    %41 = tpu.matmul %39, %40, %cst_32 {dimension_numbers = #tpu.dot_dimension_numbers<[1], [0], [0], [1], [0, 0, 1, 1], [], []>} : vector<128x1152xbf16>, vector<1152x128xbf16>, vector<128x128xf32> -> vector<128x128xf32>
    %c0_33 = arith.constant 0 : index
    %c0_34 = arith.constant 0 : index
    %42 = vector.load %arg5[%c0_33, %c0_34] : memref<1x128xf32, #tpu.memory_space<vmem>>, vector<1x128xf32>
    %43 = vector.broadcast %42 : vector<1x128xf32> to vector<128x128xf32>
    %44 = arith.addf %41, %43 : vector<128x128xf32>
    %cst_35 = arith.constant 0.000000e+00 : f32
    %45 = vector.broadcast %cst_35 : f32 to vector<128x128xf32>
    %46 = arith.maximumf %44, %45 : vector<128x128xf32>
    %47 = vector.shape_cast %46 : vector<128x128xf32> to vector<2x8x4x2x128xf32>
    %48 = vector.extract_strided_slice %47 {offsets = [0, 0, 0, 0, 0], sizes = [2, 8, 4, 1, 128], strides = [1, 1, 1, 1, 1]} : vector<2x8x4x2x128xf32> to vector<2x8x4x1x128xf32>
    %49 = vector.shape_cast %48 : vector<2x8x4x1x128xf32> to vector<2x8x4x128xf32>
    %50 = vector.extract_strided_slice %47 {offsets = [0, 0, 0, 1, 0], sizes = [2, 8, 4, 1, 128], strides = [1, 1, 1, 1, 1]} : vector<2x8x4x2x128xf32> to vector<2x8x4x1x128xf32>
    %51 = vector.shape_cast %50 : vector<2x8x4x1x128xf32> to vector<2x8x4x128xf32>
    %52 = arith.maximumf %49, %51 : vector<2x8x4x128xf32>
    %53 = vector.shape_cast %52 : vector<2x8x4x128xf32> to vector<2x4x2x4x128xf32>
    %54 = vector.extract_strided_slice %53 {offsets = [0, 0, 0, 0, 0], sizes = [2, 4, 1, 4, 128], strides = [1, 1, 1, 1, 1]} : vector<2x4x2x4x128xf32> to vector<2x4x1x4x128xf32>
    %55 = vector.shape_cast %54 : vector<2x4x1x4x128xf32> to vector<2x4x4x128xf32>
    %56 = vector.extract_strided_slice %53 {offsets = [0, 0, 1, 0, 0], sizes = [2, 4, 1, 4, 128], strides = [1, 1, 1, 1, 1]} : vector<2x4x2x4x128xf32> to vector<2x4x1x4x128xf32>
    %57 = vector.shape_cast %56 : vector<2x4x1x4x128xf32> to vector<2x4x4x128xf32>
    %58 = arith.maximumf %55, %57 : vector<2x4x4x128xf32>
    %cst_36 = arith.constant 0.000000e+00 : f32
    %59 = vector.broadcast %cst_36 : f32 to vector<2x1x6x128xf32>
    %cst_37 = arith.constant 0.000000e+00 : f32
    %60 = vector.broadcast %cst_37 : f32 to vector<2x6x1x128xf32>
    %c0_38 = arith.constant 0 : index
    %c0_39 = arith.constant 0 : index
    %c0_40 = arith.constant 0 : index
    %c0_41 = arith.constant 0 : index
    %61 = vector.load %arg18[%c0_38, %c0_39, %c0_40, %c0_41] : memref<2x6x6x128xf32, #tpu.memory_space<vmem>>, vector<2x1x6x128xf32>
    tpu.vector_store %arg18[%c0_38, %c0_39, %c0_40, %c0_41], %59 {strides = array<i32>} : memref<2x6x6x128xf32, #tpu.memory_space<vmem>>, vector<2x1x6x128xf32>,
    %c0_42 = arith.constant 0 : index
    %c5 = arith.constant 5 : index
    %c0_43 = arith.constant 0 : index
    %c0_44 = arith.constant 0 : index
    %62 = vector.load %arg18[%c0_42, %c5, %c0_43, %c0_44] : memref<2x6x6x128xf32, #tpu.memory_space<vmem>>, vector<2x1x6x128xf32>
    tpu.vector_store %arg18[%c0_42, %c5, %c0_43, %c0_44], %59 {strides = array<i32>} : memref<2x6x6x128xf32, #tpu.memory_space<vmem>>, vector<2x1x6x128xf32>,
    %c0_45 = arith.constant 0 : index
    %c0_46 = arith.constant 0 : index
    %c0_47 = arith.constant 0 : index
    %c0_48 = arith.constant 0 : index
    %63 = vector.load %arg18[%c0_45, %c0_46, %c0_47, %c0_48] : memref<2x6x6x128xf32, #tpu.memory_space<vmem>>, vector<2x6x1x128xf32>
    tpu.vector_store %arg18[%c0_45, %c0_46, %c0_47, %c0_48], %60 {strides = array<i32>} : memref<2x6x6x128xf32, #tpu.memory_space<vmem>>, vector<2x6x1x128xf32>,
    %c0_49 = arith.constant 0 : index
    %c0_50 = arith.constant 0 : index
    %c5_51 = arith.constant 5 : index
    %c0_52 = arith.constant 0 : index
    %64 = vector.load %arg18[%c0_49, %c0_50, %c5_51, %c0_52] : memref<2x6x6x128xf32, #tpu.memory_space<vmem>>, vector<2x6x1x128xf32>
    tpu.vector_store %arg18[%c0_49, %c0_50, %c5_51, %c0_52], %60 {strides = array<i32>} : memref<2x6x6x128xf32, #tpu.memory_space<vmem>>, vector<2x6x1x128xf32>,
    %c0_53 = arith.constant 0 : index
    %c1_54 = arith.constant 1 : index
    %c1_55 = arith.constant 1 : index
    %c0_56 = arith.constant 0 : index
    %65 = vector.load %arg18[%c0_53, %c1_54, %c1_55, %c0_56] : memref<2x6x6x128xf32, #tpu.memory_space<vmem>>, vector<2x4x4x128xf32>
    tpu.vector_store %arg18[%c0_53, %c1_54, %c1_55, %c0_56], %58 {strides = array<i32>} : memref<2x6x6x128xf32, #tpu.memory_space<vmem>>, vector<2x4x4x128xf32>,
    %c0_57 = arith.constant 0 : index
    %c0_58 = arith.constant 0 : index
    %c0_59 = arith.constant 0 : index
    %c0_60 = arith.constant 0 : index
    %66 = vector.load %arg18[%c0_57, %c0_58, %c0_59, %c0_60] : memref<2x6x6x128xf32, #tpu.memory_space<vmem>>, vector<2x6x6x128xf32>
    %67 = vector.extract_strided_slice %66 {offsets = [0, 0, 0, 0], sizes = [2, 4, 4, 128], strides = [1, 1, 1, 1]} : vector<2x6x6x128xf32> to vector<2x4x4x128xf32>
    %68 = vector.extract_strided_slice %66 {offsets = [0, 0, 1, 0], sizes = [2, 4, 4, 128], strides = [1, 1, 1, 1]} : vector<2x6x6x128xf32> to vector<2x4x4x128xf32>
    %69 = vector.extract_strided_slice %66 {offsets = [0, 0, 2, 0], sizes = [2, 4, 4, 128], strides = [1, 1, 1, 1]} : vector<2x6x6x128xf32> to vector<2x4x4x128xf32>
    %70 = vector.extract_strided_slice %66 {offsets = [0, 1, 0, 0], sizes = [2, 4, 4, 128], strides = [1, 1, 1, 1]} : vector<2x6x6x128xf32> to vector<2x4x4x128xf32>
    %71 = vector.extract_strided_slice %66 {offsets = [0, 1, 1, 0], sizes = [2, 4, 4, 128], strides = [1, 1, 1, 1]} : vector<2x6x6x128xf32> to vector<2x4x4x128xf32>
    %72 = vector.extract_strided_slice %66 {offsets = [0, 1, 2, 0], sizes = [2, 4, 4, 128], strides = [1, 1, 1, 1]} : vector<2x6x6x128xf32> to vector<2x4x4x128xf32>
    %73 = vector.extract_strided_slice %66 {offsets = [0, 2, 0, 0], sizes = [2, 4, 4, 128], strides = [1, 1, 1, 1]} : vector<2x6x6x128xf32> to vector<2x4x4x128xf32>
    %74 = vector.extract_strided_slice %66 {offsets = [0, 2, 1, 0], sizes = [2, 4, 4, 128], strides = [1, 1, 1, 1]} : vector<2x6x6x128xf32> to vector<2x4x4x128xf32>
    %75 = vector.extract_strided_slice %66 {offsets = [0, 2, 2, 0], sizes = [2, 4, 4, 128], strides = [1, 1, 1, 1]} : vector<2x6x6x128xf32> to vector<2x4x4x128xf32>
    %76 = tpu.concatenate %67, %68, %69, %70, %71, %72, %73, %74, %75 in 3 : vector<2x4x4x128xf32>, vector<2x4x4x128xf32>, vector<2x4x4x128xf32>, vector<2x4x4x128xf32>, vector<2x4x4x128xf32>, vector<2x4x4x128xf32>, vector<2x4x4x128xf32>, vector<2x4x4x128xf32>, vector<2x4x4x128xf32> -> vector<2x4x4x1152xf32>
    %77 = vector.shape_cast %76 : vector<2x4x4x1152xf32> to vector<32x1152xf32>
    %78 = arith.truncf %77 : vector<32x1152xf32> to vector<32x1152xbf16>
    %c0_61 = arith.constant 0 : index
    %c0_62 = arith.constant 0 : index
    %79 = vector.load %arg6[%c0_61, %c0_62] : memref<1152x256xbf16, #tpu.memory_space<vmem>>, vector<1152x256xbf16>
    %cst_63 = arith.constant dense<0.000000e+00> : vector<32x256xf32>
    %80 = tpu.matmul %78, %79, %cst_63 {dimension_numbers = #tpu.dot_dimension_numbers<[1], [0], [0], [1], [0, 0, 1, 1], [], []>} : vector<32x1152xbf16>, vector<1152x256xbf16>, vector<32x256xf32> -> vector<32x256xf32>
    %c0_64 = arith.constant 0 : index
    %c0_65 = arith.constant 0 : index
    %81 = vector.load %arg7[%c0_64, %c0_65] : memref<1x256xf32, #tpu.memory_space<vmem>>, vector<1x256xf32>
    %82 = vector.broadcast %81 : vector<1x256xf32> to vector<32x256xf32>
    %83 = arith.addf %80, %82 : vector<32x256xf32>
    %cst_66 = arith.constant 0.000000e+00 : f32
    %84 = vector.broadcast %cst_66 : f32 to vector<32x256xf32>
    %85 = arith.maximumf %83, %84 : vector<32x256xf32>
    %86 = vector.shape_cast %85 : vector<32x256xf32> to vector<2x4x2x2x256xf32>
    %87 = vector.extract_strided_slice %86 {offsets = [0, 0, 0, 0, 0], sizes = [2, 4, 2, 1, 256], strides = [1, 1, 1, 1, 1]} : vector<2x4x2x2x256xf32> to vector<2x4x2x1x256xf32>
    %88 = vector.shape_cast %87 : vector<2x4x2x1x256xf32> to vector<2x4x2x256xf32>
    %89 = vector.extract_strided_slice %86 {offsets = [0, 0, 0, 1, 0], sizes = [2, 4, 2, 1, 256], strides = [1, 1, 1, 1, 1]} : vector<2x4x2x2x256xf32> to vector<2x4x2x1x256xf32>
    %90 = vector.shape_cast %89 : vector<2x4x2x1x256xf32> to vector<2x4x2x256xf32>
    %91 = arith.maximumf %88, %90 : vector<2x4x2x256xf32>
    %92 = vector.shape_cast %91 : vector<2x4x2x256xf32> to vector<2x2x2x2x256xf32>
    %93 = vector.extract_strided_slice %92 {offsets = [0, 0, 0, 0, 0], sizes = [2, 2, 1, 2, 256], strides = [1, 1, 1, 1, 1]} : vector<2x2x2x2x256xf32> to vector<2x2x1x2x256xf32>
    %94 = vector.shape_cast %93 : vector<2x2x1x2x256xf32> to vector<2x2x2x256xf32>
    %95 = vector.extract_strided_slice %92 {offsets = [0, 0, 1, 0, 0], sizes = [2, 2, 1, 2, 256], strides = [1, 1, 1, 1, 1]} : vector<2x2x2x2x256xf32> to vector<2x2x1x2x256xf32>
    %96 = vector.shape_cast %95 : vector<2x2x1x2x256xf32> to vector<2x2x2x256xf32>
    %97 = arith.maximumf %94, %96 : vector<2x2x2x256xf32>
    %cst_67 = arith.constant 0.000000e+00 : f32
    %98 = vector.broadcast %cst_67 : f32 to vector<2x1x4x256xf32>
    %cst_68 = arith.constant 0.000000e+00 : f32
    %99 = vector.broadcast %cst_68 : f32 to vector<2x4x1x256xf32>
    %c0_69 = arith.constant 0 : index
    %c0_70 = arith.constant 0 : index
    %c0_71 = arith.constant 0 : index
    %c0_72 = arith.constant 0 : index
    %100 = vector.load %arg19[%c0_69, %c0_70, %c0_71, %c0_72] : memref<2x4x4x256xf32, #tpu.memory_space<vmem>>, vector<2x1x4x256xf32>
    tpu.vector_store %arg19[%c0_69, %c0_70, %c0_71, %c0_72], %98 {strides = array<i32>} : memref<2x4x4x256xf32, #tpu.memory_space<vmem>>, vector<2x1x4x256xf32>,
    %c0_73 = arith.constant 0 : index
    %c3 = arith.constant 3 : index
    %c0_74 = arith.constant 0 : index
    %c0_75 = arith.constant 0 : index
    %101 = vector.load %arg19[%c0_73, %c3, %c0_74, %c0_75] : memref<2x4x4x256xf32, #tpu.memory_space<vmem>>, vector<2x1x4x256xf32>
    tpu.vector_store %arg19[%c0_73, %c3, %c0_74, %c0_75], %98 {strides = array<i32>} : memref<2x4x4x256xf32, #tpu.memory_space<vmem>>, vector<2x1x4x256xf32>,
    %c0_76 = arith.constant 0 : index
    %c0_77 = arith.constant 0 : index
    %c0_78 = arith.constant 0 : index
    %c0_79 = arith.constant 0 : index
    %102 = vector.load %arg19[%c0_76, %c0_77, %c0_78, %c0_79] : memref<2x4x4x256xf32, #tpu.memory_space<vmem>>, vector<2x4x1x256xf32>
    tpu.vector_store %arg19[%c0_76, %c0_77, %c0_78, %c0_79], %99 {strides = array<i32>} : memref<2x4x4x256xf32, #tpu.memory_space<vmem>>, vector<2x4x1x256xf32>,
    %c0_80 = arith.constant 0 : index
    %c0_81 = arith.constant 0 : index
    %c3_82 = arith.constant 3 : index
    %c0_83 = arith.constant 0 : index
    %103 = vector.load %arg19[%c0_80, %c0_81, %c3_82, %c0_83] : memref<2x4x4x256xf32, #tpu.memory_space<vmem>>, vector<2x4x1x256xf32>
    tpu.vector_store %arg19[%c0_80, %c0_81, %c3_82, %c0_83], %99 {strides = array<i32>} : memref<2x4x4x256xf32, #tpu.memory_space<vmem>>, vector<2x4x1x256xf32>,
    %c0_84 = arith.constant 0 : index
    %c1_85 = arith.constant 1 : index
    %c1_86 = arith.constant 1 : index
    %c0_87 = arith.constant 0 : index
    %104 = vector.load %arg19[%c0_84, %c1_85, %c1_86, %c0_87] : memref<2x4x4x256xf32, #tpu.memory_space<vmem>>, vector<2x2x2x256xf32>
    tpu.vector_store %arg19[%c0_84, %c1_85, %c1_86, %c0_87], %97 {strides = array<i32>} : memref<2x4x4x256xf32, #tpu.memory_space<vmem>>, vector<2x2x2x256xf32>,
    %c0_88 = arith.constant 0 : index
    %c0_89 = arith.constant 0 : index
    %c0_90 = arith.constant 0 : index
    %c0_91 = arith.constant 0 : index
    %105 = vector.load %arg19[%c0_88, %c0_89, %c0_90, %c0_91] : memref<2x4x4x256xf32, #tpu.memory_space<vmem>>, vector<2x4x4x256xf32>
    %106 = vector.extract_strided_slice %105 {offsets = [0, 0, 0, 0], sizes = [2, 2, 2, 256], strides = [1, 1, 1, 1]} : vector<2x4x4x256xf32> to vector<2x2x2x256xf32>
    %107 = vector.extract_strided_slice %105 {offsets = [0, 0, 1, 0], sizes = [2, 2, 2, 256], strides = [1, 1, 1, 1]} : vector<2x4x4x256xf32> to vector<2x2x2x256xf32>
    %108 = vector.extract_strided_slice %105 {offsets = [0, 0, 2, 0], sizes = [2, 2, 2, 256], strides = [1, 1, 1, 1]} : vector<2x4x4x256xf32> to vector<2x2x2x256xf32>
    %109 = vector.extract_strided_slice %105 {offsets = [0, 1, 0, 0], sizes = [2, 2, 2, 256], strides = [1, 1, 1, 1]} : vector<2x4x4x256xf32> to vector<2x2x2x256xf32>
    %110 = vector.extract_strided_slice %105 {offsets = [0, 1, 1, 0], sizes = [2, 2, 2, 256], strides = [1, 1, 1, 1]} : vector<2x4x4x256xf32> to vector<2x2x2x256xf32>
    %111 = vector.extract_strided_slice %105 {offsets = [0, 1, 2, 0], sizes = [2, 2, 2, 256], strides = [1, 1, 1, 1]} : vector<2x4x4x256xf32> to vector<2x2x2x256xf32>
    %112 = vector.extract_strided_slice %105 {offsets = [0, 2, 0, 0], sizes = [2, 2, 2, 256], strides = [1, 1, 1, 1]} : vector<2x4x4x256xf32> to vector<2x2x2x256xf32>
    %113 = vector.extract_strided_slice %105 {offsets = [0, 2, 1, 0], sizes = [2, 2, 2, 256], strides = [1, 1, 1, 1]} : vector<2x4x4x256xf32> to vector<2x2x2x256xf32>
    %114 = vector.extract_strided_slice %105 {offsets = [0, 2, 2, 0], sizes = [2, 2, 2, 256], strides = [1, 1, 1, 1]} : vector<2x4x4x256xf32> to vector<2x2x2x256xf32>
    %115 = tpu.concatenate %106, %107, %108, %109, %110, %111, %112, %113, %114 in 3 : vector<2x2x2x256xf32>, vector<2x2x2x256xf32>, vector<2x2x2x256xf32>, vector<2x2x2x256xf32>, vector<2x2x2x256xf32>, vector<2x2x2x256xf32>, vector<2x2x2x256xf32>, vector<2x2x2x256xf32>, vector<2x2x2x256xf32> -> vector<2x2x2x2304xf32>
    %116 = vector.shape_cast %115 : vector<2x2x2x2304xf32> to vector<8x2304xf32>
    %117 = arith.truncf %116 : vector<8x2304xf32> to vector<8x2304xbf16>
    %c0_92 = arith.constant 0 : index
    %c0_93 = arith.constant 0 : index
    %118 = vector.load %arg8[%c0_92, %c0_93] : memref<2304x256xbf16, #tpu.memory_space<vmem>>, vector<2304x256xbf16>
    %cst_94 = arith.constant dense<0.000000e+00> : vector<8x256xf32>
    %119 = tpu.matmul %117, %118, %cst_94 {dimension_numbers = #tpu.dot_dimension_numbers<[1], [0], [0], [1], [0, 0, 1, 1], [], []>} : vector<8x2304xbf16>, vector<2304x256xbf16>, vector<8x256xf32> -> vector<8x256xf32>
    %c0_95 = arith.constant 0 : index
    %c0_96 = arith.constant 0 : index
    %120 = vector.load %arg9[%c0_95, %c0_96] : memref<1x256xf32, #tpu.memory_space<vmem>>, vector<1x256xf32>
    %121 = vector.broadcast %120 : vector<1x256xf32> to vector<8x256xf32>
    %122 = arith.addf %119, %121 : vector<8x256xf32>
    %cst_97 = arith.constant 0.000000e+00 : f32
    %123 = vector.broadcast %cst_97 : f32 to vector<8x256xf32>
    %124 = arith.maximumf %122, %123 : vector<8x256xf32>
    %125 = vector.shape_cast %124 : vector<8x256xf32> to vector<2x2x1x2x256xf32>
    %126 = vector.extract_strided_slice %125 {offsets = [0, 0, 0, 0, 0], sizes = [2, 2, 1, 1, 256], strides = [1, 1, 1, 1, 1]} : vector<2x2x1x2x256xf32> to vector<2x2x1x1x256xf32>
    %127 = vector.shape_cast %126 : vector<2x2x1x1x256xf32> to vector<2x2x1x256xf32>
    %128 = vector.extract_strided_slice %125 {offsets = [0, 0, 0, 1, 0], sizes = [2, 2, 1, 1, 256], strides = [1, 1, 1, 1, 1]} : vector<2x2x1x2x256xf32> to vector<2x2x1x1x256xf32>
    %129 = vector.shape_cast %128 : vector<2x2x1x1x256xf32> to vector<2x2x1x256xf32>
    %130 = arith.maximumf %127, %129 : vector<2x2x1x256xf32>
    %131 = vector.shape_cast %130 : vector<2x2x1x256xf32> to vector<2x1x2x1x256xf32>
    %132 = vector.extract_strided_slice %131 {offsets = [0, 0, 0, 0, 0], sizes = [2, 1, 1, 1, 256], strides = [1, 1, 1, 1, 1]} : vector<2x1x2x1x256xf32> to vector<2x1x1x1x256xf32>
    %133 = vector.shape_cast %132 : vector<2x1x1x1x256xf32> to vector<2x1x1x256xf32>
    %134 = vector.extract_strided_slice %131 {offsets = [0, 0, 1, 0, 0], sizes = [2, 1, 1, 1, 256], strides = [1, 1, 1, 1, 1]} : vector<2x1x2x1x256xf32> to vector<2x1x1x1x256xf32>
    %135 = vector.shape_cast %134 : vector<2x1x1x1x256xf32> to vector<2x1x1x256xf32>
    %136 = arith.maximumf %133, %135 : vector<2x1x1x256xf32>
    %137 = vector.shape_cast %136 : vector<2x1x1x256xf32> to vector<2x256xf32>
    %138 = arith.truncf %137 : vector<2x256xf32> to vector<2x256xbf16>
    %c0_98 = arith.constant 0 : index
    %c0_99 = arith.constant 0 : index
    %139 = vector.load %arg10[%c0_98, %c0_99] : memref<256x1024xbf16, #tpu.memory_space<vmem>>, vector<256x1024xbf16>
    %cst_100 = arith.constant dense<0.000000e+00> : vector<2x1024xf32>
    %140 = tpu.matmul %138, %139, %cst_100 {dimension_numbers = #tpu.dot_dimension_numbers<[1], [0], [0], [1], [0, 0, 1, 1], [], []>} : vector<2x256xbf16>, vector<256x1024xbf16>, vector<2x1024xf32> -> vector<2x1024xf32>
    %c0_101 = arith.constant 0 : index
    %c0_102 = arith.constant 0 : index
    %141 = vector.load %arg11[%c0_101, %c0_102] : memref<1x1024xf32, #tpu.memory_space<vmem>>, vector<1x1024xf32>
    %142 = vector.broadcast %141 : vector<1x1024xf32> to vector<2x1024xf32>
    %143 = arith.addf %140, %142 : vector<2x1024xf32>
    %cst_103 = arith.constant 0.000000e+00 : f32
    %144 = vector.broadcast %cst_103 : f32 to vector<2x1024xf32>
    %145 = arith.maximumf %143, %144 : vector<2x1024xf32>
    %146 = arith.truncf %145 : vector<2x1024xf32> to vector<2x1024xbf16>
    %c0_104 = arith.constant 0 : index
    %c0_105 = arith.constant 0 : index
    %147 = vector.load %arg12[%c0_104, %c0_105] : memref<1024x512xbf16, #tpu.memory_space<vmem>>, vector<1024x512xbf16>
    %cst_106 = arith.constant dense<0.000000e+00> : vector<2x512xf32>
    %148 = tpu.matmul %146, %147, %cst_106 {dimension_numbers = #tpu.dot_dimension_numbers<[1], [0], [0], [1], [0, 0, 1, 1], [], []>} : vector<2x1024xbf16>, vector<1024x512xbf16>, vector<2x512xf32> -> vector<2x512xf32>
    %c0_107 = arith.constant 0 : index
    %c0_108 = arith.constant 0 : index
    %149 = vector.load %arg13[%c0_107, %c0_108] : memref<1x512xf32, #tpu.memory_space<vmem>>, vector<1x512xf32>
    %150 = vector.broadcast %149 : vector<1x512xf32> to vector<2x512xf32>
    %151 = arith.addf %148, %150 : vector<2x512xf32>
    %cst_109 = arith.constant 0.000000e+00 : f32
    %152 = vector.broadcast %cst_109 : f32 to vector<2x512xf32>
    %153 = arith.maximumf %151, %152 : vector<2x512xf32>
    %154 = arith.truncf %153 : vector<2x512xf32> to vector<2x512xbf16>
    %c0_110 = arith.constant 0 : index
    %c0_111 = arith.constant 0 : index
    %155 = vector.load %arg14[%c0_110, %c0_111] : memref<512x128xbf16, #tpu.memory_space<vmem>>, vector<512x128xbf16>
    %cst_112 = arith.constant dense<0.000000e+00> : vector<2x128xf32>
    %156 = tpu.matmul %154, %155, %cst_112 {dimension_numbers = #tpu.dot_dimension_numbers<[1], [0], [0], [1], [0, 0, 1, 1], [], []>} : vector<2x512xbf16>, vector<512x128xbf16>, vector<2x128xf32> -> vector<2x128xf32>
    %c0_113 = arith.constant 0 : index
    %c0_114 = arith.constant 0 : index
    %157 = vector.load %arg15[%c0_113, %c0_114] : memref<1x128xf32, #tpu.memory_space<vmem>>, vector<1x128xf32>
    %158 = vector.broadcast %157 : vector<1x128xf32> to vector<2x128xf32>
    %159 = arith.addf %156, %158 : vector<2x128xf32>
    %c0_115 = arith.constant 0 : index
    %c0_116 = arith.constant 0 : index
    %160 = vector.load %arg16[%c0_115, %c0_116] : memref<2x128xf32, #tpu.memory_space<vmem>>, vector<2x128xf32>
    tpu.vector_store %arg16[%c0_115, %c0_116], %159 {strides = array<i32>} : memref<2x128xf32, #tpu.memory_space<vmem>>, vector<2x128xf32>,
    return
  }
  func.func @transform_0(%arg0: i32) -> (i32, i32) {
    %c0_i32 = arith.constant 0 : i32
    %c0_i32_0 = arith.constant 0 : i32
    return %arg0, %c0_i32 : i32, i32
  }
  func.func @transform_1(%arg0: i32) -> (i32, i32) {
    %c0_i32 = arith.constant 0 : i32
    %c0_i32_0 = arith.constant 0 : i32
    %c0_i32_1 = arith.constant 0 : i32
    return %c0_i32, %c0_i32_0 : i32, i32
  }
  func.func @transform_2(%arg0: i32) -> (i32, i32) {
    %c0_i32 = arith.constant 0 : i32
    %c0_i32_0 = arith.constant 0 : i32
    %c0_i32_1 = arith.constant 0 : i32
    return %c0_i32, %c0_i32_0 : i32, i32
  }
  func.func @transform_3(%arg0: i32) -> (i32, i32) {
    %c0_i32 = arith.constant 0 : i32
    %c0_i32_0 = arith.constant 0 : i32
    %c0_i32_1 = arith.constant 0 : i32
    return %c0_i32, %c0_i32_0 : i32, i32
  }
  func.func @transform_4(%arg0: i32) -> (i32, i32) {
    %c0_i32 = arith.constant 0 : i32
    %c0_i32_0 = arith.constant 0 : i32
    %c0_i32_1 = arith.constant 0 : i32
    return %c0_i32, %c0_i32_0 : i32, i32
  }
  func.func @transform_5(%arg0: i32) -> (i32, i32) {
    %c0_i32 = arith.constant 0 : i32
    %c0_i32_0 = arith.constant 0 : i32
    %c0_i32_1 = arith.constant 0 : i32
    return %c0_i32, %c0_i32_0 : i32, i32
  }
  func.func @transform_6(%arg0: i32) -> (i32, i32) {
    %c0_i32 = arith.constant 0 : i32
    %c0_i32_0 = arith.constant 0 : i32
    %c0_i32_1 = arith.constant 0 : i32
    return %c0_i32, %c0_i32_0 : i32, i32
  }
  func.func @transform_7(%arg0: i32) -> (i32, i32) {
    %c0_i32 = arith.constant 0 : i32
    %c0_i32_0 = arith.constant 0 : i32
    %c0_i32_1 = arith.constant 0 : i32
    return %c0_i32, %c0_i32_0 : i32, i32
  }
  func.func @transform_8(%arg0: i32) -> (i32, i32) {
    %c0_i32 = arith.constant 0 : i32
    %c0_i32_0 = arith.constant 0 : i32
    %c0_i32_1 = arith.constant 0 : i32
    return %c0_i32, %c0_i32_0 : i32, i32
  }
  func.func @transform_9(%arg0: i32) -> (i32, i32) {
    %c0_i32 = arith.constant 0 : i32
    %c0_i32_0 = arith.constant 0 : i32
    %c0_i32_1 = arith.constant 0 : i32
    return %c0_i32, %c0_i32_0 : i32, i32
  }
  func.func @transform_10(%arg0: i32) -> (i32, i32) {
    %c0_i32 = arith.constant 0 : i32
    %c0_i32_0 = arith.constant 0 : i32
    %c0_i32_1 = arith.constant 0 : i32
    return %c0_i32, %c0_i32_0 : i32, i32
  }
  func.func @transform_11(%arg0: i32) -> (i32, i32) {
    %c0_i32 = arith.constant 0 : i32
    %c0_i32_0 = arith.constant 0 : i32
    %c0_i32_1 = arith.constant 0 : i32
    return %c0_i32, %c0_i32_0 : i32, i32
  }
  func.func @transform_12(%arg0: i32) -> (i32, i32) {
    %c0_i32 = arith.constant 0 : i32
    %c0_i32_0 = arith.constant 0 : i32
    %c0_i32_1 = arith.constant 0 : i32
    return %c0_i32, %c0_i32_0 : i32, i32
  }
  func.func @transform_13(%arg0: i32) -> (i32, i32) {
    %c0_i32 = arith.constant 0 : i32
    %c0_i32_0 = arith.constant 0 : i32
    %c0_i32_1 = arith.constant 0 : i32
    return %c0_i32, %c0_i32_0 : i32, i32
  }
  func.func @transform_14(%arg0: i32) -> (i32, i32) {
    %c0_i32 = arith.constant 0 : i32
    %c0_i32_0 = arith.constant 0 : i32
    %c0_i32_1 = arith.constant 0 : i32
    return %c0_i32, %c0_i32_0 : i32, i32
  }
  func.func @transform_15(%arg0: i32) -> (i32, i32) {
    %c0_i32 = arith.constant 0 : i32
    %c0_i32_0 = arith.constant 0 : i32
    return %arg0, %c0_i32 : i32, i32
  }
}

</mosaic_0001>

<bundles_post_ra>
// kernel: vgg_forward.1
= control target key start
LH: loop header
LB: loop body
LE: loop exit
PB: predicated region body
PF: predicated region fallthrough
CT: control target
= control target key end

     0   :  { %20 = vsyncpa [#allocation6], 0  ;;  %s20588_s0 = inlined_call_operand.vmem [shape: bf16[512,32], index: 0, kind: input, shape index: {}]   ;;  %s20589_s1 = inlined_call_operand.hbm [shape: bf16[32,128], index: 1, kind: input, shape index: {}]   ;;  %s20590_s2 = inlined_call_operand.hbm [shape: f32[1,128], index: 2, kind: input, shape index: {}]   ;;  %s20591_s3 = inlined_call_operand.hbm [shape: bf16[1152,128], index: 3, kind: input, shape index: {}]   ;;  %s20592_s4 = inlined_call_operand.hbm [shape: f32[1,128], index: 4, kind: input, shape index: {}]   ;;  %s20593_s5 = inlined_call_operand.hbm [shape: bf16[1152,256], index: 5, kind: input, shape index: {}]   ;;  %s20594_s6 = inlined_call_operand.vmem [shape: f32[1,256], index: 6, kind: input, shape index: {}]   ;;  %s20595_s7 = inlined_call_operand.vmem [shape: bf16[2304,256], index: 7, kind: input, shape index: {}]   ;;  %s20596_s8 = inlined_call_operand.vmem [shape: f32[1,256], index: 8, kind: input, shape index: {}]   ;;  %s20597_s9 = inlined_call_operand.hbm [shape: bf16[256,1024], index: 9, kind: input, shape index: {}]   ;;  %s20598_s10 = inlined_call_operand.vmem [shape: f32[1,1024], index: 10, kind: input, shape index: {}]   ;;  %s20599_s11 = inlined_call_operand.hbm [shape: bf16[1024,512], index: 11, kind: input, shape index: {}]   ;;  %s20600_s12 = inlined_call_operand.vmem [shape: f32[1,512], index: 12, kind: input, shape index: {}]   ;;  %s20601_s13 = inlined_call_operand.hbm [shape: bf16[512,128], index: 13, kind: input, shape index: {}]   ;;  %s20602_s14 = inlined_call_operand.vmem [shape: f32[1,128], index: 14, kind: input, shape index: {}]   ;;  %s20603_s15 = inlined_call_operand.hbm [shape: f32[2,128], index: 15, kind: output, shape index: {}]  }
   0x1   :  { %21 = vsyncpa [#allocation9], 0 }
   0x2   :  { %22 = vsyncpa [#allocation12], 0 }
   0x3   :  { %23 = vsyncpa [#allocation15], 0 }
   0x4   :  { %24 = vsyncpa [#allocation18], 0 }
   0x5   :  { %25 = vsyncpa [#allocation7], 0  ;;  %s17363_s18 = smov [#allocation8]   ;;  %s17364_s20 = smov [#allocation11]  }
   0x6   :  { %s46_s19 = sshll.u32 %s17363_s18, 4  ;;  %s68_s21 = sshll.u32 %s17364_s20, 4  ;;  %s47_s19 = int_to_ptr.vmem [resolvable:$true] %s46_s19  ;;  %s69_s21 = int_to_ptr.vmem [resolvable:$true] %s68_s21 }
   0x7   :  { %s17153_s24 = scalar_lea.hbm %s20590_s2, 16 }
   0x8   :  { %p17154_p0 = scmp.ne.s32.totalorder %s20590_s2, %s17153_s24  ;;  %p17157_p1 = scmp.lt.u32.totalorder %s17153_s24, %s20590_s2 }
   0xa   :  { %p17159_p2 = pnand %p17157_p1, %p17154_p0 }
   0xc   :  { %17162 = shalt.err (!%p17159_p2)
}
   0xd   :  { %s17163_s29 = scalar_lea.vmem %s47_s19, 16  ;;  %s17167_s30 = scalar_lea.vmem %s47_s19, 32 }
   0xe   :  { %p17164_p3 = scmp.ne.s32.totalorder %s47_s19, %s17163_s29  ;;  %p17168_p4 = scmp.lt.s32.totalorder %s47_s19, %s47_s19 }
   0xf   :  { %p17169_p5 = scmp.lt.s32.totalorder %s17167_s30, %s17163_s29 }
  0x11   :  { %p17170_p6 = por %p17169_p5, %p17168_p4 }
  0x13   :  { %p17171_p7 = pnand %p17170_p6, %p17164_p3 }
  0x15   :  { %17174 = shalt.err (!%p17171_p7)
}
  0x16   :  { %49 = dma.hbm_to_vmem [thread:$0]  %s20590_s2, 16, %s47_s19, [#allocation9]  }
  0x17   :  { %s17175_s22 = scalar_lea.hbm %s20592_s4, 16 }
  0x18   :  { %p17176_p8 = scmp.ne.s32.totalorder %s20592_s4, %s17175_s22  ;;  %p17179_p9 = scmp.lt.u32.totalorder %s17175_s22, %s20592_s4 }
  0x1a   :  { %p17181_p10 = pnand %p17179_p9, %p17176_p8 }
  0x1c   :  { %17184 = shalt.err (!%p17181_p10)
}
  0x1d   :  { %s17185_s27 = scalar_lea.vmem %s69_s21, 16  ;;  %s17189_s28 = scalar_lea.vmem %s69_s21, 32 }
  0x1e   :  { %p17186_p11 = scmp.ne.s32.totalorder %s69_s21, %s17185_s27  ;;  %p17190_p12 = scmp.lt.s32.totalorder %s69_s21, %s69_s21 }
  0x1f   :  { %p17191_p13 = scmp.lt.s32.totalorder %s17189_s28, %s17185_s27 }
  0x21   :  { %p17192_p0 = por %p17191_p13, %p17190_p12 }
  0x23   :  { %p17193_p1 = pnand %p17192_p0, %p17186_p11 }
  0x25   :  { %17196 = shalt.err (!%p17193_p1)
}
  0x26   :  { %71 = dma.hbm_to_vmem [thread:$0]  %s20592_s4, 16, %s69_s21, [#allocation12]  }
  0x27   :  { %s17365_s29 = smov [#allocation14]   ;;  %s17197_s18 = scalar_lea.hbm %s20597_s9, 16384 }
  0x28   :  { %s95_s30 = sshll.u32 %s17365_s29, 4  ;;  %p17198_p2 = scmp.ne.s32.totalorder %s20597_s9, %s17197_s18  ;;  %s96_s30 = int_to_ptr.vmem [resolvable:$true] %s95_s30 }
  0x29   :  { %p17201_p3 = scmp.lt.u32.totalorder %s17197_s18, %s20597_s9 }
  0x2b   :  { %p17203_p4 = pnand %p17201_p3, %p17198_p2 }
  0x2d   :  { %17206 = shalt.err (!%p17203_p4)
}
  0x2e   :  { %s17207_s25 = scalar_lea.vmem %s96_s30, 16384  ;;  %p17212_p6 = scmp.lt.s32.totalorder %s96_s30, %s96_s30 }
  0x2f   :  { %p17208_p5 = scmp.ne.s32.totalorder %s96_s30, %s17207_s25  ;;  %p17213_p7 = scmp.lt.s32.totalorder %s17207_s25, %s17207_s25 }
  0x31   :  { %p17214_p8 = por %p17213_p7, %p17212_p6 }
  0x33   :  { %p17215_p9 = pnand %p17214_p8, %p17208_p5 }
  0x35   :  { %17218 = shalt.err (!%p17215_p9)
}
  0x36   :  { %s17366_s4 = smov 512   ;;  %s17367_s21 = smov 32  }
  0x37   :  { %101 = dma.hbm_to_vmem [thread:$0]  %s20597_s9, 16384, %s96_s30, [#allocation15], %s17366_s4, %s17366_s4, %s17367_s21  }
  0x38   :  { %s17368_s28 = smov [#allocation5]   ;;  %s17219_s16 = scalar_lea.hbm %s20589_s1, 256 }
  0x39   :  { %s33_s2 = sshll.u32 %s17368_s28, 4  ;;  %p17220_p10 = scmp.ne.s32.totalorder %s20589_s1, %s17219_s16  ;;  %s34_s2 = int_to_ptr.vmem [resolvable:$true] %s33_s2 }
  0x3a   :  { %p17223_p11 = scmp.lt.u32.totalorder %s17219_s16, %s20589_s1 }
  0x3c   :  { %p17225_p12 = pnand %p17223_p11, %p17220_p10 }
  0x3e   :  { %17228 = shalt.err (!%p17225_p12)
}
  0x3f   :  { %s17229_s23 = scalar_lea.vmem %s34_s2, 256  ;;  %p17234_p0 = scmp.lt.s32.totalorder %s34_s2, %s34_s2 }
  0x40   :  { %p17230_p13 = scmp.ne.s32.totalorder %s34_s2, %s17229_s23  ;;  %p17235_p1 = scmp.lt.s32.totalorder %s17229_s23, %s17229_s23 }
  0x42   :  { %p17236_p2 = por %p17235_p1, %p17234_p0 }
  0x44   :  { %p17237_p3 = pnand %p17236_p2, %p17230_p13 }
  0x46   :  { %17240 = shalt.err (!%p17237_p3)
}
  0x47   :  { %s17369_s9 = smov 64   ;;  %s17370_s30 = smov 4  }
  0x48   :  { %39 = dma.hbm_to_vmem [thread:$0]  %s20589_s1, 256, %s34_s2, [#allocation6], %s17369_s9, %s17369_s9, %s17370_s30  }
  0x49   :  { %s17371_s4 = smov [#allocation10]   ;;  %s17372_s26 = smov [#allocation13]  }
  0x4a   :  { %s55_s21 = sshll.u32 %s17371_s4, 4  ;;  %s77_s27 = sshll.u32 %s17372_s26, 4  ;;  %s56_s21 = int_to_ptr.vmem [resolvable:$true] %s55_s21  ;;  %s17515_s27 = int_to_ptr.vmem [resolvable:$true] %s77_s27 }
  0x4b   :  { %s17241_s29 = scalar_lea.hbm %s20591_s3, 9216 }
  0x4c   :  { %p17242_p4 = scmp.ne.s32.totalorder %s20591_s3, %s17241_s29  ;;  %p17245_p5 = scmp.lt.u32.totalorder %s17241_s29, %s20591_s3 }
  0x4e   :  { %p17247_p6 = pnand %p17245_p5, %p17242_p4 }
  0x50   :  { %17250 = shalt.err (!%p17247_p6)
}
  0x51   :  { %s17251_s1 = scalar_lea.vmem %s56_s21, 9216  ;;  %p17256_p8 = scmp.lt.s32.totalorder %s56_s21, %s56_s21 }
  0x52   :  { %p17252_p7 = scmp.ne.s32.totalorder %s56_s21, %s17251_s1  ;;  %p17257_p9 = scmp.lt.s32.totalorder %s17251_s1, %s17251_s1 }
  0x54   :  { %p17258_p10 = por %p17257_p9, %p17256_p8 }
  0x56   :  { %p17259_p11 = pnand %p17258_p10, %p17252_p7 }
  0x58   :  { %17262 = shalt.err (!%p17259_p11)
}
  0x59   :  { %61 = dma.hbm_to_vmem [thread:$0]  %s20591_s3, 9216, %s56_s21, [#allocation9], %s17369_s9, %s17369_s9, %s17370_s30  }
  0x5a   :  { %s17263_s25 = scalar_lea.hbm %s20593_s5, 18432 }
  0x5b   :  { %p17264_p12 = scmp.ne.s32.totalorder %s20593_s5, %s17263_s25  ;;  %p17267_p13 = scmp.lt.u32.totalorder %s17263_s25, %s20593_s5 }
  0x5d   :  { %p17269_p0 = pnand %p17267_p13, %p17264_p12 }
  0x5f   :  { %17272 = shalt.err (!%p17269_p0)
}
  0x60   :  { %s17273_s29 = scalar_lea.vmem %s17515_s27, 18432  ;;  %p17278_p2 = scmp.lt.s32.totalorder %s17515_s27, %s17515_s27 }
  0x61   :  { %p17274_p1 = scmp.ne.s32.totalorder %s17515_s27, %s17273_s29  ;;  %p17279_p3 = scmp.lt.s32.totalorder %s17273_s29, %s17273_s29 }
  0x63   :  { %p17280_p4 = por %p17279_p3, %p17278_p2 }
  0x65   :  { %p17281_p5 = pnand %p17280_p4, %p17274_p1 }
  0x67   :  { %17284 = shalt.err (!%p17281_p5)
}
  0x68   :  { %s17373_s3 = smov 128   ;;  %s17374_s21 = smov 8  }
  0x69   :  { %83 = dma.hbm_to_vmem [thread:$0]  %s20593_s5, 18432, %s17515_s27, [#allocation12], %s17373_s3, %s17373_s3, %s17374_s21  }
  0x6a   :  { %s17375_s18 = smov [#allocation16]   ;;  %s17285_s22 = scalar_lea.hbm %s20599_s11, 32768 }
  0x6b   :  { %s109_s20 = sshll.u32 %s17375_s18, 4  ;;  %p17286_p6 = scmp.ne.s32.totalorder %s20599_s11, %s17285_s22  ;;  %s110_s20 = int_to_ptr.vmem [resolvable:$true] %s109_s20 }
  0x6c   :  { %p17289_p7 = scmp.lt.u32.totalorder %s17285_s22, %s20599_s11 }
  0x6e   :  { %p17291_p8 = pnand %p17289_p7, %p17286_p6 }
  0x70   :  { %17294 = shalt.err (!%p17291_p8)
}
  0x71   :  { %s17295_s26 = scalar_lea.vmem %s110_s20, 32768  ;;  %p17300_p10 = scmp.lt.s32.totalorder %s110_s20, %s110_s20 }
  0x72   :  { %p17296_p9 = scmp.ne.s32.totalorder %s110_s20, %s17295_s26  ;;  %p17301_p11 = scmp.lt.s32.totalorder %s17295_s26, %s17295_s26 }
  0x74   :  { %p17302_p12 = por %p17301_p11, %p17300_p10 }
  0x76   :  { %p17303_p13 = pnand %p17302_p12, %p17296_p9 }
  0x78   :  { %17306 = shalt.err (!%p17303_p13)
}
  0x79   :  { %s17376_s5 = smov 256   ;;  %s17377_s27 = smov 16  }
  0x7a   :  { %115 = dma.hbm_to_vmem [thread:$0]  %s20599_s11, 32768, %s110_s20, [#allocation15], %s17376_s5, %s17376_s5, %s17377_s27  }
  0x7b   :  { %s17378_s29 = smov [#allocation17]   ;;  %s17307_s17 = scalar_lea.hbm %s20601_s13, 4096 }
  0x7c   :  { %s123_s3 = sshll.u32 %s17378_s29, 4  ;;  %p17308_p0 = scmp.ne.s32.totalorder %s20601_s13, %s17307_s17  ;;  %s124_s3 = int_to_ptr.vmem [resolvable:$true] %s123_s3 }
  0x7d   :  { %p17311_p1 = scmp.lt.u32.totalorder %s17307_s17, %s20601_s13 }
  0x7f   :  { %p17313_p2 = pnand %p17311_p1, %p17308_p0 }
  0x81   :  { %17316 = shalt.err (!%p17313_p2)
}
  0x82   :  { %s17317_s23 = scalar_lea.vmem %s124_s3, 4096  ;;  %p17322_p4 = scmp.lt.s32.totalorder %s124_s3, %s124_s3 }
  0x83   :  { %p17318_p3 = scmp.ne.s32.totalorder %s124_s3, %s17317_s23  ;;  %p17323_p5 = scmp.lt.s32.totalorder %s17317_s23, %s17317_s23 }
  0x85   :  { %p17324_p6 = por %p17323_p5, %p17322_p4 }
  0x87   :  { %p17325_p7 = pnand %p17324_p6, %p17318_p3 }
  0x89   :  { %17328 = shalt.err (!%p17325_p7)
}
  0x8a   :  { %129 = dma.hbm_to_vmem [thread:$0]  %s20601_s13, 4096, %s124_s3, [#allocation18], %s17369_s9, %s17369_s9, %s17370_s30  }
  0x8b   :  { %17351 = dma.done.wait [#allocation6], 256  }
  0x8c   :  { %17352 = vsyncadd [#allocation6], 4294967040 }
  0x8d   :  { %17353 = dma.done.wait [#allocation9], 9232  }
  0x8e   :  { %17354 = vsyncadd [#allocation9], 4294958064 }
  0x8f   :  { %17355 = dma.done.wait [#allocation12], 18448  }
  0x90   :  { %17356 = vsyncadd [#allocation12], 4294948848 }
  0x91   :  { %17357 = dma.done.wait [#allocation15], 49152  }
  0x92   :  { %17358 = vsyncadd [#allocation15], 4294918144 }
  0x93   :  { %17359 = dma.done.wait [#allocation18], 4096  }
  0x94   :  { %17360 = vsyncadd [#allocation18], 4294963200  ;;  %v15951_v0 = vld [vmem:[#allocation5] sm:$0xff]   ;;  %v15952_v1 = vld [vmem:[#allocation5 + $0x8] sm:$0xff]   ;;  %vm404_vm0 = vcmask 261120   ;;  %v17379_v58 = vmov 0.0  }
  0x95   :  { %15728 = vmatprep.subr.bf16.mxu0 %v15951_v0  ;;  %v15953_v2 = vld [vmem:[%s20588_s0] sm:$0xff]   ;;  %v15954_v3 = vld [vmem:[%s20588_s0 + $0x8] sm:$0xff]   ;;  %v15955_v4 = vld [vmem:[%s20588_s0 + $0x10] sm:$0xff]   ;;  %3414 = vst [vmem:[#allocation2] sm:$0xff] %v17379_v58  ;;  %vm4327_vm1 = vcmask 1046528   ;;  %vm4392_vm2 = vcmask 1045504  }
  0x96   :  { %15729 = vmatpush3.bf16.msra.mxu0 %v15951_v0  ;;  %15732 = vmatprep.mubr.msk.bf16.mxu0 %vm404_vm0, %v15953_v2  ;;  %v15956_v5 = vld [vmem:[%s20588_s0 + $0x18] sm:$0xff]   ;;  %v15957_v6 = vld [vmem:[%s20588_s0 + $0x20] sm:$0xff]   ;;  %v15958_v7 = vld [vmem:[%s20588_s0 + $0x28] sm:$0xff]   ;;  %3415 = vst [vmem:[#allocation2 + $0x8] sm:$0x3] %v17379_v58  ;;  %vm4103_vm3 = vcmask 1041409  }
  0x97   :  { %15730 = vmatprep.subr.bf16.mxu0 %v15952_v1  ;;  %v15959_v8 = vld [vmem:[%s20588_s0 + $0x30] sm:$0xff]   ;;  %v15960_v9 = vld [vmem:[%s20588_s0 + $0x38] sm:$0xff]   ;;  %v15961_v10 = vld [vmem:[%s20588_s0 + $0x40] sm:$0xff]   ;;  %3424 = vst [vmem:[#allocation2 + $0x10] sm:$0x1] %v17379_v58  ;;  %vm4105_vm4 = vcmask 1042434  }
  0x98   :  { %v15962_v11 = vld [vmem:[%s20588_s0 + $0x48] sm:$0xff]   ;;  %v15963_v12 = vld [vmem:[%s20588_s0 + $0x50] sm:$0xff]   ;;  %v15964_v13 = vld [vmem:[%s20588_s0 + $0x58] sm:$0xff]   ;;  %3425 = vst [vmem:[#allocation2 + $0x20] sm:$0x1] %v17379_v58  ;;  %vm4107_vm5 = vcmask 1043459  }
  0x99   :  { %v15965_v14 = vld [vmem:[%s20588_s0 + $0x60] sm:$0xff]   ;;  %v15966_v15 = vld [vmem:[%s20588_s0 + $0x68] sm:$0xff]   ;;  %v15967_v16 = vld [vmem:[%s20588_s0 + $0x70] sm:$0xff]   ;;  %3444 = vst [vmem:[#allocation2 + $0x19] sm:$0x1] %v17379_v58  ;;  %vm4109_vm6 = vcmask 1044484  }
  0x9a   :  { %15731 = vmatpush3.bf16.msra.mxu0 %v15952_v1  ;;  %v15968_v17 = vld [vmem:[%s20588_s0 + $0x78] sm:$0xff]   ;;  %v15969_v18 = vld [vmem:[%s20588_s0 + $0x80] sm:$0xff]   ;;  %v15970_v19 = vld [vmem:[%s20588_s0 + $0x88] sm:$0xff]   ;;  %3445 = vst [vmem:[#allocation2 + $0x29] sm:$0x1] %v17379_v58  ;;  %vm4111_vm7 = vcmask 1045509  }
  0x9b   :  { %v15971_v20 = vld [vmem:[%s20588_s0 + $0x90] sm:$0xff]   ;;  %v15972_v21 = vld [vmem:[%s20588_s0 + $0x98] sm:$0xff]   ;;  %v15973_v22 = vld [vmem:[%s20588_s0 + $0xa0] sm:$0xff]   ;;  %3416 = vst [vmem:[#allocation2 + $0xa0] sm:$0xff] %v17379_v58  ;;  %vm4113_vm8 = vcmask 1046534   ;;  %vm4115_vm9 = vcmask 1047559  }
  0x9c   :  { %v15974_v23 = vld [vmem:[%s20588_s0 + $0xa8] sm:$0xff]   ;;  %v15975_v24 = vld [vmem:[%s20588_s0 + $0xb0] sm:$0xff]   ;;  %v15976_v25 = vld [vmem:[%s20588_s0 + $0xb8] sm:$0xff]   ;;  %3417 = vst [vmem:[#allocation2 + $0xa8] sm:$0x3] %v17379_v58  ;;  %s17383_s9 = smov [#allocation19]  }
  0x9d   :  { %15733 = vmatmul.mubr.msk.bf16.vlgmr.msra.gmra.mrb[0].mxu0 %vm404_vm0, %v15954_v3  ;;  %v15977_v26 = vld [vmem:[%s20588_s0 + $0xc0] sm:$0xff]   ;;  %v15978_v27 = vld [vmem:[%s20588_s0 + $0xc8] sm:$0xff]   ;;  %v15979_v28 = vld [vmem:[%s20588_s0 + $0xd0] sm:$0xff]   ;;  %3419 = vst [vmem:[#allocation2 + $0x90] sm:$0xff] %v17379_v58  ;;  %v17380_v3 = vmov 1983009808  }
  0x9e   :  { %15736 = vmatprep.mubr.msk.bf16.mxu0 %vm404_vm0, %v15955_v4  ;;  %v15985_v29 = vld [vmem:[#allocation10 + $0x40] sm:$0xff]   ;;  %v15981_v31 = vld [vmem:[%s20588_s0 + $0xe0] sm:$0xff]   ;;  %v15982_v33 = vld [vmem:[%s20588_s0 + $0xe8] sm:$0xff]   ;;  %3420 = vst [vmem:[#allocation2 + $0x98] sm:$0x3] %v17379_v58  ;;  %v920_v4 = vunpack.c.l.s4 %v17380_v3  ;;  %s13992_s30 = sshll.u32 %s17383_s9, 4  ;;  %s13993_s30 = int_to_ptr.vmem [resolvable:$true] %s13992_s30 }
  0x9f   :  { %v15980_v30 = vld [vmem:[%s20588_s0 + $0xd8] sm:$0xff]   ;;  %15412 = vmatprep.subr.bf16.mxu1 %v15985_v29  ;;  %v15983_v34 = vld [vmem:[%s20588_s0 + $0xf0] sm:$0xff]   ;;  %v15989_v38 = vld [vmem:[#allocation10 + $0x50] sm:$0xff]   ;;  %3421 = vst [vmem:[#allocation2 + $0x130] sm:$0xff] %v17379_v58  ;;  %s17329_s4 = scalar_lea.vmem %s13993_s30, 32  ;;  %p17334_p9 = scmp.lt.s32.totalorder %s13993_s30, %s13993_s30 }
  0xa0   :  { %v15986_v32 = vld [vmem:[#allocation10] sm:$0xff]   ;;  %v15987_v36 = vld [vmem:[#allocation10 + $0x48] sm:$0xff]   ;;  %v15991_v40 = vld [vmem:[#allocation10 + $0x10] sm:$0xff]   ;;  %3422 = vst [vmem:[#allocation2 + $0x138] sm:$0x3] %v17379_v58  ;;  %p17330_p8 = scmp.ne.s32.totalorder %s13993_s30, %s17329_s4  ;;  %p17335_p10 = scmp.lt.s32.totalorder %s17329_s4, %s17329_s4 }
  0xa1   :  { %15413 = vmatpush3.bf16.msra.mxu1 %v15986_v32  ;;  %v15984_v35 = vld [vmem:[%s20588_s0 + $0xf8] sm:$0xff]   ;;  %v15993_v42 = vld [vmem:[#allocation10 + $0x58] sm:$0xff]   ;;  %v15998_v47 = vld [vmem:[#allocation10 + $0x150] sm:$0xff]   ;;  %3426 = vst [vmem:[#allocation2 + $0x30] sm:$0x1] %v17379_v58 }
  0xa2   :  { %v15988_v37 = vld [vmem:[#allocation10 + $0x8] sm:$0xff]   ;;  %15414 = vmatprep.subr.bf16.mxu1 %v15987_v36  ;;  %v15990_v39 = vld [vmem:[#allocation10 + $0x140] sm:$0xff]   ;;  %v15995_v44 = vld [vmem:[#allocation10 + $0x18] sm:$0xff]   ;;  %3427 = vst [vmem:[#allocation2 + $0x40] sm:$0x1] %v17379_v58  ;;  %p17336_p11 = por %p17335_p10, %p17334_p9 }
  0xa3   :  { %v15992_v41 = vld [vmem:[#allocation10 + $0x100] sm:$0xff]   ;;  %15540 = vmatprep.subr.bf16.mxu0 %v15990_v39  ;;  %v15994_v43 = vld [vmem:[#allocation10 + $0x148] sm:$0xff]   ;;  %v16000_v49 = vld [vmem:[#allocation10 + $0x110] sm:$0xff]   ;;  %3428 = vst [vmem:[#allocation2 + $0x50] sm:$0x1] %v17379_v58 }
  0xa4   :  { %15541 = vmatpush3.bf16.msra.mxu0 %v15992_v41  ;;  %v15996_v45 = vld [vmem:[#allocation10 + $0x108] sm:$0xff]   ;;  %v15997_v46 = vld [vmem:[#allocation10 + $0x60] sm:$0xff]   ;;  %v16002_v51 = vld [vmem:[#allocation10 + $0x158] sm:$0xff]   ;;  %3429 = vst [vmem:[#allocation2 + $0x60] sm:$0x1] %v17379_v58  ;;  %p17337_p12 = pnand %p17336_p11, %p17330_p8 }
  0xa5   :  { %15737 = vmatmul.mubr.msk.bf16.gmra.mrb[4].mxu0 %vm404_vm0, %v15956_v5  ;;  %15415 = vmatpush3.bf16.msra.mxu1 %v15988_v37  ;;  %v15999_v48 = vld [vmem:[#allocation10 + $0x20] sm:$0xff]   ;;  %v16001_v50 = vld [vmem:[#allocation10 + $0x68] sm:$0xff]   ;;  %v16004_v53 = vld [vmem:[#allocation10 + $0x118] sm:$0xff]   ;;  %3430 = vst [vmem:[#allocation2 + $0x70] sm:$0x1] %v17379_v58  ;;  %v20604_v5 = vlaneseq }
  0xa6   :  { %15740 = vmatprep.mubr.msk.bf16.mxu0 %vm404_vm0, %v15957_v6  ;;  %15416 = vmatprep.subr.bf16.mxu1 %v15989_v38  ;;  %v16003_v52 = vld [vmem:[#allocation10 + $0x28] sm:$0xff]   ;;  %v16005_v54 = vld [vmem:[#allocation10 + $0x70] sm:$0xff]   ;;  %v16006_v55 = vld [vmem:[#allocation10 + $0x160] sm:$0xff]   ;;  %3431 = vst [vmem:[#allocation2 + $0x80] sm:$0x1] %v17379_v58 }
  0xa7   :  { %15542 = vmatprep.subr.bf16.mxu0 %v15994_v43  ;;  %v16007_v56 = vld [vmem:[#allocation10 + $0x30] sm:$0xff]   ;;  %v16008_v57 = vld [vmem:[#allocation10 + $0x120] sm:$0xff]   ;;  %3434 = vst [vmem:[#allocation2 + $0xb0] sm:$0x1] %v17379_v58  ;;  %3435 = vst [vmem:[#allocation2 + $0xc0] sm:$0x1] %v17379_v58 }
  0xa8   :  { %15543 = vmatpush3.bf16.msra.mxu0 %v15996_v45  ;;  %3436 = vst [vmem:[#allocation2 + $0xd0] sm:$0x1] %v17379_v58  ;;  %3437 = vst [vmem:[#allocation2 + $0xe0] sm:$0x1] %v17379_v58  ;;  %v16009_v59 = vld [vmem:[#allocation10 + $0x78] sm:$0xff]   ;;  %v16010_v60 = vld [vmem:[#allocation10 + $0x168] sm:$0xff]  }
  0xa9   :  { %15417 = vmatpush3.bf16.msra.mxu1 %v15991_v40  ;;  %15544 = vmatprep.subr.bf16.mxu0 %v15998_v47  ;;  %3438 = vst [vmem:[#allocation2 + $0xf0] sm:$0x1] %v17379_v58  ;;  %3439 = vst [vmem:[#allocation2 + $0x100] sm:$0x1] %v17379_v58  ;;  %v16011_v61 = vld [vmem:[#allocation10 + $0x38] sm:$0xff]   ;;  %v16012_v62 = vld [vmem:[#allocation10 + $0x128] sm:$0xff]  }
  0xaa   :  { %15418 = vmatprep.subr.bf16.mxu1 %v15993_v42  ;;  %3440 = vst [vmem:[#allocation2 + $0x110] sm:$0x1] %v17379_v58  ;;  %3441 = vst [vmem:[#allocation2 + $0x120] sm:$0x1] %v17379_v58  ;;  %v16013_v63 = vld [vmem:[#allocation10 + $0x170] sm:$0xff]   ;;  %v16015_v1 = vld [vmem:[#allocation10 + $0x178] sm:$0xff]  }
  0xab   :  { %3446 = vst [vmem:[#allocation2 + $0x39] sm:$0x1] %v17379_v58  ;;  %3447 = vst [vmem:[#allocation2 + $0x49] sm:$0x1] %v17379_v58  ;;  %v16014_v0 = vld [vmem:[#allocation10 + $0x130] sm:$0xff]   ;;  %v16016_v2 = vld [vmem:[#allocation10 + $0x138] sm:$0xff]  }
  0xac   :  { %15545 = vmatpush3.bf16.msra.mxu0 %v16000_v49  ;;  %3448 = vst [vmem:[#allocation2 + $0x59] sm:$0x1] %v17379_v58  ;;  %3449 = vst [vmem:[#allocation2 + $0x69] sm:$0x1] %v17379_v58 }
  0xad   :  { %15741 = vmatmul.mubr.msk.bf16.gmra.mrb[8].mxu0 %vm404_vm0, %v15958_v7  ;;  %15419 = vmatpush3.bf16.msra.mxu1 %v15995_v44  ;;  %3450 = vst [vmem:[#allocation2 + $0x79] sm:$0x1] %v17379_v58  ;;  %3451 = vst [vmem:[#allocation2 + $0x89] sm:$0x1] %v17379_v58  ;;  %v17784_v7 = vld [vmem:[#allocation8] ss:$0 sm:$0xff] }
  0xae   :  { %15744 = vmatprep.mubr.msk.bf16.mxu0 %vm404_vm0, %v15959_v8  ;;  %15420 = vmatprep.subr.bf16.mxu1 %v15997_v46  ;;  %3454 = vst [vmem:[#allocation2 + $0xb9] sm:$0x1] %v17379_v58  ;;  %3455 = vst [vmem:[#allocation2 + $0xc9] sm:$0x1] %v17379_v58 }
  0xaf   :  { %15546 = vmatprep.subr.bf16.mxu0 %v16002_v51  ;;  %3456 = vst [vmem:[#allocation2 + $0xd9] sm:$0x1] %v17379_v58  ;;  %3457 = vst [vmem:[#allocation2 + $0xe9] sm:$0x1] %v17379_v58 }
  0xb0   :  { %15547 = vmatpush3.bf16.msra.mxu0 %v16004_v53  ;;  %3458 = vst [vmem:[#allocation2 + $0xf9] sm:$0x1] %v17379_v58  ;;  %3459 = vst [vmem:[#allocation2 + $0x109] sm:$0x1] %v17379_v58 }
  0xb1   :  { %15421 = vmatpush3.bf16.msra.mxu1 %v15999_v48  ;;  %15548 = vmatprep.subr.bf16.mxu0 %v16006_v55  ;;  %3460 = vst [vmem:[#allocation2 + $0x119] sm:$0x1] %v17379_v58  ;;  %3461 = vst [vmem:[#allocation2 + $0x129] sm:$0x1] %v17379_v58 }
  0xb2   :  { %15422 = vmatprep.subr.bf16.mxu1 %v16001_v50  ;;  %6275 = vst [vmem:[#allocation3] sm:$0x3f] %v17379_v58  ;;  %6276 = vst [vmem:[#allocation3 + $0x30] sm:$0x3f] %v17379_v58 }
  0xb3   :  { %6278 = vst [vmem:[#allocation3 + $0x28] sm:$0x3f] %v17379_v58  ;;  %6279 = vst [vmem:[#allocation3 + $0x58] sm:$0x3f] %v17379_v58 }
  0xb4   :  { %15549 = vmatpush3.bf16.msra.mxu0 %v16008_v57  ;;  %6281 = vst [vmem:[#allocation3 + $0x8] sm:$0x1] %v17379_v58  ;;  %6282 = vst [vmem:[#allocation3 + $0x10] sm:$0x1] %v17379_v58 }
  0xb5   :  { %15745 = vmatmul.mubr.msk.bf16.gmra.mrb[12].mxu0 %vm404_vm0, %v15960_v9  ;;  %15423 = vmatpush3.bf16.msra.mxu1 %v16003_v52  ;;  %6283 = vst [vmem:[#allocation3 + $0x18] sm:$0x1] %v17379_v58  ;;  %6284 = vst [vmem:[#allocation3 + $0x20] sm:$0x1] %v17379_v58  ;;  %v921_v9 = vunpack.c.0.s8 %v920_v4 }
  0xb6   :  { %15748 = vmatprep.mubr.msk.bf16.mxu0 %vm404_vm0, %v15961_v10  ;;  %15424 = vmatprep.subr.bf16.mxu1 %v16005_v54  ;;  %6287 = vst [vmem:[#allocation3 + $0x38] sm:$0x1] %v17379_v58  ;;  %6288 = vst [vmem:[#allocation3 + $0x40] sm:$0x1] %v17379_v58  ;;  %v17787_v10 = vshrl.u32 %v20604_v5, 7 }
  0xb7   :  { %6289 = vst [vmem:[#allocation3 + $0x48] sm:$0x1] %v17379_v58  ;;  %6290 = vst [vmem:[#allocation3 + $0x50] sm:$0x1] %v17379_v58  ;;  %15550 = vmatprep.subr.bf16.mxu0 %v16010_v60 }
  0xb8   :  { %6293 = vst [vmem:[#allocation3 + $0xd] sm:$0x1] %v17379_v58  ;;  %6294 = vst [vmem:[#allocation3 + $0x15] sm:$0x1] %v17379_v58  ;;  %15551 = vmatpush3.bf16.msra.mxu0 %v16012_v62 }
  0xb9   :  { %15425 = vmatpush3.bf16.msra.mxu1 %v16007_v56  ;;  %6295 = vst [vmem:[#allocation3 + $0x1d] sm:$0x1] %v17379_v58  ;;  %6296 = vst [vmem:[#allocation3 + $0x25] sm:$0x1] %v17379_v58  ;;  %15552 = vmatprep.subr.bf16.mxu0 %v16013_v63 }
  0xba   :  { %6299 = vst [vmem:[#allocation3 + $0x3d] sm:$0x1] %v17379_v58  ;;  %6300 = vst [vmem:[#allocation3 + $0x45] sm:$0x1] %v17379_v58  ;;  %15426 = vmatprep.subr.bf16.mxu1 %v16009_v59 }
  0xbb   :  { %6301 = vst [vmem:[#allocation3 + $0x4d] sm:$0x1] %v17379_v58  ;;  %6302 = vst [vmem:[#allocation3 + $0x55] sm:$0x1] %v17379_v58 }
  0xbc   :  { %7980 = vst [vmem:[#allocation4] sm:$0xff] %v17379_v58  ;;  %7981 = vst [vmem:[#allocation4 + $0x20] sm:$0xff] %v17379_v58  ;;  %15553 = vmatpush3.bf16.msra.mxu0 %v16014_v0 }
  0xbd   :  { %15749 = vmatmul.mubr.msk.bf16.gmra.mrb[16].mxu0 %vm404_vm0, %v15962_v11  ;;  %7983 = vst [vmem:[#allocation4 + $0x18] sm:$0xff] %v17379_v58  ;;  %7984 = vst [vmem:[#allocation4 + $0x38] sm:$0xff] %v17379_v58  ;;  %15427 = vmatpush3.bf16.msra.mxu1 %v16011_v61 }
  0xbe   :  { %15752 = vmatprep.mubr.msk.bf16.mxu0 %vm404_vm0, %v15963_v12  ;;  %3423 = vst [vmem:[#allocation2] sm:$0x1] %v17379_v58  ;;  %3443 = vst [vmem:[#allocation2 + $0x9] sm:$0x1] %v17379_v58  ;;  %15554 = vmatprep.subr.bf16.mxu0 %v16015_v1 }
  0xbf   :  { %3432 = vst [vmem:[#allocation2 + $0x90] sm:$0x1] %v17379_v58  ;;  %3433 = vst [vmem:[#allocation2 + $0xa0] sm:$0x1] %v17379_v58 }
  0xc0   :  { %3442 = vst [vmem:[#allocation2 + $0x130] sm:$0x1] %v17379_v58  ;;  %3452 = vst [vmem:[#allocation2 + $0x99] sm:$0x1] %v17379_v58  ;;  %15555 = vmatpush3.bf16.msra.mxu0 %v16016_v2 }
  0xc1   :  { %3453 = vst [vmem:[#allocation2 + $0xa9] sm:$0x1] %v17379_v58  ;;  %3462 = vst [vmem:[#allocation2 + $0x139] sm:$0x1] %v17379_v58 }
  0xc2   :  { %6280 = vst [vmem:[#allocation3] sm:$0x1] %v17379_v58  ;;  %6285 = vst [vmem:[#allocation3 + $0x28] sm:$0x1] %v17379_v58 }
  0xc3   :  { %6286 = vst [vmem:[#allocation3 + $0x30] sm:$0x1] %v17379_v58  ;;  %6291 = vst [vmem:[#allocation3 + $0x58] sm:$0x1] %v17379_v58 }
  0xc4   :  { %6292 = vst [vmem:[#allocation3 + $0x5] sm:$0x1] %v17379_v58  ;;  %6297 = vst [vmem:[#allocation3 + $0x2d] sm:$0x1] %v17379_v58 }
  0xc5   :  { %15753 = vmatmul.mubr.msk.bf16.gmra.mrb[20].mxu0 %vm404_vm0, %v15964_v13  ;;  %6298 = vst [vmem:[#allocation3 + $0x35] sm:$0x1] %v17379_v58  ;;  %6303 = vst [vmem:[#allocation3 + $0x5d] sm:$0x1] %v17379_v58  ;;  %v4255_v6 = vld [vmem:[#allocation2] sm:$0xff] }
  0xc6   :  { %15756 = vmatprep.mubr.msk.bf16.mxu0 %vm404_vm0, %v15965_v14  ;;  %v4256_v8 = vld [vmem:[#allocation2 + $0x8] sm:$0x3]  ;;  %20613 = vst [vmem:[#allocation26_spill] sm:$0xff] %v17787_v10  ;;  %v4328_v12 = vrot.slane %v4255_v6, 1  ;;  %v17791_v14 = vsub.s32 %v921_v9, %v17787_v10 }
  0xcd   :  { %15757 = vmatmul.mubr.msk.bf16.gmra.mrb[24].mxu0 %vm404_vm0, %v15966_v15 }
  0xce   :  { %15760 = vmatprep.mubr.msk.bf16.mxu0 %vm404_vm0, %v15967_v16  ;;  %v4329_v16 = vrot.slane %v4256_v8, 1 }
  0xd5   :  { %15761 = vmatmul.mubr.msk.bf16.gmra.mrb[28].mxu0 %vm404_vm0, %v15968_v17 }
  0xd6   :  { %15764 = vmatprep.mubr.msk.bf16.mxu0 %vm404_vm0, %v15969_v18 }
  0xdd   :  { %15765 = vmatmul.mubr.msk.bf16.gmra.mrb[32].mxu0 %vm404_vm0, %v15970_v19  ;;  %v4393_v19 = vrot.slane %v4255_v6, 2 }
  0xde   :  { %15768 = vmatprep.mubr.msk.bf16.mxu0 %vm404_vm0, %v15971_v20  ;;  %v4394_v20 = vrot.slane %v4256_v8, 2 }
  0xe5   :  { %15769 = vmatmul.mubr.msk.bf16.gmra.mrb[36].mxu0 %vm404_vm0, %v15972_v21 }
  0xe6   :  { %15772 = vmatprep.mubr.msk.bf16.mxu0 %vm404_vm0, %v15973_v22 }
  0xed   :  { %15773 = vmatmul.mubr.msk.bf16.gmra.mrb[40].mxu0 %vm404_vm0, %v15974_v23 }
  0xee   :  { %15776 = vmatprep.mubr.msk.bf16.mxu0 %vm404_vm0, %v15975_v24 }
  0xf5   :  { %15777 = vmatmul.mubr.msk.bf16.gmra.mrb[44].mxu0 %vm404_vm0, %v15976_v25  ;;  %v17796_v25 = vsub.s32 0, %v17787_v10 }
  0xf6   :  { %15780 = vmatprep.mubr.msk.bf16.mxu0 %vm404_vm0, %v15977_v26 }
  0xfd   :  { %15781 = vmatmul.mubr.msk.bf16.gmra.mrb[48].mxu0 %vm404_vm0, %v15978_v27 }
  0xfe   :  { %15784 = vmatprep.mubr.msk.bf16.mxu0 %vm404_vm0, %v15979_v28 }
 0x105   :  { %15785 = vmatmul.mubr.msk.bf16.gmra.mrb[52].mxu0 %vm404_vm0, %v15980_v30  ;;  %v17801_v30 = vsel %vm4327_vm1, %v4328_v12, %v4329_v16 }
 0x106   :  { %15788 = vmatprep.mubr.msk.bf16.mxu0 %vm404_vm0, %v15981_v31 }
 0x10d   :  { %15789 = vmatmul.mubr.msk.bf16.gmra.mrb[56].mxu0 %vm404_vm0, %v15982_v33 }
 0x10e   :  { %15792 = vmatprep.mubr.msk.bf16.mxu0 %vm404_vm0, %v15983_v34  ;;  %v17805_v34 = vsel %vm4392_vm2, %v4393_v19, %v4394_v20 }
 0x115   :  { %15793 = vmatmul.mubr.msk.bf16.gmra.mrb[60].mxu0 %vm404_vm0, %v15984_v35 }
 0x170   :  { %v15734_v11 = vpop.f32.mrb[0].mxu0 }
 0x171   :  { %v544_v13 = vadd.f32 %v15734_v11, %v17784_v7  ;;  %v535_v15 = vpop.f32.mrb[1].mxu0 }
 0x172   :  { %v536_v17 = vadd.f32 %v17784_v7, %v535_v15  ;;  %v15735_v18 = vpop.f32.mrb[2].mxu0 }
 0x173   :  { %v792_v21 = vmax.f32 %v544_v13, 0.0  ;;  %v547_v22 = vadd.f32 %v15735_v18, %v17784_v7  ;;  %v538_v23 = vpop.f32.mrb[3].mxu0 }
 0x174   :  { %v790_v24 = vmax.f32 %v536_v17, 0.0  ;;  %v539_v26 = vadd.f32 %v17784_v7, %v538_v23 }
 0x175   :  { %v952_v27 = vcombine.high %v792_v21, %v792_v21  ;;  %v959_v28 = vrot.slane %v792_v21, %v17791_v14  ;;  %v793_v29 = vmax.f32 %v547_v22, 0.0 }
 0x176   :  { %v918_v31 = vcombine.high %v790_v24, %v790_v24  ;;  %v925_v32 = vrot.slane %v790_v24, %v17791_v14  ;;  %v791_v33 = vmax.f32 %v539_v26, 0.0 }
 0x177   :  { %v966_v35 = vrot.slane %v952_v27, %v17791_v14  ;;  %v967_v36 = vcombine.high %v959_v28, %v959_v28  ;;  %v14080_v37 = vrot.slane %v959_v28, 9  ;;  %v969_v38 = vcombine.high %v793_v29, %v793_v29 }
 0x178   :  { %v932_v39 = vrot.slane %v918_v31, %v17791_v14  ;;  %v933_v40 = vcombine.high %v925_v32, %v925_v32  ;;  %v14072_v41 = vrot.slane %v925_v32, 9  ;;  %v976_v42 = vrot.slane %v793_v29, %v17791_v14  ;;  %v15738_v43 = vpop.f32.mrb[4].mxu0 }
 0x179   :  { %v968_v44 = vcombine.high %v966_v35, %v966_v35  ;;  %v14081_v45 = vrot.slane %v967_v36, 9  ;;  %v14082_v46 = vrot.slane %v966_v35, 9  ;;  %v3038_v47 = vmax.f32 %v959_v28, %v14080_v37  ;;  %v551_v48 = vpop.f32.mrb[5].mxu0 }
 0x17a   :  { %v934_v49 = vcombine.high %v932_v39, %v932_v39  ;;  %v14073_v50 = vrot.slane %v933_v40, 9  ;;  %v14074_v51 = vrot.slane %v932_v39, 9  ;;  %v3030_v52 = vmax.f32 %v925_v32, %v14072_v41  ;;  %v15739_v53 = vpop.f32.mrb[6].mxu0 }
 0x17b   :  { %v14083_v54 = vrot.slane %v968_v44, 9  ;;  %v3039_v55 = vmax.f32 %v967_v36, %v14081_v45  ;;  %v3040_v56 = vmax.f32 %v966_v35, %v14082_v46  ;;  %v983_v57 = vrot.slane %v969_v38, %v17791_v14  ;;  %v17811_v58 = vpop.f32.mrb[7].mxu0 }
 0x17c   :  { %v14075_v59 = vrot.slane %v934_v49, 9  ;;  %v3031_v60 = vmax.f32 %v933_v40, %v14073_v50  ;;  %v3032_v61 = vmax.f32 %v932_v39, %v14074_v51  ;;  %v3286_v62 = vmax.f32 %v3030_v52, %v3038_v47 }
 0x17d   :  { %v3041_v63 = vmax.f32 %v968_v44, %v14083_v54  ;;  %v984_v0 = vcombine.high %v976_v42, %v976_v42  ;;  %v985_v1 = vcombine.high %v983_v57, %v983_v57  ;;  %v14084_v2 = vrot.slane %v976_v42, 9 }
 0x17e   :  { %v3033_v3 = vmax.f32 %v934_v49, %v14075_v59  ;;  %v3287_v4 = vmax.f32 %v3031_v60, %v3039_v55  ;;  %v3288_v6 = vmax.f32 %v3032_v61, %v3040_v56  ;;  %v3594_v8 = vrot.slane %v3286_v62, %v17796_v25 }
 0x17f   :  { %v14085_v9 = vrot.slane %v984_v0, 9  ;;  %v14086_v11 = vrot.slane %v983_v57, 9  ;;  %v14087_v12 = vrot.slane %v985_v1, 9  ;;  %v3042_v13 = vmax.f32 %v976_v42, %v14084_v2 }
 0x180   :  { %v3289_v15 = vmax.f32 %v3033_v3, %v3041_v63  ;;  %v3598_v16 = vrot.slane %v3287_v4, %v17796_v25  ;;  %v3602_v17 = vrot.slane %v3288_v6, %v17796_v25  ;;  %v935_v18 = vcombine.high %v791_v33, %v791_v33  ;;  %v17816_v19 = vpop.f32.mrb[8].mxu0 }
 0x181   :  { %v3043_v20 = vmax.f32 %v984_v0, %v14085_v9  ;;  %v3044_v21 = vmax.f32 %v983_v57, %v14086_v11  ;;  %v3045_v22 = vmax.f32 %v985_v1, %v14087_v12  ;;  %v942_v23 = vrot.slane %v791_v33, %v17791_v14  ;;  %v17819_v24 = vpop.f32.mrb[9].mxu0 }
 0x182   :  { %v3606_v26 = vrot.slane %v3289_v15, %v17796_v25  ;;  %v4104_v27 = vsel %vm4103_vm3, %v3598_v16, %v3594_v8  ;;  %v949_v28 = vrot.slane %v935_v18, %v17791_v14  ;;  %v560_v29 = vadd.f32 %v15738_v43, %v17784_v7  ;;  %v17825_v31 = vpop.f32.mrb[10].mxu0 }
 0x183   :  { %v4106_v32 = vsel %vm4105_vm4, %v3602_v17, %v4104_v27  ;;  %v950_v35 = vcombine.high %v942_v23, %v942_v23  ;;  %v14076_v36 = vrot.slane %v942_v23, 9  ;;  %v552_v33 = vadd.f32 %v17784_v7, %v551_v48  ;;  %v17829_v37 = vpop.f32.mrb[11].mxu0 }
 0x184   :  { %v951_v38 = vcombine.high %v949_v28, %v949_v28  ;;  %v14078_v39 = vrot.slane %v949_v28, 9  ;;  %v4108_v40 = vsel %vm4107_vm5, %v3606_v26, %v4106_v32  ;;  %v796_v41 = vmax.f32 %v560_v29, 0.0 }
 0x185   :  { %v14077_v42 = vrot.slane %v950_v35, 9  ;;  %v3034_v44 = vmax.f32 %v942_v23, %v14076_v36  ;;  %v794_v43 = vmax.f32 %v552_v33, 0.0  ;;  %v563_v45 = vadd.f32 %v15739_v53, %v17784_v7 }
 0x186   :  { %v14079_v46 = vrot.slane %v951_v38, 9  ;;  %v3036_v47 = vmax.f32 %v949_v28, %v14078_v39  ;;  %v1020_v49 = vcombine.high %v796_v41, %v796_v41  ;;  %v1027_v50 = vrot.slane %v796_v41, %v17791_v14 }
 0x187   :  { %v3035_v51 = vmax.f32 %v950_v35, %v14077_v42  ;;  %v3290_v48 = vmax.f32 %v3034_v44, %v3042_v13  ;;  %v986_v52 = vcombine.high %v794_v43, %v794_v43  ;;  %v993_v54 = vrot.slane %v794_v43, %v17791_v14 }
 0x188   :  { %v3037_v55 = vmax.f32 %v951_v38, %v14079_v46  ;;  %v3292_v56 = vmax.f32 %v3036_v47, %v3044_v21  ;;  %v1034_v57 = vrot.slane %v1020_v49, %v17791_v14  ;;  %v1035_v59 = vcombine.high %v1027_v50, %v1027_v50  ;;  %v17836_v60 = vpop.f32.mrb[12].mxu0 }
 0x189   :  { %v3291_v61 = vmax.f32 %v3035_v51, %v3043_v20  ;;  %v3610_v53 = vrot.slane %v3290_v48, %v17796_v25  ;;  %v14096_v62 = vrot.slane %v1027_v50, 9  ;;  %v1000_v63 = vrot.slane %v986_v52, %v17791_v14  ;;  %v17840_v0 = vpop.f32.mrb[13].mxu0 }
 0x18a   :  { %v3293_v1 = vmax.f32 %v3037_v55, %v3045_v22  ;;  %v3618_v2 = vrot.slane %v3292_v56, %v17796_v25  ;;  %v1036_v3 = vcombine.high %v1034_v57, %v1034_v57  ;;  %v14097_v4 = vrot.slane %v1035_v59, 9  ;;  %v17843_v6 = vpop.f32.mrb[14].mxu0 }
 0x18b   :  { %v3614_v8 = vrot.slane %v3291_v61, %v17796_v25  ;;  %v4110_v9 = vsel %vm4109_vm6, %v3610_v53, %v4108_v40  ;;  %v14098_v11 = vrot.slane %v1034_v57, 9  ;;  %v3054_v12 = vmax.f32 %v1027_v50, %v14096_v62  ;;  %v17847_v13 = vpop.f32.mrb[15].mxu0 }
 0x18c   :  { %v3622_v15 = vrot.slane %v3293_v1, %v17796_v25  ;;  %v14099_v16 = vrot.slane %v1036_v3, 9  ;;  %v3055_v17 = vmax.f32 %v1035_v59, %v14097_v4  ;;  %v1001_v18 = vcombine.high %v993_v54, %v993_v54 }
 0x18d   :  { %v4112_v20 = vsel %vm4111_vm7, %v3614_v8, %v4110_v9  ;;  %v3056_v21 = vmax.f32 %v1034_v57, %v14098_v11  ;;  %v1002_v22 = vcombine.high %v1000_v63, %v1000_v63  ;;  %v14088_v23 = vrot.slane %v993_v54, 9 }
 0x18e   :  { %v4114_v26 = vsel %vm4113_vm8, %v3618_v2, %v4112_v20  ;;  %v3057_v27 = vmax.f32 %v1036_v3, %v14099_v16  ;;  %v14089_v28 = vrot.slane %v1001_v18, 9  ;;  %v14090_v29 = vrot.slane %v1000_v63, 9 }
 0x18f   :  { %v4116_v32 = vsel %vm4115_vm9, %v3622_v15, %v4114_v26  ;;  %v14091_v35 = vrot.slane %v1002_v22, 9  ;;  %v3046_v36 = vmax.f32 %v993_v54, %v14088_v23  ;;  %v797_v33 = vmax.f32 %v563_v45, 0.0 }
 0x190   :  { %4239 = vst [vmem:[#allocation2 + $0x11] sm:$0xff] %v4116_v32  ;;  %v3047_v38 = vmax.f32 %v1001_v18, %v14089_v28  ;;  %v3048_v39 = vmax.f32 %v1000_v63, %v14090_v29  ;;  %v555_v40 = vadd.f32 %v17784_v7, %v17811_v58  ;;  %v576_v41 = vadd.f32 %v17816_v19, %v17784_v7  ;;  %v17857_v42 = vpop.f32.mrb[16].mxu0 }
 0x191   :  { %v3049_v44 = vmax.f32 %v1002_v22, %v14091_v35  ;;  %v3294_v43 = vmax.f32 %v3046_v36, %v3054_v12  ;;  %v1037_v46 = vcombine.high %v797_v33, %v797_v33  ;;  %v1044_v47 = vrot.slane %v797_v33, %v17791_v14  ;;  %v17860_v49 = vpop.f32.mrb[17].mxu0 }
 0x192   :  { %v3295_v50 = vmax.f32 %v3047_v38, %v3055_v17  ;;  %v3296_v45 = vmax.f32 %v3048_v39, %v3056_v21  ;;  %v795_v51 = vmax.f32 %v555_v40, 0.0  ;;  %v800_v48 = vmax.f32 %v576_v41, 0.0  ;;  %v17862_v52 = vpop.f32.mrb[18].mxu0 }
 0x193   :  { %v3297_v54 = vmax.f32 %v3049_v44, %v3057_v27  ;;  %v3626_v58 = vrot.slane %v3294_v43, %v17796_v25  ;;  %v1051_v19 = vrot.slane %v1037_v46, %v17791_v14  ;;  %v1052_v55 = vcombine.high %v1044_v47, %v1044_v47  ;;  %v17866_v56 = vpop.f32.mrb[19].mxu0 }
 0x194   :  { %v3630_v57 = vrot.slane %v3295_v50, %v17796_v25  ;;  %v3634_v59 = vrot.slane %v3296_v45, %v17796_v25  ;;  %v14100_v61 = vrot.slane %v1044_v47, 9  ;;  %v1003_v53 = vcombine.high %v795_v51, %v795_v51 }
 0x195   :  { %v3638_v62 = vrot.slane %v3297_v54, %v17796_v25  ;;  %v1053_v63 = vcombine.high %v1051_v19, %v1051_v19  ;;  %v14101_v1 = vrot.slane %v1052_v55, 9  ;;  %v14102_v2 = vrot.slane %v1051_v19, 9 }
 0x196   :  { %v4117_v3 = vsel %vm4103_vm3, %v3630_v57, %v3626_v58  ;;  %v3058_v4 = vmax.f32 %v1044_v47, %v14100_v61  ;;  %v1010_v8 = vrot.slane %v795_v51, %v17791_v14  ;;  %v1017_v9 = vrot.slane %v1003_v53, %v17791_v14 }
 0x197   :  { %v4118_v11 = vsel %vm4105_vm4, %v3634_v59, %v4117_v3  ;;  %v14103_v12 = vrot.slane %v1053_v63, 9  ;;  %v3059_v15 = vmax.f32 %v1052_v55, %v14101_v1  ;;  %v3060_v16 = vmax.f32 %v1051_v19, %v14102_v2 }
 0x198   :  { %v1018_v17 = vcombine.high %v1010_v8, %v1010_v8  ;;  %v1019_v18 = vcombine.high %v1017_v9, %v1017_v9  ;;  %v14092_v20 = vrot.slane %v1010_v8, 9  ;;  %v14094_v21 = vrot.slane %v1017_v9, 9  ;;  %v17875_v22 = vpop.f32.mrb[20].mxu0 }
 0x199   :  { %v3061_v23 = vmax.f32 %v1053_v63, %v14103_v12  ;;  %v4119_v26 = vsel %vm4107_vm5, %v3638_v62, %v4118_v11  ;;  %v1088_v27 = vcombine.high %v800_v48, %v800_v48  ;;  %v1095_v28 = vrot.slane %v800_v48, %v17791_v14  ;;  %v17879_v29 = vpop.f32.mrb[21].mxu0 }
 0x19a   :  { %v14093_v32 = vrot.slane %v1018_v17, 9  ;;  %v14095_v35 = vrot.slane %v1019_v18, 9  ;;  %v3050_v36 = vmax.f32 %v1010_v8, %v14092_v20  ;;  %v3052_v33 = vmax.f32 %v1017_v9, %v14094_v21  ;;  %v17881_v38 = vpop.f32.mrb[22].mxu0 }
 0x19b   :  { %v1102_v39 = vrot.slane %v1088_v27, %v17791_v14  ;;  %v1103_v40 = vcombine.high %v1095_v28, %v1095_v28  ;;  %v14112_v41 = vrot.slane %v1095_v28, 9  ;;  %v568_v44 = vadd.f32 %v17784_v7, %v17819_v24  ;;  %v17886_v43 = vpop.f32.mrb[23].mxu0 }
 0x19c   :  { %v3051_v46 = vmax.f32 %v1018_v17, %v14093_v32  ;;  %v3053_v47 = vmax.f32 %v1019_v18, %v14095_v35  ;;  %v3298_v50 = vmax.f32 %v3050_v36, %v3058_v4  ;;  %v3300_v45 = vmax.f32 %v3052_v33, %v3060_v16 }
 0x19d   :  { %v1104_v51 = vcombine.high %v1102_v39, %v1102_v39  ;;  %v14113_v48 = vrot.slane %v1103_v40, 9  ;;  %v14114_v54 = vrot.slane %v1102_v39, 9  ;;  %v3070_v58 = vmax.f32 %v1095_v28, %v14112_v41 }
 0x19e   :  { %v3299_v19 = vmax.f32 %v3051_v46, %v3059_v15  ;;  %v3301_v55 = vmax.f32 %v3053_v47, %v3061_v23  ;;  %v3642_v57 = vrot.slane %v3298_v50, %v17796_v25  ;;  %v3650_v59 = vrot.slane %v3300_v45, %v17796_v25 }
 0x19f   :  { %v14115_v61 = vrot.slane %v1104_v51, 9  ;;  %v3071_v53 = vmax.f32 %v1103_v40, %v14113_v48  ;;  %v3072_v62 = vmax.f32 %v1102_v39, %v14114_v54  ;;  %v798_v24 = vmax.f32 %v568_v44, 0.0 }
 0x1a0   :  { %v3646_v63 = vrot.slane %v3299_v19, %v17796_v25  ;;  %v3654_v1 = vrot.slane %v3301_v55, %v17796_v25  ;;  %v4120_v2 = vsel %vm4109_vm6, %v3642_v57, %v4119_v26  ;;  %v579_v3 = vadd.f32 %v17825_v31, %v17784_v7  ;;  %v17895_v4 = vpop.f32.mrb[24].mxu0 }
 0x1a1   :  { %v3073_v8 = vmax.f32 %v1104_v51, %v14115_v61  ;;  %v1054_v9 = vcombine.high %v798_v24, %v798_v24  ;;  %v1061_v11 = vrot.slane %v798_v24, %v17791_v14  ;;  %v571_v12 = vadd.f32 %v17784_v7, %v17829_v37  ;;  %v17900_v15 = vpop.f32.mrb[25].mxu0 }
 0x1a2   :  { %v4121_v16 = vsel %vm4111_vm7, %v3646_v63, %v4120_v2  ;;  %v801_v17 = vmax.f32 %v579_v3, 0.0  ;;  %v592_v18 = vadd.f32 %v17836_v60, %v17784_v7  ;;  %v17907_v31 = vadd.f32 %v17784_v7, %v17840_v0  ;;  %v17909_v20 = vpop.f32.mrb[26].mxu0 }
 0x1a3   :  { %v4122_v21 = vsel %vm4113_vm8, %v3650_v59, %v4121_v16  ;;  %v1068_v23 = vrot.slane %v1054_v9, %v17791_v14  ;;  %v1069_v26 = vcombine.high %v1061_v11, %v1061_v11  ;;  %v14104_v37 = vrot.slane %v1061_v11, 9  ;;  %v17913_v27 = vpop.f32.mrb[27].mxu0 }
 0x1a4   :  { %v4123_v28 = vsel %vm4115_vm9, %v3654_v1, %v4122_v21  ;;  %v1105_v32 = vcombine.high %v801_v17, %v801_v17  ;;  %v1112_v35 = vrot.slane %v801_v17, %v17791_v14  ;;  %v799_v60 = vmax.f32 %v571_v12, 0.0 }
 0x1a5   :  { %4240 = vst [vmem:[#allocation2 + $0x21] sm:$0xff] %v4123_v28  ;;  %v1070_v36 = vcombine.high %v1068_v23, %v1068_v23  ;;  %v14105_v7 = vrot.slane %v1069_v26, 9  ;;  %v14106_v0 = vrot.slane %v1068_v23, 9  ;;  %v3062_v33 = vmax.f32 %v1061_v11, %v14104_v37 }
 0x1a6   :  { %v1119_v39 = vrot.slane %v1105_v32, %v17791_v14  ;;  %v1120_v40 = vcombine.high %v1112_v35, %v1112_v35  ;;  %v14116_v41 = vrot.slane %v1112_v35, 9  ;;  %v1071_v44 = vcombine.high %v799_v60, %v799_v60 }
 0x1a7   :  { %v14107_v46 = vrot.slane %v1070_v36, 9  ;;  %v3063_v47 = vmax.f32 %v1069_v26, %v14105_v7  ;;  %v3064_v50 = vmax.f32 %v1068_v23, %v14106_v0  ;;  %v3302_v45 = vmax.f32 %v3062_v33, %v3070_v58 }
 0x1a8   :  { %v1121_v51 = vcombine.high %v1119_v39, %v1119_v39  ;;  %v14117_v48 = vrot.slane %v1120_v40, 9  ;;  %v14118_v54 = vrot.slane %v1119_v39, 9  ;;  %v3074_v19 = vmax.f32 %v1112_v35, %v14116_v41  ;;  %v17918_v55 = vpop.f32.mrb[28].mxu0 }
 0x1a9   :  { %v3065_v57 = vmax.f32 %v1070_v36, %v14107_v46  ;;  %v3303_v59 = vmax.f32 %v3063_v47, %v3071_v53  ;;  %v3304_v61 = vmax.f32 %v3064_v50, %v3072_v62  ;;  %v3658_v24 = vrot.slane %v3302_v45, %v17796_v25  ;;  %v17921_v63 = vpop.f32.mrb[29].mxu0 }
 0x1aa   :  { %v14119_v1 = vrot.slane %v1121_v51, 9  ;;  %v3075_v2 = vmax.f32 %v1120_v40, %v14117_v48  ;;  %v3076_v3 = vmax.f32 %v1119_v39, %v14118_v54  ;;  %v1078_v9 = vrot.slane %v799_v60, %v17791_v14  ;;  %v17924_v11 = vpop.f32.mrb[30].mxu0 }
 0x1ab   :  { %v3305_v58 = vmax.f32 %v3065_v57, %v3073_v8  ;;  %v3662_v12 = vrot.slane %v3303_v59, %v17796_v25  ;;  %v3666_v16 = vrot.slane %v3304_v61, %v17796_v25  ;;  %v1085_v17 = vrot.slane %v1071_v44, %v17791_v14  ;;  %v17929_v53 = vpop.f32.mrb[31].mxu0 }
 0x1ac   :  { %v3077_v62 = vmax.f32 %v1121_v51, %v14119_v1  ;;  %v1086_v21 = vcombine.high %v1078_v9, %v1078_v9  ;;  %v14108_v23 = vrot.slane %v1078_v9, 9  ;;  %v804_v26 = vmax.f32 %v592_v18, 0.0 }
 0x1ad   :  { %v3670_v37 = vrot.slane %v3305_v58, %v17796_v25  ;;  %v4124_v28 = vsel %vm4103_vm3, %v3662_v12, %v3658_v24  ;;  %v1087_v32 = vcombine.high %v1085_v17, %v1085_v17  ;;  %v14110_v35 = vrot.slane %v1085_v17, 9 }
 0x1ae   :  { %v4125_v8 = vsel %vm4105_vm4, %v3666_v16, %v4124_v28  ;;  %v14109_v60 = vrot.slane %v1086_v21, 9  ;;  %v3066_v36 = vmax.f32 %v1078_v9, %v14108_v23  ;;  %v1156_v7 = vcombine.high %v804_v26, %v804_v26 }
 0x1af   :  { %v14111_v0 = vrot.slane %v1087_v32, 9  ;;  %v3068_v33 = vmax.f32 %v1085_v17, %v14110_v35  ;;  %v4126_v39 = vsel %vm4107_vm5, %v3670_v37, %v4125_v8  ;;  %v1163_v40 = vrot.slane %v804_v26, %v17791_v14 }
 0x1b0   :  { %v3067_v41 = vmax.f32 %v1086_v21, %v14109_v60  ;;  %v3306_v44 = vmax.f32 %v3066_v36, %v3074_v19  ;;  %v1170_v18 = vrot.slane %v1156_v7, %v17791_v14  ;;  %v802_v46 = vmax.f32 %v17907_v31, 0.0  ;;  %v17938_v47 = vpop.f32.mrb[32].mxu0 }
 0x1b1   :  { %v3069_v50 = vmax.f32 %v1087_v32, %v14111_v0  ;;  %v3308_v45 = vmax.f32 %v3068_v33, %v3076_v3  ;;  %v1171_v51 = vcombine.high %v1163_v40, %v1163_v40  ;;  %v14128_v48 = vrot.slane %v1163_v40, 9  ;;  %v17940_v54 = vpop.f32.mrb[33].mxu0  ;;  %v17953_v32 = vld [vmem:[#allocation8] ss:$0 sm:$0xff] }
 0x1b2   :  { %v3307_v57 = vmax.f32 %v3067_v41, %v3075_v2  ;;  %v3674_v59 = vrot.slane %v3306_v44, %v17796_v25  ;;  %v1172_v61 = vcombine.high %v1170_v18, %v1170_v18  ;;  %v14130_v24 = vrot.slane %v1170_v18, 9  ;;  %v17943_v1 = vpop.f32.mrb[34].mxu0 }
 0x1b3   :  { %v3309_v19 = vmax.f32 %v3069_v50, %v3077_v62  ;;  %v3682_v9 = vrot.slane %v3308_v45, %v17796_v25  ;;  %v14129_v58 = vrot.slane %v1171_v51, 9  ;;  %v3086_v31 = vmax.f32 %v1163_v40, %v14128_v48  ;;  %v17946_v12 = vpop.f32.mrb[35].mxu0 }
 0x1b4   :  { %v3678_v3 = vrot.slane %v3307_v57, %v17796_v25  ;;  %v4127_v16 = vsel %vm4109_vm6, %v3674_v59, %v4126_v39  ;;  %v14131_v17 = vrot.slane %v1172_v61, 9  ;;  %v3088_v21 = vmax.f32 %v1170_v18, %v14130_v24 }
 0x1b5   :  { %v3686_v2 = vrot.slane %v3309_v19, %v17796_v25  ;;  %v3087_v23 = vmax.f32 %v1171_v51, %v14129_v58  ;;  %v1122_v26 = vcombine.high %v802_v46, %v802_v46  ;;  %v1129_v37 = vrot.slane %v802_v46, %v17791_v14 }
 0x1b6   :  { %v4128_v62 = vsel %vm4111_vm7, %v3678_v3, %v4127_v16  ;;  %v3089_v28 = vmax.f32 %v1172_v61, %v14131_v17  ;;  %v595_v35 = vadd.f32 %v17953_v32, %v17843_v6  ;;  %v587_v8 = vadd.f32 %v17953_v32, %v17847_v13 }
 0x1b7   :  { %v4129_v60 = vsel %vm4113_vm8, %v3682_v9, %v4128_v62  ;;  %v1136_v36 = vrot.slane %v1122_v26, %v17791_v14  ;;  %v1137_v7 = vcombine.high %v1129_v37, %v1129_v37  ;;  %v14120_v0 = vrot.slane %v1129_v37, 9 }
 0x1b8   :  { %v4130_v33 = vsel %vm4115_vm9, %v3686_v2, %v4129_v60  ;;  %v805_v39 = vmax.f32 %v595_v35, 0.0  ;;  %v803_v40 = vmax.f32 %v587_v8, 0.0  ;;  %v608_v41 = vadd.f32 %v17953_v32, %v17857_v42  ;;  %v17964_v50 = vpop.f32.mrb[36].mxu0 }
 0x1b9   :  { %4241 = vst [vmem:[#allocation2 + $0x31] sm:$0xff] %v4130_v33  ;;  %v1138_v44 = vcombine.high %v1136_v36, %v1136_v36  ;;  %v14121_v18 = vrot.slane %v1137_v7, 9  ;;  %v14122_v6 = vrot.slane %v1136_v36, 9  ;;  %v3078_v46 = vmax.f32 %v1129_v37, %v14120_v0  ;;  %v17968_v57 = vpop.f32.mrb[37].mxu0 }
 0x1ba   :  { %v1173_v13 = vcombine.high %v805_v39, %v805_v39  ;;  %v1180_v45 = vrot.slane %v805_v39, %v17791_v14  ;;  %v1139_v51 = vcombine.high %v803_v40, %v803_v40  ;;  %v1146_v48 = vrot.slane %v803_v40, %v17791_v14  ;;  %v17970_v42 = vpop.f32.mrb[38].mxu0 }
 0x1bb   :  { %v14123_v59 = vrot.slane %v1138_v44, 9  ;;  %v3079_v61 = vmax.f32 %v1137_v7, %v14121_v18  ;;  %v3080_v24 = vmax.f32 %v1136_v36, %v14122_v6  ;;  %v3310_v19 = vmax.f32 %v3078_v46, %v3086_v31  ;;  %v17974_v17 = vpop.f32.mrb[39].mxu0 }
 0x1bc   :  { %v1187_v9 = vrot.slane %v1173_v13, %v17791_v14  ;;  %v1188_v58 = vcombine.high %v1180_v45, %v1180_v45  ;;  %v14132_v3 = vrot.slane %v1180_v45, 9  ;;  %v1153_v16 = vrot.slane %v1139_v51, %v17791_v14 }
 0x1bd   :  { %v3081_v2 = vmax.f32 %v1138_v44, %v14123_v59  ;;  %v3311_v26 = vmax.f32 %v3079_v61, %v3087_v23  ;;  %v3312_v37 = vmax.f32 %v3080_v24, %v3088_v21  ;;  %v3690_v62 = vrot.slane %v3310_v19, %v17796_v25 }
 0x1be   :  { %v1189_v35 = vcombine.high %v1187_v9, %v1187_v9  ;;  %v14133_v8 = vrot.slane %v1188_v58, 9  ;;  %v14134_v60 = vrot.slane %v1187_v9, 9  ;;  %v3090_v36 = vmax.f32 %v1180_v45, %v14132_v3 }
 0x1bf   :  { %v3313_v31 = vmax.f32 %v3081_v2, %v3089_v28  ;;  %v3694_v7 = vrot.slane %v3311_v26, %v17796_v25  ;;  %v3698_v0 = vrot.slane %v3312_v37, %v17796_v25  ;;  %v1154_v33 = vcombine.high %v1146_v48, %v1146_v48 }
 0x1c0   :  { %v14135_v39 = vrot.slane %v1189_v35, 9  ;;  %v3091_v40 = vmax.f32 %v1188_v58, %v14133_v8  ;;  %v3092_v18 = vmax.f32 %v1187_v9, %v14134_v60  ;;  %v1155_v6 = vcombine.high %v1153_v16, %v1153_v16 }
 0x1c1   :  { %v3702_v44 = vrot.slane %v3313_v31, %v17796_v25  ;;  %v4131_v21 = vsel %vm4103_vm3, %v3694_v7, %v3690_v62  ;;  %v14124_v23 = vrot.slane %v1146_v48, 9  ;;  %v14125_v46 = vrot.slane %v1154_v33, 9 }
 0x1c2   :  { %v4132_v13 = vsel %vm4105_vm4, %v3698_v0, %v4131_v21  ;;  %v3093_v51 = vmax.f32 %v1189_v35, %v14135_v39  ;;  %v14126_v45 = vrot.slane %v1153_v16, 9  ;;  %v14127_v28 = vrot.slane %v1155_v6, 9 }
 0x1c3   :  { %v3082_v59 = vmax.f32 %v1146_v48, %v14124_v23  ;;  %v3083_v61 = vmax.f32 %v1154_v33, %v14125_v46  ;;  %v4133_v24 = vsel %vm4107_vm5, %v3702_v44, %v4132_v13  ;;  %v808_v19 = vmax.f32 %v608_v41, 0.0 }
 0x1c4   :  { %v3084_v3 = vmax.f32 %v1153_v16, %v14126_v45  ;;  %v3085_v58 = vmax.f32 %v1155_v6, %v14127_v28  ;;  %v600_v9 = vadd.f32 %v17953_v32, %v17860_v49  ;;  %v611_v2 = vadd.f32 %v17953_v32, %v17862_v52 }
 0x1c5   :  { %v3314_v26 = vmax.f32 %v3082_v59, %v3090_v36  ;;  %v3315_v37 = vmax.f32 %v3083_v61, %v3091_v40  ;;  %v1224_v62 = vcombine.high %v808_v19, %v808_v19  ;;  %v1231_v35 = vrot.slane %v808_v19, %v17791_v14 }
 0x1c6   :  { %v3316_v8 = vmax.f32 %v3084_v3, %v3092_v18  ;;  %v3317_v60 = vmax.f32 %v3085_v58, %v3093_v51  ;;  %v806_v48 = vmax.f32 %v600_v9, 0.0  ;;  %v809_v31 = vmax.f32 %v611_v2, 0.0 }
 0x1c7   :  { %v3706_v7 = vrot.slane %v3314_v26, %v17796_v25  ;;  %v3710_v41 = vrot.slane %v3315_v37, %v17796_v25  ;;  %v1238_v16 = vrot.slane %v1224_v62, %v17791_v14  ;;  %v1239_v0 = vcombine.high %v1231_v35, %v1231_v35 }
 0x1c8   :  { %v3714_v49 = vrot.slane %v3316_v8, %v17796_v25  ;;  %v3718_v52 = vrot.slane %v3317_v60, %v17796_v25  ;;  %v14144_v36 = vrot.slane %v1231_v35, 9  ;;  %v1190_v33 = vcombine.high %v806_v48, %v806_v48 }
 0x1c9   :  { %v4134_v39 = vsel %vm4109_vm6, %v3706_v7, %v4133_v24  ;;  %v1240_v40 = vcombine.high %v1238_v16, %v1238_v16  ;;  %v14145_v18 = vrot.slane %v1239_v0, 9  ;;  %v14146_v6 = vrot.slane %v1238_v16, 9 }
 0x1ca   :  { %v4135_v44 = vsel %vm4111_vm7, %v3710_v41, %v4134_v39  ;;  %v3102_v21 = vmax.f32 %v1231_v35, %v14144_v36  ;;  %v1197_v23 = vrot.slane %v806_v48, %v17791_v14  ;;  %v1204_v46 = vrot.slane %v1190_v33, %v17791_v14  ;;  %v18005_v36 = vld [vmem:[#allocation2 + $0x18] sm:$0x3] }
 0x1cb   :  { %v4136_v13 = vsel %vm4113_vm8, %v3714_v49, %v4135_v44  ;;  %v14147_v51 = vrot.slane %v1240_v40, 9  ;;  %v3103_v45 = vmax.f32 %v1239_v0, %v14145_v18  ;;  %v3104_v28 = vmax.f32 %v1238_v16, %v14146_v6 }
 0x1cc   :  { %v4137_v59 = vsel %vm4115_vm9, %v3718_v52, %v4136_v13  ;;  %v1205_v61 = vcombine.high %v1197_v23, %v1197_v23  ;;  %v1206_v19 = vcombine.high %v1204_v46, %v1204_v46  ;;  %v14136_v24 = vrot.slane %v1197_v23, 9  ;;  %v18003_v52 = vld [vmem:[#allocation2 + $0x10] sm:$0xff] }
 0x1cd   :  { %4242 = vst [vmem:[#allocation2 + $0x41] sm:$0xff] %v4137_v59  ;;  %v3105_v3 = vmax.f32 %v1240_v40, %v14147_v51  ;;  %v14138_v58 = vrot.slane %v1204_v46, 9  ;;  %v1241_v9 = vcombine.high %v809_v31, %v809_v31  ;;  %v1248_v2 = vrot.slane %v809_v31, %v17791_v14  ;;  %v18007_v31 = vld [vmem:[#allocation2 + $0x20] sm:$0xff] }
 0x1ce   :  { %v14137_v26 = vrot.slane %v1205_v61, 9  ;;  %v14139_v37 = vrot.slane %v1206_v19, 9  ;;  %v3094_v62 = vmax.f32 %v1197_v23, %v14136_v24  ;;  %v603_v35 = vadd.f32 %v17953_v32, %v17866_v56  ;;  %v18014_v24 = vld [vmem:[#allocation2 + $0x28] sm:$0x3] }
 0x1cf   :  { %v3096_v8 = vmax.f32 %v1204_v46, %v14138_v58  ;;  %v1255_v60 = vrot.slane %v1241_v9, %v17791_v14  ;;  %v1256_v48 = vcombine.high %v1248_v2, %v1248_v2  ;;  %v14148_v7 = vrot.slane %v1248_v2, 9  ;;  %v18016_v58 = vpop.f32.mrb[40].mxu0 }
 0x1d0   :  { %v3095_v41 = vmax.f32 %v1205_v61, %v14137_v26  ;;  %v3097_v16 = vmax.f32 %v1206_v19, %v14139_v37  ;;  %v3318_v0 = vmax.f32 %v3094_v62, %v3102_v21  ;;  %v807_v49 = vmax.f32 %v603_v35, 0.0 }
 0x1d1   :  { %v3320_v33 = vmax.f32 %v3096_v8, %v3104_v28  ;;  %v1257_v39 = vcombine.high %v1255_v60, %v1255_v60  ;;  %v14149_v40 = vrot.slane %v1256_v48, 9  ;;  %v14150_v18 = vrot.slane %v1255_v60, 9 }
 0x1d2   :  { %v3319_v56 = vmax.f32 %v3095_v41, %v3103_v45  ;;  %v3321_v6 = vmax.f32 %v3097_v16, %v3105_v3  ;;  %v3722_v44 = vrot.slane %v3318_v0, %v17796_v25  ;;  %v3106_v23 = vmax.f32 %v1248_v2, %v14148_v7  ;;  %v18029_v41 = vpop.f32.mrb[41].mxu0 }
 0x1d3   :  { %v3730_v46 = vrot.slane %v3320_v33, %v17796_v25  ;;  %v14151_v13 = vrot.slane %v1257_v39, 9  ;;  %v3107_v21 = vmax.f32 %v1256_v48, %v14149_v40  ;;  %v3108_v51 = vmax.f32 %v1255_v60, %v14150_v18 }
 0x1d4   :  { %v3726_v59 = vrot.slane %v3319_v56, %v17796_v25  ;;  %v3734_v61 = vrot.slane %v3321_v6, %v17796_v25  ;;  %v1207_v19 = vcombine.high %v807_v49, %v807_v49  ;;  %v1214_v28 = vrot.slane %v807_v49, %v17791_v14  ;;  %v17140_v6 = vld [vmem:[#allocation2] sm:$0xff] }
 0x1d5   :  { %v3109_v45 = vmax.f32 %v1257_v39, %v14151_v13  ;;  %v4331_v3 = vrot.slane %v18003_v52, 1  ;;  %v4332_v9 = vrot.slane %v18005_v36, 1  ;;  %v4334_v2 = vrot.slane %v18007_v31, 1  ;;  %v18031_v39 = vpop.f32.mrb[42].mxu0 }
 0x1d6   :  { %v4138_v26 = vsel %vm4103_vm3, %v3726_v59, %v3722_v44  ;;  %v1221_v37 = vrot.slane %v1207_v19, %v17791_v14  ;;  %v1222_v62 = vcombine.high %v1214_v28, %v1214_v28  ;;  %v14140_v35 = vrot.slane %v1214_v28, 9 }
 0x1d7   :  { %v4139_v8 = vsel %vm4105_vm4, %v3730_v46, %v4138_v26  ;;  %v18025_v60 = vsel %vm4327_vm1, %v4331_v3, %v4332_v9  ;;  %v4335_v48 = vrot.slane %v18014_v24, 1  ;;  %v4497_v44 = vpack.c.bf16 %v18003_v52, %v17140_v6  ;;  %v18040_v46 = vpop.f32.mrb[43].mxu0 }
 0x1d8   :  { %v1223_v16 = vcombine.high %v1221_v37, %v1221_v37  ;;  %v14141_v0 = vrot.slane %v1222_v62, 9  ;;  %v14142_v49 = vrot.slane %v1221_v37, 9  ;;  %v3098_v33 = vmax.f32 %v1214_v28, %v14140_v35 }
 0x1d9   :  { %v4140_v40 = vsel %vm4107_vm5, %v3734_v61, %v4139_v8  ;;  %v18035_v18 = vsel %vm4327_vm1, %v4334_v2, %v4335_v48  ;;  %v4498_v56 = vpack.c.bf16 %v18025_v60, %v17801_v30  ;;  %v624_v61 = vadd.f32 %v17953_v32, %v17875_v22 }
 0x1da   :  { %v14143_v13 = vrot.slane %v1223_v16, 9  ;;  %v3099_v59 = vmax.f32 %v1222_v62, %v14141_v0  ;;  %v3100_v19 = vmax.f32 %v1221_v37, %v14142_v49  ;;  %v3322_v3 = vmax.f32 %v3098_v33, %v3106_v23 }
 0x1db   :  { %5166 = vmatprep.mubr.bf16.mxu1 %v4498_v56  ;;  %v616_v9 = vadd.f32 %v17953_v32, %v17879_v29  ;;  %v627_v30 = vadd.f32 %v17953_v32, %v17881_v38  ;;  %v812_v23 = vmax.f32 %v624_v61, 0.0  ;;  %v619_v48 = vadd.f32 %v17953_v32, %v17886_v43 }
 0x1dc   :  { %v3101_v2 = vmax.f32 %v1223_v16, %v14143_v13  ;;  %v3323_v26 = vmax.f32 %v3099_v59, %v3107_v21  ;;  %v3324_v35 = vmax.f32 %v3100_v19, %v3108_v51  ;;  %v3738_v62 = vrot.slane %v3322_v3, %v17796_v25  ;;  %5167 = vmatmul.mubr.bf16.vlgmr.msra.gmra.mrb[0].mxu1 %v4497_v44 }
 0x1dd   :  { %v810_v37 = vmax.f32 %v616_v9, 0.0  ;;  %v813_v8 = vmax.f32 %v627_v30, 0.0  ;;  %v1292_v38 = vcombine.high %v812_v23, %v812_v23  ;;  %v1299_v21 = vrot.slane %v812_v23, %v17791_v14 }
 0x1de   :  { %v3325_v0 = vmax.f32 %v3101_v2, %v3109_v45  ;;  %v3742_v22 = vrot.slane %v3323_v26, %v17796_v25  ;;  %v3746_v29 = vrot.slane %v3324_v35, %v17796_v25  ;;  %v4141_v49 = vsel %vm4109_vm6, %v3738_v62, %v4140_v40 }
 0x1df   :  { %v1258_v51 = vcombine.high %v810_v37, %v810_v37  ;;  %v1265_v16 = vrot.slane %v810_v37, %v17791_v14  ;;  %v1309_v6 = vcombine.high %v813_v8, %v813_v8  ;;  %v1316_v43 = vrot.slane %v813_v8, %v17791_v14 }
 0x1e0   :  { %v3750_v33 = vrot.slane %v3325_v0, %v17796_v25  ;;  %v4142_v56 = vsel %vm4111_vm7, %v3742_v22, %v4141_v49  ;;  %v1306_v44 = vrot.slane %v1292_v38, %v17791_v14  ;;  %v1307_v13 = vcombine.high %v1299_v21, %v1299_v21  ;;  %v18066_v49 = vpop.f32.mrb[44].mxu0 }
 0x1e1   :  { %v4143_v45 = vsel %vm4113_vm8, %v3746_v29, %v4142_v56  ;;  %v14160_v59 = vrot.slane %v1299_v21, 9  ;;  %v1272_v19 = vrot.slane %v1258_v51, %v17791_v14  ;;  %v1273_v3 = vcombine.high %v1265_v16, %v1265_v16 }
 0x1e2   :  { %v4144_v40 = vsel %vm4115_vm9, %v3750_v33, %v4143_v45  ;;  %v14152_v61 = vrot.slane %v1265_v16, 9  ;;  %v1308_v9 = vcombine.high %v1306_v44, %v1306_v44  ;;  %v14161_v30 = vrot.slane %v1307_v13, 9  ;;  %v18068_v45 = vpop.f32.mrb[45].mxu0 }
 0x1e3   :  { %4243 = vst [vmem:[#allocation2 + $0x51] sm:$0xff] %v4144_v40  ;;  %v14162_v2 = vrot.slane %v1306_v44, 9  ;;  %v3118_v26 = vmax.f32 %v1299_v21, %v14160_v59  ;;  %v1274_v35 = vcombine.high %v1272_v19, %v1272_v19  ;;  %v14153_v62 = vrot.slane %v1273_v3, 9  ;;  %v18070_v28 = vpop.f32.mrb[46].mxu0 }
 0x1e4   :  { %v14154_v23 = vrot.slane %v1272_v19, 9  ;;  %v3110_v37 = vmax.f32 %v1265_v16, %v14152_v61  ;;  %v14163_v8 = vrot.slane %v1308_v9, 9  ;;  %v3119_v0 = vmax.f32 %v1307_v13, %v14161_v30 }
 0x1e5   :  { %v3120_v22 = vmax.f32 %v1306_v44, %v14162_v2  ;;  %v1323_v29 = vrot.slane %v1309_v6, %v17791_v14  ;;  %v14155_v38 = vrot.slane %v1274_v35, 9  ;;  %v3111_v51 = vmax.f32 %v1273_v3, %v14153_v62 }
 0x1e6   :  { %v3112_v33 = vmax.f32 %v1272_v19, %v14154_v23  ;;  %v3326_v56 = vmax.f32 %v3110_v37, %v3118_v26  ;;  %v3121_v40 = vmax.f32 %v1308_v9, %v14163_v8  ;;  %v1324_v5 = vcombine.high %v1316_v43, %v1316_v43 }
 0x1e7   :  { %v1325_v21 = vcombine.high %v1323_v29, %v1323_v29  ;;  %v14164_v59 = vrot.slane %v1316_v43, 9  ;;  %v3113_v16 = vmax.f32 %v1274_v35, %v14155_v38  ;;  %v3327_v61 = vmax.f32 %v3111_v51, %v3119_v0 }
 0x1e8   :  { %v3328_v13 = vmax.f32 %v3112_v33, %v3120_v22  ;;  %v3754_v44 = vrot.slane %v3326_v56, %v17796_v25  ;;  %v14165_v6 = vrot.slane %v1324_v5, 9  ;;  %v14166_v30 = vrot.slane %v1323_v29, 9 }
 0x1e9   :  { %v14167_v2 = vrot.slane %v1325_v21, 9  ;;  %v3122_v7 = vmax.f32 %v1316_v43, %v14164_v59  ;;  %v3329_v3 = vmax.f32 %v3113_v16, %v3121_v40  ;;  %v3758_v19 = vrot.slane %v3327_v61, %v17796_v25 }
 0x1ea   :  { %v3762_v26 = vrot.slane %v3328_v13, %v17796_v25  ;;  %v811_v9 = vmax.f32 %v619_v48, 0.0  ;;  %v3123_v62 = vmax.f32 %v1324_v5, %v14165_v6  ;;  %v3124_v23 = vmax.f32 %v1323_v29, %v14166_v30  ;;  %v18087_v29 = vpop.f32.mrb[47].mxu0 }
 0x1eb   :  { %v3125_v37 = vmax.f32 %v1325_v21, %v14167_v2  ;;  %v4396_v8 = vrot.slane %v18003_v52, 2  ;;  %v3766_v35 = vrot.slane %v3329_v3, %v17796_v25  ;;  %v4145_v0 = vsel %vm4103_vm3, %v3758_v19, %v3754_v44 }
 0x1ec   :  { %v1275_v22 = vcombine.high %v811_v9, %v811_v9  ;;  %v1282_v38 = vrot.slane %v811_v9, %v17791_v14  ;;  %v4146_v43 = vsel %vm4105_vm4, %v3762_v26, %v4145_v0  ;;  %v20614_v51 = vrot.slane %v18005_v36, 2 }
 0x1ed   :  { %v4399_v5 = vrot.slane %v18007_v31, 2  ;;  %v4400_v48 = vrot.slane %v18014_v24, 2  ;;  %v4147_v21 = vsel %vm4107_vm5, %v3766_v35, %v4146_v43  ;;  %v640_v16 = vadd.f32 %v17953_v32, %v17895_v4 }
 0x1ee   :  { %v18083_v33 = vsel %vm4392_vm2, %v4396_v8, %v20614_v51  ;;  %v1289_v52 = vrot.slane %v1275_v22, %v17791_v14  ;;  %v1290_v56 = vcombine.high %v1282_v38, %v1282_v38  ;;  %v14156_v40 = vrot.slane %v1282_v38, 9 }
 0x1ef   :  { %v18092_v59 = vsel %vm4392_vm2, %v4399_v5, %v4400_v48  ;;  %v632_v24 = vadd.f32 %v17953_v32, %v17900_v15  ;;  %v816_v2 = vmax.f32 %v640_v16, 0.0  ;;  %v643_v19 = vadd.f32 %v17953_v32, %v17909_v20 }
 0x1f0   :  { %v1291_v61 = vcombine.high %v1289_v52, %v1289_v52  ;;  %v14157_v13 = vrot.slane %v1290_v56, 9  ;;  %v14158_v44 = vrot.slane %v1289_v52, 9  ;;  %v3114_v6 = vmax.f32 %v1282_v38, %v14156_v40 }
 0x1f1   :  { %v4502_v30 = vpack.c.bf16 %v18092_v59, %v18083_v33  ;;  %v814_v3 = vmax.f32 %v632_v24, 0.0  ;;  %v1360_v4 = vcombine.high %v816_v2, %v816_v2  ;;  %v1367_v15 = vrot.slane %v816_v2, %v17791_v14 }
 0x1f2   :  { %v14159_v26 = vrot.slane %v1291_v61, 9  ;;  %v3115_v9 = vmax.f32 %v1290_v56, %v14157_v13  ;;  %v3116_v8 = vmax.f32 %v1289_v52, %v14158_v44  ;;  %v3330_v35 = vmax.f32 %v3114_v6, %v3122_v7 }
 0x1f3   :  { %5360 = vmatprep.mubr.bf16.mxu0 %v4502_v30  ;;  %v1326_v0 = vcombine.high %v814_v3, %v814_v3  ;;  %v1333_v22 = vrot.slane %v814_v3, %v17791_v14  ;;  %v20615_v48 = vpack.c.bf16 %v18035_v18, %v18025_v60  ;;  %v1374_v20 = vrot.slane %v1360_v4, %v17791_v14 }
 0x1f4   :  { %v3117_v38 = vmax.f32 %v1291_v61, %v14159_v26  ;;  %v3331_v43 = vmax.f32 %v3115_v9, %v3123_v62  ;;  %v3332_v51 = vmax.f32 %v3116_v8, %v3124_v23  ;;  %v3770_v5 = vrot.slane %v3330_v35, %v17796_v25  ;;  %v18118_v8 = vld [vmem:[#allocation2 + $0x30] sm:$0xff] }
 0x1f5   :  { %5361 = vmatmul.mubr.bf16.vlgmr.msra.gmra.mrb[64].mxu0 %v20615_v48  ;;  %v1375_v52 = vcombine.high %v1367_v15, %v1367_v15  ;;  %v14176_v7 = vrot.slane %v1367_v15, 9  ;;  %v1340_v56 = vrot.slane %v1326_v0, %v17791_v14  ;;  %v1376_v23 = vcombine.high %v1374_v20, %v1374_v20 }
 0x1f6   :  { %v3333_v40 = vmax.f32 %v3117_v38, %v3125_v37  ;;  %v3774_v16 = vrot.slane %v3331_v43, %v17796_v25  ;;  %v3778_v24 = vrot.slane %v3332_v51, %v17796_v25  ;;  %v4148_v62 = vsel %vm4109_vm6, %v3770_v5, %v4147_v21  ;;  %v18123_v5 = vld [vmem:[#allocation2 + $0x38] sm:$0x3] }
 0x1f7   :  { %v14177_v61 = vrot.slane %v1375_v52, 9  ;;  %v14178_v13 = vrot.slane %v1374_v20, 9  ;;  %v3134_v44 = vmax.f32 %v1367_v15, %v14176_v7  ;;  %v1341_v30 = vcombine.high %v1333_v22, %v1333_v22 }
 0x1f8   :  { %v3782_v60 = vrot.slane %v3333_v40, %v17796_v25  ;;  %v4149_v6 = vsel %vm4111_vm7, %v3774_v16, %v4148_v62  ;;  %v1342_v2 = vcombine.high %v1340_v56, %v1340_v56  ;;  %v14179_v26 = vrot.slane %v1376_v23, 9 }
 0x1f9   :  { %v4150_v3 = vsel %vm4113_vm8, %v3778_v24, %v4149_v6  ;;  %v3135_v37 = vmax.f32 %v1375_v52, %v14177_v61  ;;  %v3136_v9 = vmax.f32 %v1374_v20, %v14178_v13  ;;  %v14168_v21 = vrot.slane %v1333_v22, 9 }
 0x1fa   :  { %v4151_v35 = vsel %vm4115_vm9, %v3782_v60, %v4150_v3  ;;  %v14169_v4 = vrot.slane %v1341_v30, 9  ;;  %v14170_v0 = vrot.slane %v1340_v56, 9  ;;  %v3137_v15 = vmax.f32 %v1376_v23, %v14179_v26  ;;  %v16017_v3 = vld [vmem:[#allocation10 + $0xc0] sm:$0xff]  }
 0x1fb   :  { %4244 = vst [vmem:[#allocation2 + $0x61] sm:$0xff] %v4151_v35  ;;  %v14171_v38 = vrot.slane %v1342_v2, 9  ;;  %v817_v43 = vmax.f32 %v643_v19, 0.0  ;;  %v635_v51 = vadd.f32 %v17953_v32, %v17913_v27  ;;  %v3126_v48 = vmax.f32 %v1333_v22, %v14168_v21  ;;  %v16018_v26 = vld [vmem:[#allocation10 + $0x80] sm:$0xff]   ;;  %v18132_v35 = vpop.f32.mrb[48].mxu0  ;;  %15476 = vmatprep.subr.bf16.mxu1 %v16017_v3 }
 0x1fc   :  { %v3127_v7 = vmax.f32 %v1341_v30, %v14169_v4  ;;  %v3128_v52 = vmax.f32 %v1340_v56, %v14170_v0  ;;  %v4337_v20 = vrot.slane %v18118_v8, 1  ;;  %v4338_v19 = vrot.slane %v18123_v5, 1  ;;  %15477 = vmatpush3.bf16.msra.mxu1 %v16018_v26 }
 0x1fd   :  { %v3129_v40 = vmax.f32 %v1342_v2, %v14171_v38  ;;  %v1377_v16 = vcombine.high %v817_v43, %v817_v43  ;;  %v1384_v24 = vrot.slane %v817_v43, %v17791_v14  ;;  %v815_v62 = vmax.f32 %v635_v51, 0.0 }
 0x1fe   :  { %v3334_v61 = vmax.f32 %v3126_v48, %v3134_v44  ;;  %v3335_v13 = vmax.f32 %v3127_v7, %v3135_v37  ;;  %v3336_v23 = vmax.f32 %v3128_v52, %v3136_v9 }
 0x1ff   :  { %v3337_v60 = vmax.f32 %v3129_v40, %v3137_v15  ;;  %v1391_v27 = vrot.slane %v1377_v16, %v17791_v14  ;;  %v1392_v32 = vcombine.high %v1384_v24, %v1384_v24  ;;  %v14180_v6 = vrot.slane %v1384_v24, 9 }
 0x200   :  { %v3786_v22 = vrot.slane %v3334_v61, %v17796_v25  ;;  %v3790_v56 = vrot.slane %v3335_v13, %v17796_v25  ;;  %v3794_v30 = vrot.slane %v3336_v23, %v17796_v25  ;;  %v1343_v2 = vcombine.high %v815_v62, %v815_v62 }
 0x201   :  { %v3798_v44 = vrot.slane %v3337_v60, %v17796_v25  ;;  %v1393_v37 = vcombine.high %v1391_v27, %v1391_v27  ;;  %v14181_v9 = vrot.slane %v1392_v32, 9  ;;  %v14182_v21 = vrot.slane %v1391_v27, 9 }
 0x202   :  { %v4152_v4 = vsel %vm4103_vm3, %v3790_v56, %v3786_v22  ;;  %v3138_v0 = vmax.f32 %v1384_v24, %v14180_v6  ;;  %v1350_v15 = vrot.slane %v815_v62, %v17791_v14  ;;  %v1357_v38 = vrot.slane %v1343_v2, %v17791_v14 }
 0x203   :  { %v4153_v43 = vsel %vm4105_vm4, %v3794_v30, %v4152_v4  ;;  %v14183_v51 = vrot.slane %v1393_v37, 9  ;;  %v3139_v48 = vmax.f32 %v1392_v32, %v14181_v9  ;;  %v3140_v7 = vmax.f32 %v1391_v27, %v14182_v21  ;;  %v18147_v27 = vpop.f32.mrb[49].mxu0  ;;  %v18153_v30 = vld [vmem:[#allocation8] ss:$0 sm:$0xff] }
 0x204   :  { %v1358_v52 = vcombine.high %v1350_v15, %v1350_v15  ;;  %v1359_v40 = vcombine.high %v1357_v38, %v1357_v38  ;;  %v14172_v16 = vrot.slane %v1350_v15, 9  ;;  %v14174_v61 = vrot.slane %v1357_v38, 9  ;;  %v18161_v2 = vpop.f32.mrb[50].mxu0 }
 0x205   :  { %v3141_v13 = vmax.f32 %v1393_v37, %v14183_v51  ;;  %v4154_v23 = vsel %vm4107_vm5, %v3798_v44, %v4153_v43  ;;  %v18141_v24 = vsel %vm4327_vm1, %v4337_v20, %v4338_v19  ;;  %v18145_v62 = vpack.c.bf16 %v18118_v8, %v18007_v31  ;;  %v18163_v9 = vpop.f32.mrb[51].mxu0 }
 0x206   :  { %v14173_v60 = vrot.slane %v1358_v52, 9  ;;  %v14175_v6 = vrot.slane %v1359_v40, 9  ;;  %v3130_v22 = vmax.f32 %v1350_v15, %v14172_v16  ;;  %v3132_v32 = vmax.f32 %v1357_v38, %v14174_v61 }
 0x207   :  { %20616 = vst [vmem:[#allocation27_spill] sm:$0xff] %v18145_v62  ;;  %v18151_v56 = vpack.c.bf16 %v18141_v24, %v18035_v18  ;;  %v656_v20 = vadd.f32 %v18153_v30, %v17918_v55  ;;  %v648_v19 = vadd.f32 %v18153_v30, %v17921_v63  ;;  %v659_v31 = vadd.f32 %v18153_v30, %v17924_v11 }
 0x208   :  { %v3131_v3 = vmax.f32 %v1358_v52, %v14173_v60  ;;  %v3133_v26 = vmax.f32 %v1359_v40, %v14175_v6  ;;  %v3338_v44 = vmax.f32 %v3130_v22, %v3138_v0  ;;  %v3340_v37 = vmax.f32 %v3132_v32, %v3140_v7 }
 0x209   :  { %20617 = vst [vmem:[#allocation28_spill] sm:$0xff] %v18151_v56  ;;  %5174 = vmatprep.mubr.bf16.mxu1 %v18151_v56  ;;  %v820_v18 = vmax.f32 %v656_v20, 0.0  ;;  %v818_v21 = vmax.f32 %v648_v19, 0.0  ;;  %v821_v4 = vmax.f32 %v659_v31, 0.0  ;;  %v651_v55 = vadd.f32 %v18153_v30, %v17929_v53 }
 0x20a   :  { %v3339_v63 = vmax.f32 %v3131_v3, %v3139_v48  ;;  %v3341_v15 = vmax.f32 %v3133_v26, %v3141_v13  ;;  %v3802_v11 = vrot.slane %v3338_v44, %v17796_v25  ;;  %v3810_v38 = vrot.slane %v3340_v37, %v17796_v25  ;;  %5175 = vmatmul.mubr.bf16.gmra.mrb[4].mxu1 %v18145_v62 }
 0x20b   :  { %v1428_v0 = vcombine.high %v820_v18, %v820_v18  ;;  %v1435_v43 = vrot.slane %v820_v18, %v17791_v14  ;;  %v1394_v51 = vcombine.high %v818_v21, %v818_v21  ;;  %v1401_v7 = vrot.slane %v818_v21, %v17791_v14 }
 0x20c   :  { %v3806_v52 = vrot.slane %v3339_v63, %v17796_v25  ;;  %v3814_v40 = vrot.slane %v3341_v15, %v17796_v25  ;;  %v4155_v53 = vsel %vm4109_vm6, %v3802_v11, %v4154_v23  ;;  %v1445_v48 = vcombine.high %v821_v4, %v821_v4 }
 0x20d   :  { %v1442_v16 = vrot.slane %v1428_v0, %v17791_v14  ;;  %v1443_v61 = vcombine.high %v1435_v43, %v1435_v43  ;;  %v14192_v13 = vrot.slane %v1435_v43, 9  ;;  %v1408_v60 = vrot.slane %v1394_v51, %v17791_v14 }
 0x20e   :  { %v4156_v6 = vsel %vm4111_vm7, %v3806_v52, %v4155_v53  ;;  %v1409_v22 = vcombine.high %v1401_v7, %v1401_v7  ;;  %v14184_v32 = vrot.slane %v1401_v7, 9  ;;  %v1452_v20 = vrot.slane %v821_v4, %v17791_v14 }
 0x20f   :  { %v4157_v19 = vsel %vm4113_vm8, %v3810_v38, %v4156_v6  ;;  %v1444_v31 = vcombine.high %v1442_v16, %v1442_v16  ;;  %v14193_v3 = vrot.slane %v1443_v61, 9  ;;  %v14194_v26 = vrot.slane %v1442_v16, 9 }
 0x210   :  { %v4158_v23 = vsel %vm4115_vm9, %v3814_v40, %v4157_v19  ;;  %v3150_v44 = vmax.f32 %v1435_v43, %v14192_v13  ;;  %v1410_v37 = vcombine.high %v1408_v60, %v1408_v60  ;;  %v14185_v18 = vrot.slane %v1409_v22, 9 }
 0x211   :  { %4245 = vst [vmem:[#allocation2 + $0x71] sm:$0xff] %v4158_v23  ;;  %v14195_v21 = vrot.slane %v1444_v31, 9  ;;  %v3151_v63 = vmax.f32 %v1443_v61, %v14193_v3  ;;  %v3152_v15 = vmax.f32 %v1442_v16, %v14194_v26  ;;  %v14186_v11 = vrot.slane %v1408_v60, 9  ;;  %v18188_v26 = vld [vmem:[#allocation2 + $0x40] sm:$0xff] }
 0x212   :  { %v14187_v0 = vrot.slane %v1410_v37, 9  ;;  %v3142_v51 = vmax.f32 %v1401_v7, %v14184_v32  ;;  %v3143_v52 = vmax.f32 %v1409_v22, %v14185_v18  ;;  %v1459_v4 = vrot.slane %v1445_v48, %v17791_v14  ;;  %v18185_v32 = vpop.f32.mrb[52].mxu0 }
 0x213   :  { %v3153_v53 = vmax.f32 %v1444_v31, %v14195_v21  ;;  %v3144_v38 = vmax.f32 %v1408_v60, %v14186_v11  ;;  %v1460_v6 = vcombine.high %v1452_v20, %v1452_v20  ;;  %v14196_v36 = vrot.slane %v1452_v20, 9  ;;  %v16019_v11 = vld [vmem:[#allocation10 + $0xc8] sm:$0xff]  }
 0x214   :  { %v3145_v10 = vmax.f32 %v1410_v37, %v14187_v0  ;;  %v3342_v62 = vmax.f32 %v3142_v51, %v3150_v44  ;;  %v3343_v40 = vmax.f32 %v3143_v52, %v3151_v63  ;;  %v1461_v43 = vcombine.high %v1459_v4, %v1459_v4  ;;  %v4264_v44 = vld [vmem:[#allocation2 + $0x48] sm:$0x3]  ;;  %v18190_v37 = vpop.f32.mrb[53].mxu0  ;;  %v16020_v0 = vld [vmem:[#allocation10 + $0x88] sm:$0xff]   ;;  %15478 = vmatprep.subr.bf16.mxu1 %v16019_v11 }
 0x215   :  { %v3344_v13 = vmax.f32 %v3144_v38, %v3152_v15  ;;  %v14197_v19 = vrot.slane %v1460_v6, 9  ;;  %v14198_v23 = vrot.slane %v1459_v4, 9  ;;  %v3154_v56 = vmax.f32 %v1452_v20, %v14196_v36  ;;  %v18195_v18 = vpop.f32.mrb[54].mxu0  ;;  %15479 = vmatpush3.bf16.msra.mxu1 %v16020_v0 }
 0x216   :  { %v3345_v61 = vmax.f32 %v3145_v10, %v3153_v53  ;;  %v3818_v16 = vrot.slane %v3342_v62, %v17796_v25  ;;  %v3822_v7 = vrot.slane %v3343_v40, %v17796_v25  ;;  %v14199_v22 = vrot.slane %v1461_v43, 9  ;;  %v18200_v51 = vpop.f32.mrb[55].mxu0 }
 0x217   :  { %v3826_v48 = vrot.slane %v3344_v13, %v17796_v25  ;;  %v3155_v60 = vmax.f32 %v1460_v6, %v14197_v19  ;;  %v3156_v31 = vmax.f32 %v1459_v4, %v14198_v23  ;;  %v819_v3 = vmax.f32 %v651_v55, 0.0 }
 0x218   :  { %v3830_v36 = vrot.slane %v3345_v61, %v17796_v25  ;;  %v4159_v10 = vsel %vm4103_vm3, %v3822_v7, %v3818_v16  ;;  %v3157_v62 = vmax.f32 %v1461_v43, %v14199_v22  ;;  %v4402_v20 = vrot.slane %v18118_v8, 2 }
 0x219   :  { %v4160_v21 = vsel %vm4105_vm4, %v3826_v48, %v4159_v10  ;;  %v1411_v63 = vcombine.high %v819_v3, %v819_v3  ;;  %v1418_v15 = vrot.slane %v819_v3, %v17791_v14  ;;  %v4403_v55 = vrot.slane %v18123_v5, 2 }
 0x21a   :  { %v4161_v52 = vsel %vm4107_vm5, %v3830_v36, %v4160_v21  ;;  %v4405_v4 = vrot.slane %v18188_v26, 2  ;;  %v4406_v53 = vrot.slane %v4264_v44, 2  ;;  %v4340_v8 = vrot.slane %v18188_v26, 1 }
 0x21b   :  { %v1425_v38 = vrot.slane %v1411_v63, %v17791_v14  ;;  %v1426_v6 = vcombine.high %v1418_v15, %v1418_v15  ;;  %v14188_v40 = vrot.slane %v1418_v15, 9  ;;  %v18207_v43 = vsel %vm4392_vm2, %v4402_v20, %v4403_v55 }
 0x21c   :  { %v18210_v5 = vsel %vm4392_vm2, %v4405_v4, %v4406_v53  ;;  %v4341_v13 = vrot.slane %v4264_v44, 1  ;;  %v672_v19 = vadd.f32 %v18153_v30, %v17938_v47  ;;  %v664_v23 = vadd.f32 %v18153_v30, %v17940_v54 }
 0x21d   :  { %v1427_v61 = vcombine.high %v1425_v38, %v1425_v38  ;;  %v14189_v16 = vrot.slane %v1426_v6, 9  ;;  %v14190_v7 = vrot.slane %v1425_v38, 9  ;;  %v3146_v22 = vmax.f32 %v1418_v15, %v14188_v40 }
 0x21e   :  { %v4508_v48 = vpack.c.bf16 %v18210_v5, %v18207_v43  ;;  %v18219_v3 = vsel %vm4327_vm1, %v4340_v8, %v4341_v13  ;;  %v824_v36 = vmax.f32 %v672_v19, 0.0  ;;  %v822_v10 = vmax.f32 %v664_v23, 0.0 }
 0x21f   :  { %v14191_v44 = vrot.slane %v1427_v61, 9  ;;  %v3147_v20 = vmax.f32 %v1426_v6, %v14189_v16  ;;  %v3148_v21 = vmax.f32 %v1425_v38, %v14190_v7  ;;  %v3346_v47 = vmax.f32 %v3146_v22, %v3154_v56 }
 0x220   :  { %5368 = vmatprep.mubr.bf16.mxu0 %v4508_v48  ;;  %v4507_v54 = vpack.c.bf16 %v18219_v3, %v18141_v24  ;;  %v1496_v63 = vcombine.high %v824_v36, %v824_v36  ;;  %v1503_v55 = vrot.slane %v824_v36, %v17791_v14  ;;  %v1462_v15 = vcombine.high %v822_v10, %v822_v10 }
 0x221   :  { %v3149_v11 = vmax.f32 %v1427_v61, %v14191_v44  ;;  %v3347_v0 = vmax.f32 %v3147_v20, %v3155_v60  ;;  %v3348_v4 = vmax.f32 %v3148_v21, %v3156_v31  ;;  %v3834_v53 = vrot.slane %v3346_v47, %v17796_v25  ;;  %v18234_v20 = vld [vmem:[#allocation2 + $0x50] sm:$0xff] }
 0x222   :  { %5369 = vmatmul.mubr.bf16.gmra.mrb[68].mxu0 %v4507_v54  ;;  %v1510_v8 = vrot.slane %v1496_v63, %v17791_v14  ;;  %v1511_v40 = vcombine.high %v1503_v55, %v1503_v55  ;;  %v14208_v6 = vrot.slane %v1503_v55, 9  ;;  %v1469_v56 = vrot.slane %v822_v10, %v17791_v14  ;;  %v18237_v63 = vld [vmem:[#allocation2 + $0x58] sm:$0x3] }
 0x223   :  { %v3349_v38 = vmax.f32 %v3149_v11, %v3157_v62  ;;  %v3838_v13 = vrot.slane %v3347_v0, %v17796_v25  ;;  %v3842_v24 = vrot.slane %v3348_v4, %v17796_v25  ;;  %v4162_v19 = vsel %vm4109_vm6, %v3834_v53, %v4161_v52 }
 0x224   :  { %v1512_v23 = vcombine.high %v1510_v8, %v1510_v8  ;;  %v14209_v61 = vrot.slane %v1511_v40, 9  ;;  %v14210_v60 = vrot.slane %v1510_v8, 9  ;;  %v3166_v31 = vmax.f32 %v1503_v55, %v14208_v6 }
 0x225   :  { %v3846_v16 = vrot.slane %v3349_v38, %v17796_v25  ;;  %v4163_v7 = vsel %vm4111_vm7, %v3838_v13, %v4162_v19  ;;  %v1476_v22 = vrot.slane %v1462_v15, %v17791_v14  ;;  %v1477_v48 = vcombine.high %v1469_v56, %v1469_v56 }
 0x226   :  { %v4164_v36 = vsel %vm4113_vm8, %v3842_v24, %v4163_v7  ;;  %v14211_v62 = vrot.slane %v1512_v23, 9  ;;  %v3167_v10 = vmax.f32 %v1511_v40, %v14209_v61  ;;  %v3168_v44 = vmax.f32 %v1510_v8, %v14210_v60 }
 0x227   :  { %v4165_v52 = vsel %vm4115_vm9, %v3846_v16, %v4164_v36  ;;  %v1478_v21 = vcombine.high %v1476_v22, %v1476_v22  ;;  %v14200_v47 = vrot.slane %v1469_v56, 9  ;;  %v14201_v54 = vrot.slane %v1477_v48, 9 }
 0x228   :  { %4246 = vst [vmem:[#allocation2 + $0x81] sm:$0xff] %v4165_v52  ;;  %v3169_v55 = vmax.f32 %v1512_v23, %v14211_v62  ;;  %v14202_v11 = vrot.slane %v1476_v22, 9  ;;  %v675_v15 = vadd.f32 %v18153_v30, %v17943_v1  ;;  %v667_v0 = vadd.f32 %v18153_v30, %v17946_v12 }
 0x229   :  { %v14203_v4 = vrot.slane %v1478_v21, 9  ;;  %v3158_v53 = vmax.f32 %v1469_v56, %v14200_v47  ;;  %v3159_v8 = vmax.f32 %v1477_v48, %v14201_v54  ;;  %v4343_v40 = vrot.slane %v18234_v20, 1 }
 0x22a   :  { %v3160_v6 = vmax.f32 %v1476_v22, %v14202_v11  ;;  %v825_v38 = vmax.f32 %v675_v15, 0.0  ;;  %v823_v13 = vmax.f32 %v667_v0, 0.0  ;;  %v4344_v24 = vrot.slane %v18237_v63, 1  ;;  %v16021_v0 = vld [vmem:[#allocation10 + $0xd0] sm:$0xff]  }
 0x22b   :  { %v3161_v19 = vmax.f32 %v1478_v21, %v14203_v4  ;;  %v3350_v61 = vmax.f32 %v3158_v53, %v3166_v31  ;;  %v3351_v23 = vmax.f32 %v3159_v8, %v3167_v10  ;;  %v18247_v60 = vpack.c.bf16 %v18234_v20, %v18188_v26  ;;  %v16022_v4 = vld [vmem:[#allocation10 + $0x90] sm:$0xff]   ;;  %v18259_v53 = vpop.f32.mrb[56].mxu0  ;;  %15480 = vmatprep.subr.bf16.mxu1 %v16021_v0 }
 0x22c   :  { %v3352_v1 = vmax.f32 %v3160_v6, %v3168_v44  ;;  %v1513_v16 = vcombine.high %v825_v38, %v825_v38  ;;  %v1520_v12 = vrot.slane %v825_v38, %v17791_v14  ;;  %v1479_v56 = vcombine.high %v823_v13, %v823_v13  ;;  %15481 = vmatpush3.bf16.msra.mxu1 %v16022_v4 }
 0x22d   :  { %20618 = vst [vmem:[#allocation29_spill] sm:$0xff] %v18247_v60  ;;  %v3353_v7 = vmax.f32 %v3161_v19, %v3169_v55  ;;  %v3850_v48 = vrot.slane %v3350_v61, %v17796_v25  ;;  %v3854_v22 = vrot.slane %v3351_v23, %v17796_v25  ;;  %v1486_v36 = vrot.slane %v823_v13, %v17791_v14 }
 0x22e   :  { %v3858_v62 = vrot.slane %v3352_v1, %v17796_v25  ;;  %v1527_v31 = vrot.slane %v1513_v16, %v17791_v14  ;;  %v1528_v10 = vcombine.high %v1520_v12, %v1520_v12  ;;  %v14212_v52 = vrot.slane %v1520_v12, 9 }
 0x22f   :  { %v3862_v26 = vrot.slane %v3353_v7, %v17796_v25  ;;  %v4166_v44 = vsel %vm4103_vm3, %v3854_v22, %v3850_v48  ;;  %v1493_v21 = vrot.slane %v1479_v56, %v17791_v14  ;;  %v1494_v47 = vcombine.high %v1486_v36, %v1486_v36 }
 0x230   :  { %v4167_v54 = vsel %vm4105_vm4, %v3858_v62, %v4166_v44  ;;  %v1529_v55 = vcombine.high %v1527_v31, %v1527_v31  ;;  %v14213_v11 = vrot.slane %v1528_v10, 9  ;;  %v14214_v15 = vrot.slane %v1527_v31, 9 }
 0x231   :  { %v3170_v8 = vmax.f32 %v1520_v12, %v14212_v52  ;;  %v1495_v6 = vcombine.high %v1493_v21, %v1493_v21  ;;  %v14204_v38 = vrot.slane %v1486_v36, 9  ;;  %v14205_v13 = vrot.slane %v1494_v47, 9  ;;  %v18267_v52 = vpop.f32.mrb[57].mxu0 }
 0x232   :  { %v14215_v19 = vrot.slane %v1529_v55, 9  ;;  %v3171_v61 = vmax.f32 %v1528_v10, %v14213_v11  ;;  %v3172_v23 = vmax.f32 %v1527_v31, %v14214_v15  ;;  %v14206_v1 = vrot.slane %v1493_v21, 9 }
 0x233   :  { %v14207_v16 = vrot.slane %v1495_v6, 9  ;;  %v3162_v56 = vmax.f32 %v1486_v36, %v14204_v38  ;;  %v3163_v7 = vmax.f32 %v1494_v47, %v14205_v13  ;;  %v4168_v48 = vsel %vm4107_vm5, %v3862_v26, %v4167_v54  ;;  %v18273_v47 = vpop.f32.mrb[58].mxu0 }
 0x234   :  { %v3173_v22 = vmax.f32 %v1529_v55, %v14215_v19  ;;  %v3164_v62 = vmax.f32 %v1493_v21, %v14206_v1  ;;  %v18263_v44 = vsel %vm4327_vm1, %v4343_v40, %v4344_v24  ;;  %v688_v12 = vadd.f32 %v18153_v30, %v17964_v50  ;;  %v18279_v50 = vpop.f32.mrb[59].mxu0 }
 0x235   :  { %v3165_v10 = vmax.f32 %v1495_v6, %v14207_v16  ;;  %v3354_v31 = vmax.f32 %v3162_v56, %v3170_v8  ;;  %v3355_v11 = vmax.f32 %v3163_v7, %v3171_v61  ;;  %v18271_v36 = vpack.c.bf16 %v18263_v44, %v18219_v3 }
 0x236   :  { %v3356_v26 = vmax.f32 %v3164_v62, %v3172_v23  ;;  %v828_v54 = vmax.f32 %v688_v12, 0.0  ;;  %v680_v40 = vadd.f32 %v18153_v30, %v17968_v57  ;;  %v691_v24 = vadd.f32 %v18153_v30, %v17970_v42 }
 0x237   :  { %20619 = vst [vmem:[#allocation30_spill] sm:$0xff] %v18271_v36  ;;  %v3357_v21 = vmax.f32 %v3165_v10, %v3173_v22  ;;  %v3866_v55 = vrot.slane %v3354_v31, %v17796_v25  ;;  %v3870_v15 = vrot.slane %v3355_v11, %v17796_v25  ;;  %5182 = vmatprep.mubr.bf16.mxu1 %v18271_v36 }
 0x238   :  { %v683_v3 = vadd.f32 %v18153_v30, %v17974_v17  ;;  %v3874_v0 = vrot.slane %v3356_v26, %v17796_v25  ;;  %5183 = vmatmul.mubr.bf16.gmra.mrb[8].mxu1 %v18247_v60  ;;  %v1564_v57 = vcombine.high %v828_v54, %v828_v54  ;;  %v1571_v4 = vrot.slane %v828_v54, %v17791_v14 }
 0x239   :  { %v826_v42 = vmax.f32 %v680_v40, 0.0  ;;  %v3878_v8 = vrot.slane %v3357_v21, %v17796_v25  ;;  %v4169_v6 = vsel %vm4109_vm6, %v3866_v55, %v4168_v48  ;;  %v829_v38 = vmax.f32 %v691_v24, 0.0 }
 0x23a   :  { %v827_v13 = vmax.f32 %v683_v3, 0.0  ;;  %v4170_v19 = vsel %vm4111_vm7, %v3870_v15, %v4169_v6  ;;  %v1578_v61 = vrot.slane %v1564_v57, %v17791_v14  ;;  %v1579_v23 = vcombine.high %v1571_v4, %v1571_v4 }
 0x23b   :  { %v14224_v17 = vrot.slane %v1571_v4, 9  ;;  %v4171_v1 = vsel %vm4113_vm8, %v3874_v0, %v4170_v19  ;;  %v1530_v16 = vcombine.high %v826_v42, %v826_v42  ;;  %v1537_v56 = vrot.slane %v826_v42, %v17791_v14 }
 0x23c   :  { %v1581_v7 = vcombine.high %v829_v38, %v829_v38  ;;  %v4172_v22 = vsel %vm4115_vm9, %v3878_v8, %v4171_v1  ;;  %v1580_v62 = vcombine.high %v1578_v61, %v1578_v61  ;;  %v14225_v12 = vrot.slane %v1579_v23, 9 }
 0x23d   :  { %v14226_v10 = vrot.slane %v1578_v61, 9  ;;  %4247 = vst [vmem:[#allocation2 + $0xb1] sm:$0xff] %v4172_v22  ;;  %v3182_v48 = vmax.f32 %v1571_v4, %v14224_v17  ;;  %v1544_v31 = vrot.slane %v1530_v16, %v17791_v14  ;;  %v1545_v11 = vcombine.high %v1537_v56, %v1537_v56 }
 0x23e   :  { %v14216_v26 = vrot.slane %v1537_v56, 9  ;;  %v14227_v54 = vrot.slane %v1580_v62, 9  ;;  %v3183_v40 = vmax.f32 %v1579_v23, %v14225_v12  ;;  %v1588_v21 = vrot.slane %v829_v38, %v17791_v14 }
 0x23f   :  { %v3184_v24 = vmax.f32 %v1578_v61, %v14226_v10  ;;  %v1546_v55 = vcombine.high %v1544_v31, %v1544_v31  ;;  %v14217_v15 = vrot.slane %v1545_v11, 9  ;;  %v14218_v3 = vrot.slane %v1544_v31, 9 }
 0x240   :  { %v3174_v0 = vmax.f32 %v1537_v56, %v14216_v26  ;;  %v3185_v57 = vmax.f32 %v1580_v62, %v14227_v54  ;;  %v1595_v42 = vrot.slane %v1581_v7, %v17791_v14  ;;  %v1596_v8 = vcombine.high %v1588_v21, %v1588_v21  ;;  %v18300_v7 = vpop.f32.mrb[60].mxu0 }
 0x241   :  { %v14228_v6 = vrot.slane %v1588_v21, 9  ;;  %v14219_v19 = vrot.slane %v1546_v55, 9  ;;  %v3175_v4 = vmax.f32 %v1545_v11, %v14217_v15  ;;  %v3176_v17 = vmax.f32 %v1544_v31, %v14218_v3  ;;  %v18305_v15 = vpop.f32.mrb[61].mxu0 }
 0x242   :  { %v3358_v1 = vmax.f32 %v3174_v0, %v3182_v48  ;;  %v1597_v16 = vcombine.high %v1595_v42, %v1595_v42  ;;  %v14229_v22 = vrot.slane %v1596_v8, 9  ;;  %v14230_v60 = vrot.slane %v1595_v42, 9 }
 0x243   :  { %v3186_v23 = vmax.f32 %v1588_v21, %v14228_v6  ;;  %v3177_v61 = vmax.f32 %v1546_v55, %v14219_v19  ;;  %v3359_v12 = vmax.f32 %v3175_v4, %v3183_v40  ;;  %v3360_v38 = vmax.f32 %v3176_v17, %v3184_v24  ;;  %v18308_v24 = vld [vmem:[#allocation2 + $0x60] sm:$0xff]  ;;  %v16023_v4 = vld [vmem:[#allocation10 + $0xd8] sm:$0xff]  }
 0x244   :  { %v3882_v10 = vrot.slane %v3358_v1, %v17796_v25  ;;  %v14231_v36 = vrot.slane %v1597_v16, 9  ;;  %v3187_v56 = vmax.f32 %v1596_v8, %v14229_v22  ;;  %v3188_v62 = vmax.f32 %v1595_v42, %v14230_v60  ;;  %v4268_v8 = vld [vmem:[#allocation2 + $0x68] sm:$0x3]  ;;  %v16024_v17 = vld [vmem:[#allocation10 + $0x98] sm:$0xff]   ;;  %v18316_v1 = vpop.f32.mrb[62].mxu0  ;;  %15482 = vmatprep.subr.bf16.mxu1 %v16023_v4 }
 0x245   :  { %v1547_v26 = vcombine.high %v827_v13, %v827_v13  ;;  %v3361_v54 = vmax.f32 %v3177_v61, %v3185_v57  ;;  %v3886_v11 = vrot.slane %v3359_v12, %v17796_v25  ;;  %v3890_v48 = vrot.slane %v3360_v38, %v17796_v25  ;;  %v18320_v61 = vpop.f32.mrb[63].mxu0  ;;  %15483 = vmatpush3.bf16.msra.mxu1 %v16024_v17 }
 0x246   :  { %v1554_v31 = vrot.slane %v827_v13, %v17791_v14  ;;  %v3189_v21 = vmax.f32 %v1597_v16, %v14231_v36  ;;  %v4408_v55 = vrot.slane %v18234_v20, 2  ;;  %v4409_v60 = vrot.slane %v18237_v63, 2 }
 0x247   :  { %v1561_v40 = vrot.slane %v1547_v26, %v17791_v14  ;;  %v3894_v3 = vrot.slane %v3361_v54, %v17796_v25  ;;  %v4173_v0 = vsel %vm4103_vm3, %v3886_v11, %v3882_v10  ;;  %v4411_v22 = vrot.slane %v18308_v24, 2 }
 0x248   :  { %v1562_v57 = vcombine.high %v1554_v31, %v1554_v31  ;;  %v14220_v42 = vrot.slane %v1554_v31, 9  ;;  %v4174_v13 = vsel %vm4105_vm4, %v3890_v48, %v4173_v0  ;;  %v4410_v36 = vsel %vm4392_vm2, %v4408_v55, %v4409_v60 }
 0x249   :  { %v1563_v6 = vcombine.high %v1561_v40, %v1561_v40  ;;  %v14222_v19 = vrot.slane %v1561_v40, 9  ;;  %v4175_v63 = vsel %vm4107_vm5, %v3894_v3, %v4174_v13  ;;  %v4412_v10 = vrot.slane %v4268_v8, 2 }
 0x24a   :  { %v14221_v20 = vrot.slane %v1562_v57, 9  ;;  %v3178_v16 = vmax.f32 %v1554_v31, %v14220_v42  ;;  %v18323_v26 = vpack.c.bf16 %v4410_v36, %v18210_v5  ;;  %v4346_v48 = vrot.slane %v18308_v24, 1 }
 0x24b   :  { %v14223_v12 = vrot.slane %v1563_v6, 9  ;;  %v3180_v38 = vmax.f32 %v1561_v40, %v14222_v19  ;;  %v4347_v55 = vrot.slane %v4268_v8, 1  ;;  %v18327_v3 = vsel %vm4392_vm2, %v4411_v22, %v4412_v10 }
 0x24c   :  { %20620 = vst [vmem:[#allocation31_spill] sm:$0xff] %v18323_v26  ;;  %v3179_v54 = vmax.f32 %v1562_v57, %v14221_v20  ;;  %v3362_v11 = vmax.f32 %v3178_v16, %v3186_v23  ;;  %20621 = vst [vmem:[#allocation32_spill] sm:$0xff] %v18327_v3  ;;  %v704_v0 = vadd.f32 %v18153_v30, %v18016_v58 }
 0x24d   :  { %v3181_v31 = vmax.f32 %v1563_v6, %v14223_v12  ;;  %v3364_v60 = vmax.f32 %v3180_v38, %v3188_v62  ;;  %v4514_v5 = vpack.c.bf16 %v18327_v3, %v4410_v36  ;;  %v18334_v57 = vsel %vm4327_vm1, %v4346_v48, %v4347_v55  ;;  %v18339_v6 = vld [vmem:[#allocation2 + $0x70] sm:$0xff] }
 0x24e   :  { %v3363_v40 = vmax.f32 %v3179_v54, %v3187_v56  ;;  %v3898_v42 = vrot.slane %v3362_v11, %v17796_v25  ;;  %v4513_v62 = vpack.c.bf16 %v18334_v57, %v18263_v44  ;;  %v832_v13 = vmax.f32 %v704_v0, 0.0 }
 0x24f   :  { %v3365_v23 = vmax.f32 %v3181_v31, %v3189_v21  ;;  %v3906_v8 = vrot.slane %v3364_v60, %v17796_v25  ;;  %5376 = vmatprep.mubr.bf16.mxu0 %v4514_v5  ;;  %v696_v56 = vadd.f32 %v18153_v30, %v18029_v41  ;;  %v707_v36 = vadd.f32 %v18153_v30, %v18031_v39 }
 0x250   :  { %v3902_v19 = vrot.slane %v3363_v40, %v17796_v25  ;;  %v4176_v58 = vsel %vm4109_vm6, %v3898_v42, %v4175_v63  ;;  %5377 = vmatmul.mubr.bf16.gmra.mrb[72].mxu0 %v4513_v62  ;;  %v1632_v4 = vcombine.high %v832_v13, %v832_v13  ;;  %v1639_v44 = vrot.slane %v832_v13, %v17791_v14 }
 0x251   :  { %v3910_v21 = vrot.slane %v3365_v23, %v17796_v25  ;;  %v699_v17 = vadd.f32 %v18153_v30, %v18040_v46  ;;  %v830_v16 = vmax.f32 %v696_v56, 0.0  ;;  %v833_v63 = vmax.f32 %v707_v36, 0.0 }
 0x252   :  { %v4177_v20 = vsel %vm4111_vm7, %v3902_v19, %v4176_v58  ;;  %v4349_v22 = vrot.slane %v18339_v6, 1  ;;  %v1646_v12 = vrot.slane %v1632_v4, %v17791_v14  ;;  %v1647_v39 = vcombine.high %v1639_v44, %v1639_v44 }
 0x253   :  { %v4178_v41 = vsel %vm4113_vm8, %v3906_v8, %v4177_v20  ;;  %v14240_v38 = vrot.slane %v1639_v44, 9  ;;  %v1598_v54 = vcombine.high %v830_v16, %v830_v16  ;;  %v1605_v11 = vrot.slane %v830_v16, %v17791_v14 }
 0x254   :  { %v4179_v10 = vsel %vm4115_vm9, %v3910_v21, %v4178_v41  ;;  %v1649_v48 = vcombine.high %v833_v63, %v833_v63  ;;  %v1648_v46 = vcombine.high %v1646_v12, %v1646_v12  ;;  %v14241_v55 = vrot.slane %v1647_v39, 9 }
 0x255   :  { %4248 = vst [vmem:[#allocation2 + $0xc1] sm:$0xff] %v4179_v10  ;;  %v14242_v31 = vrot.slane %v1646_v12, 9  ;;  %v3198_v60 = vmax.f32 %v1639_v44, %v14240_v38  ;;  %v1612_v0 = vrot.slane %v1598_v54, %v17791_v14  ;;  %v1613_v40 = vcombine.high %v1605_v11, %v1605_v11 }
 0x256   :  { %v14232_v42 = vrot.slane %v1605_v11, 9  ;;  %v1656_v5 = vrot.slane %v833_v63, %v17791_v14  ;;  %v14243_v23 = vrot.slane %v1648_v46, 9  ;;  %v3199_v8 = vmax.f32 %v1647_v39, %v14241_v55  ;;  %v16025_v39 = vld [vmem:[#allocation10 + $0xe0] sm:$0xff]  }
 0x257   :  { %v3200_v62 = vmax.f32 %v1646_v12, %v14242_v31  ;;  %v1663_v13 = vrot.slane %v1649_v48, %v17791_v14  ;;  %v1614_v19 = vcombine.high %v1612_v0, %v1612_v0  ;;  %v14233_v58 = vrot.slane %v1613_v40, 9  ;;  %v18362_v12 = vld [vmem:[#allocation2 + $0x78] sm:$0x3]  ;;  %15484 = vmatprep.subr.bf16.mxu1 %v16025_v39 }
 0x258   :  { %v14234_v56 = vrot.slane %v1612_v0, 9  ;;  %v3190_v36 = vmax.f32 %v1605_v11, %v14232_v42  ;;  %v3201_v21 = vmax.f32 %v1648_v46, %v14243_v23  ;;  %v1664_v4 = vcombine.high %v1656_v5, %v1656_v5 }
 0x259   :  { %v1665_v20 = vcombine.high %v1663_v13, %v1663_v13  ;;  %v14244_v16 = vrot.slane %v1656_v5, 9  ;;  %v14235_v44 = vrot.slane %v1614_v19, 9  ;;  %v3191_v41 = vmax.f32 %v1613_v40, %v14233_v58 }
 0x25a   :  { %v3192_v38 = vmax.f32 %v1612_v0, %v14234_v56  ;;  %v3366_v10 = vmax.f32 %v3190_v36, %v3198_v60  ;;  %v14245_v54 = vrot.slane %v1664_v4, 9  ;;  %v14246_v26 = vrot.slane %v1663_v13, 9 }
 0x25b   :  { %v14247_v63 = vrot.slane %v1665_v20, 9  ;;  %v18360_v3 = vmax.f32 %v1656_v5, %v14244_v16  ;;  %v3193_v48 = vmax.f32 %v1614_v19, %v14235_v44  ;;  %v3367_v55 = vmax.f32 %v3191_v41, %v3199_v8 }
 0x25c   :  { %v3368_v31 = vmax.f32 %v3192_v38, %v3200_v62  ;;  %v3914_v11 = vrot.slane %v3366_v10, %v17796_v25  ;;  %v18365_v46 = vmax.f32 %v1664_v4, %v14245_v54  ;;  %v18367_v42 = vmax.f32 %v1663_v13, %v14246_v26  ;;  %v16026_v13 = vld [vmem:[#allocation10 + $0xa0] sm:$0xff]  }
 0x25d   :  { %v18369_v40 = vmax.f32 %v1665_v20, %v14247_v63  ;;  %v831_v60 = vmax.f32 %v699_v17, 0.0  ;;  %v3369_v0 = vmax.f32 %v3193_v48, %v3201_v21  ;;  %v3918_v5 = vrot.slane %v3367_v55, %v17796_v25  ;;  %v16027_v17 = vld [vmem:[#allocation10 + $0xe8] sm:$0xff]   ;;  %v16029_v20 = vld [vmem:[#allocation10 + $0x200] sm:$0xff]   ;;  %15485 = vmatpush3.bf16.msra.mxu1 %v16026_v13 }
 0x25e   :  { %v3922_v23 = vrot.slane %v3368_v31, %v17796_v25  ;;  %v4350_v58 = vrot.slane %v18362_v12, 1  ;;  %v18377_v62 = vpack.c.bf16 %v18339_v6, %v18308_v24  ;;  %v720_v26 = vadd.f32 %v18153_v30, %v18066_v49  ;;  %v16030_v49 = vld [vmem:[#allocation10 + $0x208] sm:$0xff]   ;;  %15486 = vmatprep.subr.bf16.mxu1 %v16027_v17  ;;  %15796 = vmatprep.subr.bf16.mxu0 %v16029_v20 }
 0x25f   :  { %v1615_v19 = vcombine.high %v831_v60, %v831_v60  ;;  %v1622_v8 = vrot.slane %v831_v60, %v17791_v14  ;;  %v3926_v56 = vrot.slane %v3369_v0, %v17796_v25  ;;  %v4180_v36 = vsel %vm4103_vm3, %v3918_v5, %v3914_v11  ;;  %v16028_v63 = vld [vmem:[#allocation10 + $0xa8] sm:$0xff]   ;;  %15797 = vmatpush3.bf16.msra.mxu0 %v16029_v20  ;;  %v16033_v5 = vld [vmem:[#allocation10 + $0x210] sm:$0xff]  }
 0x260   :  { %v18384_v21 = vsel %vm4327_vm1, %v4349_v22, %v4350_v58  ;;  %v712_v4 = vadd.f32 %v18153_v30, %v18068_v45  ;;  %v4181_v16 = vsel %vm4105_vm4, %v3922_v23, %v4180_v36  ;;  %v836_v22 = vmax.f32 %v720_v26, 0.0  ;;  %15798 = vmatprep.subr.bf16.mxu0 %v16030_v49  ;;  %v16032_v36 = vld [vmem:[#allocation10 + $0xb0] sm:$0xff]  }
 0x261   :  { %v1629_v24 = vrot.slane %v1615_v19, %v17791_v14  ;;  %v1630_v44 = vcombine.high %v1622_v8, %v1622_v8  ;;  %v14236_v41 = vrot.slane %v1622_v8, 9  ;;  %v4182_v38 = vsel %vm4107_vm5, %v3926_v56, %v4181_v16  ;;  %15487 = vmatpush3.bf16.msra.mxu1 %v16028_v63 }
 0x262   :  { %v18393_v10 = vpack.c.bf16 %v18384_v21, %v18334_v57  ;;  %v834_v54 = vmax.f32 %v712_v4, 0.0  ;;  %v1700_v31 = vcombine.high %v836_v22, %v836_v22  ;;  %v1707_v11 = vrot.slane %v836_v22, %v17791_v14  ;;  %v16031_v57 = vld [vmem:[#allocation10 + $0xf0] sm:$0xff]  }
 0x263   :  { %v1631_v45 = vcombine.high %v1629_v24, %v1629_v24  ;;  %v14237_v39 = vrot.slane %v1630_v44, 9  ;;  %v14238_v48 = vrot.slane %v1629_v24, 9  ;;  %v3194_v55 = vmax.f32 %v1622_v8, %v14236_v41  ;;  %15799 = vmatpush3.bf16.msra.mxu0 %v16030_v49  ;;  %15488 = vmatprep.subr.bf16.mxu1 %v16031_v57 }
 0x264   :  { %5190 = vmatprep.mubr.bf16.mxu1 %v18393_v10  ;;  %v1666_v60 = vcombine.high %v834_v54, %v834_v54  ;;  %v1673_v0 = vrot.slane %v834_v54, %v17791_v14  ;;  %v1714_v8 = vrot.slane %v1700_v31, %v17791_v14  ;;  %v1715_v13 = vcombine.high %v1707_v11, %v1707_v11 }
 0x265   :  { %v14239_v23 = vrot.slane %v1631_v45, 9  ;;  %v3195_v58 = vmax.f32 %v1630_v44, %v14237_v39  ;;  %v3196_v19 = vmax.f32 %v1629_v24, %v14238_v48  ;;  %v3370_v26 = vmax.f32 %v3194_v55, %v18360_v3  ;;  %5191 = vmatmul.mubr.bf16.gmra.mrb[12].mxu1 %v18377_v62  ;;  %v16035_v3 = vld [vmem:[#allocation10 + $0xf8] sm:$0xff]   ;;  %15800 = vmatprep.subr.bf16.mxu0 %v16033_v5 }
 0x266   :  { %v14256_v17 = vrot.slane %v1707_v11, 9  ;;  %v1680_v56 = vrot.slane %v1666_v60, %v17791_v14  ;;  %v1716_v44 = vcombine.high %v1714_v8, %v1714_v8  ;;  %v14257_v41 = vrot.slane %v1715_v13, 9  ;;  %v16034_v39 = vld [vmem:[#allocation10 + $0x218] sm:$0xff]   ;;  %15489 = vmatpush3.bf16.msra.mxu1 %v16032_v36 }
 0x267   :  { %v3197_v4 = vmax.f32 %v1631_v45, %v14239_v23  ;;  %v3371_v20 = vmax.f32 %v3195_v58, %v18365_v46  ;;  %v3372_v16 = vmax.f32 %v3196_v19, %v18367_v42  ;;  %v3930_v24 = vrot.slane %v3370_v26, %v17796_v25  ;;  %v16036_v60 = vld [vmem:[#allocation10 + $0xb8] sm:$0xff]   ;;  %15801 = vmatpush3.bf16.msra.mxu0 %v16033_v5 }
 0x268   :  { %v14258_v22 = vrot.slane %v1714_v8, 9  ;;  %v3214_v54 = vmax.f32 %v1707_v11, %v14256_v17  ;;  %v14259_v42 = vrot.slane %v1716_v44, 9  ;;  %v3215_v55 = vmax.f32 %v1715_v13, %v14257_v41  ;;  %15490 = vmatprep.subr.bf16.mxu1 %v16035_v3  ;;  %15802 = vmatprep.subr.bf16.mxu0 %v16034_v39  ;;  %v16039_v13 = vld [vmem:[#allocation10 + $0x1c0] sm:$0xff]  }
 0x269   :  { %v3373_v48 = vmax.f32 %v3197_v4, %v18369_v40  ;;  %v3934_v63 = vrot.slane %v3371_v20, %v17796_v25  ;;  %v3938_v45 = vrot.slane %v3372_v16, %v17796_v25  ;;  %v4183_v46 = vsel %vm4109_vm6, %v3930_v24, %v4182_v38  ;;  %v16037_v38 = vld [vmem:[#allocation10 + $0x220] sm:$0xff]   ;;  %v18415_v16 = vld [vmem:[#allocation2 + $0x80] sm:$0xff] }
 0x26a   :  { %v3216_v31 = vmax.f32 %v1714_v8, %v14258_v22  ;;  %v1681_v49 = vcombine.high %v1673_v0, %v1673_v0  ;;  %v1682_v57 = vcombine.high %v1680_v56, %v1680_v56  ;;  %v14248_v58 = vrot.slane %v1673_v0, 9  ;;  %15491 = vmatpush3.bf16.msra.mxu1 %v16036_v60 }
 0x26b   :  { %v3942_v23 = vrot.slane %v3373_v48, %v17796_v25  ;;  %v4184_v11 = vsel %vm4111_vm7, %v3934_v63, %v4183_v46  ;;  %v3217_v19 = vmax.f32 %v1716_v44, %v14259_v42  ;;  %v14250_v17 = vrot.slane %v1680_v56, 9  ;;  %15803 = vmatpush3.bf16.msra.mxu0 %v16034_v39  ;;  %15604 = vmatprep.subr.bf16.mxu1 %v16039_v13 }
 0x26c   :  { %v4185_v40 = vsel %vm4113_vm8, %v3938_v45, %v4184_v11  ;;  %v14249_v26 = vrot.slane %v1681_v49, 9  ;;  %v14251_v36 = vrot.slane %v1682_v57, 9  ;;  %v3206_v4 = vmax.f32 %v1673_v0, %v14248_v58  ;;  %15804 = vmatprep.subr.bf16.mxu0 %v16037_v38 }
 0x26d   :  { %v4186_v8 = vsel %vm4115_vm9, %v3942_v23, %v4185_v40  ;;  %v723_v20 = vadd.f32 %v18153_v30, %v18070_v28  ;;  %v3208_v24 = vmax.f32 %v1680_v56, %v14250_v17  ;;  %v715_v3 = vadd.f32 %v18153_v30, %v18087_v29  ;;  %v16038_v56 = vld [vmem:[#allocation10 + $0x228] sm:$0xff]  }
 0x26e   :  { %4249 = vst [vmem:[#allocation2 + $0xd1] sm:$0xff] %v4186_v8  ;;  %v3207_v5 = vmax.f32 %v1681_v49, %v14249_v26  ;;  %v4414_v44 = vrot.slane %v18339_v6, 2  ;;  %v3209_v41 = vmax.f32 %v1682_v57, %v14251_v36  ;;  %v3374_v22 = vmax.f32 %v3206_v4, %v3214_v54 }
 0x26f   :  { %v837_v48 = vmax.f32 %v723_v20, 0.0  ;;  %v4415_v63 = vrot.slane %v18362_v12, 2  ;;  %v3376_v28 = vmax.f32 %v3208_v24, %v3216_v31  ;;  %v835_v45 = vmax.f32 %v715_v3, 0.0  ;;  %15805 = vmatpush3.bf16.msra.mxu0 %v16037_v38  ;;  %v4272_v24 = vld [vmem:[#allocation2 + $0x88] sm:$0x3] }
 0x270   :  { %v3375_v0 = vmax.f32 %v3207_v5, %v3215_v55  ;;  %v4469_v46 = vrot.slane %v18415_v16, 2  ;;  %v3377_v42 = vmax.f32 %v3209_v41, %v3217_v19  ;;  %v3946_v29 = vrot.slane %v3374_v22, %v17796_v25  ;;  %15806 = vmatprep.subr.bf16.mxu0 %v16038_v56  ;;  %v16041_v19 = vld [vmem:[#allocation10 + $0x230] sm:$0xff]  }
 0x271   :  { %v1717_v30 = vcombine.high %v837_v48, %v837_v48  ;;  %v1724_v6 = vrot.slane %v837_v48, %v17791_v14  ;;  %v3954_v49 = vrot.slane %v3376_v28, %v17796_v25  ;;  %v1683_v12 = vcombine.high %v835_v45, %v835_v45 }
 0x272   :  { %v3950_v54 = vrot.slane %v3375_v0, %v17796_v25  ;;  %v1690_v39 = vrot.slane %v835_v45, %v17791_v14  ;;  %v3958_v55 = vrot.slane %v3377_v42, %v17796_v25  ;;  %v16042_v42 = vld [vmem:[#allocation10 + $0x238] sm:$0xff]  }
 0x273   :  { %v1731_v31 = vrot.slane %v1717_v30, %v17791_v14  ;;  %v1732_v60 = vcombine.high %v1724_v6, %v1724_v6  ;;  %v14260_v23 = vrot.slane %v1724_v6, 9  ;;  %v1697_v57 = vrot.slane %v1683_v12, %v17791_v14  ;;  %15807 = vmatpush3.bf16.msra.mxu0 %v16038_v56 }
 0x274   :  { %v4187_v11 = vsel %vm4103_vm3, %v3950_v54, %v3946_v29  ;;  %v1698_v58 = vcombine.high %v1690_v39, %v1690_v39  ;;  %v14252_v40 = vrot.slane %v1690_v39, 9  ;;  %15808 = vmatprep.subr.bf16.mxu0 %v16041_v19  ;;  %v4470_v54 = vrot.slane %v4272_v24, 2 }
 0x275   :  { %v4188_v26 = vsel %vm4105_vm4, %v3954_v49, %v4187_v11  ;;  %v1733_v17 = vcombine.high %v1731_v31, %v1731_v31  ;;  %v14261_v13 = vrot.slane %v1732_v60, 9  ;;  %v14262_v8 = vrot.slane %v1731_v31, 9 }
 0x276   :  { %v3218_v36 = vmax.f32 %v1724_v6, %v14260_v23  ;;  %v1699_v4 = vcombine.high %v1697_v57, %v1697_v57  ;;  %v14253_v20 = vrot.slane %v1698_v58, 9  ;;  %v14254_v5 = vrot.slane %v1697_v57, 9 }
 0x277   :  { %v14263_v3 = vrot.slane %v1733_v17, 9  ;;  %v3219_v38 = vmax.f32 %v1732_v60, %v14261_v13  ;;  %v3220_v41 = vmax.f32 %v1731_v31, %v14262_v8  ;;  %v3210_v22 = vmax.f32 %v1690_v39, %v14252_v40  ;;  %15809 = vmatpush3.bf16.msra.mxu0 %v16041_v19 }
 0x278   :  { %v14255_v48 = vrot.slane %v1699_v4, 9  ;;  %v3211_v0 = vmax.f32 %v1698_v58, %v14253_v20  ;;  %v3212_v28 = vmax.f32 %v1697_v57, %v14254_v5  ;;  %v4189_v45 = vsel %vm4107_vm5, %v3958_v55, %v4188_v26  ;;  %v18441_v55 = vld [vmem:[#allocation8] ss:$0 sm:$0xff]  ;;  %15810 = vmatprep.subr.bf16.mxu0 %v16042_v42 }
 0x279   :  { %v3221_v29 = vmax.f32 %v1733_v17, %v14263_v3  ;;  %v3378_v30 = vmax.f32 %v3210_v22, %v3218_v36  ;;  %v18434_v6 = vsel %vm4392_vm2, %v4414_v44, %v4415_v63  ;;  %v4461_v31 = vrot.slane %v18415_v16, 1 }
 0x27a   :  { %v3213_v49 = vmax.f32 %v1699_v4, %v14255_v48  ;;  %v3379_v12 = vmax.f32 %v3211_v0, %v3219_v38  ;;  %v3380_v23 = vmax.f32 %v3212_v28, %v3220_v41  ;;  %v18439_v39 = vsel %vm4392_vm2, %v4469_v46, %v4470_v54 }
 0x27b   :  { %v3962_v56 = vrot.slane %v3378_v30, %v17796_v25  ;;  %v4462_v60 = vrot.slane %v4272_v24, 1  ;;  %v736_v11 = vadd.f32 %v18441_v55, %v18132_v35  ;;  %v4520_v16 = vpack.c.bf16 %v18439_v39, %v18434_v6  ;;  %v18455_v35 = vld [vmem:[#allocation2 + $0xa0] sm:$0xff]  ;;  %15811 = vmatpush3.bf16.msra.mxu0 %v16042_v42 }
 0x27c   :  { %v3381_v44 = vmax.f32 %v3213_v49, %v3221_v29  ;;  %v3966_v63 = vrot.slane %v3379_v12, %v17796_v25  ;;  %v3970_v57 = vrot.slane %v3380_v23, %v17796_v25  ;;  %v728_v26 = vadd.f32 %v18441_v55, %v18147_v27 }
 0x27d   :  { %v4190_v58 = vsel %vm4109_vm6, %v3962_v56, %v4189_v45  ;;  %v18451_v46 = vsel %vm4327_vm1, %v4461_v31, %v4462_v60  ;;  %v840_v40 = vmax.f32 %v736_v11, 0.0  ;;  %5384 = vmatprep.mubr.bf16.mxu0 %v4520_v16  ;;  %v739_v8 = vadd.f32 %v18441_v55, %v18161_v2 }
 0x27e   :  { %v3974_v19 = vrot.slane %v3381_v44, %v17796_v25  ;;  %v4191_v17 = vsel %vm4111_vm7, %v3966_v63, %v4190_v58  ;;  %v4519_v13 = vpack.c.bf16 %v18451_v46, %v18384_v21  ;;  %v838_v5 = vmax.f32 %v728_v26, 0.0 }
 0x27f   :  { %v4192_v36 = vsel %vm4113_vm8, %v3970_v57, %v4191_v17  ;;  %v1768_v4 = vcombine.high %v840_v40, %v840_v40  ;;  %v1775_v20 = vrot.slane %v840_v40, %v17791_v14  ;;  %v841_v24 = vmax.f32 %v739_v8, 0.0 }
 0x280   :  { %v4193_v27 = vsel %vm4115_vm9, %v3974_v19, %v4192_v36  ;;  %5385 = vmatmul.mubr.bf16.gmra.mrb[76].mxu0 %v4519_v13  ;;  %v731_v3 = vadd.f32 %v18441_v55, %v18163_v9  ;;  %v4352_v38 = vrot.slane %v18455_v35, 1  ;;  %v1734_v22 = vcombine.high %v838_v5, %v838_v5 }
 0x281   :  { %4250 = vst [vmem:[#allocation2 + $0xe1] sm:$0xff] %v4193_v27  ;;  %v1782_v21 = vrot.slane %v1768_v4, %v17791_v14  ;;  %v1783_v2 = vcombine.high %v1775_v20, %v1775_v20  ;;  %v14272_v41 = vrot.slane %v1775_v20, 9  ;;  %v1741_v48 = vrot.slane %v838_v5, %v17791_v14 }
 0x282   :  { %v1785_v0 = vcombine.high %v841_v24, %v841_v24  ;;  %v1792_v28 = vrot.slane %v841_v24, %v17791_v14  ;;  %v839_v45 = vmax.f32 %v731_v3, 0.0  ;;  %v1748_v9 = vrot.slane %v1734_v22, %v17791_v14  ;;  %v18474_v24 = vld [vmem:[#allocation2 + $0xa8] sm:$0x3]  ;;  %v18477_v22 = vld [vmem:[#allocation2 + $0xb0] sm:$0xff] }
 0x283   :  { %v1784_v42 = vcombine.high %v1782_v21, %v1782_v21  ;;  %v14273_v29 = vrot.slane %v1783_v2, 9  ;;  %v14274_v30 = vrot.slane %v1782_v21, 9  ;;  %v3230_v54 = vmax.f32 %v1775_v20, %v14272_v41 }
 0x284   :  { %v1749_v49 = vcombine.high %v1741_v48, %v1741_v48  ;;  %v14264_v12 = vrot.slane %v1741_v48, 9  ;;  %v1799_v23 = vrot.slane %v1785_v0, %v17791_v14  ;;  %v1800_v11 = vcombine.high %v1792_v28, %v1792_v28 }
 0x285   :  { %v14275_v31 = vrot.slane %v1784_v42, 9  ;;  %v3231_v56 = vmax.f32 %v1783_v2, %v14273_v29  ;;  %v3232_v60 = vmax.f32 %v1782_v21, %v14274_v30  ;;  %v1750_v44 = vcombine.high %v1748_v9, %v1748_v9  ;;  %v18480_v30 = vld [vmem:[#allocation2 + $0xb8] sm:$0x3] }
 0x286   :  { %v14265_v63 = vrot.slane %v1749_v49, 9  ;;  %v14266_v57 = vrot.slane %v1748_v9, 9  ;;  %v3222_v16 = vmax.f32 %v1741_v48, %v14264_v12  ;;  %v1801_v40 = vcombine.high %v1799_v23, %v1799_v23 }
 0x287   :  { %v3233_v58 = vmax.f32 %v1784_v42, %v14275_v31  ;;  %v14276_v26 = vrot.slane %v1792_v28, 9  ;;  %v14277_v19 = vrot.slane %v1800_v11, 9  ;;  %v14267_v17 = vrot.slane %v1750_v44, 9 }
 0x288   :  { %v3223_v13 = vmax.f32 %v1749_v49, %v14265_v63  ;;  %v3224_v8 = vmax.f32 %v1748_v9, %v14266_v57  ;;  %v3382_v36 = vmax.f32 %v3222_v16, %v3230_v54  ;;  %v14278_v4 = vrot.slane %v1799_v23, 9 }
 0x289   :  { %v14279_v20 = vrot.slane %v1801_v40, 9  ;;  %v3234_v5 = vmax.f32 %v1792_v28, %v14276_v26  ;;  %v3235_v27 = vmax.f32 %v1800_v11, %v14277_v19  ;;  %v3225_v3 = vmax.f32 %v1750_v44, %v14267_v17 }
 0x28a   :  { %v3383_v21 = vmax.f32 %v3223_v13, %v3231_v56  ;;  %v3384_v2 = vmax.f32 %v3224_v8, %v3232_v60  ;;  %v3978_v41 = vrot.slane %v3382_v36, %v17796_v25  ;;  %v3236_v48 = vmax.f32 %v1799_v23, %v14278_v4 }
 0x28b   :  { %v3237_v0 = vmax.f32 %v1801_v40, %v14279_v20  ;;  %v1751_v42 = vcombine.high %v839_v45, %v839_v45  ;;  %v1758_v29 = vrot.slane %v839_v45, %v17791_v14  ;;  %v3385_v54 = vmax.f32 %v3225_v3, %v3233_v58 }
 0x28c   :  { %v3982_v28 = vrot.slane %v3383_v21, %v17796_v25  ;;  %v3986_v9 = vrot.slane %v3384_v2, %v17796_v25  ;;  %v4353_v49 = vrot.slane %v18474_v24, 1  ;;  %v4355_v60 = vrot.slane %v18477_v22, 1 }
 0x28d   :  { %v1765_v12 = vrot.slane %v1751_v42, %v17791_v14  ;;  %v1766_v31 = vcombine.high %v1758_v29, %v1758_v29  ;;  %v14268_v56 = vrot.slane %v1758_v29, 9  ;;  %v3990_v23 = vrot.slane %v3385_v54, %v17796_v25 }
 0x28e   :  { %v4194_v11 = vsel %vm4103_vm3, %v3982_v28, %v3978_v41  ;;  %v4354_v45 = vsel %vm4327_vm1, %v4352_v38, %v4353_v49  ;;  %v4356_v44 = vrot.slane %v18480_v30, 1  ;;  %v4524_v17 = vpack.c.bf16 %v18477_v22, %v18455_v35 }
 0x28f   :  { %v4195_v63 = vsel %vm4105_vm4, %v3986_v9, %v4194_v11  ;;  %v1767_v57 = vcombine.high %v1765_v12, %v1765_v12  ;;  %v14269_v16 = vrot.slane %v1766_v31, 9  ;;  %v14270_v58 = vrot.slane %v1765_v12, 9 }
 0x290   :  { %v3226_v40 = vmax.f32 %v1758_v29, %v14268_v56  ;;  %v4196_v26 = vsel %vm4107_vm5, %v3990_v23, %v4195_v63  ;;  %v18494_v19 = vsel %vm4327_vm1, %v4355_v60, %v4356_v44  ;;  %v752_v20 = vadd.f32 %v18441_v55, %v18185_v32 }
 0x291   :  { %v14271_v13 = vrot.slane %v1767_v57, 9  ;;  %v3227_v8 = vmax.f32 %v1766_v31, %v14269_v16  ;;  %v3228_v36 = vmax.f32 %v1765_v12, %v14270_v58  ;;  %v4525_v38 = vpack.c.bf16 %v18494_v19, %v4354_v45 }
 0x292   :  { %v3386_v4 = vmax.f32 %v3226_v40, %v3234_v5  ;;  %v744_v3 = vadd.f32 %v18441_v55, %v18190_v37  ;;  %v755_v21 = vadd.f32 %v18441_v55, %v18195_v18  ;;  %v747_v35 = vadd.f32 %v18441_v55, %v18200_v51 }
 0x293   :  { %v3229_v2 = vmax.f32 %v1767_v57, %v14271_v13  ;;  %v3387_v41 = vmax.f32 %v3227_v8, %v3235_v27  ;;  %v3388_v42 = vmax.f32 %v3228_v36, %v3236_v48  ;;  %5198 = vmatprep.mubr.bf16.mxu1 %v4525_v38  ;;  %v844_v5 = vmax.f32 %v752_v20, 0.0 }
 0x294   :  { %v3994_v29 = vrot.slane %v3386_v4, %v17796_v25  ;;  %5199 = vmatmul.mubr.bf16.gmra.mrb[16].mxu1 %v4524_v17  ;;  %v842_v54 = vmax.f32 %v744_v3, 0.0  ;;  %v845_v28 = vmax.f32 %v755_v21, 0.0  ;;  %v843_v49 = vmax.f32 %v747_v35, 0.0 }
 0x295   :  { %v3389_v32 = vmax.f32 %v3229_v2, %v3237_v0  ;;  %v3998_v9 = vrot.slane %v3387_v41, %v17796_v25  ;;  %v4002_v37 = vrot.slane %v3388_v42, %v17796_v25  ;;  %v1836_v27 = vcombine.high %v844_v5, %v844_v5 }
 0x296   :  { %v4197_v18 = vsel %vm4109_vm6, %v3994_v29, %v4196_v26  ;;  %v1843_v48 = vrot.slane %v844_v5, %v17791_v14  ;;  %v1802_v12 = vcombine.high %v842_v54, %v842_v54  ;;  %v1809_v56 = vrot.slane %v842_v54, %v17791_v14 }
 0x297   :  { %v4006_v51 = vrot.slane %v3389_v32, %v17796_v25  ;;  %v4198_v31 = vsel %vm4111_vm7, %v3998_v9, %v4197_v18  ;;  %v1853_v60 = vcombine.high %v845_v28, %v845_v28  ;;  %v1850_v23 = vrot.slane %v1836_v27, %v17791_v14 }
 0x298   :  { %v4199_v0 = vsel %vm4113_vm8, %v4002_v37, %v4198_v31  ;;  %v1851_v11 = vcombine.high %v1843_v48, %v1843_v48  ;;  %v14288_v45 = vrot.slane %v1843_v48, 9  ;;  %v1816_v63 = vrot.slane %v1802_v12, %v17791_v14 }
 0x299   :  { %v4200_v44 = vsel %vm4115_vm9, %v4006_v51, %v4199_v0  ;;  %v1817_v57 = vcombine.high %v1809_v56, %v1809_v56  ;;  %v14280_v16 = vrot.slane %v1809_v56, 9  ;;  %v1852_v58 = vcombine.high %v1850_v23, %v1850_v23 }
 0x29a   :  { %4251 = vst [vmem:[#allocation2 + $0xf1] sm:$0xff] %v4200_v44  ;;  %v14289_v40 = vrot.slane %v1851_v11, 9  ;;  %v14290_v26 = vrot.slane %v1850_v23, 9  ;;  %v3246_v17 = vmax.f32 %v1843_v48, %v14288_v45  ;;  %v1818_v13 = vcombine.high %v1816_v63, %v1816_v63 }
 0x29b   :  { %v14281_v8 = vrot.slane %v1817_v57, 9  ;;  %v14282_v36 = vrot.slane %v1816_v63, 9  ;;  %v3238_v38 = vmax.f32 %v1809_v56, %v14280_v16  ;;  %v14291_v4 = vrot.slane %v1852_v58, 9 }
 0x29c   :  { %v3247_v20 = vmax.f32 %v1851_v11, %v14289_v40  ;;  %v3248_v3 = vmax.f32 %v1850_v23, %v14290_v26  ;;  %v1860_v21 = vrot.slane %v845_v28, %v17791_v14  ;;  %v14283_v2 = vrot.slane %v1818_v13, 9  ;;  %v4280_v40 = vld [vmem:[#allocation2 + $0xc8] sm:$0x3] }
 0x29d   :  { %v3239_v41 = vmax.f32 %v1817_v57, %v14281_v8  ;;  %v3240_v42 = vmax.f32 %v1816_v63, %v14282_v36  ;;  %v3390_v35 = vmax.f32 %v3238_v38, %v3246_v17  ;;  %v3249_v29 = vmax.f32 %v1852_v58, %v14291_v4  ;;  %v18528_v58 = vld [vmem:[#allocation2 + $0xc0] sm:$0xff] }
 0x29e   :  { %v1867_v5 = vrot.slane %v1853_v60, %v17791_v14  ;;  %v1868_v54 = vcombine.high %v1860_v21, %v1860_v21  ;;  %v14292_v32 = vrot.slane %v1860_v21, 9  ;;  %v3241_v9 = vmax.f32 %v1818_v13, %v14283_v2 }
 0x29f   :  { %v3391_v37 = vmax.f32 %v3239_v41, %v3247_v20  ;;  %v3392_v18 = vmax.f32 %v3240_v42, %v3248_v3  ;;  %v4010_v27 = vrot.slane %v3390_v35, %v17796_v25  ;;  %v1819_v23 = vcombine.high %v843_v49, %v843_v49 }
 0x2a0   :  { %v1869_v48 = vcombine.high %v1867_v5, %v1867_v5  ;;  %v14293_v12 = vrot.slane %v1868_v54, 9  ;;  %v14294_v51 = vrot.slane %v1867_v5, 9  ;;  %v3250_v31 = vmax.f32 %v1860_v21, %v14292_v32 }
 0x2a1   :  { %v3393_v56 = vmax.f32 %v3241_v9, %v3249_v29  ;;  %v4014_v28 = vrot.slane %v3391_v37, %v17796_v25  ;;  %v4018_v0 = vrot.slane %v3392_v18, %v17796_v25  ;;  %v1826_v44 = vrot.slane %v843_v49, %v17791_v14 }
 0x2a2   :  { %v14295_v11 = vrot.slane %v1869_v48, 9  ;;  %v3251_v45 = vmax.f32 %v1868_v54, %v14293_v12  ;;  %v3252_v60 = vmax.f32 %v1867_v5, %v14294_v51  ;;  %v1833_v16 = vrot.slane %v1819_v23, %v17791_v14 }
 0x2a3   :  { %v4022_v63 = vrot.slane %v3393_v56, %v17796_v25  ;;  %v4201_v57 = vsel %vm4103_vm3, %v4014_v28, %v4010_v27  ;;  %v4420_v26 = vrot.slane %v18477_v22, 2  ;;  %v1834_v8 = vcombine.high %v1826_v44, %v1826_v44 }
 0x2a4   :  { %v4202_v17 = vsel %vm4105_vm4, %v4018_v0, %v4201_v57  ;;  %v3253_v13 = vmax.f32 %v1869_v48, %v14295_v11  ;;  %v14284_v36 = vrot.slane %v1826_v44, 9  ;;  %v1835_v38 = vcombine.high %v1833_v16, %v1833_v16 }
 0x2a5   :  { %v14286_v4 = vrot.slane %v1833_v16, 9  ;;  %v4203_v49 = vsel %vm4107_vm5, %v4022_v63, %v4202_v17  ;;  %v4421_v20 = vrot.slane %v18480_v30, 2  ;;  %v14285_v3 = vrot.slane %v1834_v8, 9 }
 0x2a6   :  { %v3242_v21 = vmax.f32 %v1826_v44, %v14284_v36  ;;  %v4423_v2 = vrot.slane %v18528_v58, 2  ;;  %v4424_v41 = vrot.slane %v4280_v40, 2  ;;  %v14287_v42 = vrot.slane %v1835_v38, 9 }
 0x2a7   :  { %v3244_v35 = vmax.f32 %v1833_v16, %v14286_v4  ;;  %v18536_v29 = vsel %vm4392_vm2, %v4420_v26, %v4421_v20  ;;  %v4358_v5 = vrot.slane %v18528_v58, 1  ;;  %v3243_v54 = vmax.f32 %v1834_v8, %v14285_v3 }
 0x2a8   :  { %v3394_v32 = vmax.f32 %v3242_v21, %v3250_v31  ;;  %v18540_v9 = vsel %vm4392_vm2, %v4423_v2, %v4424_v41  ;;  %v4359_v37 = vrot.slane %v4280_v40, 1  ;;  %v3245_v18 = vmax.f32 %v1835_v38, %v14287_v42 }
 0x2a9   :  { %v3396_v30 = vmax.f32 %v3244_v35, %v3252_v60  ;;  %v4529_v27 = vpack.c.bf16 %v18540_v9, %v18536_v29  ;;  %v768_v48 = vadd.f32 %v18441_v55, %v18259_v53  ;;  %v3395_v12 = vmax.f32 %v3243_v54, %v3251_v45 }
 0x2aa   :  { %v4026_v51 = vrot.slane %v3394_v32, %v17796_v25  ;;  %v18548_v56 = vsel %vm4327_vm1, %v4358_v5, %v4359_v37  ;;  %v760_v31 = vadd.f32 %v18441_v55, %v18267_v52  ;;  %v3397_v28 = vmax.f32 %v3245_v18, %v3253_v13 }
 0x2ab   :  { %v4034_v0 = vrot.slane %v3396_v30, %v17796_v25  ;;  %5392 = vmatprep.mubr.bf16.mxu0 %v4529_v27  ;;  %v4528_v23 = vpack.c.bf16 %v18548_v56, %v18494_v19  ;;  %v848_v11 = vmax.f32 %v768_v48, 0.0  ;;  %v4030_v60 = vrot.slane %v3395_v12, %v17796_v25 }
 0x2ac   :  { %v4204_v53 = vsel %vm4109_vm6, %v4026_v51, %v4203_v49  ;;  %v846_v45 = vmax.f32 %v760_v31, 0.0  ;;  %v771_v44 = vadd.f32 %v18441_v55, %v18273_v47  ;;  %v4038_v63 = vrot.slane %v3397_v28, %v17796_v25 }
 0x2ad   :  { %5393 = vmatmul.mubr.bf16.gmra.mrb[80].mxu0 %v4528_v23  ;;  %v1904_v52 = vcombine.high %v848_v11, %v848_v11  ;;  %v1911_v57 = vrot.slane %v848_v11, %v17791_v14  ;;  %v763_v16 = vadd.f32 %v18441_v55, %v18279_v50  ;;  %v4205_v19 = vsel %vm4111_vm7, %v4030_v60, %v4204_v53 }
 0x2ae   :  { %v1870_v40 = vcombine.high %v846_v45, %v846_v45  ;;  %v1877_v26 = vrot.slane %v846_v45, %v17791_v14  ;;  %v849_v17 = vmax.f32 %v771_v44, 0.0  ;;  %v4206_v13 = vsel %vm4113_vm8, %v4034_v0, %v4205_v19 }
 0x2af   :  { %v1918_v8 = vrot.slane %v1904_v52, %v17791_v14  ;;  %v1919_v47 = vcombine.high %v1911_v57, %v1911_v57  ;;  %v14304_v36 = vrot.slane %v1911_v57, 9  ;;  %v4207_v38 = vsel %vm4115_vm9, %v4038_v63, %v4206_v13  ;;  %v18574_v13 = vld [vmem:[#allocation2 + $0xd0] sm:$0xff] }
 0x2b0   :  { %v1884_v4 = vrot.slane %v1870_v40, %v17791_v14  ;;  %v1885_v49 = vcombine.high %v1877_v26, %v1877_v26  ;;  %v14296_v20 = vrot.slane %v1877_v26, 9  ;;  %4252 = vst [vmem:[#allocation2 + $0x101] sm:$0xff] %v4207_v38  ;;  %v1921_v18 = vcombine.high %v849_v17, %v849_v17 }
 0x2b1   :  { %v1920_v50 = vcombine.high %v1918_v8, %v1918_v8  ;;  %v14305_v3 = vrot.slane %v1919_v47, 9  ;;  %v14306_v21 = vrot.slane %v1918_v8, 9  ;;  %v3262_v2 = vmax.f32 %v1911_v57, %v14304_v36 }
 0x2b2   :  { %v1886_v41 = vcombine.high %v1884_v4, %v1884_v4  ;;  %v14297_v42 = vrot.slane %v1885_v49, 9  ;;  %v14298_v35 = vrot.slane %v1884_v4, 9  ;;  %v3254_v5 = vmax.f32 %v1877_v26, %v14296_v20  ;;  %v18580_v20 = vld [vmem:[#allocation2 + $0xd8] sm:$0x3] }
 0x2b3   :  { %v14307_v54 = vrot.slane %v1920_v50, 9  ;;  %v3263_v32 = vmax.f32 %v1919_v47, %v14305_v3  ;;  %v3264_v37 = vmax.f32 %v1918_v8, %v14306_v21  ;;  %v1928_v31 = vrot.slane %v849_v17, %v17791_v14 }
 0x2b4   :  { %v14299_v30 = vrot.slane %v1886_v41, 9  ;;  %v3255_v27 = vmax.f32 %v1885_v49, %v14297_v42  ;;  %v3256_v48 = vmax.f32 %v1884_v4, %v14298_v35  ;;  %v3398_v12 = vmax.f32 %v3254_v5, %v3262_v2 }
 0x2b5   :  { %v3265_v51 = vmax.f32 %v1920_v50, %v14307_v54  ;;  %v1935_v28 = vrot.slane %v1921_v18, %v17791_v14  ;;  %v847_v0 = vmax.f32 %v763_v16, 0.0  ;;  %v1936_v45 = vcombine.high %v1928_v31, %v1928_v31 }
 0x2b6   :  { %v3257_v23 = vmax.f32 %v1886_v41, %v14299_v30  ;;  %v3399_v11 = vmax.f32 %v3255_v27, %v3263_v32  ;;  %v3400_v60 = vmax.f32 %v3256_v48, %v3264_v37  ;;  %v4042_v53 = vrot.slane %v3398_v12, %v17796_v25 }
 0x2b7   :  { %v1937_v44 = vcombine.high %v1935_v28, %v1935_v28  ;;  %v14308_v63 = vrot.slane %v1928_v31, 9  ;;  %v14310_v52 = vrot.slane %v1935_v28, 9  ;;  %v1887_v26 = vcombine.high %v847_v0, %v847_v0 }
 0x2b8   :  { %v3401_v57 = vmax.f32 %v3257_v23, %v3265_v51  ;;  %v4046_v19 = vrot.slane %v3399_v11, %v17796_v25  ;;  %v4050_v40 = vrot.slane %v3400_v60, %v17796_v25  ;;  %v14309_v17 = vrot.slane %v1936_v45, 9 }
 0x2b9   :  { %v14311_v8 = vrot.slane %v1937_v44, 9  ;;  %v3266_v16 = vmax.f32 %v1928_v31, %v14308_v63  ;;  %v3268_v47 = vmax.f32 %v1935_v28, %v14310_v52  ;;  %v1894_v4 = vrot.slane %v847_v0, %v17791_v14 }
 0x2ba   :  { %v4054_v36 = vrot.slane %v3401_v57, %v17796_v25  ;;  %v4208_v38 = vsel %vm4103_vm3, %v4046_v19, %v4042_v53  ;;  %v1901_v49 = vrot.slane %v1887_v26, %v17791_v14  ;;  %v3267_v3 = vmax.f32 %v1936_v45, %v14309_v17 }
 0x2bb   :  { %v4209_v50 = vsel %vm4105_vm4, %v4050_v40, %v4208_v38  ;;  %v3269_v21 = vmax.f32 %v1937_v44, %v14311_v8  ;;  %v4361_v2 = vrot.slane %v18574_v13, 1  ;;  %v1902_v41 = vcombine.high %v1894_v4, %v1894_v4 }
 0x2bc   :  { %v1903_v42 = vcombine.high %v1901_v49, %v1901_v49  ;;  %v14300_v35 = vrot.slane %v1894_v4, 9  ;;  %v14302_v5 = vrot.slane %v1901_v49, 9  ;;  %v4210_v54 = vsel %vm4107_vm5, %v4054_v36, %v4209_v50 }
 0x2bd   :  { %v4362_v32 = vrot.slane %v18580_v20, 1  ;;  %v18588_v37 = vpack.c.bf16 %v18574_v13, %v18528_v58  ;;  %v784_v18 = vadd.f32 %v18441_v55, %v18300_v7  ;;  %v14301_v30 = vrot.slane %v1902_v41, 9 }
 0x2be   :  { %v14303_v27 = vrot.slane %v1903_v42, 9  ;;  %v3258_v48 = vmax.f32 %v1894_v4, %v14300_v35  ;;  %v3260_v12 = vmax.f32 %v1901_v49, %v14302_v5  ;;  %v776_v28 = vadd.f32 %v18441_v55, %v18305_v15 }
 0x2bf   :  { %v18593_v51 = vsel %vm4327_vm1, %v4361_v2, %v4362_v32  ;;  %v852_v31 = vmax.f32 %v784_v18, 0.0  ;;  %v787_v0 = vadd.f32 %v18441_v55, %v18316_v1  ;;  %v3259_v23 = vmax.f32 %v1902_v41, %v14301_v30  ;;  %v18615_v41 = vpop.f32.mrb[0].mxu1 }
 0x2c0   :  { %v3261_v11 = vmax.f32 %v1903_v42, %v14303_v27  ;;  %v3402_v60 = vmax.f32 %v3258_v48, %v3266_v16  ;;  %v3404_v53 = vmax.f32 %v3260_v12, %v3268_v47  ;;  %v18601_v7 = vpack.c.bf16 %v18593_v51, %v18548_v56  ;;  %v18618_v32 = vpop.f32.mrb[1].mxu1 }
 0x2c1   :  { %v1972_v45 = vcombine.high %v852_v31, %v852_v31  ;;  %v1979_v44 = vrot.slane %v852_v31, %v17791_v14  ;;  %v850_v63 = vmax.f32 %v776_v28, 0.0  ;;  %v3403_v52 = vmax.f32 %v3259_v23, %v3267_v3  ;;  %v18621_v12 = vpop.f32.mrb[2].mxu1 }
 0x2c2   :  { %v3405_v57 = vmax.f32 %v3261_v11, %v3269_v21  ;;  %v4058_v19 = vrot.slane %v3402_v60, %v17796_v25  ;;  %v4066_v15 = vrot.slane %v3404_v53, %v17796_v25  ;;  %5206 = vmatprep.mubr.bf16.mxu1 %v18601_v7  ;;  %v853_v23 = vmax.f32 %v787_v0, 0.0  ;;  %v18625_v60 = vpop.f32.mrb[3].mxu1 }
 0x2c3   :  { %v1986_v1 = vrot.slane %v1972_v45, %v17791_v14  ;;  %v1987_v40 = vcombine.high %v1979_v44, %v1979_v44  ;;  %v14320_v26 = vrot.slane %v1979_v44, 9  ;;  %v1938_v17 = vcombine.high %v850_v63, %v850_v63  ;;  %5207 = vmatmul.mubr.bf16.gmra.mrb[20].mxu1 %v18588_v37 }
 0x2c4   :  { %v4062_v56 = vrot.slane %v3403_v52, %v17796_v25  ;;  %v4070_v8 = vrot.slane %v3405_v57, %v17796_v25  ;;  %v4211_v16 = vsel %vm4109_vm6, %v4058_v19, %v4210_v54  ;;  %v1945_v47 = vrot.slane %v850_v63, %v17791_v14 }
 0x2c5   :  { %v1988_v36 = vcombine.high %v1986_v1, %v1986_v1  ;;  %v14321_v38 = vrot.slane %v1987_v40, 9  ;;  %v14322_v4 = vrot.slane %v1986_v1, 9  ;;  %v3278_v49 = vmax.f32 %v1979_v44, %v14320_v26 }
 0x2c6   :  { %v4212_v50 = vsel %vm4111_vm7, %v4062_v56, %v4211_v16  ;;  %v1952_v3 = vrot.slane %v1938_v17, %v17791_v14  ;;  %v1953_v21 = vcombine.high %v1945_v47, %v1945_v47  ;;  %v14312_v2 = vrot.slane %v1945_v47, 9 }
 0x2c7   :  { %v4213_v42 = vsel %vm4113_vm8, %v4066_v15, %v4212_v50  ;;  %v14323_v35 = vrot.slane %v1988_v36, 9  ;;  %v3279_v5 = vmax.f32 %v1987_v40, %v14321_v38  ;;  %v3280_v54 = vmax.f32 %v1986_v1, %v14322_v4 }
 0x2c8   :  { %v4214_v18 = vsel %vm4115_vm9, %v4070_v8, %v4213_v42  ;;  %v1954_v30 = vcombine.high %v1952_v3, %v1952_v3  ;;  %v14313_v27 = vrot.slane %v1953_v21, 9  ;;  %v14314_v48 = vrot.slane %v1952_v3, 9  ;;  %v18634_v38 = vpop.f32.mrb[64].mxu0 }
 0x2c9   :  { %4253 = vst [vmem:[#allocation2 + $0x111] sm:$0xff] %v4214_v18  ;;  %v3281_v31 = vmax.f32 %v1988_v36, %v14323_v35  ;;  %v3270_v28 = vmax.f32 %v1945_v47, %v14312_v2  ;;  %v779_v11 = vadd.f32 %v18441_v55, %v18320_v61  ;;  %v4426_v63 = vrot.slane %v18574_v13, 2 }
 0x2ca   :  { %v14315_v53 = vrot.slane %v1954_v30, 9  ;;  %v3271_v45 = vmax.f32 %v1953_v21, %v14313_v27  ;;  %v3272_v44 = vmax.f32 %v1952_v3, %v14314_v48  ;;  %v1989_v57 = vcombine.high %v853_v23, %v853_v23  ;;  %v18636_v21 = vpop.f32.mrb[65].mxu0 }
 0x2cb   :  { %v3406_v52 = vmax.f32 %v3270_v28, %v3278_v49  ;;  %v1996_v19 = vrot.slane %v853_v23, %v17791_v14  ;;  %v851_v15 = vmax.f32 %v779_v11, 0.0  ;;  %v4427_v0 = vrot.slane %v18580_v20, 2 }
 0x2cc   :  { %v3273_v1 = vmax.f32 %v1954_v30, %v14315_v53  ;;  %v3407_v40 = vmax.f32 %v3271_v45, %v3279_v5  ;;  %v3408_v26 = vmax.f32 %v3272_v44, %v3280_v54  ;;  %v2003_v61 = vrot.slane %v1989_v57, %v17791_v14  ;;  %v18642_v5 = vld [vmem:[#allocation2 + $0xe0] sm:$0xff]  ;;  %v18644_v54 = vpop.f32.mrb[66].mxu0  ;;  %v4284_v45 = vld [vmem:[#allocation2 + $0xe8] sm:$0x3]  ;;  %v18649_v44 = vld [vmem:[#allocation2 + $0xf0] sm:$0xff] }
 0x2cd   :  { %v4074_v17 = vrot.slane %v3406_v52, %v17796_v25  ;;  %v2004_v55 = vcombine.high %v1996_v19, %v1996_v19  ;;  %v14324_v56 = vrot.slane %v1996_v19, 9  ;;  %v1955_v36 = vcombine.high %v851_v15, %v851_v15 }
 0x2ce   :  { %v3409_v8 = vmax.f32 %v3273_v1, %v3281_v31  ;;  %v4078_v16 = vrot.slane %v3407_v40, %v17796_v25  ;;  %v4082_v47 = vrot.slane %v3408_v26, %v17796_v25  ;;  %v2005_v4 = vcombine.high %v2003_v61, %v2003_v61  ;;  %v18647_v31 = vpop.f32.mrb[67].mxu0 }
 0x2cf   :  { %v14325_v49 = vrot.slane %v2004_v55, 9  ;;  %v14326_v50 = vrot.slane %v2003_v61, 9  ;;  %v3282_v3 = vmax.f32 %v1996_v19, %v14324_v56  ;;  %v1962_v42 = vrot.slane %v851_v15, %v17791_v14 }
 0x2d0   :  { %v4086_v20 = vrot.slane %v3409_v8, %v17796_v25  ;;  %v4215_v2 = vsel %vm4103_vm3, %v4078_v16, %v4074_v17  ;;  %v1969_v35 = vrot.slane %v1955_v36, %v17791_v14  ;;  %v14327_v30 = vrot.slane %v2005_v4, 9 }
 0x2d1   :  { %v4216_v18 = vsel %vm4105_vm4, %v4082_v47, %v4215_v2  ;;  %v3283_v27 = vmax.f32 %v2004_v55, %v14325_v49  ;;  %v3284_v48 = vmax.f32 %v2003_v61, %v14326_v50  ;;  %v1970_v28 = vcombine.high %v1962_v42, %v1962_v42  ;;  %v4286_v61 = vld [vmem:[#allocation2 + $0xf8] sm:$0x3] }
 0x2d2   :  { %v1971_v23 = vcombine.high %v1969_v35, %v1969_v35  ;;  %v14316_v11 = vrot.slane %v1962_v42, 9  ;;  %v14318_v53 = vrot.slane %v1969_v35, 9  ;;  %v3285_v52 = vmax.f32 %v2005_v4, %v14327_v30  ;;  %v18668_v30 = vld [vmem:[#allocation2 + $0x100] sm:$0xff] }
 0x2d3   :  { %v4217_v57 = vsel %vm4107_vm5, %v4086_v20, %v4216_v18  ;;  %v18653_v19 = vsel %vm4392_vm2, %v4426_v63, %v4427_v0  ;;  %v4429_v15 = vrot.slane %v18642_v5, 2  ;;  %v14317_v1 = vrot.slane %v1970_v28, 9 }
 0x2d4   :  { %v14319_v40 = vrot.slane %v1971_v23, 9  ;;  %v3274_v26 = vmax.f32 %v1962_v42, %v14316_v11  ;;  %v3276_v17 = vmax.f32 %v1969_v35, %v14318_v53  ;;  %v4430_v55 = vrot.slane %v4284_v45, 2  ;;  %v18675_v53 = vld [vmem:[#allocation2 + $0x110] sm:$0xff] }
 0x2d5   :  { %v4364_v56 = vrot.slane %v18642_v5, 1  ;;  %v4365_v8 = vrot.slane %v4284_v45, 1  ;;  %v4367_v16 = vrot.slane %v18649_v44, 1  ;;  %v3275_v47 = vmax.f32 %v1970_v28, %v14317_v1 }
 0x2d6   :  { %v3277_v36 = vmax.f32 %v1971_v23, %v14319_v40  ;;  %v3410_v4 = vmax.f32 %v3274_v26, %v3282_v3  ;;  %v3412_v49 = vmax.f32 %v3276_v17, %v3284_v48  ;;  %v18659_v63 = vsel %vm4392_vm2, %v4429_v15, %v4430_v55  ;;  %v4288_v3 = vld [vmem:[#allocation2 + $0x108] sm:$0x3] }
 0x2d7   :  { %v4366_v0 = vsel %vm4327_vm1, %v4364_v56, %v4365_v8  ;;  %v4368_v50 = vrot.slane %v4286_v61, 1  ;;  %v18664_v20 = vpack.c.bf16 %v18649_v44, %v18642_v5  ;;  %v3411_v2 = vmax.f32 %v3275_v47, %v3283_v27  ;;  %v4290_v27 = vld [vmem:[#allocation2 + $0x118] sm:$0x3] }
 0x2d8   :  { %v3413_v42 = vmax.f32 %v3277_v36, %v3285_v52  ;;  %v4090_v35 = vrot.slane %v3410_v4, %v17796_v25  ;;  %v4098_v18 = vrot.slane %v3412_v49, %v17796_v25  ;;  %v4535_v48 = vpack.c.bf16 %v18659_v63, %v18653_v19 }
 0x2d9   :  { %v4534_v28 = vpack.c.bf16 %v4366_v0, %v18593_v51  ;;  %v4369_v23 = vsel %vm4327_vm1, %v4367_v16, %v4368_v50  ;;  %v4432_v11 = vrot.slane %v18649_v44, 2  ;;  %v4094_v45 = vrot.slane %v3411_v2, %v17796_v25 }
 0x2da   :  { %v4102_v52 = vrot.slane %v3413_v42, %v17796_v25  ;;  %v4218_v15 = vsel %vm4109_vm6, %v4090_v35, %v4217_v57  ;;  %v18680_v1 = vpack.c.bf16 %v4369_v23, %v4366_v0  ;;  %5400 = vmatprep.mubr.bf16.mxu0 %v4535_v48  ;;  %v4433_v40 = vrot.slane %v4286_v61, 2  ;;  %v18703_v48 = vld [vmem:[#allocation2 + $0x90] sm:$0xff] }
 0x2db   :  { %v4435_v26 = vrot.slane %v18668_v30, 2  ;;  %v4436_v51 = vrot.slane %v4288_v3, 2  ;;  %v4370_v17 = vrot.slane %v18668_v30, 1  ;;  %v4219_v55 = vsel %vm4111_vm7, %v4094_v45, %v4218_v15  ;;  %5401 = vmatmul.mubr.bf16.gmra.mrb[84].mxu0 %v4534_v28  ;;  %v18705_v28 = vld [vmem:[#allocation2 + $0x98] sm:$0x3]  ;;  %v17143_v45 = vld [vmem:[#allocation2 + $0x10] sm:$0xff] }
 0x2dc   :  { %5214 = vmatprep.mubr.bf16.mxu1 %v18680_v1  ;;  %v4371_v56 = vrot.slane %v4288_v3, 1  ;;  %v4373_v8 = vrot.slane %v18675_v53, 1  ;;  %v4374_v16 = vrot.slane %v4290_v27, 1  ;;  %v4220_v57 = vsel %vm4113_vm8, %v4098_v18, %v4219_v55 }
 0x2dd   :  { %5215 = vmatmul.mubr.bf16.gmra.mrb[24].mxu1 %v18664_v20  ;;  %v18690_v61 = vsel %vm4392_vm2, %v4432_v11, %v4433_v40  ;;  %v18693_v47 = vsel %vm4392_vm2, %v4435_v26, %v4436_v51  ;;  %v4221_v36 = vsel %vm4115_vm9, %v4102_v52, %v4220_v57  ;;  %v15434_v50 = vpop.f32.mrb[4].mxu1  ;;  %v18709_v11 = vpack.c.bf16 %v18675_v53, %v18668_v30  ;;  %v17144_v52 = vld [vmem:[#allocation2 + $0x20] sm:$0xff] }
 0x2de   :  { %v4541_v4 = vpack.c.bf16 %v18693_v47, %v18690_v61  ;;  %v4372_v49 = vsel %vm4327_vm1, %v4370_v17, %v4371_v56  ;;  %v4375_v0 = vsel %vm4327_vm1, %v4373_v8, %v4374_v16  ;;  %4254 = vst [vmem:[#allocation2 + $0x121] sm:$0xff] %v4221_v36  ;;  %v15435_v42 = vpop.f32.mrb[5].mxu1  ;;  %v4500_v15 = vpack.c.bf16 %v17144_v52, %v17143_v45  ;;  %v18742_v45 = vld [vmem:[#allocation2 + $0x130] sm:$0xff] }
 0x2df   :  { %v18700_v2 = vpack.c.bf16 %v4375_v0, %v4372_v49  ;;  %v4540_v35 = vpack.c.bf16 %v4372_v49, %v4369_v23  ;;  %v15437_v18 = vpop.f32.mrb[6].mxu1  ;;  %v4438_v23 = vrot.slane %v18675_v53, 2  ;;  %v4439_v40 = vrot.slane %v4290_v27, 2 }
 0x2e0   :  { %5408 = vmatprep.mubr.bf16.mxu0 %v4541_v4  ;;  %v15438_v3 = vpop.f32.mrb[7].mxu1  ;;  %v4481_v26 = vrot.slane %v18703_v48, 1  ;;  %v4482_v51 = vrot.slane %v18705_v28, 1  ;;  %v18719_v56 = vadd.f32 %v18618_v32, %v18615_v41  ;;  %v18723_v8 = vadd.f32 %v18625_v60, %v18621_v12  ;;  %v16040_v60 = vld [vmem:[#allocation10 + $0x180] sm:$0xff]  }
 0x2e1   :  { %5222 = vmatprep.mubr.bf16.mxu1 %v18700_v2  ;;  %v18731_v49 = vsel %vm4392_vm2, %v4438_v23, %v4439_v40  ;;  %v18746_v52 = vadd.f32 %v18636_v21, %v18634_v38  ;;  %v18748_v23 = vld [vmem:[#allocation2 + $0x138] sm:$0x3]  ;;  %v18752_v40 = vadd.f32 %v18647_v31, %v18644_v54  ;;  %v4505_v54 = vpack.c.bf16 %v18207_v43, %v18092_v59  ;;  %v16044_v31 = vld [vmem:[#allocation10 + $0x188] sm:$0xff]  }
 0x2e2   :  { %v18728_v4 = vsel %vm4327_vm1, %v4481_v26, %v4482_v51  ;;  %v18754_v26 = vadd.f32 %v15435_v42, %v15434_v50  ;;  %v18756_v51 = vadd.f32 %v15438_v3, %v15437_v18  ;;  %v4485_v38 = vrot.slane %v18748_v23, 1  ;;  %v16045_v42 = vld [vmem:[#allocation10 + $0x1d0] sm:$0xff]  }
 0x2e3   :  { %5409 = vmatmul.mubr.bf16.gmra.mrb[88].mxu0 %v4540_v35  ;;  %v17148_v3 = vld [vmem:[#allocation2 + $0x60] sm:$0xff]  ;;  %v4489_v43 = vrot.slane %v18703_v48, 2 }
 0x2e5   :  { %5223 = vmatmul.mubr.bf16.gmra.mrb[28].mxu1 %v18709_v11  ;;  %v18715_v17 = vld [vmem:[#allocation2 + $0x120] sm:$0xff]  ;;  %v4292_v55 = vld [vmem:[#allocation2 + $0x128] sm:$0x3] }
 0x2e6   :  { %5263 = vmatprep.mubr.bf16.mxu1 %v4500_v15  ;;  %v4472_v16 = vrot.slane %v18715_v17, 2  ;;  %v4473_v57 = vrot.slane %v4292_v55, 2  ;;  %v4464_v27 = vrot.slane %v18715_v17, 1  ;;  %v4465_v36 = vrot.slane %v4292_v55, 1  ;;  %v16043_v15 = vld [vmem:[#allocation10 + $0x1c8] sm:$0xff]   ;;  %v17145_v55 = vld [vmem:[#allocation2 + $0x30] sm:$0xff] }
 0x2e7   :  { %v4548_v21 = vpack.c.bf16 %v18742_v45, %v18715_v17 }
 0x2e8   :  { %v18734_v35 = vsel %vm4392_vm2, %v4472_v16, %v4473_v57  ;;  %v18737_v41 = vsel %vm4327_vm1, %v4464_v27, %v4465_v36  ;;  %v17146_v16 = vld [vmem:[#allocation2 + $0x40] sm:$0xff]  ;;  %v20622_v27 = vpack.c.bf16 %v18083_v33, %v17805_v34  ;;  %v17147_v33 = vld [vmem:[#allocation2 + $0x50] sm:$0xff] }
 0x2e9   :  { %v4547_v32 = vpack.c.bf16 %v18734_v35, %v18731_v49  ;;  %v4546_v12 = vpack.c.bf16 %v18737_v41, %v4375_v0  ;;  %v4484_v0 = vrot.slane %v18742_v45, 1  ;;  %v4506_v57 = vpack.c.bf16 %v17146_v16, %v17145_v55  ;;  %v16046_v34 = vld [vmem:[#allocation10 + $0x190] sm:$0xff]   ;;  %v16048_v55 = vld [vmem:[#allocation10 + $0x198] sm:$0xff]  }
 0x2ea   :  { %v4512_v36 = vpack.c.bf16 %v17148_v3, %v17147_v33  ;;  %v17149_v33 = vld [vmem:[#allocation2 + $0x70] sm:$0xff]  ;;  %v18783_v3 = vld [vmem:[#allocation2 + $0x80] sm:$0xff] }
 0x2eb   :  { %5416 = vmatprep.mubr.bf16.mxu0 %v4547_v32  ;;  %v18768_v50 = vsel %vm4327_vm1, %v4484_v0, %v4485_v38  ;;  %v20623_v32 = vld [vmem:[#allocation32_spill] sm:$0xff]  ;;  %v16049_v38 = vld [vmem:[#allocation10 + $0x1e0] sm:$0xff]  }
 0x2ec   :  { %5417 = vmatmul.mubr.bf16.gmra.mrb[92].mxu0 %v4546_v12  ;;  %v4549_v18 = vpack.c.bf16 %v18768_v50, %v18737_v41  ;;  %v4517_v59 = vpack.c.bf16 %v18434_v6, %v20623_v32  ;;  %v4490_v12 = vrot.slane %v18705_v28, 2  ;;  %v16051_v32 = vld [vmem:[#allocation10 + $0x1e8] sm:$0xff]  }
 0x2ed   :  { %5264 = vmatmul.mubr.bf16.vlgmr.msra.gmra.mrb[32].mxu1 %v20622_v27  ;;  %15812 = vmatprep.mubr.bf16.mxu0 %v4505_v54 }
 0x2ee   :  { %15605 = vmatpush3.bf16.msra.mxu1 %v16040_v60  ;;  %5271 = vmatprep.mubr.bf16.mxu1 %v4506_v57  ;;  %v16047_v60 = vld [vmem:[#allocation10 + $0x1d8] sm:$0xff]   ;;  %v4491_v57 = vsel %vm4392_vm2, %v4489_v43, %v4490_v12  ;;  %v16052_v43 = vld [vmem:[#allocation10 + $0x1a8] sm:$0xff]   ;;  %v4492_v12 = vrot.slane %v18742_v45, 2 }
 0x2ef   :  { %15606 = vmatprep.subr.bf16.mxu1 %v16043_v15  ;;  %v20624_v15 = vld [vmem:[#allocation31_spill] sm:$0xff]  ;;  %v4523_v28 = vpack.c.bf16 %v4491_v57, %v18439_v39  ;;  %v4418_v57 = vrot.slane %v18474_v24, 2  ;;  %v4533_v24 = vpack.c.bf16 %v18642_v5, %v18574_v13 }
 0x2f0   :  { %v16053_v39 = vld [vmem:[#allocation10 + $0x1f0] sm:$0xff]  }
 0x2f2   :  { %15607 = vmatpush3.bf16.msra.mxu1 %v16044_v31 }
 0x2f3   :  { %15608 = vmatprep.subr.bf16.mxu1 %v16045_v42 }
 0x2f4   :  { %15813 = vmatmul.mubr.bf16.vlgmr.msra.gmra.mrb[96].mxu0 %v20624_v15 }
 0x2f5   :  { %5272 = vmatmul.mubr.bf16.gmra.mrb[36].mxu1 %v4505_v54  ;;  %15816 = vmatprep.mubr.bf16.mxu0 %v4517_v59  ;;  %v15562_v0 = vpop.f32.mrb[68].mxu0  ;;  %v16050_v54 = vld [vmem:[#allocation10 + $0x1a0] sm:$0xff]  }
 0x2f6   :  { %5279 = vmatprep.mubr.bf16.mxu1 %v4512_v36  ;;  %15609 = vmatpush3.bf16.msra.mxu1 %v16046_v34  ;;  %v15563_v16 = vpop.f32.mrb[69].mxu0  ;;  %v4518_v34 = vpack.c.bf16 %v18783_v3, %v17149_v33  ;;  %v4532_v36 = vpack.c.bf16 %v18653_v19, %v18540_v9  ;;  %v16054_v9 = vld [vmem:[#allocation10 + $0x1b0] sm:$0xff]   ;;  %v4527_v19 = vpack.c.bf16 %v18528_v58, %v18477_v22 }
 0x2f7   :  { %15610 = vmatprep.subr.bf16.mxu1 %v16047_v60  ;;  %v18778_v27 = vadd.f32 %v15563_v16, %v15562_v0  ;;  %v15565_v6 = vpop.f32.mrb[70].mxu0  ;;  %v4493_v60 = vrot.slane %v18748_v23, 2  ;;  %v4538_v0 = vpack.c.bf16 %v18690_v61, %v18659_v63  ;;  %v16056_v61 = vld [vmem:[#allocation10 + $0x1b8] sm:$0xff]  }
 0x2f8   :  { %v15566_v31 = vpop.f32.mrb[71].mxu0 }
 0x2f9   :  { %v18780_v42 = vadd.f32 %v15566_v31, %v15565_v6  ;;  %v4494_v63 = vsel %vm4392_vm2, %v4492_v12, %v4493_v60 }
 0x2fa   :  { %15611 = vmatpush3.bf16.msra.mxu1 %v16048_v55  ;;  %v17151_v55 = vld [vmem:[#allocation2 + $0xa0] sm:$0xff]  ;;  %v4550_v22 = vpack.c.bf16 %v4494_v63, %v18734_v35  ;;  %v4539_v35 = vpack.c.bf16 %v18668_v30, %v18649_v44  ;;  %v20627_v44 = vld [vmem:[#allocation30_spill] sm:$0xff]  ;;  %v20628_v30 = vld [vmem:[#allocation29_spill] sm:$0xff] }
 0x2fb   :  { %15612 = vmatprep.subr.bf16.mxu1 %v16049_v38  ;;  %v4417_v16 = vrot.slane %v17151_v55, 2  ;;  %v16055_v38 = vld [vmem:[#allocation10 + $0x1f8] sm:$0xff]   ;;  %v16063_v63 = vld [vmem:[#allocation13 + $0x20] ss:$8 sps:$4 sm:$0xff]  }
 0x2fc   :  { %15817 = vmatmul.mubr.bf16.gmra.mrb[100].mxu0 %v4523_v28 }
 0x2fd   :  { %5280 = vmatmul.mubr.bf16.gmra.mrb[40].mxu1 %v20624_v15  ;;  %15820 = vmatprep.mubr.bf16.mxu0 %v4532_v36  ;;  %v4544_v15 = vpack.c.bf16 %v18731_v49, %v18693_v47  ;;  %v4419_v23 = vsel %vm4392_vm2, %v4417_v16, %v4418_v57  ;;  %v16059_v57 = vld [vmem:[#allocation13 + $0x4] ss:$8 sps:$4 sm:$0xff]  }
 0x2fe   :  { %5287 = vmatprep.mubr.bf16.mxu1 %v4518_v34  ;;  %15613 = vmatpush3.bf16.msra.mxu1 %v16050_v54  ;;  %v4526_v58 = vpack.c.bf16 %v18536_v29, %v4419_v23  ;;  %v4545_v29 = vpack.c.bf16 %v18715_v17, %v18675_v53  ;;  %v20625_v54 = vld [vmem:[#allocation28_spill] sm:$0xff] }
 0x2ff   :  { %15614 = vmatprep.subr.bf16.mxu1 %v16051_v32 }
 0x302   :  { %15615 = vmatpush3.bf16.msra.mxu1 %v16052_v43 }
 0x303   :  { %15616 = vmatprep.subr.bf16.mxu1 %v16053_v39  ;;  %v20626_v39 = vld [vmem:[#allocation27_spill] sm:$0xff] }
 0x304   :  { %15821 = vmatmul.mubr.bf16.gmra.mrb[104].mxu0 %v4538_v0 }
 0x305   :  { %5288 = vmatmul.mubr.bf16.gmra.mrb[44].mxu1 %v4517_v59  ;;  %15824 = vmatprep.mubr.bf16.mxu0 %v4544_v15 }
 0x306   :  { %5295 = vmatprep.mubr.bf16.mxu1 %v4527_v19  ;;  %15617 = vmatpush3.bf16.msra.mxu1 %v16054_v9  ;;  %v4522_v9 = vpack.c.bf16 %v18728_v4, %v18451_v46 }
 0x307   :  { %15618 = vmatprep.subr.bf16.mxu1 %v16055_v38  ;;  %v16060_v38 = vld [vmem:[#allocation13 + $0x10] ss:$8 sps:$4 sm:$0xff]  }
 0x30a   :  { %15619 = vmatpush3.bf16.msra.mxu1 %v16056_v61  ;;  %v16065_v61 = vld [vmem:[#allocation13 + $0x24] ss:$8 sps:$4 sm:$0xff]  }
 0x30b   :  { %v15440_v47 = vpop.f32.mrb[8].mxu1  ;;  %7539 = vmatprep.subr.bf16.mxu1 %v16059_v57 }
 0x30c   :  { %15825 = vmatmul.mubr.bf16.gmra.mrb[108].mxu0 %v4550_v22  ;;  %v15441_v49 = vpop.f32.mrb[9].mxu1 }
 0x30d   :  { %5296 = vmatmul.mubr.bf16.gmra.mrb[48].mxu1 %v4526_v58  ;;  %v18804_v59 = vadd.f32 %v15441_v49, %v15440_v47  ;;  %v15443_v6 = vpop.f32.mrb[10].mxu1 }
 0x30e   :  { %5303 = vmatprep.mubr.bf16.mxu1 %v4533_v24  ;;  %v15444_v31 = vpop.f32.mrb[11].mxu1 }
 0x30f   :  { %v18806_v28 = vadd.f32 %v15444_v31, %v15443_v6  ;;  %v16066_v6 = vld [vmem:[#allocation13 + $0x30] ss:$8 sps:$4 sm:$0xff]   ;;  %v16068_v31 = vld [vmem:[#allocation13 + $0x34] ss:$8 sps:$4 sm:$0xff]  }
 0x315   :  { %5304 = vmatmul.mubr.bf16.gmra.mrb[52].mxu1 %v4532_v36 }
 0x316   :  { %5311 = vmatprep.mubr.bf16.mxu1 %v4539_v35  ;;  %v16071_v35 = vld [vmem:[#allocation13 + $0x44] ss:$8 sps:$4 sm:$0xff]  }
 0x31d   :  { %5312 = vmatmul.mubr.bf16.gmra.mrb[56].mxu1 %v4538_v0 }
 0x31e   :  { %5319 = vmatprep.mubr.bf16.mxu1 %v4545_v29  ;;  %v16069_v29 = vld [vmem:[#allocation13 + $0x40] ss:$8 sps:$4 sm:$0xff]  }
 0x323   :  { %v15568_v13 = vpop.f32.mrb[72].mxu0 }
 0x324   :  { %v15569_v5 = vpop.f32.mrb[73].mxu0 }
 0x325   :  { %5320 = vmatmul.mubr.bf16.gmra.mrb[60].mxu1 %v4544_v15  ;;  %v18813_v33 = vadd.f32 %v15569_v5, %v15568_v13  ;;  %v15571_v34 = vpop.f32.mrb[74].mxu0  ;;  %v4521_v15 = vpack.c.bf16 %v18703_v48, %v18783_v3  ;;  %v16057_v3 = vld [vmem:[#allocation13] ss:$8 sps:$4 sm:$0xff]   ;;  %v16072_v13 = vld [vmem:[#allocation13 + $0x50] ss:$8 sps:$4 sm:$0xff]  }
 0x326   :  { %5457 = vmatprep.mubr.bf16.mxu1 %v20625_v54  ;;  %v15572_v32 = vpop.f32.mrb[75].mxu0  ;;  %v16074_v5 = vld [vmem:[#allocation13 + $0x54] ss:$8 sps:$4 sm:$0xff]   ;;  %v16077_v54 = vld [vmem:[#allocation13 + $0x64] ss:$8 sps:$4 sm:$0xff]  }
 0x327   :  { %v18815_v43 = vadd.f32 %v15572_v32, %v15571_v34  ;;  %v16075_v34 = vld [vmem:[#allocation13 + $0x60] ss:$8 sps:$4 sm:$0xff]  }
 0x32d   :  { %5458 = vmatmul.mubr.bf16.vlgmr.msra.gmra.mrb[64].mxu1 %v20626_v39 }
 0x32e   :  { %5465 = vmatprep.mubr.bf16.mxu1 %v20627_v44  ;;  %7540 = vmatpush1.bf16.msra.mxu1 %v16057_v3 }
 0x335   :  { %5466 = vmatmul.mubr.bf16.gmra.mrb[68].mxu1 %v20628_v30 }
 0x336   :  { %5473 = vmatprep.mubr.bf16.mxu1 %v18393_v10 }
 0x338   :  { %v15446_v53 = vpop.f32.mrb[12].mxu1 }
 0x339   :  { %v15447_v36 = vpop.f32.mrb[13].mxu1 }
 0x33a   :  { %v18821_v12 = vadd.f32 %v15447_v36, %v15446_v53  ;;  %v15449_v60 = vpop.f32.mrb[14].mxu1 }
 0x33b   :  { %v15450_v0 = vpop.f32.mrb[15].mxu1 }
 0x33c   :  { %v18825_v19 = vadd.f32 %v15450_v0, %v15449_v60 }
 0x33d   :  { %5474 = vmatmul.mubr.bf16.gmra.mrb[72].mxu1 %v18377_v62 }
 0x33e   :  { %5481 = vmatprep.mubr.bf16.mxu1 %v4522_v9 }
 0x345   :  { %5482 = vmatmul.mubr.bf16.gmra.mrb[76].mxu1 %v4521_v15 }
 0x346   :  { %5489 = vmatprep.mubr.bf16.mxu1 %v18601_v7 }
 0x34d   :  { %5490 = vmatmul.mubr.bf16.gmra.mrb[80].mxu1 %v18588_v37 }
 0x34e   :  { %5497 = vmatprep.mubr.bf16.mxu1 %v18680_v1 }
 0x353   :  { %v15574_v10 = vpop.f32.mrb[76].mxu0 }
 0x354   :  { %v15575_v55 = vpop.f32.mrb[77].mxu0 }
 0x355   :  { %5498 = vmatmul.mubr.bf16.gmra.mrb[84].mxu1 %v18664_v20  ;;  %v18834_v46 = vadd.f32 %v15575_v55, %v15574_v10  ;;  %v15577_v4 = vpop.f32.mrb[78].mxu0 }
 0x356   :  { %5505 = vmatprep.mubr.bf16.mxu1 %v18700_v2  ;;  %v15578_v62 = vpop.f32.mrb[79].mxu0 }
 0x357   :  { %v18837_v16 = vadd.f32 %v15578_v62, %v15577_v4  ;;  %v16078_v4 = vld [vmem:[#allocation13 + $0x70] ss:$8 sps:$4 sm:$0xff]   ;;  %v16080_v62 = vld [vmem:[#allocation13 + $0x74] ss:$8 sps:$4 sm:$0xff]  }
 0x35d   :  { %5506 = vmatmul.mubr.bf16.gmra.mrb[88].mxu1 %v18709_v11  ;;  %v16062_v11 = vld [vmem:[#allocation13 + $0x14] ss:$8 sps:$4 sm:$0xff]  }
 0x35e   :  { %5513 = vmatprep.mubr.bf16.mxu1 %v4549_v18  ;;  %7541 = vmatprep.subr.bf16.mxu1 %v16062_v11 }
 0x35f   :  { %7542 = vmatpush1.bf16.msra.mxu1 %v16060_v38 }
 0x360   :  { %7543 = vmatprep.subr.bf16.mxu1 %v16065_v61 }
 0x363   :  { %7544 = vmatpush1.bf16.msra.mxu1 %v16063_v63 }
 0x364   :  { %7545 = vmatprep.subr.bf16.mxu1 %v16068_v31  ;;  %v16084_v31 = vld [vmem:[#allocation13 + $0x90] ss:$8 sps:$4 sm:$0xff]  }
 0x365   :  { %5514 = vmatmul.mubr.bf16.gmra.mrb[92].mxu1 %v4548_v21 }
 0x367   :  { %v15452_v37 = vpop.f32.mrb[16].mxu1  ;;  %7546 = vmatpush1.bf16.msra.mxu1 %v16066_v6 }
 0x368   :  { %v15453_v7 = vpop.f32.mrb[17].mxu1  ;;  %7547 = vmatprep.subr.bf16.mxu1 %v16071_v35  ;;  %v16086_v35 = vld [vmem:[#allocation13 + $0x94] ss:$8 sps:$4 sm:$0xff]  }
 0x369   :  { %v18846_v20 = vadd.f32 %v15453_v7, %v15452_v37  ;;  %v15455_v1 = vpop.f32.mrb[18].mxu1  ;;  %v16083_v37 = vld [vmem:[#allocation13 + $0x84] ss:$8 sps:$4 sm:$0xff]  }
 0x36a   :  { %v15456_v48 = vpop.f32.mrb[19].mxu1 }
 0x36b   :  { %v18848_v2 = vadd.f32 %v15456_v48, %v15455_v1  ;;  %7548 = vmatpush1.bf16.msra.mxu1 %v16069_v29  ;;  %v16081_v1 = vld [vmem:[#allocation13 + $0x80] ss:$8 sps:$4 sm:$0xff]  }
 0x36c   :  { %7549 = vmatprep.subr.bf16.mxu1 %v16074_v5 }
 0x36f   :  { %7550 = vmatpush1.bf16.msra.mxu1 %v16072_v13 }
 0x370   :  { %7551 = vmatprep.subr.bf16.mxu1 %v16077_v54 }
 0x373   :  { %7552 = vmatpush1.bf16.msra.mxu1 %v16075_v34 }
 0x374   :  { %7553 = vmatprep.subr.bf16.mxu1 %v16080_v62 }
 0x377   :  { %7554 = vmatpush1.bf16.msra.mxu1 %v16078_v4 }
 0x378   :  { %7555 = vmatprep.subr.bf16.mxu1 %v16083_v37 }
 0x37b   :  { %7556 = vmatpush1.bf16.msra.mxu1 %v16081_v1 }
 0x37c   :  { %7557 = vmatprep.subr.bf16.mxu1 %v16086_v35 }
 0x37f   :  { %7558 = vmatpush1.bf16.msra.mxu1 %v16084_v31 }
 0x380   :  { %v15580_v41 = vpop.f32.mrb[80].mxu0 }
 0x381   :  { %v15581_v50 = vpop.f32.mrb[81].mxu0 }
 0x382   :  { %v18850_v18 = vadd.f32 %v15581_v50, %v15580_v41  ;;  %v15583_v17 = vpop.f32.mrb[82].mxu0 }
 0x383   :  { %v15584_v45 = vpop.f32.mrb[83].mxu0 }
 0x384   :  { %v18852_v21 = vadd.f32 %v15584_v45, %v15583_v17 }
 0x396   :  { %v15458_v23 = vpop.f32.mrb[20].mxu1 }
 0x397   :  { %v15459_v22 = vpop.f32.mrb[21].mxu1 }
 0x398   :  { %v18854_v58 = vadd.f32 %v15459_v22, %v15458_v23  ;;  %v15461_v24 = vpop.f32.mrb[22].mxu1  ;;  %v18874_v23 = vld [vmem:[#allocation11] ss:$0 sm:$0xff] }
 0x399   :  { %v15462_v47 = vpop.f32.mrb[23].mxu1  ;;  %v5169_v29 = vadd.f32 %v18719_v56, %v18874_v23 }
 0x39a   :  { %v18856_v49 = vadd.f32 %v15462_v47, %v15461_v24 }
 0x3ae   :  { %v15586_v32 = vpop.f32.mrb[84].mxu0 }
 0x3af   :  { %v15587_v39 = vpop.f32.mrb[85].mxu0 }
 0x3b0   :  { %v15464_v44 = vpop.f32.mrb[24].mxu1  ;;  %v18858_v30 = vadd.f32 %v15587_v39, %v15586_v32  ;;  %v15589_v53 = vpop.f32.mrb[86].mxu0  ;;  %v16089_v32 = vld [vmem:[#allocation13 + $0xa4] ss:$8 sps:$4 sm:$0xff]  }
 0x3b1   :  { %v15465_v36 = vpop.f32.mrb[25].mxu1  ;;  %v15590_v60 = vpop.f32.mrb[87].mxu0  ;;  %7559 = vmatprep.subr.bf16.mxu1 %v16089_v32 }
 0x3b2   :  { %v18860_v0 = vadd.f32 %v15465_v36, %v15464_v44  ;;  %v15467_v9 = vpop.f32.mrb[26].mxu1  ;;  %v18862_v15 = vadd.f32 %v15590_v60, %v15589_v53  ;;  %v5172_v53 = vadd.f32 %v18723_v8, %v18874_v23 }
 0x3b3   :  { %v15468_v10 = vpop.f32.mrb[27].mxu1 }
 0x3b4   :  { %v18864_v55 = vadd.f32 %v15468_v10, %v15467_v9  ;;  %v16087_v10 = vld [vmem:[#allocation13 + $0xa0] ss:$8 sps:$4 sm:$0xff]  }
 0x3b5   :  { %7560 = vmatpush1.bf16.msra.mxu1 %v16087_v10  ;;  %v16096_v10 = vld [vmem:[#allocation13 + $0xd0] ss:$8 sps:$4 sm:$0xff]  }
 0x3b6   :  { %v15592_v7 = vpop.f32.mrb[88].mxu0 }
 0x3b7   :  { %v15593_v48 = vpop.f32.mrb[89].mxu0 }
 0x3b8   :  { %v15470_v3 = vpop.f32.mrb[28].mxu1  ;;  %v18866_v57 = vadd.f32 %v15593_v48, %v15592_v7  ;;  %v15595_v11 = vpop.f32.mrb[90].mxu0  ;;  %v5177_v48 = vadd.f32 %v18754_v26, %v18874_v23 }
 0x3b9   :  { %v15471_v38 = vpop.f32.mrb[29].mxu1  ;;  %v15596_v41 = vpop.f32.mrb[91].mxu0 }
 0x3ba   :  { %v18868_v50 = vadd.f32 %v15471_v38, %v15470_v3  ;;  %v15473_v17 = vpop.f32.mrb[30].mxu1  ;;  %v18870_v45 = vadd.f32 %v15596_v41, %v15595_v11  ;;  %v16090_v41 = vld [vmem:[#allocation13 + $0xb0] ss:$8 sps:$4 sm:$0xff]  }
 0x3bb   :  { %v15474_v63 = vpop.f32.mrb[31].mxu1 }
 0x3bc   :  { %v18872_v61 = vadd.f32 %v15474_v63, %v15473_v17 }
 0x3bf   :  { %v15598_v24 = vpop.f32.mrb[92].mxu0 }
 0x3c0   :  { %v15492_v22 = vpop.f32.mrb[32].mxu1  ;;  %v15599_v6 = vpop.f32.mrb[93].mxu0 }
 0x3c1   :  { %v15493_v47 = vpop.f32.mrb[33].mxu1  ;;  %v18878_v5 = vadd.f32 %v15599_v6, %v15598_v24  ;;  %v15601_v34 = vpop.f32.mrb[94].mxu0  ;;  %v16093_v6 = vld [vmem:[#allocation13 + $0xc0] ss:$8 sps:$4 sm:$0xff]  }
 0x3c2   :  { %v15494_v13 = vadd.f32 %v15493_v47, %v15492_v22  ;;  %v15495_v54 = vpop.f32.mrb[34].mxu1  ;;  %v15602_v44 = vpop.f32.mrb[95].mxu0  ;;  %v16095_v22 = vld [vmem:[#allocation13 + $0xc4] ss:$8 sps:$4 sm:$0xff]  }
 0x3c3   :  { %v15496_v39 = vpop.f32.mrb[35].mxu1  ;;  %v18882_v9 = vadd.f32 %v15602_v44, %v15601_v34 }
 0x3c4   :  { %v5266_v36 = vadd.f32 %v15494_v13, %v5169_v29  ;;  %v15497_v60 = vadd.f32 %v15496_v39, %v15495_v54 }
 0x3c6   :  { %v5269_v56 = vadd.f32 %v15497_v60, %v5172_v53  ;;  %v18885_v4 = vadd.f32 %v18746_v52, %v5266_v36  ;;  %v16092_v52 = vld [vmem:[#allocation13 + $0xb4] ss:$8 sps:$4 sm:$0xff]   ;;  %v5188_v36 = vadd.f32 %v18806_v28, %v18874_v23 }
 0x3c7   :  { %v18887_v37 = vpop.f32.mrb[96].mxu0  ;;  %7561 = vmatprep.subr.bf16.mxu1 %v16092_v52 }
 0x3c8   :  { %v15498_v62 = vpop.f32.mrb[36].mxu1  ;;  %v18890_v7 = vadd.f32 %v18752_v40, %v5269_v56  ;;  %v18892_v8 = vpop.f32.mrb[97].mxu0  ;;  %v5180_v40 = vadd.f32 %v18756_v51, %v18874_v23  ;;  %7562 = vmatpush1.bf16.msra.mxu1 %v16090_v41  ;;  %v5185_v51 = vadd.f32 %v18804_v59, %v18874_v23  ;;  %v16098_v56 = vld [vmem:[#allocation13 + $0xd4] ss:$8 sps:$4 sm:$0xff]   ;;  %v16099_v41 = vld [vmem:[#allocation13 + $0xe0] ss:$8 sps:$4 sm:$0xff]  }
 0x3c9   :  { %v15499_v1 = vpop.f32.mrb[37].mxu1  ;;  %v18896_v38 = vpop.f32.mrb[98].mxu0  ;;  %7563 = vmatprep.subr.bf16.mxu1 %v16095_v22 }
 0x3ca   :  { %v15500_v3 = vadd.f32 %v15499_v1, %v15498_v62  ;;  %v15501_v11 = vpop.f32.mrb[38].mxu1  ;;  %v18898_v63 = vpop.f32.mrb[99].mxu0 }
 0x3cb   :  { %v15502_v17 = vpop.f32.mrb[39].mxu1 }
 0x3cc   :  { %v5274_v24 = vadd.f32 %v15500_v3, %v5177_v48  ;;  %v15503_v47 = vadd.f32 %v15502_v17, %v15501_v11  ;;  %7564 = vmatpush1.bf16.msra.mxu1 %v16093_v6  ;;  %v16101_v48 = vld [vmem:[#allocation13 + $0xe4] ss:$8 sps:$4 sm:$0xff]   ;;  %v5193_v17 = vadd.f32 %v18821_v12, %v18874_v23 }
 0x3cd   :  { %7565 = vmatprep.subr.bf16.mxu1 %v16098_v56 }
 0x3ce   :  { %v5277_v31 = vadd.f32 %v15503_v47, %v5180_v40  ;;  %v18903_v26 = vadd.f32 %v18778_v27, %v5274_v24 }
 0x3cf   :  { %v18905_v29 = vpop.f32.mrb[100].mxu0 }
 0x3d0   :  { %v15504_v35 = vpop.f32.mrb[40].mxu1  ;;  %v18908_v13 = vadd.f32 %v18780_v42, %v5277_v31  ;;  %v18910_v34 = vpop.f32.mrb[101].mxu0  ;;  %7566 = vmatpush1.bf16.msra.mxu1 %v16096_v10 }
 0x3d1   :  { %v15505_v54 = vpop.f32.mrb[41].mxu1  ;;  %v18914_v44 = vpop.f32.mrb[102].mxu0  ;;  %7567 = vmatprep.subr.bf16.mxu1 %v16101_v48  ;;  %v16108_v48 = vld [vmem:[#allocation13 + $0x104] ss:$8 sps:$4 sm:$0xff]  }
 0x3d2   :  { %v15506_v32 = vadd.f32 %v15505_v54, %v15504_v35  ;;  %v15507_v39 = vpop.f32.mrb[42].mxu1  ;;  %v18916_v53 = vpop.f32.mrb[103].mxu0 }
 0x3d3   :  { %v15508_v27 = vpop.f32.mrb[43].mxu1 }
 0x3d4   :  { %v5282_v60 = vadd.f32 %v15506_v32, %v5185_v51  ;;  %v15509_v42 = vadd.f32 %v15508_v27, %v15507_v39  ;;  %7568 = vmatpush1.bf16.msra.mxu1 %v16099_v41  ;;  %v16102_v51 = vld [vmem:[#allocation13 + $0xf0] ss:$8 sps:$4 sm:$0xff]   ;;  %v16104_v32 = vld [vmem:[#allocation13 + $0xf4] ss:$8 sps:$4 sm:$0xff]  }
 0x3d5   :  { %7569 = vmatprep.subr.bf16.mxu1 %v16104_v32 }
 0x3d6   :  { %v5285_v62 = vadd.f32 %v15509_v42, %v5188_v36  ;;  %v18921_v1 = vadd.f32 %v18813_v33, %v5282_v60 }
 0x3d7   :  { %v18923_v3 = vpop.f32.mrb[104].mxu0 }
 0x3d8   :  { %v15510_v59 = vpop.f32.mrb[44].mxu1  ;;  %v18926_v11 = vadd.f32 %v18815_v43, %v5285_v62  ;;  %v18928_v28 = vpop.f32.mrb[105].mxu0  ;;  %v5196_v43 = vadd.f32 %v18825_v19, %v18874_v23  ;;  %v5201_v19 = vadd.f32 %v18846_v20, %v18874_v23  ;;  %7570 = vmatpush1.bf16.msra.mxu1 %v16102_v51 }
 0x3d9   :  { %v15511_v52 = vpop.f32.mrb[45].mxu1  ;;  %v18932_v40 = vpop.f32.mrb[106].mxu0  ;;  %7592 = vmatprep.subr.bf16.mxu1 %v16108_v48 }
 0x3da   :  { %v15512_v22 = vadd.f32 %v15511_v52, %v15510_v59  ;;  %v15513_v33 = vpop.f32.mrb[46].mxu1  ;;  %v18934_v47 = vpop.f32.mrb[107].mxu0 }
 0x3db   :  { %v15514_v24 = vpop.f32.mrb[47].mxu1 }
 0x3dc   :  { %v5290_v6 = vadd.f32 %v15512_v22, %v5193_v17  ;;  %v15515_v31 = vadd.f32 %v15514_v24, %v15513_v33  ;;  %v5209_v24 = vadd.f32 %v18854_v58, %v18874_v23  ;;  %v5217_v58 = vadd.f32 %v18860_v0, %v18874_v23 }
 0x3dd   :  { %v5225_v0 = vadd.f32 %v18868_v50, %v18874_v23 }
 0x3de   :  { %v5293_v35 = vadd.f32 %v15515_v31, %v5196_v43  ;;  %v18939_v54 = vadd.f32 %v18834_v46, %v5290_v6 }
 0x3df   :  { %v18941_v39 = vpop.f32.mrb[108].mxu0 }
 0x3e0   :  { %v15516_v12 = vpop.f32.mrb[48].mxu1  ;;  %v18944_v27 = vadd.f32 %v18837_v16, %v5293_v35  ;;  %v18946_v60 = vpop.f32.mrb[109].mxu0  ;;  %v5204_v16 = vadd.f32 %v18848_v2, %v18874_v23  ;;  %v5212_v2 = vadd.f32 %v18856_v49, %v18874_v23  ;;  %v5220_v49 = vadd.f32 %v18864_v55, %v18874_v23 }
 0x3e1   :  { %v15517_v36 = vpop.f32.mrb[49].mxu1  ;;  %v18950_v56 = vpop.f32.mrb[110].mxu0  ;;  %v5228_v55 = vadd.f32 %v18872_v61, %v18874_v23 }
 0x3e2   :  { %v15518_v42 = vadd.f32 %v15517_v36, %v15516_v12  ;;  %v15519_v10 = vpop.f32.mrb[50].mxu1  ;;  %v18952_v62 = vpop.f32.mrb[111].mxu0 }
 0x3e3   :  { %v15520_v46 = vpop.f32.mrb[51].mxu1 }
 0x3e4   :  { %v5298_v59 = vadd.f32 %v15518_v42, %v5201_v19  ;;  %v15521_v41 = vadd.f32 %v15520_v46, %v15519_v10 }
 0x3e6   :  { %v5301_v52 = vadd.f32 %v15521_v41, %v5204_v16  ;;  %v18957_v17 = vadd.f32 %v18850_v18, %v5298_v59 }
 0x3e8   :  { %v15522_v20 = vpop.f32.mrb[52].mxu1  ;;  %v18960_v22 = vadd.f32 %v18852_v21, %v5301_v52 }
 0x3e9   :  { %v15523_v33 = vpop.f32.mrb[53].mxu1 }
 0x3ea   :  { %v15524_v43 = vadd.f32 %v15523_v33, %v15522_v20  ;;  %v15525_v6 = vpop.f32.mrb[54].mxu1 }
 0x3eb   :  { %v15526_v31 = vpop.f32.mrb[55].mxu1 }
 0x3ec   :  { %v5306_v35 = vadd.f32 %v15524_v43, %v5209_v24  ;;  %v15527_v51 = vadd.f32 %v15526_v31, %v15525_v6 }
 0x3ee   :  { %v5309_v32 = vadd.f32 %v15527_v51, %v5212_v2  ;;  %v18967_v18 = vadd.f32 %v18858_v30, %v5306_v35 }
 0x3f0   :  { %v15528_v12 = vpop.f32.mrb[56].mxu1  ;;  %v18970_v21 = vadd.f32 %v18862_v15, %v5309_v32 }
 0x3f1   :  { %v15529_v36 = vpop.f32.mrb[57].mxu1 }
 0x3f2   :  { %v15530_v19 = vadd.f32 %v15529_v36, %v15528_v12  ;;  %v15531_v42 = vpop.f32.mrb[58].mxu1 }
 0x3f3   :  { %v15532_v10 = vpop.f32.mrb[59].mxu1 }
 0x3f4   :  { %v5314_v46 = vadd.f32 %v15530_v19, %v5217_v58  ;;  %v15533_v48 = vadd.f32 %v15532_v10, %v15531_v42 }
 0x3f6   :  { %v5317_v16 = vadd.f32 %v15533_v48, %v5220_v49  ;;  %v18977_v30 = vadd.f32 %v18866_v57, %v5314_v46  ;;  %v18997_v48 = vld [vmem:[#allocation3] sm:$0x3f] }
 0x3f8   :  { %v15534_v59 = vpop.f32.mrb[60].mxu1  ;;  %v18980_v15 = vadd.f32 %v18870_v45, %v5317_v16 }
 0x3f9   :  { %v15535_v41 = vpop.f32.mrb[61].mxu1 }
 0x3fa   :  { %v15536_v52 = vadd.f32 %v15535_v41, %v15534_v59  ;;  %v15537_v20 = vpop.f32.mrb[62].mxu1 }
 0x3fb   :  { %v15538_v33 = vpop.f32.mrb[63].mxu1 }
 0x3fc   :  { %v5322_v24 = vadd.f32 %v15536_v52, %v5225_v0  ;;  %v15539_v43 = vadd.f32 %v15538_v33, %v15537_v20  ;;  %v6525_v52 = vrot.slane %v18997_v48, 1 }
 0x3fe   :  { %v5325_v6 = vadd.f32 %v15539_v43, %v5228_v55  ;;  %v18987_v57 = vadd.f32 %v18878_v5, %v5322_v24 }
 0x400   :  { %v15620_v31 = vpop.f32.mrb[64].mxu1  ;;  %v18990_v45 = vadd.f32 %v18882_v9, %v5325_v6 }
 0x401   :  { %v15621_v2 = vpop.f32.mrb[65].mxu1 }
 0x402   :  { %v15622_v35 = vadd.f32 %v15621_v2, %v15620_v31  ;;  %v15623_v51 = vpop.f32.mrb[66].mxu1 }
 0x403   :  { %v15624_v50 = vpop.f32.mrb[67].mxu1 }
 0x404   :  { %v5460_v32 = vadd.f32 %v15622_v35, %v18885_v4  ;;  %v15625_v12 = vadd.f32 %v15624_v50, %v15623_v51 }
 0x406   :  { %v5557_v36 = vadd.f32 %v18892_v8, %v5460_v32  ;;  %v5463_v61 = vadd.f32 %v15625_v12, %v18890_v7 }
 0x408   :  { %v5619_v23 = vmax.f32 %v5557_v36, 0.0  ;;  %v5560_v58 = vadd.f32 %v18898_v63, %v5463_v61  ;;  %v15626_v5 = vpop.f32.mrb[68].mxu1 }
 0x409   :  { %v15627_v19 = vpop.f32.mrb[69].mxu1 }
 0x40a   :  { %v5651_v42 = vcombine.high %v5619_v23, %v5619_v23  ;;  %v5658_v9 = vrot.slane %v5619_v23, %v17791_v14  ;;  %v5620_v10 = vmax.f32 %v5560_v58, 0.0  ;;  %v15628_v49 = vadd.f32 %v15627_v19, %v15626_v5  ;;  %v15629_v46 = vpop.f32.mrb[70].mxu1 }
 0x40b   :  { %v15630_v16 = vpop.f32.mrb[71].mxu1 }
 0x40c   :  { %v5665_v4 = vrot.slane %v5651_v42, %v17791_v14  ;;  %v5666_v59 = vcombine.high %v5658_v9, %v5658_v9  ;;  %v14401_v8 = vrot.slane %v5658_v9, 9  ;;  %v5668_v41 = vcombine.high %v5620_v10, %v5620_v10 }
 0x40d   :  { %v5675_v7 = vrot.slane %v5620_v10, %v17791_v14  ;;  %v5468_v63 = vadd.f32 %v15628_v49, %v18903_v26  ;;  %v15631_v0 = vadd.f32 %v15630_v16, %v15629_v46 }
 0x40e   :  { %v5667_v20 = vcombine.high %v5665_v4, %v5665_v4  ;;  %v14402_v33 = vrot.slane %v5666_v59, 9  ;;  %v14403_v55 = vrot.slane %v5665_v4, 9  ;;  %v6179_v24 = vmax.f32 %v5658_v9, %v14401_v8 }
 0x40f   :  { %v5682_v43 = vrot.slane %v5668_v41, %v17791_v14  ;;  %v5683_v6 = vcombine.high %v5675_v7, %v5675_v7  ;;  %v14405_v31 = vrot.slane %v5675_v7, 9  ;;  %v5565_v2 = vadd.f32 %v18887_v37, %v5468_v63 }
 0x410   :  { %v14404_v35 = vrot.slane %v5667_v20, 9  ;;  %v6180_v51 = vmax.f32 %v5666_v59, %v14402_v33  ;;  %v6181_v50 = vmax.f32 %v5665_v4, %v14403_v55  ;;  %v5471_v32 = vadd.f32 %v15631_v0, %v18908_v13  ;;  %v15632_v12 = vpop.f32.mrb[72].mxu1 }
 0x411   :  { %v5684_v26 = vcombine.high %v5682_v43, %v5682_v43  ;;  %v14406_v36 = vrot.slane %v5683_v6, 9  ;;  %v14407_v61 = vrot.slane %v5682_v43, 9  ;;  %v6183_v23 = vmax.f32 %v5675_v7, %v14405_v31  ;;  %v15633_v58 = vpop.f32.mrb[73].mxu1 }
 0x412   :  { %v6182_v5 = vmax.f32 %v5667_v20, %v14404_v35  ;;  %v5621_v19 = vmax.f32 %v5565_v2, 0.0  ;;  %v5568_v42 = vadd.f32 %v18896_v38, %v5471_v32  ;;  %v15634_v9 = vadd.f32 %v15633_v58, %v15632_v12  ;;  %v15635_v10 = vpop.f32.mrb[74].mxu1 }
 0x413   :  { %v14408_v49 = vrot.slane %v5684_v26, 9  ;;  %v6184_v46 = vmax.f32 %v5683_v6, %v14406_v36  ;;  %v6185_v37 = vmax.f32 %v5682_v43, %v14407_v61  ;;  %v6243_v16 = vmax.f32 %v6179_v24, %v6183_v23  ;;  %v15636_v59 = vpop.f32.mrb[75].mxu1 }
 0x414   :  { %v5685_v4 = vcombine.high %v5621_v19, %v5621_v19  ;;  %v5692_v13 = vrot.slane %v5621_v19, %v17791_v14  ;;  %v5622_v8 = vmax.f32 %v5568_v42, 0.0  ;;  %v5476_v41 = vadd.f32 %v15634_v9, %v18921_v1 }
 0x415   :  { %v6186_v63 = vmax.f32 %v5684_v26, %v14408_v49  ;;  %v6244_v7 = vmax.f32 %v6180_v51, %v6184_v46  ;;  %v6245_v0 = vmax.f32 %v6181_v50, %v6185_v37  ;;  %v6339_v20 = vrot.slane %v6243_v16, %v17796_v25 }
 0x416   :  { %v5699_v38 = vrot.slane %v5685_v4, %v17791_v14  ;;  %v5700_v33 = vcombine.high %v5692_v13, %v5692_v13  ;;  %v14409_v55 = vrot.slane %v5692_v13, 9  ;;  %v5702_v31 = vcombine.high %v5622_v8, %v5622_v8 }
 0x417   :  { %v6246_v6 = vmax.f32 %v6182_v5, %v6186_v63  ;;  %v6343_v24 = vrot.slane %v6244_v7, %v17796_v25  ;;  %v6347_v43 = vrot.slane %v6245_v0, %v17796_v25  ;;  %v5709_v2 = vrot.slane %v5622_v8, %v17791_v14 }
 0x418   :  { %v5701_v35 = vcombine.high %v5699_v38, %v5699_v38  ;;  %v14410_v32 = vrot.slane %v5700_v33, 9  ;;  %v14411_v1 = vrot.slane %v5699_v38, 9  ;;  %v6187_v12 = vmax.f32 %v5692_v13, %v14409_v55  ;;  %v15638_v51 = vpop.f32.mrb[76].mxu1 }
 0x419   :  { %v6351_v50 = vrot.slane %v6246_v6, %v17796_v25  ;;  %v6464_v26 = vsel %vm4103_vm3, %v6343_v24, %v6339_v20  ;;  %v5716_v36 = vrot.slane %v5702_v31, %v17791_v14  ;;  %v5717_v61 = vcombine.high %v5709_v2, %v5709_v2  ;;  %v15639_v23 = vpop.f32.mrb[77].mxu1 }
 0x41a   :  { %v6465_v58 = vsel %vm4105_vm4, %v6347_v43, %v6464_v26  ;;  %v14412_v5 = vrot.slane %v5701_v35, 9  ;;  %v6188_v19 = vmax.f32 %v5700_v33, %v14410_v32  ;;  %v6189_v42 = vmax.f32 %v5699_v38, %v14411_v1  ;;  %v15641_v9 = vpop.f32.mrb[78].mxu1 }
 0x41b   :  { %v6466_v49 = vsel %vm4107_vm5, %v6351_v50, %v6465_v58  ;;  %v5718_v46 = vcombine.high %v5716_v36, %v5716_v36  ;;  %v14413_v37 = vrot.slane %v5709_v2, 9  ;;  %v14414_v16 = vrot.slane %v5717_v61, 9  ;;  %v15642_v4 = vpop.f32.mrb[79].mxu1 }
 0x41c   :  { %6497 = vst [vmem:[#allocation3 + $0x9] sm:$0xf] %v6466_v49  ;;  %v6190_v13 = vmax.f32 %v5701_v35, %v14412_v5  ;;  %v14415_v8 = vrot.slane %v5716_v36, 9  ;;  %v5573_v63 = vadd.f32 %v18910_v34, %v5476_v41  ;;  %v15637_v7 = vadd.f32 %v15636_v59, %v15635_v10 }
 0x41d   :  { %v14416_v0 = vrot.slane %v5718_v46, 9  ;;  %v6191_v20 = vmax.f32 %v5709_v2, %v14413_v37  ;;  %v6192_v55 = vmax.f32 %v5717_v61, %v14414_v16  ;;  %v15640_v31 = vadd.f32 %v15639_v23, %v15638_v51 }
 0x41e   :  { %v6193_v6 = vmax.f32 %v5716_v36, %v14415_v8  ;;  %v5623_v33 = vmax.f32 %v5573_v63, 0.0  ;;  %v5479_v38 = vadd.f32 %v15637_v7, %v18926_v11  ;;  %v15643_v24 = vadd.f32 %v15642_v4, %v15641_v9 }
 0x41f   :  { %v6194_v43 = vmax.f32 %v5718_v46, %v14416_v0  ;;  %v6247_v32 = vmax.f32 %v6187_v12, %v6191_v20  ;;  %v6248_v1 = vmax.f32 %v6188_v19, %v6192_v55  ;;  %v5484_v50 = vadd.f32 %v15640_v31, %v18939_v54 }
 0x420   :  { %v6249_v26 = vmax.f32 %v6189_v42, %v6193_v6  ;;  %v5719_v35 = vcombine.high %v5623_v33, %v5623_v33  ;;  %v5726_v58 = vrot.slane %v5623_v33, %v17791_v14  ;;  %v5576_v34 = vadd.f32 %v18916_v53, %v5479_v38  ;;  %v15644_v10 = vpop.f32.mrb[80].mxu1 }
 0x421   :  { %v6250_v59 = vmax.f32 %v6190_v13, %v6194_v43  ;;  %v6355_v41 = vrot.slane %v6247_v32, %v17796_v25  ;;  %v6359_v2 = vrot.slane %v6248_v1, %v17796_v25  ;;  %v5581_v11 = vadd.f32 %v18905_v29, %v5484_v50  ;;  %v15645_v51 = vpop.f32.mrb[81].mxu1 }
 0x422   :  { %v6363_v12 = vrot.slane %v6249_v26, %v17796_v25  ;;  %v5733_v36 = vrot.slane %v5719_v35, %v17791_v14  ;;  %v5734_v54 = vcombine.high %v5726_v58, %v5726_v58  ;;  %v14417_v61 = vrot.slane %v5726_v58, 9  ;;  %v15647_v23 = vpop.f32.mrb[82].mxu1 }
 0x423   :  { %v6367_v5 = vrot.slane %v6250_v59, %v17796_v25  ;;  %v6467_v53 = vsel %vm4103_vm3, %v6359_v2, %v6355_v41  ;;  %v5624_v19 = vmax.f32 %v5576_v34, 0.0  ;;  %v5625_v42 = vmax.f32 %v5581_v11, 0.0  ;;  %v15648_v9 = vpop.f32.mrb[83].mxu1 }
 0x424   :  { %v6468_v49 = vsel %vm4105_vm4, %v6363_v12, %v6467_v53  ;;  %v5735_v46 = vcombine.high %v5733_v36, %v5733_v36  ;;  %v14418_v37 = vrot.slane %v5734_v54, 9  ;;  %v14419_v29 = vrot.slane %v5733_v36, 9 }
 0x425   :  { %v6469_v16 = vsel %vm4107_vm5, %v6367_v5, %v6468_v49  ;;  %v6195_v4 = vmax.f32 %v5726_v58, %v14417_v61  ;;  %v5736_v13 = vcombine.high %v5624_v19, %v5624_v19  ;;  %v5743_v8 = vrot.slane %v5624_v19, %v17791_v14 }
 0x426   :  { %6498 = vst [vmem:[#allocation3 + $0x11] sm:$0xf] %v6469_v16  ;;  %v14420_v63 = vrot.slane %v5735_v46, 9  ;;  %v6196_v7 = vmax.f32 %v5734_v54, %v14418_v37  ;;  %v6197_v0 = vmax.f32 %v5733_v36, %v14419_v29  ;;  %v5753_v20 = vcombine.high %v5625_v42, %v5625_v42 }
 0x427   :  { %v5750_v55 = vrot.slane %v5736_v13, %v17791_v14  ;;  %v5751_v31 = vcombine.high %v5743_v8, %v5743_v8  ;;  %v14421_v6 = vrot.slane %v5743_v8, 9  ;;  %v5760_v33 = vrot.slane %v5625_v42, %v17791_v14 }
 0x428   :  { %v6198_v38 = vmax.f32 %v5735_v46, %v14420_v63  ;;  %v5767_v43 = vrot.slane %v5753_v20, %v17791_v14  ;;  %v5487_v32 = vadd.f32 %v15643_v24, %v18944_v27  ;;  %v15646_v1 = vadd.f32 %v15645_v51, %v15644_v10  ;;  %v15650_v50 = vpop.f32.mrb[84].mxu1 }
 0x429   :  { %v5752_v26 = vcombine.high %v5750_v55, %v5750_v55  ;;  %v14422_v35 = vrot.slane %v5751_v31, 9  ;;  %v14423_v58 = vrot.slane %v5750_v55, 9  ;;  %v6199_v34 = vmax.f32 %v5743_v8, %v14421_v6  ;;  %v15651_v59 = vpop.f32.mrb[85].mxu1  ;;  %v19049_v8 = vld [vmem:[#allocation3 + $0x8] sm:$0x3f] }
 0x42a   :  { %v5768_v41 = vcombine.high %v5760_v33, %v5760_v33  ;;  %v5769_v2 = vcombine.high %v5767_v43, %v5767_v43  ;;  %v14425_v11 = vrot.slane %v5760_v33, 9  ;;  %v14427_v12 = vrot.slane %v5767_v43, 9  ;;  %v15653_v36 = vpop.f32.mrb[86].mxu1 }
 0x42b   :  { %v14424_v54 = vrot.slane %v5752_v26, 9  ;;  %v6200_v61 = vmax.f32 %v5751_v31, %v14422_v35  ;;  %v6201_v5 = vmax.f32 %v5750_v55, %v14423_v58  ;;  %v6251_v53 = vmax.f32 %v6195_v4, %v6199_v34  ;;  %v15654_v19 = vpop.f32.mrb[87].mxu1 }
 0x42c   :  { %v14426_v42 = vrot.slane %v5768_v41, 9  ;;  %v14428_v49 = vrot.slane %v5769_v2, 9  ;;  %v19038_v27 = vmax.f32 %v5760_v33, %v14425_v11  ;;  %v19040_v24 = vmax.f32 %v5767_v43, %v14427_v12 }
 0x42d   :  { %v6202_v10 = vmax.f32 %v5752_v26, %v14424_v54  ;;  %v6252_v51 = vmax.f32 %v6196_v7, %v6200_v61  ;;  %v6253_v46 = vmax.f32 %v6197_v0, %v6201_v5  ;;  %v6371_v37 = vrot.slane %v6251_v53, %v17796_v25 }
 0x42e   :  { %v19043_v29 = vmax.f32 %v5768_v41, %v14426_v42  ;;  %v19045_v16 = vmax.f32 %v5769_v2, %v14428_v49  ;;  %v5584_v13 = vadd.f32 %v18914_v44, %v5487_v32  ;;  %v5492_v4 = vadd.f32 %v15646_v1, %v18957_v17 }
 0x42f   :  { %v6254_v63 = vmax.f32 %v6198_v38, %v6202_v10  ;;  %v6375_v20 = vrot.slane %v6252_v51, %v17796_v25  ;;  %v6379_v55 = vrot.slane %v6253_v46, %v17796_v25  ;;  %v15649_v31 = vadd.f32 %v15648_v9, %v15647_v23 }
 0x430   :  { %v5626_v7 = vmax.f32 %v5584_v13, 0.0  ;;  %v5589_v0 = vadd.f32 %v18928_v28, %v5492_v4  ;;  %v15652_v6 = vadd.f32 %v15651_v59, %v15650_v50  ;;  %v15655_v33 = vadd.f32 %v15654_v19, %v15653_v36  ;;  %v19054_v43 = vpop.f32.mrb[88].mxu1 }
 0x431   :  { %v6383_v26 = vrot.slane %v6254_v63, %v17796_v25  ;;  %v6470_v44 = vsel %vm4103_vm3, %v6375_v20, %v6371_v37  ;;  %v5495_v17 = vadd.f32 %v15649_v31, %v18960_v22  ;;  %v19059_v32 = vpop.f32.mrb[89].mxu1  ;;  %v6526_v38 = vrot.slane %v19049_v8, 1 }
 0x432   :  { %v6471_v1 = vsel %vm4105_vm4, %v6379_v55, %v6470_v44  ;;  %v5770_v23 = vcombine.high %v5626_v7, %v5626_v7  ;;  %v5777_v9 = vrot.slane %v5626_v7, %v17791_v14  ;;  %v5627_v28 = vmax.f32 %v5589_v0, 0.0  ;;  %v19064_v50 = vpop.f32.mrb[90].mxu1 }
 0x433   :  { %v6472_v35 = vsel %vm4107_vm5, %v6383_v26, %v6471_v1  ;;  %v5592_v58 = vadd.f32 %v18934_v47, %v5495_v17  ;;  %v5500_v34 = vadd.f32 %v15652_v6, %v18967_v18  ;;  %v5503_v22 = vadd.f32 %v15655_v33, %v18970_v21  ;;  %v19070_v59 = vpop.f32.mrb[91].mxu1 }
 0x434   :  { %6499 = vst [vmem:[#allocation3 + $0x19] sm:$0xf] %v6472_v35  ;;  %v5784_v41 = vrot.slane %v5770_v23, %v17791_v14  ;;  %v5785_v2 = vcombine.high %v5777_v9, %v5777_v9  ;;  %v14429_v11 = vrot.slane %v5777_v9, 9  ;;  %v5787_v12 = vcombine.high %v5627_v28, %v5627_v28 }
 0x435   :  { %v5794_v36 = vrot.slane %v5627_v28, %v17791_v14  ;;  %v5628_v54 = vmax.f32 %v5592_v58, 0.0  ;;  %v5597_v61 = vadd.f32 %v18923_v3, %v5500_v34  ;;  %v5600_v5 = vadd.f32 %v18932_v40, %v5503_v22 }
 0x436   :  { %v5786_v47 = vcombine.high %v5784_v41, %v5784_v41  ;;  %v14430_v53 = vrot.slane %v5785_v2, 9  ;;  %v14431_v18 = vrot.slane %v5784_v41, 9  ;;  %v6207_v19 = vmax.f32 %v5777_v9, %v14429_v11 }
 0x437   :  { %v5801_v21 = vrot.slane %v5787_v12, %v17791_v14  ;;  %v5802_v42 = vcombine.high %v5794_v36, %v5794_v36  ;;  %v14433_v49 = vrot.slane %v5794_v36, 9  ;;  %v5804_v10 = vcombine.high %v5628_v54, %v5628_v54 }
 0x438   :  { %v14432_v51 = vrot.slane %v5786_v47, 9  ;;  %v6208_v46 = vmax.f32 %v5785_v2, %v14430_v53  ;;  %v6209_v37 = vmax.f32 %v5784_v41, %v14431_v18  ;;  %v6255_v13 = vmax.f32 %v19038_v27, %v6207_v19  ;;  %v19078_v4 = vpop.f32.mrb[92].mxu1 }
 0x439   :  { %v5803_v63 = vcombine.high %v5801_v21, %v5801_v21  ;;  %v14434_v3 = vrot.slane %v5802_v42, 9  ;;  %v14435_v20 = vrot.slane %v5801_v21, 9  ;;  %v6211_v40 = vmax.f32 %v5794_v36, %v14433_v49  ;;  %v19080_v55 = vpop.f32.mrb[93].mxu1 }
 0x43a   :  { %v6210_v31 = vmax.f32 %v5786_v47, %v14432_v51  ;;  %v6256_v7 = vmax.f32 %v19043_v29, %v6208_v46  ;;  %v6257_v0 = vmax.f32 %v19040_v24, %v6209_v37  ;;  %v6387_v6 = vrot.slane %v6255_v13, %v17796_v25  ;;  %v19085_v33 = vpop.f32.mrb[94].mxu1 }
 0x43b   :  { %v14436_v26 = vrot.slane %v5803_v63, 9  ;;  %v6212_v44 = vmax.f32 %v5802_v42, %v14434_v3  ;;  %v6213_v27 = vmax.f32 %v5801_v21, %v14435_v20  ;;  %v5811_v17 = vrot.slane %v5628_v54, %v17791_v14  ;;  %v19088_v1 = vpop.f32.mrb[95].mxu1 }
 0x43c   :  { %v6258_v23 = vmax.f32 %v19045_v16, %v6210_v31  ;;  %v6391_v9 = vrot.slane %v6256_v7, %v17796_v25  ;;  %v6395_v28 = vrot.slane %v6257_v0, %v17796_v25  ;;  %v5818_v29 = vrot.slane %v5804_v10, %v17791_v14 }
 0x43d   :  { %v6214_v24 = vmax.f32 %v5803_v63, %v14436_v26  ;;  %v5819_v35 = vcombine.high %v5811_v17, %v5811_v17  ;;  %v14437_v58 = vrot.slane %v5811_v17, 9  ;;  %v5629_v34 = vmax.f32 %v5597_v61, 0.0 }
 0x43e   :  { %v6399_v22 = vrot.slane %v6258_v23, %v17796_v25  ;;  %v6473_v41 = vsel %vm4103_vm3, %v6391_v9, %v6387_v6  ;;  %v5820_v2 = vcombine.high %v5818_v29, %v5818_v29  ;;  %v14439_v11 = vrot.slane %v5818_v29, 9 }
 0x43f   :  { %v6474_v12 = vsel %vm4105_vm4, %v6395_v28, %v6473_v41  ;;  %v14438_v36 = vrot.slane %v5819_v35, 9  ;;  %v6215_v16 = vmax.f32 %v5811_v17, %v14437_v58  ;;  %v5821_v54 = vcombine.high %v5629_v34, %v5629_v34 }
 0x440   :  { %v6475_v47 = vsel %vm4107_vm5, %v6399_v22, %v6474_v12  ;;  %v14440_v53 = vrot.slane %v5820_v2, 9  ;;  %v6217_v18 = vmax.f32 %v5818_v29, %v14439_v11  ;;  %v5828_v19 = vrot.slane %v5629_v34, %v17791_v14 }
 0x441   :  { %6500 = vst [vmem:[#allocation3 + $0x21] sm:$0xf] %v6475_v47  ;;  %v6216_v21 = vmax.f32 %v5819_v35, %v14438_v36  ;;  %v6259_v61 = vmax.f32 %v6211_v40, %v6215_v16  ;;  %v5835_v42 = vrot.slane %v5821_v54, %v17791_v14  ;;  %v5630_v49 = vmax.f32 %v5600_v5, 0.0 }
 0x442   :  { %v6218_v10 = vmax.f32 %v5820_v2, %v14440_v53  ;;  %v6261_v51 = vmax.f32 %v6213_v27, %v6217_v18  ;;  %v5836_v46 = vcombine.high %v5828_v19, %v5828_v19  ;;  %v14441_v37 = vrot.slane %v5828_v19, 9  ;;  %v19113_v2 = vld [vmem:[#allocation3 + $0x10] sm:$0x3f] }
 0x443   :  { %v6260_v13 = vmax.f32 %v6212_v44, %v6216_v21  ;;  %v6403_v63 = vrot.slane %v6259_v61, %v17796_v25  ;;  %v5837_v3 = vcombine.high %v5835_v42, %v5835_v42  ;;  %v14443_v20 = vrot.slane %v5835_v42, 9 }
 0x444   :  { %v6262_v31 = vmax.f32 %v6214_v24, %v6218_v10  ;;  %v6411_v7 = vrot.slane %v6261_v51, %v17796_v25  ;;  %v14442_v0 = vrot.slane %v5836_v46, 9  ;;  %v6219_v6 = vmax.f32 %v5828_v19, %v14441_v37 }
 0x445   :  { %v6407_v26 = vrot.slane %v6260_v13, %v17796_v25  ;;  %v14444_v40 = vrot.slane %v5837_v3, 9  ;;  %v6221_v17 = vmax.f32 %v5835_v42, %v14443_v20  ;;  %v5838_v23 = vcombine.high %v5630_v49, %v5630_v49 }
 0x446   :  { %v6415_v5 = vrot.slane %v6262_v31, %v17796_v25  ;;  %v6220_v27 = vmax.f32 %v5836_v46, %v14442_v0  ;;  %v5845_v9 = vrot.slane %v5630_v49, %v17791_v14  ;;  %v15658_v44 = vadd.f32 %v19059_v32, %v19054_v43 }
 0x447   :  { %v6476_v28 = vsel %vm4103_vm3, %v6407_v26, %v6403_v63  ;;  %v6222_v29 = vmax.f32 %v5837_v3, %v14444_v40  ;;  %v5852_v24 = vrot.slane %v5838_v23, %v17791_v14  ;;  %v15661_v35 = vadd.f32 %v19070_v59, %v19064_v50  ;;  %v19120_v59 = vld [vmem:[#allocation3 + $0x18] sm:$0x3f] }
 0x448   :  { %v6477_v58 = vsel %vm4105_vm4, %v6411_v7, %v6476_v28  ;;  %v5853_v34 = vcombine.high %v5845_v9, %v5845_v9  ;;  %v14445_v22 = vrot.slane %v5845_v9, 9  ;;  %v5508_v41 = vadd.f32 %v15658_v44, %v18977_v30 }
 0x449   :  { %v6478_v11 = vsel %vm4107_vm5, %v6415_v5, %v6477_v58  ;;  %v5854_v12 = vcombine.high %v5852_v24, %v5852_v24  ;;  %v14447_v43 = vrot.slane %v5852_v24, 9  ;;  %v5511_v32 = vadd.f32 %v15661_v35, %v18980_v15 }
 0x44a   :  { %6501 = vst [vmem:[#allocation3 + $0x39] sm:$0xf] %v6478_v11  ;;  %v14446_v36 = vrot.slane %v5853_v34, 9  ;;  %v6223_v16 = vmax.f32 %v5845_v9, %v14445_v22  ;;  %v5605_v54 = vadd.f32 %v18946_v60, %v5508_v41  ;;  %v15664_v50 = vadd.f32 %v19080_v55, %v19078_v4 }
 0x44b   :  { %v14448_v47 = vrot.slane %v5854_v12, 9  ;;  %v6225_v30 = vmax.f32 %v5852_v24, %v14447_v43  ;;  %v5608_v53 = vadd.f32 %v18952_v62, %v5511_v32  ;;  %v6527_v18 = vrot.slane %v19113_v2, 1 }
 0x44c   :  { %v6224_v19 = vmax.f32 %v5853_v34, %v14446_v36  ;;  %v6263_v21 = vmax.f32 %v6219_v6, %v6223_v16  ;;  %v5631_v61 = vmax.f32 %v5605_v54, 0.0  ;;  %v5516_v15 = vadd.f32 %v15664_v50, %v18987_v57 }
 0x44d   :  { %v6226_v42 = vmax.f32 %v5854_v12, %v14448_v47  ;;  %v6265_v49 = vmax.f32 %v6221_v17, %v6225_v30  ;;  %v5632_v10 = vmax.f32 %v5608_v53, 0.0  ;;  %v6528_v60 = vrot.slane %v19120_v59, 1 }
 0x44e   :  { %v6264_v51 = vmax.f32 %v6220_v27, %v6224_v19  ;;  %v6419_v4 = vrot.slane %v6263_v21, %v17796_v25  ;;  %v5855_v55 = vcombine.high %v5631_v61, %v5631_v61  ;;  %v5862_v46 = vrot.slane %v5631_v61, %v17791_v14 }
 0x44f   :  { %v6266_v37 = vmax.f32 %v6222_v29, %v6226_v42  ;;  %v6427_v62 = vrot.slane %v6265_v49, %v17796_v25  ;;  %v5872_v13 = vcombine.high %v5632_v10, %v5632_v10  ;;  %v5879_v63 = vrot.slane %v5632_v10, %v17791_v14  ;;  %v19136_v29 = vld [vmem:[#allocation3 + $0x20] sm:$0x3f] }
 0x450   :  { %v6423_v3 = vrot.slane %v6264_v51, %v17796_v25  ;;  %v5869_v57 = vrot.slane %v5855_v55, %v17791_v14  ;;  %v5870_v20 = vcombine.high %v5862_v46, %v5862_v46  ;;  %v14449_v31 = vrot.slane %v5862_v46, 9 }
 0x451   :  { %v6431_v7 = vrot.slane %v6266_v37, %v17796_v25  ;;  %v5886_v0 = vrot.slane %v5872_v13, %v17791_v14  ;;  %v5887_v6 = vcombine.high %v5879_v63, %v5879_v63  ;;  %v14453_v26 = vrot.slane %v5879_v63, 9  ;;  %v16106_v37 = vld [vmem:[#allocation13 + $0x100] ss:$8 sps:$4 sm:$0xff]  }
 0x452   :  { %v6479_v40 = vsel %vm4103_vm3, %v6423_v3, %v6419_v4  ;;  %v5871_v17 = vcombine.high %v5869_v57, %v5869_v57  ;;  %v14450_v23 = vrot.slane %v5870_v20, 9  ;;  %v14451_v5 = vrot.slane %v5869_v57, 9  ;;  %v19170_v13 = vld [vmem:[#allocation3 + $0x30] sm:$0x3f] }
 0x453   :  { %v6480_v27 = vsel %vm4105_vm4, %v6427_v62, %v6479_v40  ;;  %v6227_v9 = vmax.f32 %v5862_v46, %v14449_v31  ;;  %v5888_v44 = vcombine.high %v5886_v0, %v5886_v0  ;;  %v14454_v28 = vrot.slane %v5887_v6, 9 }
 0x454   :  { %v6481_v24 = vsel %vm4107_vm5, %v6431_v7, %v6480_v27  ;;  %v14452_v35 = vrot.slane %v5871_v17, 9  ;;  %v6228_v58 = vmax.f32 %v5870_v20, %v14450_v23  ;;  %v6229_v34 = vmax.f32 %v5869_v57, %v14451_v5  ;;  %v16112_v20 = vld [vmem:[#allocation13 + $0x114] ss:$8 sps:$4 sm:$0xff]   ;;  %v16115_v27 = vld [vmem:[#allocation13 + $0x124] ss:$8 sps:$4 sm:$0xff]  }
 0x455   :  { %6502 = vst [vmem:[#allocation3 + $0x41] sm:$0xf] %v6481_v24  ;;  %v14455_v22 = vrot.slane %v5886_v0, 9  ;;  %v14456_v41 = vrot.slane %v5888_v44, 9  ;;  %v6231_v11 = vmax.f32 %v5879_v63, %v14453_v26  ;;  %v6232_v12 = vmax.f32 %v5887_v6, %v14454_v28 }
 0x456   :  { %v6230_v43 = vmax.f32 %v5871_v17, %v14452_v35  ;;  %v5613_v32 = vadd.f32 %v18941_v39, %v5516_v15  ;;  %v6543_v36 = vrot.slane %v19136_v29, 1  ;;  %v14465_v16 = vcombine.low %v18997_v48, %v19049_v8  ;;  %v16110_v17 = vld [vmem:[#allocation13 + $0x110] ss:$8 sps:$4 sm:$0xff]  }
 0x457   :  { %v6233_v54 = vmax.f32 %v5886_v0, %v14455_v22  ;;  %v6234_v50 = vmax.f32 %v5888_v44, %v14456_v41  ;;  %v6267_v47 = vmax.f32 %v6227_v9, %v6231_v11  ;;  %v6268_v30 = vmax.f32 %v6228_v58, %v6232_v12  ;;  %v16113_v41 = vld [vmem:[#allocation13 + $0x120] ss:$8 sps:$4 sm:$0xff]  }
 0x458   :  { %v5633_v53 = vmax.f32 %v5613_v32, 0.0  ;;  %v14466_v19 = vcombine.low %v6525_v52, %v6526_v38  ;;  %v19149_v21 = vcombine.low %v6526_v38, %v6527_v18  ;;  %v19151_v39 = vcombine.low %v6527_v18, %v6528_v60 }
 0x459   :  { %v6269_v61 = vmax.f32 %v6229_v34, %v6233_v54  ;;  %v6270_v15 = vmax.f32 %v6230_v43, %v6234_v50  ;;  %v6435_v42 = vrot.slane %v6267_v47, %v17796_v25  ;;  %v6439_v49 = vrot.slane %v6268_v30, %v17796_v25  ;;  %v16118_v47 = vld [vmem:[#allocation13 + $0x134] ss:$8 sps:$4 sm:$0xff]  }
 0x45a   :  { %v5889_v10 = vcombine.high %v5633_v53, %v5633_v53  ;;  %v5896_v51 = vrot.slane %v5633_v53, %v17791_v14  ;;  %v19158_v4 = vcombine.low %v6528_v60, %v6543_v36  ;;  %v6646_v52 = vpack.c.bf16 %v19151_v39, %v14466_v19  ;;  %v19172_v60 = vld [vmem:[#allocation3 + $0x38] sm:$0x3f] }
 0x45b   :  { %v6443_v38 = vrot.slane %v6269_v61, %v17796_v25  ;;  %v6447_v18 = vrot.slane %v6270_v15, %v17796_v25  ;;  %v6482_v55 = vsel %vm4103_vm3, %v6439_v49, %v6435_v42  ;;  %v19166_v46 = vcombine.low %v19113_v2, %v19120_v59 }
 0x45c   :  { %7571 = vmatprep.mubr.bf16.mxu1 %v6646_v52  ;;  %v15667_v62 = vadd.f32 %v19088_v1, %v19085_v33  ;;  %v5903_v3 = vrot.slane %v5889_v10, %v17791_v14  ;;  %v5904_v7 = vcombine.high %v5896_v51, %v5896_v51  ;;  %v14457_v0 = vrot.slane %v5896_v51, 9  ;;  %v19179_v33 = vld [vmem:[#allocation3 + $0x40] sm:$0x3f] }
 0x45d   :  { %v6483_v63 = vsel %vm4105_vm4, %v6443_v38, %v6482_v55  ;;  %v6645_v57 = vpack.c.bf16 %v19166_v46, %v14465_v16  ;;  %v6529_v1 = vrot.slane %v19170_v13, 1  ;;  %v6530_v26 = vrot.slane %v19172_v60, 1  ;;  %v16116_v55 = vld [vmem:[#allocation13 + $0x130] ss:$8 sps:$4 sm:$0xff]  }
 0x45e   :  { %v6484_v31 = vsel %vm4107_vm5, %v6447_v18, %v6483_v63  ;;  %v5519_v6 = vadd.f32 %v15667_v62, %v18990_v45  ;;  %v6533_v40 = vrot.slane %v18997_v48, 2  ;;  %v5905_v23 = vcombine.high %v5903_v3, %v5903_v3  ;;  %v19187_v45 = vld [vmem:[#allocation3 + $0x28] sm:$0x3f] }
 0x45f   :  { %6503 = vst [vmem:[#allocation3 + $0x49] sm:$0xf] %v6484_v31  ;;  %7572 = vmatmul.mubr.bf16.vlgmr.msra.gmra.mrb[96].mxu1 %v6645_v57  ;;  %v6534_v9 = vrot.slane %v19049_v8, 2  ;;  %v6535_v44 = vrot.slane %v19113_v2, 2  ;;  %v14458_v28 = vrot.slane %v5904_v7, 9  ;;  %v14459_v24 = vrot.slane %v5903_v3, 9 }
 0x460   :  { %7593 = vmatpush1.bf16.msra.mxu1 %v16106_v37  ;;  %v5616_v5 = vadd.f32 %v18950_v56, %v5519_v6  ;;  %v6531_v35 = vrot.slane %v19179_v33, 1  ;;  %v6536_v58 = vrot.slane %v19120_v59, 2  ;;  %v19191_v48 = vmax.f32 %v5896_v51, %v14457_v0  ;;  %v16121_v0 = vld [vmem:[#allocation13 + $0x144] ss:$8 sps:$4 sm:$0xff]  }
 0x461   :  { %7594 = vmatprep.subr.bf16.mxu1 %v16112_v20  ;;  %v14480_v22 = vcombine.low %v6529_v1, %v6530_v26  ;;  %v14479_v56 = vcombine.low %v19170_v13, %v19172_v60  ;;  %v19195_v11 = vcombine.low %v6533_v40, %v6534_v9  ;;  %v6545_v43 = vrot.slane %v19136_v29, 2 }
 0x462   :  { %v5634_v34 = vmax.f32 %v5616_v5, 0.0  ;;  %v19197_v12 = vcombine.low %v6535_v44, %v6536_v58  ;;  %v6551_v32 = vrot.slane %v19187_v45, 2  ;;  %v14460_v16 = vrot.slane %v5905_v23, 9 }
 0x463   :  { %v19202_v30 = vcombine.low %v6534_v9, %v6535_v44  ;;  %v19208_v61 = vcombine.low %v6536_v58, %v6545_v43  ;;  %v6649_v42 = vpack.c.bf16 %v19158_v4, %v19149_v21  ;;  %v6236_v38 = vmax.f32 %v5904_v7, %v14458_v28  ;;  %v16119_v44 = vld [vmem:[#allocation13 + $0x140] ss:$8 sps:$4 sm:$0xff]   ;;  %v16218_v21 = vld [vmem:[#allocation13 + $0x330] ss:$8 sps:$4 sm:$0xff]   ;;  %v16223_v4 = vld [vmem:[#allocation13 + $0x344] ss:$8 sps:$4 sm:$0xff]  }
 0x464   :  { %7595 = vmatpush1.bf16.msra.mxu1 %v16110_v17  ;;  %v5906_v54 = vcombine.high %v5634_v34, %v5634_v34  ;;  %v5913_v50 = vrot.slane %v5634_v34, %v17791_v14  ;;  %v6647_v19 = vpack.c.bf16 %v19197_v12, %v19195_v11  ;;  %v19210_v15 = vcombine.low %v6545_v43, %v6551_v32  ;;  %v16175_v11 = vld [vmem:[#allocation13 + $0x244] ss:$8 sps:$4 sm:$0xff]  }
 0x465   :  { %7596 = vmatprep.subr.bf16.mxu1 %v16115_v27  ;;  %v6237_v18 = vmax.f32 %v5903_v3, %v14459_v24  ;;  %v6650_v62 = vpack.c.bf16 %v19208_v61, %v19202_v30  ;;  %v14468_v3 = vcombine.low %v19049_v8, %v19113_v2  ;;  %v14474_v7 = vcombine.low %v19120_v59, %v19136_v29  ;;  %v16187_v30 = vld [vmem:[#allocation13 + $0x284] ss:$8 sps:$4 sm:$0xff]   ;;  %v16185_v61 = vld [vmem:[#allocation13 + $0x280] ss:$8 sps:$4 sm:$0xff]  }
 0x466   :  { %v19204_v53 = vld [vmem:[#allocation3 + $0x48] sm:$0x3f]  ;;  %v5920_v49 = vrot.slane %v5906_v54, %v17791_v14  ;;  %v5921_v10 = vcombine.high %v5913_v50, %v5913_v50  ;;  %v14461_v51 = vrot.slane %v5913_v50, 9  ;;  %v19230_v1 = vcombine.low %v6530_v26, %v6531_v35 }
 0x467   :  { %v6532_v52 = vrot.slane %v19204_v53, 1  ;;  %v19218_v37 = vcombine.low %v19179_v33, %v19204_v53  ;;  %v6238_v9 = vmax.f32 %v5905_v23, %v14460_v16  ;;  %v6549_v24 = vrot.slane %v19187_v45, 1  ;;  %v16124_v26 = vld [vmem:[#allocation13 + $0x154] ss:$8 sps:$4 sm:$0xff]   ;;  %v16127_v16 = vld [vmem:[#allocation13 + $0x164] ss:$8 sps:$4 sm:$0xff]  }
 0x468   :  { %7597 = vmatpush1.bf16.msra.mxu1 %v16113_v41  ;;  %v5922_v63 = vcombine.high %v5920_v49, %v5920_v49  ;;  %v14462_v57 = vrot.slane %v5921_v10, 9  ;;  %v14463_v20 = vrot.slane %v5920_v49, 9  ;;  %v6239_v31 = vmax.f32 %v5913_v50, %v14461_v51  ;;  %v16128_v51 = vld [vmem:[#allocation13 + $0x170] ss:$8 sps:$4 sm:$0xff]  }
 0x469   :  { %7598 = vmatprep.subr.bf16.mxu1 %v16118_v47  ;;  %v19224_v6 = vcombine.low %v6531_v35, %v6532_v52  ;;  %v14477_v8 = vcombine.low %v19136_v29, %v19187_v45  ;;  %v6654_v35 = vpack.c.bf16 %v19218_v37, %v14479_v56  ;;  %v6648_v34 = vpack.c.bf16 %v14474_v7, %v14468_v3  ;;  %v16122_v56 = vld [vmem:[#allocation13 + $0x150] ss:$8 sps:$4 sm:$0xff]   ;;  %v16125_v47 = vld [vmem:[#allocation13 + $0x160] ss:$8 sps:$4 sm:$0xff]   ;;  %v16140_v7 = vld [vmem:[#allocation13 + $0x194] ss:$8 sps:$4 sm:$0xff]  }
 0x46a   :  { %v14464_v40 = vrot.slane %v5922_v63, 9  ;;  %v6240_v17 = vmax.f32 %v5921_v10, %v14462_v57  ;;  %v6241_v5 = vmax.f32 %v5920_v49, %v14463_v20  ;;  %v6271_v27 = vmax.f32 %v19191_v48, %v6239_v31  ;;  %v16130_v49 = vld [vmem:[#allocation13 + $0x174] ss:$8 sps:$4 sm:$0xff]   ;;  %v6516_v10 = vld [vmem:[#allocation3 + $0x58] sm:$0x3f] }
 0x46b   :  { %v6655_v28 = vpack.c.bf16 %v19224_v6, %v14480_v22  ;;  %v19240_v23 = vcombine.low %v6543_v36, %v6549_v24  ;;  %v19243_v48 = vpack.c.bf16 %v14477_v8, %v19166_v46  ;;  %v6653_v22 = vpack.c.bf16 %v19210_v15, %v19197_v12  ;;  %v16131_v20 = vld [vmem:[#allocation13 + $0x180] ss:$8 sps:$4 sm:$0xff]   ;;  %v16143_v8 = vld [vmem:[#allocation13 + $0x1a4] ss:$8 sps:$4 sm:$0xff]   ;;  %v16297_v15 = vld [vmem:[%s20595_s7 + $0x44] ss:$8 sps:$4 sm:$0xff]  }
 0x46c   :  { %7599 = vmatpush1.bf16.msra.mxu1 %v16116_v55  ;;  %v6242_v2 = vmax.f32 %v5922_v63, %v14464_v40  ;;  %v6272_v58 = vmax.f32 %v6236_v38, %v6240_v17  ;;  %v6273_v59 = vmax.f32 %v6237_v18, %v6241_v5  ;;  %v6451_v41 = vrot.slane %v6271_v27, %v17796_v25  ;;  %v16133_v38 = vld [vmem:[#allocation13 + $0x184] ss:$8 sps:$4 sm:$0xff]  }
 0x46d   :  { %7600 = vmatprep.subr.bf16.mxu1 %v16121_v0  ;;  %7581 = vmatprep.mubr.bf16.mxu1 %v6655_v28  ;;  %v6652_v29 = vpack.c.bf16 %v19240_v23, %v19151_v39  ;;  %v6550_v18 = vrot.slane %v6516_v10, 1  ;;  %v6540_v63 = vrot.slane %v19204_v53, 2  ;;  %v6552_v57 = vrot.slane %v6516_v10, 2  ;;  %v16138_v28 = vld [vmem:[#allocation13 + $0x190] ss:$8 sps:$4 sm:$0xff]  }
 0x46e   :  { %v6274_v45 = vmax.f32 %v6238_v9, %v6242_v2  ;;  %v6455_v43 = vrot.slane %v6272_v58, %v17796_v25  ;;  %v6459_v32 = vrot.slane %v6273_v59, %v17796_v25  ;;  %7582 = vmatmul.mubr.bf16.gmra.mrb[100].mxu1 %v6654_v35  ;;  %v6539_v40 = vrot.slane %v19179_v33, 2  ;;  %v16146_v58 = vld [vmem:[#allocation13 + $0x1b4] ss:$8 sps:$4 sm:$0xff]   ;;  %v16144_v59 = vld [vmem:[#allocation13 + $0x1b0] ss:$8 sps:$4 sm:$0xff]  }
 0x46f   :  { %7624 = vmatprep.mubr.bf16.mxu1 %v6648_v34  ;;  %v16147_v35 = vld [vmem:[#allocation13 + $0x1c0] ss:$8 sps:$4 sm:$0xff]   ;;  %v16152_v34 = vld [vmem:[#allocation13 + $0x1d4] ss:$8 sps:$4 sm:$0xff]   ;;  %v16235_v39 = vld [vmem:[#allocation13 + $0x384] ss:$8 sps:$4 sm:$0xff]  }
 0x470   :  { %7601 = vmatpush1.bf16.msra.mxu1 %v16119_v44  ;;  %v6463_v36 = vrot.slane %v6274_v45, %v17796_v25  ;;  %v6485_v46 = vsel %vm4103_vm3, %v6455_v43, %v6451_v41  ;;  %v19273_v27 = vcombine.low %v6539_v40, %v6540_v63  ;;  %v16150_v45 = vld [vmem:[#allocation13 + $0x1d0] ss:$8 sps:$4 sm:$0xff]   ;;  %v16155_v41 = vld [vmem:[#allocation13 + $0x1e4] ss:$8 sps:$4 sm:$0xff]   ;;  %v16153_v43 = vld [vmem:[#allocation13 + $0x1e0] ss:$8 sps:$4 sm:$0xff]  }
 0x471   :  { %7602 = vmatprep.subr.bf16.mxu1 %v16124_v26  ;;  %v6486_v54 = vsel %vm4105_vm4, %v6459_v32, %v6485_v46  ;;  %v16149_v26 = vld [vmem:[#allocation13 + $0x1c4] ss:$8 sps:$4 sm:$0xff]   ;;  %v16158_v32 = vld [vmem:[#allocation13 + $0x1f4] ss:$8 sps:$4 sm:$0xff]   ;;  %v16233_v23 = vld [vmem:[#allocation13 + $0x380] ss:$8 sps:$4 sm:$0xff]  }
 0x472   :  { %v6487_v50 = vsel %vm4107_vm5, %v6463_v36, %v6486_v54  ;;  %v16161_v36 = vld [vmem:[#allocation13 + $0x204] ss:$8 sps:$4 sm:$0xff]   ;;  %v14482_v54 = vcombine.low %v19172_v60, %v19179_v33  ;;  %v16226_v33 = vld [vmem:[#allocation13 + $0x354] ss:$8 sps:$4 sm:$0xff]  }
 0x473   :  { %6504 = vst [vmem:[#allocation3 + $0x51] sm:$0xf] %v6487_v50  ;;  %v16166_v50 = vld [vmem:[#allocation13 + $0x214] ss:$8 sps:$4 sm:$0xff]  }
 0x474   :  { %7603 = vmatpush1.bf16.msra.mxu1 %v16122_v56  ;;  %v16156_v56 = vld [vmem:[#allocation13 + $0x1f0] ss:$8 sps:$4 sm:$0xff]   ;;  %v16295_v12 = vld [vmem:[%s20595_s7 + $0x40] ss:$8 sps:$4 sm:$0xff]  }
 0x475   :  { %7604 = vmatprep.subr.bf16.mxu1 %v16127_v16  ;;  %v16159_v16 = vld [vmem:[#allocation13 + $0x200] ss:$8 sps:$4 sm:$0xff]  }
 0x478   :  { %7605 = vmatpush1.bf16.msra.mxu1 %v16125_v47 }
 0x479   :  { %7606 = vmatprep.subr.bf16.mxu1 %v16130_v49  ;;  %v6537_v49 = vrot.slane %v19170_v13, 2  ;;  %v16170_v13 = vld [vmem:[#allocation13 + $0x230] ss:$8 sps:$4 sm:$0xff]  }
 0x47a   :  { %v19256_v55 = vld [vmem:[#allocation3 + $0x50] sm:$0x3f] }
 0x47b   :  { %v6546_v31 = vrot.slane %v19256_v55, 2  ;;  %v6544_v0 = vrot.slane %v19256_v55, 1  ;;  %v14491_v3 = vcombine.low %v19256_v55, %v6516_v10  ;;  %v14488_v46 = vcombine.low %v19204_v53, %v19256_v55  ;;  %v16212_v55 = vld [vmem:[#allocation13 + $0x310] ss:$8 sps:$4 sm:$0xff]   ;;  %v16217_v53 = vld [vmem:[#allocation13 + $0x324] ss:$8 sps:$4 sm:$0xff]  }
 0x47c   :  { %7607 = vmatpush1.bf16.msra.mxu1 %v16128_v51  ;;  %v6538_v10 = vrot.slane %v19172_v60, 2  ;;  %v16164_v51 = vld [vmem:[#allocation13 + $0x210] ss:$8 sps:$4 sm:$0xff]   ;;  %v16221_v60 = vld [vmem:[#allocation13 + $0x340] ss:$8 sps:$4 sm:$0xff]  }
 0x47d   :  { %7608 = vmatprep.subr.bf16.mxu1 %v16133_v38  ;;  %v19265_v17 = vcombine.low %v6532_v52, %v6544_v0  ;;  %v19267_v5 = vcombine.low %v6544_v0, %v6550_v18  ;;  %v19276_v9 = vpack.c.bf16 %v14491_v3, %v19218_v37  ;;  %v19280_v44 = vcombine.low %v6546_v31, %v6552_v57  ;;  %v16141_v37 = vld [vmem:[#allocation13 + $0x1a0] ss:$8 sps:$4 sm:$0xff]   ;;  %v16169_v38 = vld [vmem:[#allocation13 + $0x224] ss:$8 sps:$4 sm:$0xff]   ;;  %v16172_v0 = vld [vmem:[#allocation13 + $0x234] ss:$8 sps:$4 sm:$0xff]  }
 0x47e   :  { %v6657_v47 = vpack.c.bf16 %v14488_v46, %v14482_v54  ;;  %v14481_v18 = vcombine.low %v6537_v49, %v6538_v10  ;;  %v16167_v57 = vld [vmem:[#allocation13 + $0x220] ss:$8 sps:$4 sm:$0xff]   ;;  %v16178_v3 = vld [vmem:[#allocation13 + $0x254] ss:$8 sps:$4 sm:$0xff]   ;;  %v16291_v46 = vld [vmem:[%s20595_s7 + $0x24] ss:$8 sps:$4 sm:$0xff]  }
 0x47f   :  { %v6658_v52 = vpack.c.bf16 %v19265_v17, %v19230_v1  ;;  %v6661_v24 = vpack.c.bf16 %v19267_v5, %v19224_v6  ;;  %v6662_v2 = vpack.c.bf16 %v19280_v44, %v19273_v27  ;;  %v16202_v54 = vld [vmem:[#allocation13 + $0x2d4] ss:$8 sps:$4 sm:$0xff]   ;;  %v16205_v49 = vld [vmem:[#allocation13 + $0x2e4] ss:$8 sps:$4 sm:$0xff]   ;;  %v16230_v17 = vld [vmem:[#allocation13 + $0x370] ss:$8 sps:$4 sm:$0xff]  }
 0x480   :  { %7609 = vmatpush1.bf16.msra.mxu1 %v16131_v20  ;;  %v6656_v20 = vpack.c.bf16 %v19273_v27, %v14481_v18  ;;  %v16206_v18 = vld [vmem:[#allocation13 + $0x2f0] ss:$8 sps:$4 sm:$0xff]   ;;  %v16232_v1 = vld [vmem:[#allocation13 + $0x374] ss:$8 sps:$4 sm:$0xff]  }
 0x481   :  { %7610 = vmatprep.subr.bf16.mxu1 %v16140_v7  ;;  %v16176_v7 = vld [vmem:[#allocation13 + $0x250] ss:$8 sps:$4 sm:$0xff]   ;;  %v16276_v6 = vld [vmem:[#allocation13 + $0x454] ss:$8 sps:$4 sm:$0xff]  }
 0x482   :  { %v16274_v5 = vld [vmem:[#allocation13 + $0x450] ss:$8 sps:$4 sm:$0xff]   ;;  %v16298_v27 = vld [vmem:[%s20595_s7 + $0x50] ss:$8 sps:$4 sm:$0xff]   ;;  %v16301_v44 = vld [vmem:[%s20595_s7 + $0x60] ss:$8 sps:$4 sm:$0xff]  }
 0x484   :  { %7611 = vmatpush1.bf16.msra.mxu1 %v16138_v28  ;;  %v16181_v28 = vld [vmem:[#allocation13 + $0x264] ss:$8 sps:$4 sm:$0xff]  }
 0x485   :  { %7612 = vmatprep.subr.bf16.mxu1 %v16143_v8  ;;  %v16179_v8 = vld [vmem:[#allocation13 + $0x260] ss:$8 sps:$4 sm:$0xff]  }
 0x488   :  { %7613 = vmatpush1.bf16.msra.mxu1 %v16141_v37  ;;  %v16184_v37 = vld [vmem:[#allocation13 + $0x274] ss:$8 sps:$4 sm:$0xff]  }
 0x489   :  { %7614 = vmatprep.subr.bf16.mxu1 %v16146_v58  ;;  %v16182_v58 = vld [vmem:[#allocation13 + $0x270] ss:$8 sps:$4 sm:$0xff]  }
 0x48c   :  { %7615 = vmatpush1.bf16.msra.mxu1 %v16144_v59  ;;  %v16188_v59 = vld [vmem:[#allocation13 + $0x290] ss:$8 sps:$4 sm:$0xff]  }
 0x48d   :  { %7616 = vmatprep.subr.bf16.mxu1 %v16149_v26  ;;  %v16193_v26 = vld [vmem:[#allocation13 + $0x2a4] ss:$8 sps:$4 sm:$0xff]  }
 0x490   :  { %7617 = vmatpush1.bf16.msra.mxu1 %v16147_v35  ;;  %v16191_v35 = vld [vmem:[#allocation13 + $0x2a0] ss:$8 sps:$4 sm:$0xff]  }
 0x491   :  { %7618 = vmatprep.subr.bf16.mxu1 %v16152_v34  ;;  %v16196_v34 = vld [vmem:[#allocation13 + $0x2b4] ss:$8 sps:$4 sm:$0xff]  }
 0x494   :  { %7619 = vmatpush1.bf16.msra.mxu1 %v16150_v45  ;;  %v16283_v45 = vld [vmem:[%s20595_s7] ss:$8 sps:$4 sm:$0xff]  }
 0x495   :  { %7620 = vmatprep.subr.bf16.mxu1 %v16155_v41  ;;  %v16285_v41 = vld [vmem:[%s20595_s7 + $0x4] ss:$8 sps:$4 sm:$0xff]  }
 0x496   :  { %10303 = vmatprep.subr.bf16.mxu0 %v16285_v41  ;;  %v16263_v41 = vld [vmem:[#allocation13 + $0x414] ss:$8 sps:$4 sm:$0xff]  }
 0x497   :  { %10304 = vmatpush1.bf16.msra.mxu0 %v16283_v45  ;;  %v16258_v45 = vld [vmem:[#allocation13 + $0x400] ss:$8 sps:$4 sm:$0xff]  }
 0x498   :  { %7621 = vmatpush1.bf16.msra.mxu1 %v16153_v43  ;;  %v16194_v43 = vld [vmem:[#allocation13 + $0x2b0] ss:$8 sps:$4 sm:$0xff]  }
 0x499   :  { %7622 = vmatprep.subr.bf16.mxu1 %v16158_v32  ;;  %v16288_v32 = vld [vmem:[%s20595_s7 + $0x14] ss:$8 sps:$4 sm:$0xff]  }
 0x49a   :  { %10305 = vmatprep.subr.bf16.mxu0 %v16288_v32  ;;  %v16267_v32 = vld [vmem:[#allocation13 + $0x424] ss:$8 sps:$4 sm:$0xff]  }
 0x49c   :  { %7623 = vmatpush1.bf16.msra.mxu1 %v16156_v56  ;;  %v16199_v56 = vld [vmem:[#allocation13 + $0x2c4] ss:$8 sps:$4 sm:$0xff]  }
 0x49d   :  { %7645 = vmatprep.subr.bf16.mxu1 %v16161_v36  ;;  %v16286_v36 = vld [vmem:[%s20595_s7 + $0x10] ss:$8 sps:$4 sm:$0xff]  }
 0x49e   :  { %10306 = vmatpush1.bf16.msra.mxu0 %v16286_v36  ;;  %v16270_v36 = vld [vmem:[#allocation13 + $0x434] ss:$8 sps:$4 sm:$0xff]  }
 0x49f   :  { %7625 = vmatmul.mubr.bf16.vlgmr.msra.gmra.mrb[96].mxu1 %v6647_v19  ;;  %v16173_v19 = vld [vmem:[#allocation13 + $0x240] ss:$8 sps:$4 sm:$0xff]   ;;  %10307 = vmatprep.subr.bf16.mxu0 %v16291_v46  ;;  %v16268_v46 = vld [vmem:[#allocation13 + $0x430] ss:$8 sps:$4 sm:$0xff]  }
 0x4a0   :  { %7634 = vmatprep.mubr.bf16.mxu1 %v6657_v47  ;;  %7646 = vmatpush1.bf16.msra.mxu1 %v16159_v16  ;;  %v16197_v16 = vld [vmem:[#allocation13 + $0x2c0] ss:$8 sps:$4 sm:$0xff]   ;;  %v16200_v47 = vld [vmem:[#allocation13 + $0x2d0] ss:$8 sps:$4 sm:$0xff]  }
 0x4a1   :  { %7647 = vmatprep.subr.bf16.mxu1 %v16166_v50  ;;  %v16289_v50 = vld [vmem:[%s20595_s7 + $0x20] ss:$8 sps:$4 sm:$0xff]  }
 0x4a2   :  { %10308 = vmatpush1.bf16.msra.mxu0 %v16289_v50  ;;  %v16277_v50 = vld [vmem:[#allocation13 + $0x460] ss:$8 sps:$4 sm:$0xff]  }
 0x4a4   :  { %7648 = vmatpush1.bf16.msra.mxu1 %v16164_v51  ;;  %v16203_v51 = vld [vmem:[#allocation13 + $0x2e0] ss:$8 sps:$4 sm:$0xff]  }
 0x4a5   :  { %7649 = vmatprep.subr.bf16.mxu1 %v16169_v38  ;;  %v16208_v38 = vld [vmem:[#allocation13 + $0x2f4] ss:$8 sps:$4 sm:$0xff]  }
 0x4a7   :  { %7635 = vmatmul.mubr.bf16.gmra.mrb[100].mxu1 %v6656_v20  ;;  %v14490_v20 = vcombine.low %v6540_v63, %v6546_v31  ;;  %v16215_v63 = vld [vmem:[#allocation13 + $0x320] ss:$8 sps:$4 sm:$0xff]   ;;  %v16220_v31 = vld [vmem:[#allocation13 + $0x334] ss:$8 sps:$4 sm:$0xff]  }
 0x4a8   :  { %7650 = vmatpush1.bf16.msra.mxu1 %v16167_v57  ;;  %7677 = vmatprep.mubr.bf16.mxu1 %v6650_v62  ;;  %v16190_v62 = vld [vmem:[#allocation13 + $0x294] ss:$8 sps:$4 sm:$0xff]   ;;  %v16211_v57 = vld [vmem:[#allocation13 + $0x304] ss:$8 sps:$4 sm:$0xff]  }
 0x4a9   :  { %7651 = vmatprep.subr.bf16.mxu1 %v16172_v0  ;;  %v16209_v0 = vld [vmem:[#allocation13 + $0x300] ss:$8 sps:$4 sm:$0xff]  }
 0x4ac   :  { %7652 = vmatpush1.bf16.msra.mxu1 %v16170_v13  ;;  %v14484_v13 = vcombine.low %v6538_v10, %v6539_v40  ;;  %v16229_v40 = vld [vmem:[#allocation13 + $0x364] ss:$8 sps:$4 sm:$0xff]   ;;  %v16227_v10 = vld [vmem:[#allocation13 + $0x360] ss:$8 sps:$4 sm:$0xff]  }
 0x4ad   :  { %7653 = vmatprep.subr.bf16.mxu1 %v16175_v11  ;;  %v16214_v11 = vld [vmem:[#allocation13 + $0x314] ss:$8 sps:$4 sm:$0xff]  }
 0x4b0   :  { %7654 = vmatpush1.bf16.msra.mxu1 %v16173_v19  ;;  %v6659_v19 = vpack.c.bf16 %v14490_v20, %v14484_v13  ;;  %v20629_v20 = vlaneseq  ;;  %v16307_v13 = vld [vmem:[%s20595_s7 + $0x80] ss:$8 sps:$4 sm:$0xff]  }
 0x4b1   :  { %7655 = vmatprep.subr.bf16.mxu1 %v16178_v3  ;;  %v16241_v3 = vld [vmem:[#allocation13 + $0x3a4] ss:$8 sps:$4 sm:$0xff]  }
 0x4b2   :  { %vm19383_vm10 = vcmp.lt.s32.totalorder %v20629_v20, 256 }
 0x4b4   :  { %7656 = vmatpush1.bf16.msra.mxu1 %v16176_v7  ;;  %v16239_v7 = vld [vmem:[#allocation13 + $0x3a0] ss:$8 sps:$4 sm:$0xff]  }
 0x4b5   :  { %7657 = vmatprep.subr.bf16.mxu1 %v16181_v28  ;;  %v16244_v28 = vld [vmem:[#allocation13 + $0x3b4] ss:$8 sps:$4 sm:$0xff]  }
 0x4b8   :  { %7658 = vmatpush1.bf16.msra.mxu1 %v16179_v8  ;;  %v16242_v8 = vld [vmem:[#allocation13 + $0x3b0] ss:$8 sps:$4 sm:$0xff]  }
 0x4b9   :  { %7659 = vmatprep.subr.bf16.mxu1 %v16184_v37  ;;  %v16247_v37 = vld [vmem:[#allocation13 + $0x3c4] ss:$8 sps:$4 sm:$0xff]  }
 0x4bc   :  { %7660 = vmatpush1.bf16.msra.mxu1 %v16182_v58  ;;  %v16245_v58 = vld [vmem:[#allocation13 + $0x3c0] ss:$8 sps:$4 sm:$0xff]  }
 0x4bd   :  { %7661 = vmatprep.subr.bf16.mxu1 %v16187_v30  ;;  %v16250_v30 = vld [vmem:[#allocation13 + $0x3d4] ss:$8 sps:$4 sm:$0xff]  }
 0x4c0   :  { %7662 = vmatpush1.bf16.msra.mxu1 %v16185_v61  ;;  %v16248_v61 = vld [vmem:[#allocation13 + $0x3d0] ss:$8 sps:$4 sm:$0xff]  }
 0x4c1   :  { %7663 = vmatprep.subr.bf16.mxu1 %v16190_v62  ;;  %v16253_v62 = vld [vmem:[#allocation13 + $0x3e4] ss:$8 sps:$4 sm:$0xff]  }
 0x4c4   :  { %7664 = vmatpush1.bf16.msra.mxu1 %v16188_v59  ;;  %v16251_v59 = vld [vmem:[#allocation13 + $0x3e0] ss:$8 sps:$4 sm:$0xff]  }
 0x4c5   :  { %7665 = vmatprep.subr.bf16.mxu1 %v16193_v26  ;;  %v16256_v26 = vld [vmem:[#allocation13 + $0x3f4] ss:$8 sps:$4 sm:$0xff]  }
 0x4c8   :  { %7666 = vmatpush1.bf16.msra.mxu1 %v16191_v35  ;;  %v16254_v35 = vld [vmem:[#allocation13 + $0x3f0] ss:$8 sps:$4 sm:$0xff]  }
 0x4c9   :  { %7667 = vmatprep.subr.bf16.mxu1 %v16196_v34  ;;  %v16260_v34 = vld [vmem:[#allocation13 + $0x404] ss:$8 sps:$4 sm:$0xff]  }
 0x4cc   :  { %7668 = vmatpush1.bf16.msra.mxu1 %v16194_v43  ;;  %v16261_v43 = vld [vmem:[#allocation13 + $0x410] ss:$8 sps:$4 sm:$0xff]  }
 0x4cd   :  { %7669 = vmatprep.subr.bf16.mxu1 %v16199_v56  ;;  %v16265_v56 = vld [vmem:[#allocation13 + $0x420] ss:$8 sps:$4 sm:$0xff]  }
 0x4d0   :  { %7670 = vmatpush1.bf16.msra.mxu1 %v16197_v16  ;;  %v17381_v16 = vmov 0  }
 0x4d1   :  { %7671 = vmatprep.subr.bf16.mxu1 %v16202_v54  ;;  %v16271_v54 = vld [vmem:[#allocation13 + $0x440] ss:$8 sps:$4 sm:$0xff]  }
 0x4d4   :  { %7672 = vmatpush1.bf16.msra.mxu1 %v16200_v47  ;;  %v16282_v47 = vld [vmem:[#allocation13 + $0x474] ss:$8 sps:$4 sm:$0xff]  }
 0x4d5   :  { %7673 = vmatprep.subr.bf16.mxu1 %v16205_v49  ;;  %v16292_v49 = vld [vmem:[%s20595_s7 + $0x30] ss:$8 sps:$4 sm:$0xff]  }
 0x4d8   :  { %7674 = vmatpush1.bf16.msra.mxu1 %v16203_v51  ;;  %v16294_v51 = vld [vmem:[%s20595_s7 + $0x34] ss:$8 sps:$4 sm:$0xff]  }
 0x4d9   :  { %7675 = vmatprep.subr.bf16.mxu1 %v16208_v38  ;;  %10309 = vmatprep.subr.bf16.mxu0 %v16294_v51  ;;  %v16306_v38 = vld [vmem:[%s20595_s7 + $0x74] ss:$8 sps:$4 sm:$0xff]  }
 0x4da   :  { %10310 = vmatpush1.bf16.msra.mxu0 %v16292_v49 }
 0x4db   :  { %10311 = vmatprep.subr.bf16.mxu0 %v16297_v15 }
 0x4dc   :  { %7676 = vmatpush1.bf16.msra.mxu1 %v16206_v18  ;;  %v16304_v18 = vld [vmem:[%s20595_s7 + $0x70] ss:$8 sps:$4 sm:$0xff]  }
 0x4dd   :  { %7698 = vmatprep.subr.bf16.mxu1 %v16211_v57  ;;  %v16309_v57 = vld [vmem:[%s20595_s7 + $0x84] ss:$8 sps:$4 sm:$0xff]  }
 0x4de   :  { %10312 = vmatpush1.bf16.msra.mxu0 %v16295_v12 }
 0x4df   :  { %7678 = vmatmul.mubr.bf16.vlgmr.msra.gmra.mrb[96].mxu1 %v6649_v42  ;;  %v16224_v42 = vld [vmem:[#allocation13 + $0x350] ss:$8 sps:$4 sm:$0xff]  }
 0x4e0   :  { %7687 = vmatprep.mubr.bf16.mxu1 %v6659_v19  ;;  %7699 = vmatpush1.bf16.msra.mxu1 %v16209_v0  ;;  %v16312_v19 = vld [vmem:[%s20595_s7 + $0x94] ss:$8 sps:$4 sm:$0xff]  }
 0x4e1   :  { %7700 = vmatprep.subr.bf16.mxu1 %v16214_v11  ;;  %v17152_v11 = vld [vmem:[#allocation4 + $0x20] sm:$0xff] }
 0x4e2   :  { %7989 = vst.msk [vmem:[#allocation4] ss:$4 sm:$0x3] %vm19383_vm10, %v17152_v11  ;;  %7991 = vst.msk [vmem:[#allocation4 + $0x8] ss:$4 sm:$0x3] %vm19383_vm10, %v17152_v11 }
 0x4e3   :  { %7997 = vst.msk [vmem:[#allocation4 + $0x20] ss:$4 sm:$0x3] %vm19383_vm10, %v17152_v11  ;;  %7999 = vst.msk [vmem:[#allocation4 + $0x28] ss:$4 sm:$0x3] %vm19383_vm10, %v17152_v11 }
 0x4e4   :  { %7701 = vmatpush1.bf16.msra.mxu1 %v16212_v55  ;;  %8005 = vst.msk [vmem:[#allocation4 + $0x3] ss:$4 sm:$0x3] %vm19383_vm10, %v17152_v11  ;;  %8007 = vst.msk [vmem:[#allocation4 + $0xb] ss:$4 sm:$0x3] %vm19383_vm10, %v17152_v11 }
 0x4e5   :  { %7702 = vmatprep.subr.bf16.mxu1 %v16217_v53  ;;  %8013 = vst.msk [vmem:[#allocation4 + $0x23] ss:$4 sm:$0x3] %vm19383_vm10, %v17152_v11  ;;  %8015 = vst.msk [vmem:[#allocation4 + $0x2b] ss:$4 sm:$0x3] %vm19383_vm10, %v17152_v11 }
 0x4e6   :  { %7993 = vst.msk [vmem:[#allocation4 + $0x10] ss:$4 sm:$0x3] %vm19383_vm10, %v17152_v11  ;;  %7995 = vst.msk [vmem:[#allocation4 + $0x18] ss:$4 sm:$0x3] %vm19383_vm10, %v17152_v11 }
 0x4e7   :  { %7688 = vmatmul.mubr.bf16.gmra.mrb[100].mxu1 %v6658_v52  ;;  %v16236_v52 = vld [vmem:[#allocation13 + $0x390] ss:$8 sps:$4 sm:$0xff]   ;;  %8001 = vst.msk [vmem:[#allocation4 + $0x30] ss:$4 sm:$0x3] %vm19383_vm10, %v17152_v11 }
 0x4e8   :  { %7703 = vmatpush1.bf16.msra.mxu1 %v16215_v63  ;;  %7730 = vmatprep.mubr.bf16.mxu1 %v6652_v29  ;;  %v16238_v29 = vld [vmem:[#allocation13 + $0x394] ss:$8 sps:$4 sm:$0xff]   ;;  %8003 = vst.msk [vmem:[#allocation4 + $0x38] ss:$4 sm:$0x3] %vm19383_vm10, %v17152_v11 }
 0x4e9   :  { %7704 = vmatprep.subr.bf16.mxu1 %v16220_v31  ;;  %8009 = vst.msk [vmem:[#allocation4 + $0x13] ss:$4 sm:$0x3] %vm19383_vm10, %v17152_v11  ;;  %8011 = vst.msk [vmem:[#allocation4 + $0x1b] ss:$4 sm:$0x3] %vm19383_vm10, %v17152_v11 }
 0x4ea   :  { %8017 = vst.msk [vmem:[#allocation4 + $0x33] ss:$4 sm:$0x3] %vm19383_vm10, %v17152_v11  ;;  %8019 = vst.msk [vmem:[#allocation4 + $0x3b] ss:$4 sm:$0x3] %vm19383_vm10, %v17152_v11 }
 0x4eb   :  { %v16310_v55 = vld [vmem:[%s20595_s7 + $0x90] ss:$8 sps:$4 sm:$0xff]   ;;  %v16315_v53 = vld [vmem:[%s20595_s7 + $0xa4] ss:$8 sps:$4 sm:$0xff]   ;;  %v16313_v63 = vld [vmem:[%s20595_s7 + $0xa0] ss:$8 sps:$4 sm:$0xff]  }
 0x4ec   :  { %7705 = vmatpush1.bf16.msra.mxu1 %v16218_v21  ;;  %v16318_v31 = vld [vmem:[%s20595_s7 + $0xb4] ss:$8 sps:$4 sm:$0xff]   ;;  %v16316_v21 = vld [vmem:[%s20595_s7 + $0xb0] ss:$8 sps:$4 sm:$0xff]  }
 0x4ed   :  { %7706 = vmatprep.subr.bf16.mxu1 %v16223_v4  ;;  %v16321_v4 = vld [vmem:[%s20595_s7 + $0xc4] ss:$8 sps:$4 sm:$0xff]  }
 0x4f0   :  { %7707 = vmatpush1.bf16.msra.mxu1 %v16221_v60  ;;  %v16319_v60 = vld [vmem:[%s20595_s7 + $0xc0] ss:$8 sps:$4 sm:$0xff]  }
 0x4f1   :  { %7708 = vmatprep.subr.bf16.mxu1 %v16226_v33  ;;  %v16324_v33 = vld [vmem:[%s20595_s7 + $0xd4] ss:$8 sps:$4 sm:$0xff]  }
 0x4f4   :  { %7709 = vmatpush1.bf16.msra.mxu1 %v16224_v42  ;;  %v16322_v42 = vld [vmem:[%s20595_s7 + $0xd0] ss:$8 sps:$4 sm:$0xff]  }
 0x4f5   :  { %7710 = vmatprep.subr.bf16.mxu1 %v16229_v40  ;;  %v16327_v40 = vld [vmem:[%s20595_s7 + $0xe4] ss:$8 sps:$4 sm:$0xff]  }
 0x4f8   :  { %7711 = vmatpush1.bf16.msra.mxu1 %v16227_v10  ;;  %v16325_v10 = vld [vmem:[%s20595_s7 + $0xe0] ss:$8 sps:$4 sm:$0xff]  }
 0x4f9   :  { %7712 = vmatprep.subr.bf16.mxu1 %v16232_v1  ;;  %v16330_v1 = vld [vmem:[%s20595_s7 + $0xf4] ss:$8 sps:$4 sm:$0xff]  }
 0x4fc   :  { %7713 = vmatpush1.bf16.msra.mxu1 %v16230_v17  ;;  %v16328_v17 = vld [vmem:[%s20595_s7 + $0xf0] ss:$8 sps:$4 sm:$0xff]  }
 0x4fd   :  { %7714 = vmatprep.subr.bf16.mxu1 %v16235_v39  ;;  %v16337_v39 = vld [vmem:[%s20595_s7 + $0x104] ss:$8 sps:$4 sm:$0xff]  }
 0x500   :  { %7715 = vmatpush1.bf16.msra.mxu1 %v16233_v23  ;;  %v19467_v23 = vld [vmem:[#allocation4] sm:$0xff] }
 0x501   :  { %7716 = vmatprep.subr.bf16.mxu1 %v16238_v29  ;;  %v19471_v29 = vcombine.high %v19467_v23, %v19467_v23 }
 0x503   :  { %v8157_v20 = vcombine.low %v19467_v23, %v19471_v29 }
 0x504   :  { %7717 = vmatpush1.bf16.msra.mxu1 %v16236_v52  ;;  %v19473_v52 = vld [vmem:[#allocation4 + $0x18] sm:$0xff] }
 0x505   :  { %7718 = vmatprep.subr.bf16.mxu1 %v16241_v3  ;;  %v8125_v3 = vrot.slane %v19467_v23, 2 }
 0x508   :  { %7719 = vmatpush1.bf16.msra.mxu1 %v16239_v7  ;;  %v8126_v7 = vrot.slane %v19471_v29, 2 }
 0x509   :  { %7720 = vmatprep.subr.bf16.mxu1 %v16244_v28  ;;  %v19479_v28 = vcombine.high %v19473_v52, %v19473_v52 }
 0x50c   :  { %7721 = vmatpush1.bf16.msra.mxu1 %v16242_v8  ;;  %v19481_v8 = vld [vmem:[#allocation4 + $0x20] sm:$0xff] }
 0x50d   :  { %7722 = vmatprep.subr.bf16.mxu1 %v16247_v37  ;;  %v19483_v37 = vcombine.low %v8125_v3, %v8126_v7 }
 0x510   :  { %7723 = vmatpush1.bf16.msra.mxu1 %v16245_v58  ;;  %v8153_v58 = vrot.slane %v19473_v52, 2 }
 0x511   :  { %7724 = vmatprep.subr.bf16.mxu1 %v16250_v30  ;;  %v8154_v30 = vrot.slane %v19479_v28, 2 }
 0x514   :  { %7725 = vmatpush1.bf16.msra.mxu1 %v16248_v61  ;;  %v19489_v61 = vcombine.high %v19481_v8, %v19481_v8 }
 0x515   :  { %7726 = vmatprep.subr.bf16.mxu1 %v16253_v62  ;;  %v19491_v62 = vcombine.low %v8153_v58, %v8154_v30 }
 0x516   :  { %v8261_v0 = vcombine.low %v19481_v8, %v19489_v61 }
 0x518   :  { %7727 = vmatpush1.bf16.msra.mxu1 %v16251_v59  ;;  %v19493_v59 = vld [vmem:[#allocation4 + $0x38] sm:$0xff] }
 0x519   :  { %7728 = vmatprep.subr.bf16.mxu1 %v16256_v26  ;;  %v8129_v26 = vrot.slane %v19481_v8, 2 }
 0x51c   :  { %7729 = vmatpush1.bf16.msra.mxu1 %v16254_v35  ;;  %v8130_v35 = vrot.slane %v19489_v61, 2 }
 0x51d   :  { %7751 = vmatprep.subr.bf16.mxu1 %v16260_v34  ;;  %v19499_v34 = vcombine.high %v19493_v59, %v19493_v59 }
 0x51f   :  { %7731 = vmatmul.mubr.bf16.vlgmr.msra.gmra.mrb[96].mxu1 %v19243_v48  ;;  %v16273_v48 = vld [vmem:[#allocation13 + $0x444] ss:$8 sps:$4 sm:$0xff]  }
 0x520   :  { %7740 = vmatprep.mubr.bf16.mxu1 %v6661_v24  ;;  %7752 = vmatpush1.bf16.msra.mxu1 %v16258_v45  ;;  %v16279_v24 = vld [vmem:[#allocation13 + $0x464] ss:$8 sps:$4 sm:$0xff]   ;;  %v19501_v45 = vcombine.low %v8129_v26, %v8130_v35 }
 0x521   :  { %7753 = vmatprep.subr.bf16.mxu1 %v16263_v41  ;;  %v8155_v41 = vrot.slane %v19493_v59, 2 }
 0x524   :  { %7754 = vmatpush1.bf16.msra.mxu1 %v16261_v43  ;;  %v8156_v43 = vrot.slane %v19499_v34, 2 }
 0x525   :  { %7755 = vmatprep.subr.bf16.mxu1 %v16267_v32 }
 0x526   :  { %v19505_v32 = vcombine.low %v8155_v41, %v8156_v43 }
 0x527   :  { %7741 = vmatmul.mubr.bf16.gmra.mrb[100].mxu1 %v19276_v9  ;;  %v16280_v9 = vld [vmem:[#allocation13 + $0x470] ss:$8 sps:$4 sm:$0xff]  }
 0x528   :  { %7756 = vmatpush1.bf16.msra.mxu1 %v16265_v56  ;;  %7783 = vmatprep.mubr.bf16.mxu1 %v17381_v16  ;;  %v6807_v56 = vld [vmem:[%s20594_s6] sm:$0x3] }
 0x529   :  { %7757 = vmatprep.subr.bf16.mxu1 %v16270_v36  ;;  %v20632_v36 = vld [vmem:[#allocation26_spill] sm:$0xff] }
 0x52c   :  { %7758 = vmatpush1.bf16.msra.mxu1 %v16268_v46  ;;  %v19511_v46 = vsub.s32 1, %v20632_v36 }
 0x52d   :  { %7759 = vmatprep.subr.bf16.mxu1 %v16273_v48 }
 0x52e   :  { %v19517_v48 = vrot.slane %v6807_v56, %v19511_v46 }
 0x530   :  { %7760 = vmatpush1.bf16.msra.mxu1 %v16271_v54  ;;  %v17382_v54 = vmov 572653568  }
 0x531   :  { %7761 = vmatprep.subr.bf16.mxu1 %v16276_v6  ;;  %v8029_v6 = vunpack.c.l.s4 %v17382_v54 }
 0x533   :  { %v8030_v51 = vunpack.c.0.s8 %v8029_v6 }
 0x534   :  { %7762 = vmatpush1.bf16.msra.mxu1 %v16274_v5 }
 0x535   :  { %7763 = vmatprep.subr.bf16.mxu1 %v16279_v24 }
 0x538   :  { %7764 = vmatpush1.bf16.msra.mxu1 %v16277_v50 }
 0x539   :  { %7765 = vmatprep.subr.bf16.mxu1 %v16282_v47 }
 0x53c   :  { %7766 = vmatpush1.bf16.msra.mxu1 %v16280_v9 }
 0x53f   :  { %7784 = vmatmul.mubr.bf16.vlgmr.msra.gmra.mrb[96].mxu1 %v6653_v22  ;;  %v16300_v22 = vld [vmem:[%s20595_s7 + $0x54] ss:$8 sps:$4 sm:$0xff]  }
 0x540   :  { %7793 = vmatprep.mubr.bf16.mxu1 %v17381_v16  ;;  %10313 = vmatprep.subr.bf16.mxu0 %v16300_v22  ;;  %v19514_v16 = vrot.slane %v6807_v56, %v17796_v25 }
 0x541   :  { %10314 = vmatpush1.bf16.msra.mxu0 %v16298_v27 }
 0x547   :  { %7794 = vmatmul.mubr.bf16.gmra.mrb[100].mxu1 %v6662_v2  ;;  %v16303_v2 = vld [vmem:[%s20595_s7 + $0x64] ss:$8 sps:$4 sm:$0xff]  }
 0x548   :  { %10315 = vmatprep.subr.bf16.mxu0 %v16303_v2 }
 0x549   :  { %10316 = vmatpush1.bf16.msra.mxu0 %v16301_v44 }
 0x54a   :  { %10317 = vmatprep.subr.bf16.mxu0 %v16306_v38 }
 0x54d   :  { %10318 = vmatpush1.bf16.msra.mxu0 %v16304_v18 }
 0x54e   :  { %10319 = vmatprep.subr.bf16.mxu0 %v16309_v57  ;;  %v19524_v57 = vsub.s32 %v8030_v51, %v20632_v36 }
 0x551   :  { %10320 = vmatpush1.bf16.msra.mxu0 %v16307_v13 }
 0x552   :  { %10321 = vmatprep.subr.bf16.mxu0 %v16312_v19 }
 0x555   :  { %10322 = vmatpush1.bf16.msra.mxu0 %v16310_v55 }
 0x556   :  { %10323 = vmatprep.subr.bf16.mxu0 %v16315_v53 }
 0x559   :  { %10324 = vmatpush1.bf16.msra.mxu0 %v16313_v63 }
 0x55a   :  { %10325 = vmatprep.subr.bf16.mxu0 %v16318_v31 }
 0x55d   :  { %10326 = vmatpush1.bf16.msra.mxu0 %v16316_v21  ;;  %v8117_v21 = vrot.slane %v19467_v23, 1  ;;  %v8236_v23 = vcombine.low %v19473_v52, %v19479_v28 }
 0x55e   :  { %10327 = vmatprep.subr.bf16.mxu0 %v16321_v4  ;;  %v8118_v4 = vrot.slane %v19471_v29, 1 }
 0x561   :  { %10328 = vmatpush1.bf16.msra.mxu0 %v16319_v60  ;;  %v8121_v60 = vrot.slane %v19481_v8, 1  ;;  %v8150_v8 = vrot.slane %v19479_v28, 1  ;;  %v8182_v28 = vrot.slane %v19483_v37, %v17791_v14 }
 0x562   :  { %10329 = vmatprep.subr.bf16.mxu0 %v16324_v33 }
 0x565   :  { %10330 = vmatpush1.bf16.msra.mxu0 %v16322_v42 }
 0x566   :  { %10331 = vmatprep.subr.bf16.mxu0 %v16327_v40 }
 0x569   :  { %10332 = vmatpush1.bf16.msra.mxu0 %v16325_v10 }
 0x56a   :  { %10333 = vmatprep.subr.bf16.mxu0 %v16330_v1 }
 0x56d   :  { %10334 = vmatpush1.bf16.msra.mxu0 %v16328_v17 }
 0x56e   :  { %10344 = vmatprep.subr.bf16.mxu0 %v16337_v39 }
 0x612   :  { %v7785_v5 = vpop.f32.mrb[96].mxu1 }
 0x613   :  { %v15828_v24 = vadd.f32 %v7785_v5, %v19514_v16  ;;  %v7787_v50 = vpop.f32.mrb[97].mxu1 }
 0x614   :  { %v15829_v47 = vadd.f32 %v7787_v50, %v19517_v48  ;;  %v7789_v9 = vpop.f32.mrb[98].mxu1 }
 0x615   :  { %v7804_v49 = vmax.f32 %v15828_v24, 0.0  ;;  %v15830_v12 = vadd.f32 %v7789_v9, %v19514_v16  ;;  %v7791_v15 = vpop.f32.mrb[99].mxu1 }
 0x616   :  { %v7805_v22 = vmax.f32 %v15829_v47, 0.0  ;;  %v15831_v27 = vadd.f32 %v7791_v15, %v19517_v48 }
 0x617   :  { %v7806_v44 = vmax.f32 %v15830_v12, 0.0 }
 0x618   :  { %v7820_v2 = vcombine.low %v7804_v49, %v7805_v22  ;;  %v7821_v38 = vcombine.high %v7804_v49, %v7805_v22  ;;  %v7807_v18 = vmax.f32 %v15831_v27, 0.0 }
 0x61a   :  { %v7828_v13 = vrot.slane %v7820_v2, %v17791_v14  ;;  %v7835_v11 = vrot.slane %v7821_v38, %v17791_v14  ;;  %v7838_v19 = vcombine.low %v7806_v44, %v7807_v18  ;;  %v7839_v55 = vcombine.high %v7806_v44, %v7807_v18  ;;  %v7795_v53 = vpop.f32.mrb[100].mxu1 }
 0x61b   :  { %v15832_v63 = vadd.f32 %v7795_v53, %v19514_v16  ;;  %v7797_v31 = vpop.f32.mrb[101].mxu1 }
 0x61c   :  { %v7836_v33 = vcombine.high %v7828_v13, %v7828_v13  ;;  %v7837_v42 = vcombine.high %v7835_v11, %v7835_v11  ;;  %v14637_v40 = vrot.slane %v7828_v13, 9  ;;  %v14639_v10 = vrot.slane %v7835_v11, 9  ;;  %v7799_v1 = vpop.f32.mrb[102].mxu1 }
 0x61d   :  { %v7846_v17 = vrot.slane %v7838_v19, %v17791_v14  ;;  %v7853_v39 = vrot.slane %v7839_v55, %v17791_v14  ;;  %v7808_v3 = vmax.f32 %v15832_v63, 0.0  ;;  %v15833_v7 = vadd.f32 %v7797_v31, %v19517_v48  ;;  %v7801_v58 = vpop.f32.mrb[103].mxu1 }
 0x61e   :  { %v14638_v30 = vrot.slane %v7836_v33, 9  ;;  %v14640_v26 = vrot.slane %v7837_v42, 9  ;;  %v7956_v35 = vmax.f32 %v7828_v13, %v14637_v40  ;;  %v7958_v41 = vmax.f32 %v7835_v11, %v14639_v10 }
 0x61f   :  { %v7854_v43 = vcombine.high %v7846_v17, %v7846_v17  ;;  %v7855_v56 = vcombine.high %v7853_v39, %v7853_v39  ;;  %v14641_v54 = vrot.slane %v7846_v17, 9  ;;  %v14643_v6 = vrot.slane %v7853_v39, 9 }
 0x620   :  { %v7957_v5 = vmax.f32 %v7836_v33, %v14638_v30  ;;  %v7959_v24 = vmax.f32 %v7837_v42, %v14640_v26  ;;  %v7972_v50 = vmax.f32 %v7956_v35, %v7958_v41  ;;  %v7809_v47 = vmax.f32 %v15833_v7, 0.0 }
 0x621   :  { %v14642_v9 = vrot.slane %v7854_v43, 9  ;;  %v14644_v49 = vrot.slane %v7855_v56, 9  ;;  %v7960_v51 = vmax.f32 %v7846_v17, %v14641_v54  ;;  %v7962_v12 = vmax.f32 %v7853_v39, %v14643_v6 }
 0x622   :  { %v7973_v15 = vmax.f32 %v7957_v5, %v7959_v24  ;;  %v8034_v22 = vrot.slane %v7972_v50, %v19524_v57  ;;  %v7856_v27 = vcombine.low %v7808_v3, %v7809_v47  ;;  %v7857_v44 = vcombine.high %v7808_v3, %v7809_v47 }
 0x623   :  { %v7961_v2 = vmax.f32 %v7854_v43, %v14642_v9  ;;  %v7963_v38 = vmax.f32 %v7855_v56, %v14644_v49  ;;  %v7974_v18 = vmax.f32 %v7960_v51, %v7962_v12  ;;  %v15834_v13 = vadd.f32 %v7799_v1, %v19514_v16 }
 0x624   :  { %v8041_v11 = vrot.slane %v7973_v15, %v19524_v57  ;;  %v7864_v19 = vrot.slane %v7856_v27, %v17791_v14  ;;  %v7871_v55 = vrot.slane %v7857_v44, %v17791_v14  ;;  %v15835_v53 = vadd.f32 %v7801_v58, %v19517_v48 }
 0x625   :  { %v7975_v63 = vmax.f32 %v7961_v2, %v7963_v38  ;;  %v8048_v31 = vrot.slane %v7974_v18, %v19524_v57  ;;  %v7810_v33 = vmax.f32 %v15834_v13, 0.0  ;;  %v8122_v42 = vrot.slane %v19489_v61, 1 }
 0x626   :  { %v8084_v40 = vsel %vm4105_vm4, %v8041_v11, %v8034_v22  ;;  %v7872_v10 = vcombine.high %v7864_v19, %v7864_v19  ;;  %v7873_v17 = vcombine.high %v7871_v55, %v7871_v55  ;;  %v14645_v39 = vrot.slane %v7864_v19, 9 }
 0x627   :  { %v8085_v16 = vsel %vm4113_vm8, %v8041_v11, %v8084_v40  ;;  %v8055_v1 = vrot.slane %v7975_v63, %v19524_v57  ;;  %v14647_v3 = vrot.slane %v7871_v55, 9  ;;  %v7811_v7 = vmax.f32 %v15835_v53, 0.0 }
 0x628   :  { %8097 = vst [vmem:[#allocation4 + $0x8] sm:$0x66] %v8085_v16  ;;  %v14646_v30 = vrot.slane %v7872_v10, 9  ;;  %v14648_v48 = vrot.slane %v7873_v17, 9  ;;  %v7964_v58 = vmax.f32 %v7864_v19, %v14645_v39  ;;  %v19550_v26 = vcombine.low %v8117_v21, %v8118_v4 }
 0x629   :  { %v8086_v35 = vsel %vm4105_vm4, %v8055_v1, %v8048_v31  ;;  %v7966_v41 = vmax.f32 %v7871_v55, %v14647_v3  ;;  %v7874_v43 = vcombine.low %v7810_v33, %v7811_v7  ;;  %v7875_v56 = vcombine.high %v7810_v33, %v7811_v7 }
 0x62a   :  { %v8087_v54 = vsel %vm4113_vm8, %v8055_v1, %v8086_v35  ;;  %v7965_v6 = vmax.f32 %v7872_v10, %v14646_v30  ;;  %v7967_v5 = vmax.f32 %v7873_v17, %v14648_v48  ;;  %v19560_v21 = vrot.slane %v8157_v20, %v17791_v14 }
 0x62b   :  { %8098 = vst [vmem:[#allocation4 + $0x10] sm:$0x66] %v8087_v54  ;;  %v7976_v24 = vmax.f32 %v7964_v58, %v7966_v41  ;;  %v7882_v50 = vrot.slane %v7874_v43, %v17791_v14  ;;  %v7889_v47 = vrot.slane %v7875_v56, %v17791_v14  ;;  %v19566_v9 = vrot.slane %v8261_v0, %v17791_v14 }
 0x62c   :  { %v7977_v4 = vmax.f32 %v7965_v6, %v7967_v5  ;;  %v8172_v49 = vrot.slane %v19550_v26, %v17791_v14  ;;  %v19572_v51 = vcombine.low %v8121_v60, %v8122_v42  ;;  %v8149_v0 = vrot.slane %v19473_v52, 1 }
 0x62d   :  { %v7890_v12 = vcombine.high %v7882_v50, %v7882_v50  ;;  %v7891_v15 = vcombine.high %v7889_v47, %v7889_v47  ;;  %v14649_v22 = vrot.slane %v7882_v50, 9  ;;  %v8062_v29 = vrot.slane %v7976_v24, %v19524_v57 }
 0x62e   :  { %v8069_v20 = vrot.slane %v7977_v4, %v19524_v57  ;;  %v14651_v61 = vrot.slane %v7889_v47, 9  ;;  %v8276_v10 = vrot.slane %v19572_v51, %v17791_v14  ;;  %v19587_v39 = vrot.slane %v8236_v23, %v17791_v14 }
 0x62f   :  { %v14650_v27 = vrot.slane %v7890_v12, 9  ;;  %v14652_v44 = vrot.slane %v7891_v15, 9  ;;  %v7968_v2 = vmax.f32 %v7882_v50, %v14649_v22  ;;  %v8102_v38 = vld [vmem:[#allocation4 + $0x8] sm:$0xff]  ;;  %v8151_v3 = vrot.slane %v19493_v59, 1 }
 0x630   :  { %v8088_v60 = vsel %vm4105_vm4, %v8069_v20, %v8062_v29  ;;  %v7970_v18 = vmax.f32 %v7889_v47, %v14651_v61  ;;  %v8114_v13 = vcombine.high %v8102_v38, %v8102_v38  ;;  %v8119_v11 = vrot.slane %v8102_v38, 1 }
 0x631   :  { %v8089_v19 = vsel %vm4113_vm8, %v8069_v20, %v8088_v60  ;;  %v7969_v55 = vmax.f32 %v7890_v12, %v14650_v27  ;;  %v7971_v53 = vmax.f32 %v7891_v15, %v14652_v44  ;;  %v8127_v63 = vrot.slane %v8102_v38, 2 }
 0x632   :  { %8099 = vst [vmem:[#allocation4 + $0x28] sm:$0x66] %v8089_v19  ;;  %v7978_v31 = vmax.f32 %v7968_v2, %v7970_v18  ;;  %v8175_v33 = vcombine.low %v8102_v38, %v8114_v13  ;;  %v8120_v52 = vrot.slane %v8114_v13, 1  ;;  %v8128_v42 = vrot.slane %v8114_v13, 2  ;;  %v8103_v17 = vld [vmem:[#allocation4 + $0x10] sm:$0xff] }
 0x633   :  { %v7979_v40 = vmax.f32 %v7969_v55, %v7971_v53  ;;  %v8237_v7 = vcombine.low %v8149_v0, %v8150_v8  ;;  %v8135_v58 = vcombine.high %v8103_v17, %v8103_v17  ;;  %v8152_v35 = vrot.slane %v19499_v34, 1 }
 0x634   :  { %v8191_v16 = vcombine.low %v8119_v11, %v8120_v52  ;;  %v8192_v1 = vcombine.low %v8127_v63, %v8128_v42  ;;  %v8076_v30 = vrot.slane %v7978_v31, %v19524_v57  ;;  %v19594_v41 = vrot.slane %v8175_v33, %v17791_v14 }
 0x635   :  { %v8083_v48 = vrot.slane %v7979_v40, %v19524_v57  ;;  %v8137_v43 = vrot.slane %v8103_v17, 1  ;;  %v8141_v56 = vrot.slane %v8103_v17, 2  ;;  %v8138_v5 = vrot.slane %v8135_v58, 1 }
 0x636   :  { %v19597_v37 = vrot.slane %v8192_v1, %v17791_v14  ;;  %v19601_v6 = vrot.slane %v8191_v16, %v17791_v14  ;;  %v8142_v24 = vrot.slane %v8135_v58, 2  ;;  %v8251_v47 = vrot.slane %v8237_v7, %v17791_v14 }
 0x637   :  { %v8090_v54 = vsel %vm4105_vm4, %v8083_v48, %v8076_v30  ;;  %v8260_v4 = vrot.slane %v19491_v62, %v17791_v14  ;;  %v8208_v15 = vcombine.low %v8103_v17, %v8135_v58  ;;  %v8209_v22 = vcombine.low %v8137_v43, %v8138_v5 }
 0x638   :  { %v8091_v57 = vsel %vm4113_vm8, %v8083_v48, %v8090_v54  ;;  %v14657_v50 = vcombine.low %v8182_v28, %v19597_v37  ;;  %v8225_v23 = vcombine.low %v8141_v56, %v8142_v24  ;;  %v8340_v29 = vcombine.low %v19493_v59, %v19499_v34 }
 0x639   :  { %8100 = vst [vmem:[#allocation4 + $0x30] sm:$0x66] %v8091_v57  ;;  %v8106_v12 = vld [vmem:[#allocation4 + $0x28] sm:$0xff]  ;;  %v14653_v61 = vcombine.low %v19560_v21, %v19594_v41  ;;  %v8286_v0 = vrot.slane %v19501_v45, %v17791_v14  ;;  %v19614_v27 = vcombine.low %v8151_v3, %v8152_v35  ;;  %v14654_v62 = vcombine.low %v8172_v49, %v19601_v6 }
 0x63a   :  { %v8116_v20 = vcombine.high %v8106_v12, %v8106_v12  ;;  %v8123_v44 = vrot.slane %v8106_v12, 1  ;;  %v8223_v2 = vrot.slane %v8209_v22, %v17791_v14  ;;  %v8232_v38 = vrot.slane %v8225_v23, %v17791_v14  ;;  %v16335_v57 = vld [vmem:[%s20595_s7 + $0x100] ss:$8 sps:$4 sm:$0xff]  }
 0x63b   :  { %v8131_v8 = vrot.slane %v8106_v12, 2  ;;  %v8216_v21 = vrot.slane %v8208_v15, %v17791_v14  ;;  %v8348_v19 = vrot.slane %v8340_v29, %v17791_v14  ;;  %v8375_v55 = vrot.slane %v14653_v61, %v17791_v14 }
 0x63c   :  { %v8279_v59 = vcombine.low %v8106_v12, %v8116_v20  ;;  %v8124_v34 = vrot.slane %v8116_v20, 1  ;;  %v8132_v60 = vrot.slane %v8116_v20, 2  ;;  %v14661_v45 = vcombine.low %v19601_v6, %v8223_v2 }
 0x63d   :  { %v14662_v18 = vcombine.low %v19597_v37, %v8232_v38  ;;  %v19625_v13 = vcombine.low %v8223_v2, %v8251_v47  ;;  %v8355_v53 = vrot.slane %v19614_v27, %v17791_v14  ;;  %v8364_v63 = vrot.slane %v19505_v32, %v17791_v14 }
 0x63e   :  { %v8293_v11 = vrot.slane %v8279_v59, %v17791_v14  ;;  %v8295_v26 = vcombine.low %v8123_v44, %v8124_v34  ;;  %v8296_v49 = vcombine.low %v8131_v8, %v8132_v60  ;;  %v19634_v31 = vcombine.low %v8232_v38, %v8260_v4  ;;  %v16340_v4 = vld [vmem:[%s20595_s7 + $0x114] ss:$8 sps:$4 sm:$0xff]   ;;  %v16338_v38 = vld [vmem:[%s20595_s7 + $0x110] ss:$8 sps:$4 sm:$0xff]   ;;  %v16343_v60 = vld [vmem:[%s20595_s7 + $0x124] ss:$8 sps:$4 sm:$0xff]  }
 0x63f   :  { %v8382_v42 = vrot.slane %v14654_v62, %v17791_v14  ;;  %v8411_v17 = vrot.slane %v14657_v50, %v17791_v14  ;;  %v14658_v1 = vcombine.low %v19594_v41, %v8216_v21  ;;  %v14665_v3 = vcombine.low %v8216_v21, %v19587_v39 }
 0x640   :  { %v14655_v33 = vcombine.low %v19566_v9, %v8293_v11  ;;  %v8303_v52 = vrot.slane %v8295_v26, %v17791_v14  ;;  %v8310_v40 = vrot.slane %v8296_v49, %v17791_v14  ;;  %v8107_v28 = vld [vmem:[#allocation4 + $0x30] sm:$0xff]  ;;  %v8447_v62 = vrot.slane %v14661_v45, %v17791_v14 }
 0x641   :  { %v8136_v16 = vcombine.high %v8107_v28, %v8107_v28  ;;  %v8139_v30 = vrot.slane %v8107_v28, 1  ;;  %v8143_v35 = vrot.slane %v8107_v28, 2  ;;  %v8418_v6 = vrot.slane %v14658_v1, %v17791_v14 }
 0x642   :  { %v8389_v32 = vrot.slane %v14655_v33, %v17791_v14  ;;  %v14656_v9 = vcombine.low %v8276_v10, %v8303_v52  ;;  %v14659_v7 = vcombine.low %v8286_v0, %v8310_v40  ;;  %v8483_v0 = vrot.slane %v14665_v3, %v17791_v14  ;;  %v16344_v3 = vld [vmem:[%s20595_s7 + $0x130] ss:$8 sps:$4 sm:$0xff]  }
 0x643   :  { %v8312_v48 = vcombine.low %v8107_v28, %v8136_v16  ;;  %v8140_v58 = vrot.slane %v8136_v16, 1  ;;  %v8144_v37 = vrot.slane %v8136_v16, 2  ;;  %v8454_v2 = vrot.slane %v14662_v18, %v17791_v14  ;;  %v16346_v28 = vld [vmem:[%s20595_s7 + $0x134] ss:$8 sps:$4 sm:$0xff]  }
 0x644   :  { %v8397_v43 = vcombine.low %v8375_v55, %v8389_v32  ;;  %v8398_v56 = vcombine.high %v8375_v55, %v8389_v32  ;;  %v8396_v54 = vrot.slane %v14656_v9, %v17791_v14  ;;  %v8425_v41 = vrot.slane %v14659_v7, %v17791_v14  ;;  %v16349_v7 = vld [vmem:[%s20595_s7 + $0x144] ss:$8 sps:$4 sm:$0xff]  }
 0x645   :  { %v8320_v39 = vrot.slane %v8312_v48, %v17791_v14  ;;  %v8313_v5 = vcombine.low %v8139_v30, %v8140_v58  ;;  %v8329_v24 = vcombine.low %v8143_v35, %v8144_v37  ;;  %v16352_v30 = vld [vmem:[%s20595_s7 + $0x154] ss:$8 sps:$4 sm:$0xff]   ;;  %v16350_v48 = vld [vmem:[%s20595_s7 + $0x150] ss:$8 sps:$4 sm:$0xff]   ;;  %v16355_v58 = vld [vmem:[%s20595_s7 + $0x164] ss:$8 sps:$4 sm:$0xff]  }
 0x646   :  { %v8545_v51 = vpack.c.bf16 %v8397_v43, %v8397_v43  ;;  %v8546_v10 = vpack.c.bf16 %v8398_v56, %v8398_v56  ;;  %v8400_v50 = vcombine.high %v8382_v42, %v8396_v54  ;;  %v19654_v47 = vcombine.low %v8382_v42, %v8396_v54  ;;  %v16353_v35 = vld [vmem:[%s20595_s7 + $0x160] ss:$8 sps:$4 sm:$0xff]   ;;  %v16358_v37 = vld [vmem:[%s20595_s7 + $0x174] ss:$8 sps:$4 sm:$0xff]   ;;  %v16356_v43 = vld [vmem:[%s20595_s7 + $0x170] ss:$8 sps:$4 sm:$0xff]  }
 0x647   :  { %v19659_v12 = vcombine.high %v8411_v17, %v8425_v41  ;;  %v19661_v15 = vcombine.low %v8411_v17, %v8425_v41  ;;  %v14660_v22 = vcombine.low %v8293_v11, %v8320_v39  ;;  %v8327_v23 = vrot.slane %v8313_v5, %v17791_v14  ;;  %v16361_v56 = vld [vmem:[%s20595_s7 + $0x184] ss:$8 sps:$4 sm:$0xff]   ;;  %v16359_v54 = vld [vmem:[%s20595_s7 + $0x180] ss:$8 sps:$4 sm:$0xff]   ;;  %v16364_v41 = vld [vmem:[%s20595_s7 + $0x194] ss:$8 sps:$4 sm:$0xff]  }
 0x648   :  { %10335 = vmatprep.mubr.bf16.mxu0 %v8546_v10  ;;  %v8548_v29 = vpack.c.bf16 %v8400_v50, %v8400_v50  ;;  %v8336_v20 = vrot.slane %v8329_v24, %v17791_v14  ;;  %v14667_v61 = vcombine.low %v8320_v39, %v8348_v19  ;;  %v16362_v39 = vld [vmem:[%s20595_s7 + $0x190] ss:$8 sps:$4 sm:$0xff]   ;;  %v16365_v5 = vld [vmem:[%s20595_s7 + $0x1a0] ss:$8 sps:$4 sm:$0xff]   ;;  %v16370_v24 = vld [vmem:[%s20595_s7 + $0x1b4] ss:$8 sps:$4 sm:$0xff]  }
 0x649   :  { %10336 = vmatmul.mubr.bf16.vlgmr.msra.gmra.mrb[112].mxu0 %v8545_v51  ;;  %v8432_v27 = vrot.slane %v14660_v22, %v17791_v14  ;;  %v14663_v44 = vcombine.low %v8303_v52, %v8327_v23  ;;  %v14668_v8 = vcombine.low %v8327_v23, %v8355_v53  ;;  %v8490_v52 = vrot.slane %v19625_v13, %v17791_v14  ;;  %v16368_v51 = vld [vmem:[%s20595_s7 + $0x1b0] ss:$8 sps:$4 sm:$0xff]   ;;  %v16373_v10 = vld [vmem:[%s20595_s7 + $0x1c4] ss:$8 sps:$4 sm:$0xff]   ;;  %v16376_v50 = vld [vmem:[%s20595_s7 + $0x1d4] ss:$8 sps:$4 sm:$0xff]  }
 0x64a   :  { %10345 = vmatpush1.bf16.msra.mxu0 %v16335_v57  ;;  %10376 = vmatprep.mubr.bf16.mxu0 %v8548_v29  ;;  %v14664_v59 = vcombine.low %v8310_v40, %v8336_v20  ;;  %v8497_v34 = vrot.slane %v14667_v61, %v17791_v14  ;;  %v8510_v11 = vcombine.low %v8336_v20, %v8364_v63  ;;  %v16341_v63 = vld [vmem:[%s20595_s7 + $0x120] ss:$8 sps:$4 sm:$0xff]   ;;  %v16379_v22 = vld [vmem:[%s20595_s7 + $0x1e4] ss:$8 sps:$4 sm:$0xff]   ;;  %v16382_v29 = vld [vmem:[%s20595_s7 + $0x1f4] ss:$8 sps:$4 sm:$0xff]  }
 0x64b   :  { %10346 = vmatprep.subr.bf16.mxu0 %v16340_v4  ;;  %v19676_v21 = vcombine.high %v8418_v6, %v8432_v27  ;;  %v19678_v45 = vcombine.low %v8418_v6, %v8432_v27  ;;  %v8461_v18 = vrot.slane %v14663_v44, %v17791_v14  ;;  %v8504_v55 = vrot.slane %v14668_v8, %v17791_v14  ;;  %v16367_v6 = vld [vmem:[%s20595_s7 + $0x1a4] ss:$8 sps:$4 sm:$0xff]   ;;  %v16371_v57 = vld [vmem:[%s20595_s7 + $0x1c0] ss:$8 sps:$4 sm:$0xff]   ;;  %v16374_v4 = vld [vmem:[%s20595_s7 + $0x1d0] ss:$8 sps:$4 sm:$0xff]  }
 0x64c   :  { %v8468_v26 = vrot.slane %v14664_v59, %v17791_v14  ;;  %v19682_v49 = vcombine.high %v8483_v0, %v8497_v34  ;;  %v19684_v19 = vcombine.low %v8483_v0, %v8497_v34  ;;  %v8517_v13 = vrot.slane %v19634_v31, %v17791_v14  ;;  %v16347_v31 = vld [vmem:[%s20595_s7 + $0x140] ss:$8 sps:$4 sm:$0xff]   ;;  %v16380_v20 = vld [vmem:[%s20595_s7 + $0x1f0] ss:$8 sps:$4 sm:$0xff]   ;;  %v16385_v61 = vld [vmem:[%s20595_s7 + $0x204] ss:$8 sps:$4 sm:$0xff]  }
 0x64d   :  { %v19687_v53 = vcombine.high %v8447_v62, %v8461_v18  ;;  %v19689_v33 = vcombine.low %v8447_v62, %v8461_v18  ;;  %v19703_v17 = vcombine.high %v8490_v52, %v8504_v55  ;;  %v19705_v16 = vcombine.low %v8490_v52, %v8504_v55  ;;  %v16377_v23 = vld [vmem:[%s20595_s7 + $0x1e0] ss:$8 sps:$4 sm:$0xff]   ;;  %v16388_v44 = vld [vmem:[%s20595_s7 + $0x214] ss:$8 sps:$4 sm:$0xff]   ;;  %v16392_v59 = vld [vmem:[%s20595_s7 + $0x230] ss:$8 sps:$4 sm:$0xff]  }
 0x64e   :  { %10347 = vmatpush1.bf16.msra.mxu0 %v16338_v38  ;;  %v19696_v42 = vcombine.high %v8454_v2, %v8468_v26  ;;  %v19698_v40 = vcombine.low %v8454_v2, %v8468_v26  ;;  %v8524_v1 = vrot.slane %v8510_v11, %v17791_v14  ;;  %v16383_v0 = vld [vmem:[%s20595_s7 + $0x200] ss:$8 sps:$4 sm:$0xff]   ;;  %v8547_v27 = vpack.c.bf16 %v19654_v47, %v19654_v47  ;;  %v16386_v2 = vld [vmem:[%s20595_s7 + $0x210] ss:$8 sps:$4 sm:$0xff]   ;;  %v16391_v47 = vld [vmem:[%s20595_s7 + $0x224] ss:$8 sps:$4 sm:$0xff]  }
 0x64f   :  { %10348 = vmatprep.subr.bf16.mxu0 %v16343_v60  ;;  %v8550_v62 = vpack.c.bf16 %v19659_v12, %v19659_v12  ;;  %v16389_v38 = vld [vmem:[%s20595_s7 + $0x220] ss:$8 sps:$4 sm:$0xff]   ;;  %v16394_v12 = vld [vmem:[%s20595_s7 + $0x234] ss:$8 sps:$4 sm:$0xff]   ;;  %v16397_v34 = vld [vmem:[%s20595_s7 + $0x244] ss:$8 sps:$4 sm:$0xff]  }
 0x650   :  { %v19713_v32 = vcombine.high %v8517_v13, %v8524_v1  ;;  %v19715_v9 = vcombine.low %v8517_v13, %v8524_v1  ;;  %v16395_v8 = vld [vmem:[%s20595_s7 + $0x240] ss:$8 sps:$4 sm:$0xff]   ;;  %v16400_v60 = vld [vmem:[%s20595_s7 + $0x254] ss:$8 sps:$4 sm:$0xff]   ;;  %v16398_v18 = vld [vmem:[%s20595_s7 + $0x250] ss:$8 sps:$4 sm:$0xff]  }
 0x651   :  { %v16403_v11 = vld [vmem:[%s20595_s7 + $0x264] ss:$8 sps:$4 sm:$0xff]   ;;  %v16401_v26 = vld [vmem:[%s20595_s7 + $0x260] ss:$8 sps:$4 sm:$0xff]   ;;  %v16406_v55 = vld [vmem:[%s20595_s7 + $0x274] ss:$8 sps:$4 sm:$0xff]  }
 0x652   :  { %10349 = vmatpush1.bf16.msra.mxu0 %v16341_v63  ;;  %v16404_v52 = vld [vmem:[%s20595_s7 + $0x270] ss:$8 sps:$4 sm:$0xff]   ;;  %v16409_v63 = vld [vmem:[%s20595_s7 + $0x284] ss:$8 sps:$4 sm:$0xff]   ;;  %v16412_v13 = vld [vmem:[%s20595_s7 + $0x294] ss:$8 sps:$4 sm:$0xff]  }
 0x653   :  { %10350 = vmatprep.subr.bf16.mxu0 %v16346_v28  ;;  %v16407_v28 = vld [vmem:[%s20595_s7 + $0x280] ss:$8 sps:$4 sm:$0xff]   ;;  %v16410_v1 = vld [vmem:[%s20595_s7 + $0x290] ss:$8 sps:$4 sm:$0xff]  }
 0x656   :  { %10351 = vmatpush1.bf16.msra.mxu0 %v16344_v3  ;;  %v16415_v3 = vld [vmem:[%s20595_s7 + $0x2a4] ss:$8 sps:$4 sm:$0xff]  }
 0x657   :  { %10352 = vmatprep.subr.bf16.mxu0 %v16349_v7  ;;  %v16413_v7 = vld [vmem:[%s20595_s7 + $0x2a0] ss:$8 sps:$4 sm:$0xff]  }
 0x65a   :  { %10353 = vmatpush1.bf16.msra.mxu0 %v16347_v31  ;;  %v16418_v31 = vld [vmem:[%s20595_s7 + $0x2b4] ss:$8 sps:$4 sm:$0xff]  }
 0x65b   :  { %10354 = vmatprep.subr.bf16.mxu0 %v16352_v30  ;;  %v16416_v30 = vld [vmem:[%s20595_s7 + $0x2b0] ss:$8 sps:$4 sm:$0xff]  }
 0x65e   :  { %10355 = vmatpush1.bf16.msra.mxu0 %v16350_v48  ;;  %v16421_v48 = vld [vmem:[%s20595_s7 + $0x2c4] ss:$8 sps:$4 sm:$0xff]  }
 0x65f   :  { %10356 = vmatprep.subr.bf16.mxu0 %v16355_v58  ;;  %v16419_v58 = vld [vmem:[%s20595_s7 + $0x2c0] ss:$8 sps:$4 sm:$0xff]  }
 0x662   :  { %10357 = vmatpush1.bf16.msra.mxu0 %v16353_v35  ;;  %v16424_v35 = vld [vmem:[%s20595_s7 + $0x2d4] ss:$8 sps:$4 sm:$0xff]  }
 0x663   :  { %10358 = vmatprep.subr.bf16.mxu0 %v16358_v37  ;;  %v16422_v37 = vld [vmem:[%s20595_s7 + $0x2d0] ss:$8 sps:$4 sm:$0xff]  }
 0x666   :  { %10359 = vmatpush1.bf16.msra.mxu0 %v16356_v43  ;;  %v16427_v43 = vld [vmem:[%s20595_s7 + $0x2e4] ss:$8 sps:$4 sm:$0xff]  }
 0x667   :  { %10360 = vmatprep.subr.bf16.mxu0 %v16361_v56  ;;  %v16425_v56 = vld [vmem:[%s20595_s7 + $0x2e0] ss:$8 sps:$4 sm:$0xff]  }
 0x66a   :  { %10361 = vmatpush1.bf16.msra.mxu0 %v16359_v54  ;;  %v16430_v54 = vld [vmem:[%s20595_s7 + $0x2f4] ss:$8 sps:$4 sm:$0xff]  }
 0x66b   :  { %10362 = vmatprep.subr.bf16.mxu0 %v16364_v41  ;;  %v16428_v41 = vld [vmem:[%s20595_s7 + $0x2f0] ss:$8 sps:$4 sm:$0xff]  }
 0x66e   :  { %10363 = vmatpush1.bf16.msra.mxu0 %v16362_v39  ;;  %v16433_v39 = vld [vmem:[%s20595_s7 + $0x304] ss:$8 sps:$4 sm:$0xff]  }
 0x66f   :  { %10364 = vmatprep.subr.bf16.mxu0 %v16367_v6  ;;  %v16431_v6 = vld [vmem:[%s20595_s7 + $0x300] ss:$8 sps:$4 sm:$0xff]  }
 0x672   :  { %10365 = vmatpush1.bf16.msra.mxu0 %v16365_v5  ;;  %v8549_v5 = vpack.c.bf16 %v19661_v15, %v19661_v15  ;;  %v16441_v15 = vld [vmem:[%s20595_s7 + $0x324] ss:$8 sps:$4 sm:$0xff]  }
 0x673   :  { %10366 = vmatprep.subr.bf16.mxu0 %v16370_v24  ;;  %v16438_v24 = vld [vmem:[%s20595_s7 + $0x314] ss:$8 sps:$4 sm:$0xff]  }
 0x676   :  { %10367 = vmatpush1.bf16.msra.mxu0 %v16368_v51  ;;  %v8552_v51 = vpack.c.bf16 %v19676_v21, %v19676_v21  ;;  %v16444_v21 = vld [vmem:[%s20595_s7 + $0x334] ss:$8 sps:$4 sm:$0xff]  }
 0x677   :  { %10368 = vmatprep.subr.bf16.mxu0 %v16373_v10  ;;  %v16436_v10 = vld [vmem:[%s20595_s7 + $0x310] ss:$8 sps:$4 sm:$0xff]  }
 0x67a   :  { %10369 = vmatpush1.bf16.msra.mxu0 %v16371_v57  ;;  %v16439_v57 = vld [vmem:[%s20595_s7 + $0x320] ss:$8 sps:$4 sm:$0xff]  }
 0x67b   :  { %10370 = vmatprep.subr.bf16.mxu0 %v16376_v50  ;;  %v16442_v50 = vld [vmem:[%s20595_s7 + $0x330] ss:$8 sps:$4 sm:$0xff]  }
 0x67e   :  { %10371 = vmatpush1.bf16.msra.mxu0 %v16374_v4  ;;  %v16447_v4 = vld [vmem:[%s20595_s7 + $0x344] ss:$8 sps:$4 sm:$0xff]  }
 0x67f   :  { %10372 = vmatprep.subr.bf16.mxu0 %v16379_v22  ;;  %v16445_v22 = vld [vmem:[%s20595_s7 + $0x340] ss:$8 sps:$4 sm:$0xff]  }
 0x682   :  { %10373 = vmatpush1.bf16.msra.mxu0 %v16377_v23  ;;  %v16450_v23 = vld [vmem:[%s20595_s7 + $0x354] ss:$8 sps:$4 sm:$0xff]  }
 0x683   :  { %10374 = vmatprep.subr.bf16.mxu0 %v16382_v29  ;;  %v16448_v29 = vld [vmem:[%s20595_s7 + $0x350] ss:$8 sps:$4 sm:$0xff]  }
 0x686   :  { %10375 = vmatpush1.bf16.msra.mxu0 %v16380_v20  ;;  %v16453_v20 = vld [vmem:[%s20595_s7 + $0x364] ss:$8 sps:$4 sm:$0xff]  }
 0x687   :  { %10385 = vmatprep.subr.bf16.mxu0 %v16385_v61  ;;  %v16451_v61 = vld [vmem:[%s20595_s7 + $0x360] ss:$8 sps:$4 sm:$0xff]  }
 0x689   :  { %10377 = vmatmul.mubr.bf16.vlgmr.msra.gmra.mrb[112].mxu0 %v8547_v27  ;;  %v16454_v27 = vld [vmem:[%s20595_s7 + $0x370] ss:$8 sps:$4 sm:$0xff]  }
 0x68a   :  { %10386 = vmatpush1.bf16.msra.mxu0 %v16383_v0  ;;  %10417 = vmatprep.mubr.bf16.mxu0 %v8550_v62  ;;  %v16456_v0 = vld [vmem:[%s20595_s7 + $0x374] ss:$8 sps:$4 sm:$0xff]   ;;  %v16457_v62 = vld [vmem:[%s20595_s7 + $0x380] ss:$8 sps:$4 sm:$0xff]  }
 0x68b   :  { %10387 = vmatprep.subr.bf16.mxu0 %v16388_v44  ;;  %v16459_v44 = vld [vmem:[%s20595_s7 + $0x384] ss:$8 sps:$4 sm:$0xff]  }
 0x68e   :  { %10388 = vmatpush1.bf16.msra.mxu0 %v16386_v2  ;;  %v16462_v2 = vld [vmem:[%s20595_s7 + $0x394] ss:$8 sps:$4 sm:$0xff]  }
 0x68f   :  { %10389 = vmatprep.subr.bf16.mxu0 %v16391_v47  ;;  %v16460_v47 = vld [vmem:[%s20595_s7 + $0x390] ss:$8 sps:$4 sm:$0xff]  }
 0x692   :  { %10390 = vmatpush1.bf16.msra.mxu0 %v16389_v38  ;;  %v16465_v38 = vld [vmem:[%s20595_s7 + $0x3a4] ss:$8 sps:$4 sm:$0xff]  }
 0x693   :  { %10391 = vmatprep.subr.bf16.mxu0 %v16394_v12  ;;  %v16463_v12 = vld [vmem:[%s20595_s7 + $0x3a0] ss:$8 sps:$4 sm:$0xff]  }
 0x696   :  { %10392 = vmatpush1.bf16.msra.mxu0 %v16392_v59  ;;  %v16468_v59 = vld [vmem:[%s20595_s7 + $0x3b4] ss:$8 sps:$4 sm:$0xff]  }
 0x697   :  { %10393 = vmatprep.subr.bf16.mxu0 %v16397_v34  ;;  %v16466_v34 = vld [vmem:[%s20595_s7 + $0x3b0] ss:$8 sps:$4 sm:$0xff]  }
 0x69a   :  { %10394 = vmatpush1.bf16.msra.mxu0 %v16395_v8  ;;  %v16471_v8 = vld [vmem:[%s20595_s7 + $0x3c4] ss:$8 sps:$4 sm:$0xff]  }
 0x69b   :  { %10395 = vmatprep.subr.bf16.mxu0 %v16400_v60  ;;  %v16469_v60 = vld [vmem:[%s20595_s7 + $0x3c0] ss:$8 sps:$4 sm:$0xff]  }
 0x69e   :  { %10396 = vmatpush1.bf16.msra.mxu0 %v16398_v18  ;;  %v16474_v18 = vld [vmem:[%s20595_s7 + $0x3d4] ss:$8 sps:$4 sm:$0xff]  }
 0x69f   :  { %10397 = vmatprep.subr.bf16.mxu0 %v16403_v11  ;;  %v16472_v11 = vld [vmem:[%s20595_s7 + $0x3d0] ss:$8 sps:$4 sm:$0xff]  }
 0x6a2   :  { %10398 = vmatpush1.bf16.msra.mxu0 %v16401_v26  ;;  %v16477_v26 = vld [vmem:[%s20595_s7 + $0x3e4] ss:$8 sps:$4 sm:$0xff]  }
 0x6a3   :  { %10399 = vmatprep.subr.bf16.mxu0 %v16406_v55  ;;  %v16475_v55 = vld [vmem:[%s20595_s7 + $0x3e0] ss:$8 sps:$4 sm:$0xff]  }
 0x6a6   :  { %10400 = vmatpush1.bf16.msra.mxu0 %v16404_v52  ;;  %v16480_v52 = vld [vmem:[%s20595_s7 + $0x3f4] ss:$8 sps:$4 sm:$0xff]  }
 0x6a7   :  { %10401 = vmatprep.subr.bf16.mxu0 %v16409_v63  ;;  %v16478_v63 = vld [vmem:[%s20595_s7 + $0x3f0] ss:$8 sps:$4 sm:$0xff]  }
 0x6aa   :  { %10402 = vmatpush1.bf16.msra.mxu0 %v16407_v28  ;;  %v16483_v28 = vld [vmem:[%s20595_s7 + $0x404] ss:$8 sps:$4 sm:$0xff]  }
 0x6ab   :  { %10403 = vmatprep.subr.bf16.mxu0 %v16412_v13  ;;  %v16481_v13 = vld [vmem:[%s20595_s7 + $0x400] ss:$8 sps:$4 sm:$0xff]  }
 0x6ae   :  { %10404 = vmatpush1.bf16.msra.mxu0 %v16410_v1  ;;  %v8551_v1 = vpack.c.bf16 %v19678_v45, %v19678_v45  ;;  %v16489_v45 = vld [vmem:[%s20595_s7 + $0x424] ss:$8 sps:$4 sm:$0xff]  }
 0x6af   :  { %10405 = vmatprep.subr.bf16.mxu0 %v16415_v3  ;;  %v16486_v3 = vld [vmem:[%s20595_s7 + $0x414] ss:$8 sps:$4 sm:$0xff]  }
 0x6b2   :  { %10406 = vmatpush1.bf16.msra.mxu0 %v16413_v7  ;;  %v8554_v7 = vpack.c.bf16 %v19687_v53, %v19687_v53  ;;  %v16492_v53 = vld [vmem:[%s20595_s7 + $0x434] ss:$8 sps:$4 sm:$0xff]  }
 0x6b3   :  { %10407 = vmatprep.subr.bf16.mxu0 %v16418_v31  ;;  %v16484_v31 = vld [vmem:[%s20595_s7 + $0x410] ss:$8 sps:$4 sm:$0xff]  }
 0x6b6   :  { %10408 = vmatpush1.bf16.msra.mxu0 %v16416_v30  ;;  %v16487_v30 = vld [vmem:[%s20595_s7 + $0x420] ss:$8 sps:$4 sm:$0xff]  }
 0x6b7   :  { %10409 = vmatprep.subr.bf16.mxu0 %v16421_v48  ;;  %v16490_v48 = vld [vmem:[%s20595_s7 + $0x430] ss:$8 sps:$4 sm:$0xff]  }
 0x6ba   :  { %10410 = vmatpush1.bf16.msra.mxu0 %v16419_v58  ;;  %v16495_v58 = vld [vmem:[%s20595_s7 + $0x444] ss:$8 sps:$4 sm:$0xff]  }
 0x6bb   :  { %10411 = vmatprep.subr.bf16.mxu0 %v16424_v35  ;;  %v16493_v35 = vld [vmem:[%s20595_s7 + $0x440] ss:$8 sps:$4 sm:$0xff]  }
 0x6be   :  { %10412 = vmatpush1.bf16.msra.mxu0 %v16422_v37  ;;  %v16498_v37 = vld [vmem:[%s20595_s7 + $0x454] ss:$8 sps:$4 sm:$0xff]  }
 0x6bf   :  { %10413 = vmatprep.subr.bf16.mxu0 %v16427_v43  ;;  %v16496_v43 = vld [vmem:[%s20595_s7 + $0x450] ss:$8 sps:$4 sm:$0xff]  }
 0x6c2   :  { %10414 = vmatpush1.bf16.msra.mxu0 %v16425_v56  ;;  %v16501_v56 = vld [vmem:[%s20595_s7 + $0x464] ss:$8 sps:$4 sm:$0xff]  }
 0x6c3   :  { %10415 = vmatprep.subr.bf16.mxu0 %v16430_v54  ;;  %v16499_v54 = vld [vmem:[%s20595_s7 + $0x460] ss:$8 sps:$4 sm:$0xff]  }
 0x6c6   :  { %10416 = vmatpush1.bf16.msra.mxu0 %v16428_v41  ;;  %v16504_v41 = vld [vmem:[%s20595_s7 + $0x474] ss:$8 sps:$4 sm:$0xff]  }
 0x6c7   :  { %10426 = vmatprep.subr.bf16.mxu0 %v16433_v39  ;;  %v16502_v39 = vld [vmem:[%s20595_s7 + $0x470] ss:$8 sps:$4 sm:$0xff]  }
 0x6c9   :  { %10418 = vmatmul.mubr.bf16.vlgmr.msra.gmra.mrb[112].mxu0 %v8549_v5  ;;  %v16505_v5 = vld [vmem:[%s20595_s7 + $0x480] ss:$8 sps:$4 sm:$0xff]  }
 0x6ca   :  { %10427 = vmatpush1.bf16.msra.mxu0 %v16431_v6  ;;  %10458 = vmatprep.mubr.bf16.mxu0 %v8552_v51  ;;  %v16507_v6 = vld [vmem:[%s20595_s7 + $0x484] ss:$8 sps:$4 sm:$0xff]   ;;  %v16508_v51 = vld [vmem:[%s20595_s7 + $0x490] ss:$8 sps:$4 sm:$0xff]  }
 0x6cb   :  { %10428 = vmatprep.subr.bf16.mxu0 %v16438_v24  ;;  %v16510_v24 = vld [vmem:[%s20595_s7 + $0x494] ss:$8 sps:$4 sm:$0xff]  }
 0x6ce   :  { %10429 = vmatpush1.bf16.msra.mxu0 %v16436_v10  ;;  %v16513_v10 = vld [vmem:[%s20595_s7 + $0x4a4] ss:$8 sps:$4 sm:$0xff]  }
 0x6cf   :  { %10430 = vmatprep.subr.bf16.mxu0 %v16441_v15  ;;  %v16511_v15 = vld [vmem:[%s20595_s7 + $0x4a0] ss:$8 sps:$4 sm:$0xff]  }
 0x6d2   :  { %10431 = vmatpush1.bf16.msra.mxu0 %v16439_v57  ;;  %v16516_v57 = vld [vmem:[%s20595_s7 + $0x4b4] ss:$8 sps:$4 sm:$0xff]  }
 0x6d3   :  { %10432 = vmatprep.subr.bf16.mxu0 %v16444_v21  ;;  %v16514_v21 = vld [vmem:[%s20595_s7 + $0x4b0] ss:$8 sps:$4 sm:$0xff]  }
 0x6d6   :  { %10433 = vmatpush1.bf16.msra.mxu0 %v16442_v50  ;;  %v16519_v50 = vld [vmem:[%s20595_s7 + $0x4c4] ss:$8 sps:$4 sm:$0xff]  }
 0x6d7   :  { %10434 = vmatprep.subr.bf16.mxu0 %v16447_v4  ;;  %v16517_v4 = vld [vmem:[%s20595_s7 + $0x4c0] ss:$8 sps:$4 sm:$0xff]  }
 0x6da   :  { %10435 = vmatpush1.bf16.msra.mxu0 %v16445_v22  ;;  %v16522_v22 = vld [vmem:[%s20595_s7 + $0x4d4] ss:$8 sps:$4 sm:$0xff]  }
 0x6db   :  { %10436 = vmatprep.subr.bf16.mxu0 %v16450_v23  ;;  %v16520_v23 = vld [vmem:[%s20595_s7 + $0x4d0] ss:$8 sps:$4 sm:$0xff]  }
 0x6de   :  { %10437 = vmatpush1.bf16.msra.mxu0 %v16448_v29  ;;  %v16525_v29 = vld [vmem:[%s20595_s7 + $0x4e4] ss:$8 sps:$4 sm:$0xff]  }
 0x6df   :  { %10438 = vmatprep.subr.bf16.mxu0 %v16453_v20  ;;  %v16523_v20 = vld [vmem:[%s20595_s7 + $0x4e0] ss:$8 sps:$4 sm:$0xff]  }
 0x6e2   :  { %10439 = vmatpush1.bf16.msra.mxu0 %v16451_v61  ;;  %v16528_v61 = vld [vmem:[%s20595_s7 + $0x4f4] ss:$8 sps:$4 sm:$0xff]  }
 0x6e3   :  { %10440 = vmatprep.subr.bf16.mxu0 %v16456_v0  ;;  %v16526_v0 = vld [vmem:[%s20595_s7 + $0x4f0] ss:$8 sps:$4 sm:$0xff]  }
 0x6e6   :  { %10441 = vmatpush1.bf16.msra.mxu0 %v16454_v27  ;;  %v16531_v27 = vld [vmem:[%s20595_s7 + $0x504] ss:$8 sps:$4 sm:$0xff]  }
 0x6e7   :  { %10442 = vmatprep.subr.bf16.mxu0 %v16459_v44  ;;  %v16529_v44 = vld [vmem:[%s20595_s7 + $0x500] ss:$8 sps:$4 sm:$0xff]  }
 0x6ea   :  { %10443 = vmatpush1.bf16.msra.mxu0 %v16457_v62  ;;  %v8553_v62 = vpack.c.bf16 %v19689_v33, %v19689_v33  ;;  %v16537_v33 = vld [vmem:[%s20595_s7 + $0x524] ss:$8 sps:$4 sm:$0xff]  }
 0x6eb   :  { %10444 = vmatprep.subr.bf16.mxu0 %v16462_v2  ;;  %v16534_v2 = vld [vmem:[%s20595_s7 + $0x514] ss:$8 sps:$4 sm:$0xff]  }
 0x6ee   :  { %10445 = vmatpush1.bf16.msra.mxu0 %v16460_v47  ;;  %v8556_v47 = vpack.c.bf16 %v19696_v42, %v19696_v42  ;;  %v16540_v42 = vld [vmem:[%s20595_s7 + $0x534] ss:$8 sps:$4 sm:$0xff]  }
 0x6ef   :  { %10446 = vmatprep.subr.bf16.mxu0 %v16465_v38  ;;  %v16532_v38 = vld [vmem:[%s20595_s7 + $0x510] ss:$8 sps:$4 sm:$0xff]  }
 0x6f2   :  { %10447 = vmatpush1.bf16.msra.mxu0 %v16463_v12  ;;  %v16535_v12 = vld [vmem:[%s20595_s7 + $0x520] ss:$8 sps:$4 sm:$0xff]  }
 0x6f3   :  { %10448 = vmatprep.subr.bf16.mxu0 %v16468_v59  ;;  %v16538_v59 = vld [vmem:[%s20595_s7 + $0x530] ss:$8 sps:$4 sm:$0xff]  }
 0x6f6   :  { %10449 = vmatpush1.bf16.msra.mxu0 %v16466_v34  ;;  %v16543_v34 = vld [vmem:[%s20595_s7 + $0x544] ss:$8 sps:$4 sm:$0xff]  }
 0x6f7   :  { %10450 = vmatprep.subr.bf16.mxu0 %v16471_v8  ;;  %v16541_v8 = vld [vmem:[%s20595_s7 + $0x540] ss:$8 sps:$4 sm:$0xff]  }
 0x6fa   :  { %10451 = vmatpush1.bf16.msra.mxu0 %v16469_v60  ;;  %v16546_v60 = vld [vmem:[%s20595_s7 + $0x554] ss:$8 sps:$4 sm:$0xff]  }
 0x6fb   :  { %10452 = vmatprep.subr.bf16.mxu0 %v16474_v18  ;;  %v16544_v18 = vld [vmem:[%s20595_s7 + $0x550] ss:$8 sps:$4 sm:$0xff]  }
 0x6fe   :  { %10453 = vmatpush1.bf16.msra.mxu0 %v16472_v11  ;;  %v16549_v11 = vld [vmem:[%s20595_s7 + $0x564] ss:$8 sps:$4 sm:$0xff]  }
 0x6ff   :  { %10454 = vmatprep.subr.bf16.mxu0 %v16477_v26  ;;  %v16547_v26 = vld [vmem:[%s20595_s7 + $0x560] ss:$8 sps:$4 sm:$0xff]  }
 0x702   :  { %10455 = vmatpush1.bf16.msra.mxu0 %v16475_v55  ;;  %v16552_v55 = vld [vmem:[%s20595_s7 + $0x574] ss:$8 sps:$4 sm:$0xff]  }
 0x703   :  { %10456 = vmatprep.subr.bf16.mxu0 %v16480_v52  ;;  %v16550_v52 = vld [vmem:[%s20595_s7 + $0x570] ss:$8 sps:$4 sm:$0xff]  }
 0x706   :  { %10457 = vmatpush1.bf16.msra.mxu0 %v16478_v63  ;;  %v16555_v63 = vld [vmem:[%s20595_s7 + $0x584] ss:$8 sps:$4 sm:$0xff]  }
 0x707   :  { %10467 = vmatprep.subr.bf16.mxu0 %v16483_v28  ;;  %v16553_v28 = vld [vmem:[%s20595_s7 + $0x580] ss:$8 sps:$4 sm:$0xff]  }
 0x709   :  { %10459 = vmatmul.mubr.bf16.vlgmr.msra.gmra.mrb[112].mxu0 %v8551_v1  ;;  %v16556_v1 = vld [vmem:[%s20595_s7 + $0x590] ss:$8 sps:$4 sm:$0xff]  }
 0x70a   :  { %10468 = vmatpush1.bf16.msra.mxu0 %v16481_v13  ;;  %10499 = vmatprep.mubr.bf16.mxu0 %v8554_v7  ;;  %v16558_v13 = vld [vmem:[%s20595_s7 + $0x594] ss:$8 sps:$4 sm:$0xff]   ;;  %v16559_v7 = vld [vmem:[%s20595_s7 + $0x5a0] ss:$8 sps:$4 sm:$0xff]  }
 0x70b   :  { %10469 = vmatprep.subr.bf16.mxu0 %v16486_v3  ;;  %v16561_v3 = vld [vmem:[%s20595_s7 + $0x5a4] ss:$8 sps:$4 sm:$0xff]  }
 0x70e   :  { %10470 = vmatpush1.bf16.msra.mxu0 %v16484_v31  ;;  %v16564_v31 = vld [vmem:[%s20595_s7 + $0x5b4] ss:$8 sps:$4 sm:$0xff]  }
 0x70f   :  { %10471 = vmatprep.subr.bf16.mxu0 %v16489_v45  ;;  %v16562_v45 = vld [vmem:[%s20595_s7 + $0x5b0] ss:$8 sps:$4 sm:$0xff]  }
 0x712   :  { %10472 = vmatpush1.bf16.msra.mxu0 %v16487_v30  ;;  %v16567_v30 = vld [vmem:[%s20595_s7 + $0x5c4] ss:$8 sps:$4 sm:$0xff]  }
 0x713   :  { %10473 = vmatprep.subr.bf16.mxu0 %v16492_v53  ;;  %v16565_v53 = vld [vmem:[%s20595_s7 + $0x5c0] ss:$8 sps:$4 sm:$0xff]  }
 0x716   :  { %10474 = vmatpush1.bf16.msra.mxu0 %v16490_v48  ;;  %v16570_v48 = vld [vmem:[%s20595_s7 + $0x5d4] ss:$8 sps:$4 sm:$0xff]  }
 0x717   :  { %10475 = vmatprep.subr.bf16.mxu0 %v16495_v58  ;;  %v16568_v58 = vld [vmem:[%s20595_s7 + $0x5d0] ss:$8 sps:$4 sm:$0xff]  }
 0x71a   :  { %10476 = vmatpush1.bf16.msra.mxu0 %v16493_v35  ;;  %v16573_v35 = vld [vmem:[%s20595_s7 + $0x5e4] ss:$8 sps:$4 sm:$0xff]  }
 0x71b   :  { %10477 = vmatprep.subr.bf16.mxu0 %v16498_v37  ;;  %v16571_v37 = vld [vmem:[%s20595_s7 + $0x5e0] ss:$8 sps:$4 sm:$0xff]  }
 0x71e   :  { %10478 = vmatpush1.bf16.msra.mxu0 %v16496_v43  ;;  %v16576_v43 = vld [vmem:[%s20595_s7 + $0x5f4] ss:$8 sps:$4 sm:$0xff]  }
 0x71f   :  { %10479 = vmatprep.subr.bf16.mxu0 %v16501_v56  ;;  %v16574_v56 = vld [vmem:[%s20595_s7 + $0x5f0] ss:$8 sps:$4 sm:$0xff]  }
 0x722   :  { %10480 = vmatpush1.bf16.msra.mxu0 %v16499_v54  ;;  %v16579_v54 = vld [vmem:[%s20595_s7 + $0x604] ss:$8 sps:$4 sm:$0xff]  }
 0x723   :  { %10481 = vmatprep.subr.bf16.mxu0 %v16504_v41  ;;  %v16577_v41 = vld [vmem:[%s20595_s7 + $0x600] ss:$8 sps:$4 sm:$0xff]  }
 0x726   :  { %10482 = vmatpush1.bf16.msra.mxu0 %v16502_v39  ;;  %v8555_v39 = vpack.c.bf16 %v19698_v40, %v19698_v40  ;;  %v16587_v40 = vld [vmem:[%s20595_s7 + $0x624] ss:$8 sps:$4 sm:$0xff]  }
 0x727   :  { %10483 = vmatprep.subr.bf16.mxu0 %v16507_v6  ;;  %v16584_v6 = vld [vmem:[%s20595_s7 + $0x614] ss:$8 sps:$4 sm:$0xff]  }
 0x72a   :  { %10484 = vmatpush1.bf16.msra.mxu0 %v16505_v5  ;;  %v8558_v5 = vpack.c.bf16 %v19682_v49, %v19682_v49  ;;  %v16590_v49 = vld [vmem:[%s20595_s7 + $0x634] ss:$8 sps:$4 sm:$0xff]  }
 0x72b   :  { %10485 = vmatprep.subr.bf16.mxu0 %v16510_v24  ;;  %v16582_v24 = vld [vmem:[%s20595_s7 + $0x610] ss:$8 sps:$4 sm:$0xff]  }
 0x72e   :  { %10486 = vmatpush1.bf16.msra.mxu0 %v16508_v51  ;;  %v16585_v51 = vld [vmem:[%s20595_s7 + $0x620] ss:$8 sps:$4 sm:$0xff]  }
 0x72f   :  { %10487 = vmatprep.subr.bf16.mxu0 %v16513_v10  ;;  %v16588_v10 = vld [vmem:[%s20595_s7 + $0x630] ss:$8 sps:$4 sm:$0xff]  }
 0x732   :  { %10488 = vmatpush1.bf16.msra.mxu0 %v16511_v15  ;;  %v16593_v15 = vld [vmem:[%s20595_s7 + $0x644] ss:$8 sps:$4 sm:$0xff]  }
 0x733   :  { %10489 = vmatprep.subr.bf16.mxu0 %v16516_v57  ;;  %v16591_v57 = vld [vmem:[%s20595_s7 + $0x640] ss:$8 sps:$4 sm:$0xff]  }
 0x736   :  { %10490 = vmatpush1.bf16.msra.mxu0 %v16514_v21  ;;  %v16596_v21 = vld [vmem:[%s20595_s7 + $0x654] ss:$8 sps:$4 sm:$0xff]  }
 0x737   :  { %10491 = vmatprep.subr.bf16.mxu0 %v16519_v50  ;;  %v16594_v50 = vld [vmem:[%s20595_s7 + $0x650] ss:$8 sps:$4 sm:$0xff]  }
 0x73a   :  { %10492 = vmatpush1.bf16.msra.mxu0 %v16517_v4  ;;  %v16599_v4 = vld [vmem:[%s20595_s7 + $0x664] ss:$8 sps:$4 sm:$0xff]  }
 0x73b   :  { %10493 = vmatprep.subr.bf16.mxu0 %v16522_v22  ;;  %v16597_v22 = vld [vmem:[%s20595_s7 + $0x660] ss:$8 sps:$4 sm:$0xff]  }
 0x73e   :  { %10494 = vmatpush1.bf16.msra.mxu0 %v16520_v23  ;;  %v16602_v23 = vld [vmem:[%s20595_s7 + $0x674] ss:$8 sps:$4 sm:$0xff]  }
 0x73f   :  { %10495 = vmatprep.subr.bf16.mxu0 %v16525_v29  ;;  %v16600_v29 = vld [vmem:[%s20595_s7 + $0x670] ss:$8 sps:$4 sm:$0xff]  }
 0x742   :  { %10496 = vmatpush1.bf16.msra.mxu0 %v16523_v20  ;;  %v16605_v20 = vld [vmem:[%s20595_s7 + $0x684] ss:$8 sps:$4 sm:$0xff]  }
 0x743   :  { %10497 = vmatprep.subr.bf16.mxu0 %v16528_v61  ;;  %v16603_v61 = vld [vmem:[%s20595_s7 + $0x680] ss:$8 sps:$4 sm:$0xff]  }
 0x746   :  { %10498 = vmatpush1.bf16.msra.mxu0 %v16526_v0  ;;  %v16608_v0 = vld [vmem:[%s20595_s7 + $0x694] ss:$8 sps:$4 sm:$0xff]  }
 0x747   :  { %10508 = vmatprep.subr.bf16.mxu0 %v16531_v27  ;;  %v16606_v27 = vld [vmem:[%s20595_s7 + $0x690] ss:$8 sps:$4 sm:$0xff]  }
 0x749   :  { %10500 = vmatmul.mubr.bf16.vlgmr.msra.gmra.mrb[112].mxu0 %v8553_v62  ;;  %v16609_v62 = vld [vmem:[%s20595_s7 + $0x6a0] ss:$8 sps:$4 sm:$0xff]  }
 0x74a   :  { %10509 = vmatpush1.bf16.msra.mxu0 %v16529_v44  ;;  %10540 = vmatprep.mubr.bf16.mxu0 %v8556_v47  ;;  %v16611_v44 = vld [vmem:[%s20595_s7 + $0x6a4] ss:$8 sps:$4 sm:$0xff]   ;;  %v16612_v47 = vld [vmem:[%s20595_s7 + $0x6b0] ss:$8 sps:$4 sm:$0xff]  }
 0x74b   :  { %10510 = vmatprep.subr.bf16.mxu0 %v16534_v2  ;;  %v16614_v2 = vld [vmem:[%s20595_s7 + $0x6b4] ss:$8 sps:$4 sm:$0xff]  }
 0x74e   :  { %10511 = vmatpush1.bf16.msra.mxu0 %v16532_v38  ;;  %v16617_v38 = vld [vmem:[%s20595_s7 + $0x6c4] ss:$8 sps:$4 sm:$0xff]  }
 0x74f   :  { %10512 = vmatprep.subr.bf16.mxu0 %v16537_v33  ;;  %v16615_v33 = vld [vmem:[%s20595_s7 + $0x6c0] ss:$8 sps:$4 sm:$0xff]  }
 0x752   :  { %10513 = vmatpush1.bf16.msra.mxu0 %v16535_v12  ;;  %v16620_v12 = vld [vmem:[%s20595_s7 + $0x6d4] ss:$8 sps:$4 sm:$0xff]  }
 0x753   :  { %10514 = vmatprep.subr.bf16.mxu0 %v16540_v42  ;;  %v16618_v42 = vld [vmem:[%s20595_s7 + $0x6d0] ss:$8 sps:$4 sm:$0xff]  }
 0x756   :  { %10515 = vmatpush1.bf16.msra.mxu0 %v16538_v59  ;;  %v16623_v59 = vld [vmem:[%s20595_s7 + $0x6e4] ss:$8 sps:$4 sm:$0xff]  }
 0x757   :  { %10516 = vmatprep.subr.bf16.mxu0 %v16543_v34  ;;  %v16621_v34 = vld [vmem:[%s20595_s7 + $0x6e0] ss:$8 sps:$4 sm:$0xff]  }
 0x75a   :  { %10517 = vmatpush1.bf16.msra.mxu0 %v16541_v8  ;;  %v16626_v8 = vld [vmem:[%s20595_s7 + $0x6f4] ss:$8 sps:$4 sm:$0xff]  }
 0x75b   :  { %10518 = vmatprep.subr.bf16.mxu0 %v16546_v60  ;;  %v16624_v60 = vld [vmem:[%s20595_s7 + $0x6f0] ss:$8 sps:$4 sm:$0xff]  }
 0x75e   :  { %10519 = vmatpush1.bf16.msra.mxu0 %v16544_v18  ;;  %v16629_v18 = vld [vmem:[%s20595_s7 + $0x704] ss:$8 sps:$4 sm:$0xff]  }
 0x75f   :  { %10520 = vmatprep.subr.bf16.mxu0 %v16549_v11  ;;  %v16627_v11 = vld [vmem:[%s20595_s7 + $0x700] ss:$8 sps:$4 sm:$0xff]  }
 0x762   :  { %10521 = vmatpush1.bf16.msra.mxu0 %v16547_v26  ;;  %v8557_v26 = vpack.c.bf16 %v19684_v19, %v19684_v19 }
 0x763   :  { %10522 = vmatprep.subr.bf16.mxu0 %v16552_v55  ;;  %v16632_v55 = vld [vmem:[%s20595_s7 + $0x714] ss:$8 sps:$4 sm:$0xff]  }
 0x766   :  { %10523 = vmatpush1.bf16.msra.mxu0 %v16550_v52  ;;  %v8560_v52 = vpack.c.bf16 %v19703_v17, %v19703_v17  ;;  %v10758_v17 = vld [vmem:[#allocation14 + $0x80] sm:$0xff] }
 0x767   :  { %10524 = vmatprep.subr.bf16.mxu0 %v16555_v63  ;;  %v10742_v63 = vld [vmem:[#allocation14] sm:$0xff] }
 0x76a   :  { %10525 = vmatpush1.bf16.msra.mxu0 %v16553_v28  ;;  %v10746_v28 = vld [vmem:[#allocation14 + $0x20] sm:$0xff] }
 0x76b   :  { %10526 = vmatprep.subr.bf16.mxu0 %v16558_v13  ;;  %v10750_v13 = vld [vmem:[#allocation14 + $0x40] sm:$0xff]  ;;  %v14962_v19 = vcombine.high %v10742_v63, %v10746_v28 }
 0x76d   :  { %11568 = vmatprep.subr.bf16.mxu1 %v14962_v19  ;;  %v16669_v19 = vld [vmem:[%s20595_s7 + $0x7e0] ss:$8 sps:$4 sm:$0xff]  }
 0x76e   :  { %10527 = vmatpush1.bf16.msra.mxu0 %v16556_v1  ;;  %v16630_v1 = vld [vmem:[%s20595_s7 + $0x710] ss:$8 sps:$4 sm:$0xff]  }
 0x76f   :  { %10528 = vmatprep.subr.bf16.mxu0 %v16561_v3  ;;  %v14961_v3 = vcombine.low %v10742_v63, %v10746_v28  ;;  %v16665_v63 = vld [vmem:[%s20595_s7 + $0x7c4] ss:$8 sps:$4 sm:$0xff]   ;;  %v16663_v28 = vld [vmem:[%s20595_s7 + $0x7c0] ss:$8 sps:$4 sm:$0xff]  }
 0x771   :  { %11569 = vmatpush1.bf16.msra.mxu1 %v14961_v3  ;;  %v16671_v3 = vld [vmem:[%s20595_s7 + $0x7e4] ss:$8 sps:$4 sm:$0xff]  }
 0x772   :  { %10529 = vmatpush1.bf16.msra.mxu0 %v16559_v7  ;;  %v10754_v7 = vld [vmem:[#allocation14 + $0x60] sm:$0xff] }
 0x773   :  { %10530 = vmatprep.subr.bf16.mxu0 %v16564_v31  ;;  %v16635_v31 = vld [vmem:[%s20595_s7 + $0x724] ss:$8 sps:$4 sm:$0xff]  }
 0x776   :  { %10531 = vmatpush1.bf16.msra.mxu0 %v16562_v45  ;;  %v14970_v45 = vcombine.high %v10750_v13, %v10754_v7 }
 0x777   :  { %10532 = vmatprep.subr.bf16.mxu0 %v16567_v30  ;;  %v10762_v30 = vld [vmem:[#allocation14 + $0xa0] sm:$0xff] }
 0x778   :  { %11570 = vmatprep.subr.bf16.mxu1 %v14970_v45  ;;  %v16677_v45 = vld [vmem:[%s20595_s7 + $0x804] ss:$8 sps:$4 sm:$0xff]  }
 0x77a   :  { %10533 = vmatpush1.bf16.msra.mxu0 %v16565_v53  ;;  %v14969_v53 = vcombine.low %v10750_v13, %v10754_v7  ;;  %v16668_v13 = vld [vmem:[%s20595_s7 + $0x7d4] ss:$8 sps:$4 sm:$0xff]  }
 0x77b   :  { %10534 = vmatprep.subr.bf16.mxu0 %v16570_v48  ;;  %v16633_v48 = vld [vmem:[%s20595_s7 + $0x720] ss:$8 sps:$4 sm:$0xff]   ;;  %v16674_v7 = vld [vmem:[%s20595_s7 + $0x7f4] ss:$8 sps:$4 sm:$0xff]  }
 0x77c   :  { %11571 = vmatpush1.bf16.msra.mxu1 %v14969_v53  ;;  %v16680_v53 = vld [vmem:[%s20595_s7 + $0x814] ss:$8 sps:$4 sm:$0xff]  }
 0x77e   :  { %10535 = vmatpush1.bf16.msra.mxu0 %v16568_v58  ;;  %v14978_v58 = vcombine.high %v10758_v17, %v10762_v30 }
 0x77f   :  { %10536 = vmatprep.subr.bf16.mxu0 %v16573_v35  ;;  %v16638_v35 = vld [vmem:[%s20595_s7 + $0x734] ss:$8 sps:$4 sm:$0xff]  }
 0x780   :  { %11572 = vmatprep.subr.bf16.mxu1 %v14978_v58  ;;  %v16678_v58 = vld [vmem:[%s20595_s7 + $0x810] ss:$8 sps:$4 sm:$0xff]  }
 0x782   :  { %10537 = vmatpush1.bf16.msra.mxu0 %v16571_v37  ;;  %v10766_v37 = vld [vmem:[#allocation14 + $0xc0] sm:$0xff] }
 0x783   :  { %10538 = vmatprep.subr.bf16.mxu0 %v16576_v43  ;;  %v10770_v43 = vld [vmem:[#allocation14 + $0xe0] sm:$0xff] }
 0x786   :  { %10539 = vmatpush1.bf16.msra.mxu0 %v16574_v56  ;;  %v14977_v56 = vcombine.low %v10758_v17, %v10762_v30  ;;  %v16675_v17 = vld [vmem:[%s20595_s7 + $0x800] ss:$8 sps:$4 sm:$0xff]   ;;  %v8559_v30 = vpack.c.bf16 %v19705_v16, %v19705_v16  ;;  %v16683_v16 = vld [vmem:[%s20595_s7 + $0x824] ss:$8 sps:$4 sm:$0xff]  }
 0x787   :  { %10549 = vmatprep.subr.bf16.mxu0 %v16579_v54  ;;  %v16636_v54 = vld [vmem:[%s20595_s7 + $0x730] ss:$8 sps:$4 sm:$0xff]  }
 0x788   :  { %11573 = vmatpush1.bf16.msra.mxu1 %v14977_v56  ;;  %v16687_v56 = vld [vmem:[%s20595_s7 + $0x840] ss:$8 sps:$4 sm:$0xff]  }
 0x789   :  { %10541 = vmatmul.mubr.bf16.vlgmr.msra.gmra.mrb[112].mxu0 %v8555_v39  ;;  %v16641_v39 = vld [vmem:[%s20595_s7 + $0x744] ss:$8 sps:$4 sm:$0xff]  }
 0x78a   :  { %10550 = vmatpush1.bf16.msra.mxu0 %v16577_v41  ;;  %10581 = vmatprep.mubr.bf16.mxu0 %v8558_v5  ;;  %v14986_v41 = vcombine.high %v10766_v37, %v10770_v43  ;;  %v10778_v5 = vld [vmem:[#allocation14 + $0x120] sm:$0xff] }
 0x78b   :  { %10551 = vmatprep.subr.bf16.mxu0 %v16584_v6  ;;  %v10774_v6 = vld [vmem:[#allocation14 + $0x100] sm:$0xff] }
 0x78c   :  { %11574 = vmatprep.subr.bf16.mxu1 %v14986_v41  ;;  %v16690_v41 = vld [vmem:[%s20595_s7 + $0x850] ss:$8 sps:$4 sm:$0xff]  }
 0x78e   :  { %10552 = vmatpush1.bf16.msra.mxu0 %v16582_v24  ;;  %v14985_v24 = vcombine.low %v10766_v37, %v10770_v43  ;;  %v16684_v37 = vld [vmem:[%s20595_s7 + $0x830] ss:$8 sps:$4 sm:$0xff]   ;;  %v16689_v43 = vld [vmem:[%s20595_s7 + $0x844] ss:$8 sps:$4 sm:$0xff]  }
 0x78f   :  { %10553 = vmatprep.subr.bf16.mxu0 %v16587_v40  ;;  %v16639_v40 = vld [vmem:[%s20595_s7 + $0x740] ss:$8 sps:$4 sm:$0xff]  }
 0x790   :  { %11575 = vmatpush1.bf16.msra.mxu1 %v14985_v24  ;;  %v16696_v24 = vld [vmem:[%s20595_s7 + $0x870] ss:$8 sps:$4 sm:$0xff]  }
 0x792   :  { %10554 = vmatpush1.bf16.msra.mxu0 %v16585_v51  ;;  %v14994_v51 = vcombine.high %v10774_v6, %v10778_v5 }
 0x793   :  { %10555 = vmatprep.subr.bf16.mxu0 %v16590_v49  ;;  %v16644_v49 = vld [vmem:[%s20595_s7 + $0x754] ss:$8 sps:$4 sm:$0xff]  }
 0x794   :  { %11576 = vmatprep.subr.bf16.mxu1 %v14994_v51  ;;  %v16699_v51 = vld [vmem:[%s20595_s7 + $0x880] ss:$8 sps:$4 sm:$0xff]  }
 0x796   :  { %10556 = vmatpush1.bf16.msra.mxu0 %v16588_v10  ;;  %v10782_v10 = vld [vmem:[#allocation14 + $0x140] sm:$0xff] }
 0x797   :  { %10557 = vmatprep.subr.bf16.mxu0 %v16593_v15  ;;  %v10786_v15 = vld [vmem:[#allocation14 + $0x160] sm:$0xff] }
 0x79a   :  { %10558 = vmatpush1.bf16.msra.mxu0 %v16591_v57  ;;  %v14993_v57 = vcombine.low %v10774_v6, %v10778_v5  ;;  %v16693_v6 = vld [vmem:[%s20595_s7 + $0x860] ss:$8 sps:$4 sm:$0xff]   ;;  %v16698_v5 = vld [vmem:[%s20595_s7 + $0x874] ss:$8 sps:$4 sm:$0xff]  }
 0x79b   :  { %10559 = vmatprep.subr.bf16.mxu0 %v16596_v21  ;;  %v16642_v21 = vld [vmem:[%s20595_s7 + $0x750] ss:$8 sps:$4 sm:$0xff]  }
 0x79c   :  { %11577 = vmatpush1.bf16.msra.mxu1 %v14993_v57  ;;  %v16705_v57 = vld [vmem:[%s20595_s7 + $0x8a0] ss:$8 sps:$4 sm:$0xff]  }
 0x79e   :  { %10560 = vmatpush1.bf16.msra.mxu0 %v16594_v50  ;;  %v15002_v50 = vcombine.high %v10782_v10, %v10786_v15 }
 0x79f   :  { %10561 = vmatprep.subr.bf16.mxu0 %v16599_v4  ;;  %v16647_v4 = vld [vmem:[%s20595_s7 + $0x764] ss:$8 sps:$4 sm:$0xff]  }
 0x7a0   :  { %11578 = vmatprep.subr.bf16.mxu1 %v15002_v50  ;;  %v16708_v50 = vld [vmem:[%s20595_s7 + $0x8b0] ss:$8 sps:$4 sm:$0xff]  }
 0x7a2   :  { %10562 = vmatpush1.bf16.msra.mxu0 %v16597_v22  ;;  %v10790_v22 = vld [vmem:[#allocation14 + $0x180] sm:$0xff] }
 0x7a3   :  { %10563 = vmatprep.subr.bf16.mxu0 %v16602_v23  ;;  %v10794_v23 = vld [vmem:[#allocation14 + $0x1a0] sm:$0xff] }
 0x7a6   :  { %10564 = vmatpush1.bf16.msra.mxu0 %v16600_v29  ;;  %v15001_v29 = vcombine.low %v10782_v10, %v10786_v15  ;;  %v16702_v10 = vld [vmem:[%s20595_s7 + $0x890] ss:$8 sps:$4 sm:$0xff]   ;;  %v16707_v15 = vld [vmem:[%s20595_s7 + $0x8a4] ss:$8 sps:$4 sm:$0xff]  }
 0x7a7   :  { %10565 = vmatprep.subr.bf16.mxu0 %v16605_v20  ;;  %v16645_v20 = vld [vmem:[%s20595_s7 + $0x760] ss:$8 sps:$4 sm:$0xff]  }
 0x7a8   :  { %11579 = vmatpush1.bf16.msra.mxu1 %v15001_v29  ;;  %v16714_v29 = vld [vmem:[%s20595_s7 + $0x8d0] ss:$8 sps:$4 sm:$0xff]  }
 0x7aa   :  { %10566 = vmatpush1.bf16.msra.mxu0 %v16603_v61  ;;  %v15010_v61 = vcombine.high %v10790_v22, %v10794_v23 }
 0x7ab   :  { %10567 = vmatprep.subr.bf16.mxu0 %v16608_v0  ;;  %v16650_v0 = vld [vmem:[%s20595_s7 + $0x774] ss:$8 sps:$4 sm:$0xff]  }
 0x7ac   :  { %11580 = vmatprep.subr.bf16.mxu1 %v15010_v61  ;;  %v16717_v61 = vld [vmem:[%s20595_s7 + $0x8e0] ss:$8 sps:$4 sm:$0xff]  }
 0x7ae   :  { %10568 = vmatpush1.bf16.msra.mxu0 %v16606_v27  ;;  %v10798_v27 = vld [vmem:[#allocation14 + $0x1c0] sm:$0xff] }
 0x7af   :  { %10569 = vmatprep.subr.bf16.mxu0 %v16611_v44  ;;  %v10802_v44 = vld [vmem:[#allocation14 + $0x1e0] sm:$0xff] }
 0x7b2   :  { %10570 = vmatpush1.bf16.msra.mxu0 %v16609_v62  ;;  %v15009_v62 = vcombine.low %v10790_v22, %v10794_v23  ;;  %v16711_v22 = vld [vmem:[%s20595_s7 + $0x8c0] ss:$8 sps:$4 sm:$0xff]   ;;  %v16716_v23 = vld [vmem:[%s20595_s7 + $0x8d4] ss:$8 sps:$4 sm:$0xff]  }
 0x7b3   :  { %10571 = vmatprep.subr.bf16.mxu0 %v16614_v2  ;;  %v16648_v2 = vld [vmem:[%s20595_s7 + $0x770] ss:$8 sps:$4 sm:$0xff]  }
 0x7b4   :  { %11581 = vmatpush1.bf16.msra.mxu1 %v15009_v62  ;;  %v10814_v62 = vld [vmem:[#allocation14 + $0x240] sm:$0xff] }
 0x7b6   :  { %10572 = vmatpush1.bf16.msra.mxu0 %v16612_v47  ;;  %v15018_v47 = vcombine.high %v10798_v27, %v10802_v44 }
 0x7b7   :  { %10573 = vmatprep.subr.bf16.mxu0 %v16617_v38  ;;  %v16653_v38 = vld [vmem:[%s20595_s7 + $0x784] ss:$8 sps:$4 sm:$0xff]  }
 0x7b8   :  { %11582 = vmatprep.subr.bf16.mxu1 %v15018_v47  ;;  %v10822_v47 = vld [vmem:[#allocation14 + $0x280] sm:$0xff] }
 0x7ba   :  { %10574 = vmatpush1.bf16.msra.mxu0 %v16615_v33  ;;  %v10806_v33 = vld [vmem:[#allocation14 + $0x200] sm:$0xff] }
 0x7bb   :  { %10575 = vmatprep.subr.bf16.mxu0 %v16620_v12  ;;  %v10810_v12 = vld [vmem:[#allocation14 + $0x220] sm:$0xff] }
 0x7be   :  { %10576 = vmatpush1.bf16.msra.mxu0 %v16618_v42  ;;  %v15017_v42 = vcombine.low %v10798_v27, %v10802_v44  ;;  %v16720_v27 = vld [vmem:[%s20595_s7 + $0x8f0] ss:$8 sps:$4 sm:$0xff]   ;;  %v8561_v44 = vpack.c.bf16 %v19715_v9, %v19715_v9 }
 0x7bf   :  { %10577 = vmatprep.subr.bf16.mxu0 %v16623_v59  ;;  %v16651_v59 = vld [vmem:[%s20595_s7 + $0x780] ss:$8 sps:$4 sm:$0xff]   ;;  %v10838_v9 = vld [vmem:[#allocation14 + $0x300] sm:$0xff] }
 0x7c0   :  { %11583 = vmatpush1.bf16.msra.mxu1 %v15017_v42 }
 0x7c2   :  { %10578 = vmatpush1.bf16.msra.mxu0 %v16621_v34  ;;  %v15026_v34 = vcombine.high %v10806_v33, %v10810_v12 }
 0x7c3   :  { %10579 = vmatprep.subr.bf16.mxu0 %v16626_v8  ;;  %v16656_v8 = vld [vmem:[%s20595_s7 + $0x794] ss:$8 sps:$4 sm:$0xff]  }
 0x7c4   :  { %11584 = vmatprep.subr.bf16.mxu1 %v15026_v34  ;;  %v10834_v34 = vld [vmem:[#allocation14 + $0x2e0] sm:$0xff] }
 0x7c6   :  { %10580 = vmatpush1.bf16.msra.mxu0 %v16624_v60  ;;  %v15025_v60 = vcombine.low %v10806_v33, %v10810_v12  ;;  %v10826_v12 = vld [vmem:[#allocation14 + $0x2a0] sm:$0xff] }
 0x7c7   :  { %10590 = vmatprep.subr.bf16.mxu0 %v16629_v18  ;;  %v16654_v18 = vld [vmem:[%s20595_s7 + $0x790] ss:$8 sps:$4 sm:$0xff]   ;;  %v15042_v42 = vcombine.high %v10822_v47, %v10826_v12 }
 0x7c8   :  { %11585 = vmatpush1.bf16.msra.mxu1 %v15025_v60 }
 0x7c9   :  { %10582 = vmatmul.mubr.bf16.vlgmr.msra.gmra.mrb[112].mxu0 %v8557_v26  ;;  %v16657_v26 = vld [vmem:[%s20595_s7 + $0x7a0] ss:$8 sps:$4 sm:$0xff]  }
 0x7ca   :  { %10591 = vmatpush1.bf16.msra.mxu0 %v16627_v11  ;;  %10622 = vmatprep.mubr.bf16.mxu0 %v8560_v52  ;;  %v16659_v11 = vld [vmem:[%s20595_s7 + $0x7a4] ss:$8 sps:$4 sm:$0xff]   ;;  %v16660_v52 = vld [vmem:[%s20595_s7 + $0x7b0] ss:$8 sps:$4 sm:$0xff]  }
 0x7cb   :  { %10592 = vmatprep.subr.bf16.mxu0 %v16632_v55  ;;  %v16662_v55 = vld [vmem:[%s20595_s7 + $0x7b4] ss:$8 sps:$4 sm:$0xff]  }
 0x7ce   :  { %10593 = vmatpush1.bf16.msra.mxu0 %v16630_v1  ;;  %v16666_v1 = vld [vmem:[%s20595_s7 + $0x7d0] ss:$8 sps:$4 sm:$0xff]  }
 0x7cf   :  { %10594 = vmatprep.subr.bf16.mxu0 %v16635_v31  ;;  %v16672_v31 = vld [vmem:[%s20595_s7 + $0x7f0] ss:$8 sps:$4 sm:$0xff]  }
 0x7d2   :  { %10595 = vmatpush1.bf16.msra.mxu0 %v16633_v48  ;;  %v8562_v48 = vpack.c.bf16 %v19713_v32, %v19713_v32  ;;  %v16686_v32 = vld [vmem:[%s20595_s7 + $0x834] ss:$8 sps:$4 sm:$0xff]  }
 0x7d3   :  { %10596 = vmatprep.subr.bf16.mxu0 %v16638_v35  ;;  %v16681_v35 = vld [vmem:[%s20595_s7 + $0x820] ss:$8 sps:$4 sm:$0xff]  }
 0x7d6   :  { %10597 = vmatpush1.bf16.msra.mxu0 %v16636_v54  ;;  %v16692_v54 = vld [vmem:[%s20595_s7 + $0x854] ss:$8 sps:$4 sm:$0xff]  }
 0x7d7   :  { %10598 = vmatprep.subr.bf16.mxu0 %v16641_v39  ;;  %v16695_v39 = vld [vmem:[%s20595_s7 + $0x864] ss:$8 sps:$4 sm:$0xff]  }
 0x7da   :  { %10599 = vmatpush1.bf16.msra.mxu0 %v16639_v40  ;;  %v16701_v40 = vld [vmem:[%s20595_s7 + $0x884] ss:$8 sps:$4 sm:$0xff]  }
 0x7db   :  { %10600 = vmatprep.subr.bf16.mxu0 %v16644_v49  ;;  %v16704_v49 = vld [vmem:[%s20595_s7 + $0x894] ss:$8 sps:$4 sm:$0xff]  }
 0x7de   :  { %10601 = vmatpush1.bf16.msra.mxu0 %v16642_v21  ;;  %v16710_v21 = vld [vmem:[%s20595_s7 + $0x8b4] ss:$8 sps:$4 sm:$0xff]  }
 0x7df   :  { %10602 = vmatprep.subr.bf16.mxu0 %v16647_v4  ;;  %v16713_v4 = vld [vmem:[%s20595_s7 + $0x8c4] ss:$8 sps:$4 sm:$0xff]  }
 0x7e2   :  { %10603 = vmatpush1.bf16.msra.mxu0 %v16645_v20  ;;  %v16719_v20 = vld [vmem:[%s20595_s7 + $0x8e4] ss:$8 sps:$4 sm:$0xff]  }
 0x7e3   :  { %10604 = vmatprep.subr.bf16.mxu0 %v16650_v0  ;;  %v16722_v0 = vld [vmem:[%s20595_s7 + $0x8f4] ss:$8 sps:$4 sm:$0xff]  }
 0x7e6   :  { %10605 = vmatpush1.bf16.msra.mxu0 %v16648_v2  ;;  %v10818_v2 = vld [vmem:[#allocation14 + $0x260] sm:$0xff] }
 0x7e7   :  { %10606 = vmatprep.subr.bf16.mxu0 %v16653_v38  ;;  %v15033_v38 = vcombine.low %v10814_v62, %v10818_v2  ;;  %v15034_v33 = vcombine.high %v10814_v62, %v10818_v2 }
 0x7e9   :  { %11586 = vmatprep.subr.bf16.mxu1 %v15034_v33 }
 0x7ea   :  { %10607 = vmatpush1.bf16.msra.mxu0 %v16651_v59  ;;  %v10830_v59 = vld [vmem:[#allocation14 + $0x2c0] sm:$0xff]  ;;  %11587 = vmatpush1.bf16.msra.mxu1 %v15033_v38 }
 0x7eb   :  { %10608 = vmatprep.subr.bf16.mxu0 %v16656_v8  ;;  %v15041_v8 = vcombine.low %v10822_v47, %v10826_v12  ;;  %11588 = vmatprep.subr.bf16.mxu1 %v15042_v42  ;;  %v15050_v60 = vcombine.high %v10830_v59, %v10834_v34 }
 0x7ee   :  { %10609 = vmatpush1.bf16.msra.mxu0 %v16654_v18  ;;  %v20491_v18 = vld [vmem:[#allocation14 + $0x8] sm:$0xff]  ;;  %11589 = vmatpush1.bf16.msra.mxu1 %v15041_v8 }
 0x7ef   :  { %10610 = vmatprep.subr.bf16.mxu0 %v16659_v11  ;;  %v20493_v11 = vld [vmem:[#allocation14 + $0x28] sm:$0xff]  ;;  %11590 = vmatprep.subr.bf16.mxu1 %v15050_v60 }
 0x7f2   :  { %10611 = vmatpush1.bf16.msra.mxu0 %v16657_v26  ;;  %v10842_v26 = vld [vmem:[#allocation14 + $0x320] sm:$0xff] }
 0x7f3   :  { %10612 = vmatprep.subr.bf16.mxu0 %v16662_v55  ;;  %v14963_v55 = vcombine.low %v20491_v18, %v20493_v11 }
 0x7f6   :  { %10613 = vmatpush1.bf16.msra.mxu0 %v16660_v52  ;;  %v15049_v52 = vcombine.low %v10830_v59, %v10834_v34 }
 0x7f7   :  { %10614 = vmatprep.subr.bf16.mxu0 %v16665_v63  ;;  %v15058_v63 = vcombine.high %v10838_v9, %v10842_v26 }
 0x7f8   :  { %11591 = vmatpush1.bf16.msra.mxu1 %v15049_v52  ;;  %v10751_v52 = vld [vmem:[#allocation14 + $0x48] sm:$0xff] }
 0x7f9   :  { %11592 = vmatprep.subr.bf16.mxu1 %v15058_v63  ;;  %v10755_v63 = vld [vmem:[#allocation14 + $0x68] sm:$0xff] }
 0x7fa   :  { %10615 = vmatpush1.bf16.msra.mxu0 %v16663_v28  ;;  %v10846_v28 = vld [vmem:[#allocation14 + $0x340] sm:$0xff] }
 0x7fb   :  { %10616 = vmatprep.subr.bf16.mxu0 %v16668_v13  ;;  %v10850_v13 = vld [vmem:[#allocation14 + $0x360] sm:$0xff] }
 0x7fe   :  { %10617 = vmatpush1.bf16.msra.mxu0 %v16666_v1  ;;  %v15057_v1 = vcombine.low %v10838_v9, %v10842_v26 }
 0x7ff   :  { %10618 = vmatprep.subr.bf16.mxu0 %v16671_v3  ;;  %v15066_v3 = vcombine.high %v10846_v28, %v10850_v13 }
 0x800   :  { %11593 = vmatpush1.bf16.msra.mxu1 %v15057_v1 }
 0x801   :  { %11594 = vmatprep.subr.bf16.mxu1 %v15066_v3 }
 0x802   :  { %10619 = vmatpush1.bf16.msra.mxu0 %v16669_v19  ;;  %v10854_v19 = vld [vmem:[#allocation14 + $0x380] sm:$0xff] }
 0x803   :  { %10620 = vmatprep.subr.bf16.mxu0 %v16674_v7  ;;  %v10858_v7 = vld [vmem:[#allocation14 + $0x3a0] sm:$0xff] }
 0x806   :  { %10621 = vmatpush1.bf16.msra.mxu0 %v16672_v31  ;;  %v15065_v31 = vcombine.low %v10846_v28, %v10850_v13 }
 0x807   :  { %10631 = vmatprep.subr.bf16.mxu0 %v16677_v45  ;;  %v15074_v45 = vcombine.high %v10854_v19, %v10858_v7 }
 0x808   :  { %11595 = vmatpush1.bf16.msra.mxu1 %v15065_v31  ;;  %v10763_v31 = vld [vmem:[#allocation14 + $0xa8] sm:$0xff] }
 0x809   :  { %10623 = vmatmul.mubr.bf16.vlgmr.msra.gmra.mrb[112].mxu0 %v8559_v30  ;;  %v10866_v30 = vld [vmem:[#allocation14 + $0x3e0] sm:$0xff]  ;;  %11596 = vmatprep.subr.bf16.mxu1 %v15074_v45  ;;  %v14971_v45 = vcombine.low %v10751_v52, %v10755_v63 }
 0x80a   :  { %10632 = vmatpush1.bf16.msra.mxu0 %v16675_v17  ;;  %10663 = vmatprep.mubr.bf16.mxu0 %v8562_v48  ;;  %v10862_v17 = vld [vmem:[#allocation14 + $0x3c0] sm:$0xff] }
 0x80b   :  { %10633 = vmatprep.subr.bf16.mxu0 %v16680_v53  ;;  %v15073_v53 = vcombine.low %v10854_v19, %v10858_v7  ;;  %v15082_v48 = vcombine.high %v10862_v17, %v10866_v30  ;;  %v14972_v19 = vcombine.high %v10751_v52, %v10755_v63  ;;  %v10759_v7 = vld [vmem:[#allocation14 + $0x88] sm:$0xff] }
 0x80c   :  { %v16737_v52 = vld [vmem:[#allocation16 + $0x8c] ss:$16 sps:$4 sm:$0xff]  }
 0x80d   :  { %11597 = vmatpush1.bf16.msra.mxu1 %v15073_v53  ;;  %v10771_v53 = vld [vmem:[#allocation14 + $0xe8] sm:$0xff] }
 0x80e   :  { %10634 = vmatpush1.bf16.msra.mxu0 %v16678_v58  ;;  %v15081_v58 = vcombine.low %v10862_v17, %v10866_v30  ;;  %11598 = vmatprep.subr.bf16.mxu1 %v15082_v48  ;;  %v14980_v17 = vcombine.high %v10759_v7, %v10763_v31  ;;  %v10767_v30 = vld [vmem:[#allocation14 + $0xc8] sm:$0xff]  ;;  %v14979_v48 = vcombine.low %v10759_v7, %v10763_v31 }
 0x80f   :  { %10635 = vmatprep.subr.bf16.mxu0 %v16683_v16  ;;  %v14964_v16 = vcombine.high %v20491_v18, %v20493_v11  ;;  %v10787_v18 = vld [vmem:[#allocation14 + $0x168] sm:$0xff] }
 0x810   :  { %v10847_v63 = vld [vmem:[#allocation14 + $0x348] sm:$0xff] }
 0x811   :  { %11599 = vmatpush1.bf16.msra.mxu1 %v15081_v58  ;;  %v14988_v58 = vcombine.high %v10767_v30, %v10771_v53  ;;  %v16738_v7 = vld [vmem:[#allocation16 + $0xa8] ss:$16 sps:$4 sm:$0xff]   ;;  %v16740_v31 = vld [vmem:[#allocation16 + $0xac] ss:$16 sps:$4 sm:$0xff]  }
 0x812   :  { %10636 = vmatpush1.bf16.msra.mxu0 %v16681_v35  ;;  %11609 = vmatprep.subr.bf16.mxu1 %v14964_v16  ;;  %v8851_v35 = vld [vmem:[%s20596_s8] sm:$0x3] }
 0x813   :  { %10637 = vmatprep.subr.bf16.mxu0 %v16686_v32  ;;  %v8856_v32 = vrot.slane %v8851_v35, %v17796_v25  ;;  %v10775_v16 = vld [vmem:[#allocation14 + $0x108] sm:$0xff] }
 0x816   :  { %10638 = vmatpush1.bf16.msra.mxu0 %v16684_v37  ;;  %v8860_v37 = vrot.slane %v8851_v35, %v19511_v46  ;;  %v10779_v35 = vld [vmem:[#allocation14 + $0x128] sm:$0xff] }
 0x817   :  { %10639 = vmatprep.subr.bf16.mxu0 %v16689_v43  ;;  %v14995_v11 = vcombine.low %v10775_v16, %v10779_v35 }
 0x81a   :  { %10640 = vmatpush1.bf16.msra.mxu0 %v16687_v56 }
 0x81b   :  { %10641 = vmatprep.subr.bf16.mxu0 %v16692_v54 }
 0x81e   :  { %10642 = vmatpush1.bf16.msra.mxu0 %v16690_v41 }
 0x81f   :  { %10643 = vmatprep.subr.bf16.mxu0 %v16695_v39 }
 0x822   :  { %10644 = vmatpush1.bf16.msra.mxu0 %v16693_v6 }
 0x823   :  { %10645 = vmatprep.subr.bf16.mxu0 %v16698_v5 }
 0x826   :  { %10646 = vmatpush1.bf16.msra.mxu0 %v16696_v24 }
 0x827   :  { %10647 = vmatprep.subr.bf16.mxu0 %v16701_v40 }
 0x82a   :  { %10648 = vmatpush1.bf16.msra.mxu0 %v16699_v51 }
 0x82b   :  { %10649 = vmatprep.subr.bf16.mxu0 %v16704_v49 }
 0x82e   :  { %10650 = vmatpush1.bf16.msra.mxu0 %v16702_v10 }
 0x82f   :  { %10651 = vmatprep.subr.bf16.mxu0 %v16707_v15 }
 0x832   :  { %10652 = vmatpush1.bf16.msra.mxu0 %v16705_v57 }
 0x833   :  { %10653 = vmatprep.subr.bf16.mxu0 %v16710_v21 }
 0x836   :  { %10654 = vmatpush1.bf16.msra.mxu0 %v16708_v50 }
 0x837   :  { %10655 = vmatprep.subr.bf16.mxu0 %v16713_v4 }
 0x83a   :  { %10656 = vmatpush1.bf16.msra.mxu0 %v16711_v22 }
 0x83b   :  { %10657 = vmatprep.subr.bf16.mxu0 %v16716_v23  ;;  %v20507_v23 = vsub.s32 2, %v20632_v36 }
 0x83e   :  { %10658 = vmatpush1.bf16.msra.mxu0 %v16714_v29 }
 0x83f   :  { %10659 = vmatprep.subr.bf16.mxu0 %v16719_v20 }
 0x842   :  { %10660 = vmatpush1.bf16.msra.mxu0 %v16717_v61 }
 0x843   :  { %10661 = vmatprep.subr.bf16.mxu0 %v16722_v0 }
 0x846   :  { %10662 = vmatpush1.bf16.msra.mxu0 %v16720_v27 }
 0x849   :  { %10664 = vmatmul.mubr.bf16.vlgmr.msra.gmra.mrb[112].mxu0 %v8561_v44 }
 0x91c   :  { %v10665_v43 = vpop.f32.mrb[112].mxu0 }
 0x91d   :  { %v15836_v56 = vadd.f32 %v10665_v43, %v8856_v32  ;;  %v10667_v54 = vpop.f32.mrb[113].mxu0  ;;  %v14987_v32 = vcombine.low %v10767_v30, %v10771_v53  ;;  %v10783_v43 = vld [vmem:[#allocation14 + $0x148] sm:$0xff] }
 0x91e   :  { %v15837_v41 = vadd.f32 %v10667_v54, %v8860_v37  ;;  %v10669_v39 = vpop.f32.mrb[114].mxu0  ;;  %v14996_v37 = vcombine.high %v10775_v16, %v10779_v35  ;;  %v10795_v54 = vld [vmem:[#allocation14 + $0x1a8] sm:$0xff] }
 0x91f   :  { %v10672_v6 = vmax.f32 %v15836_v56, 0.0  ;;  %v10670_v5 = vpop.f32.mrb[115].mxu0  ;;  %v10791_v56 = vld [vmem:[#allocation14 + $0x188] sm:$0xff] }
 0x920   :  { %v10673_v24 = vmax.f32 %v15837_v41, 0.0  ;;  %v15003_v41 = vcombine.low %v10783_v43, %v10787_v18  ;;  %v15012_v39 = vcombine.high %v10791_v56, %v10795_v54  ;;  %v10803_v5 = vld [vmem:[#allocation14 + $0x1e8] sm:$0xff] }
 0x921   :  { %v10863_v16 = vld [vmem:[#allocation14 + $0x3c8] sm:$0xff] }
 0x922   :  { %v10676_v40 = vcombine.low %v10672_v6, %v10673_v24  ;;  %v10677_v51 = vcombine.high %v10672_v6, %v10673_v24  ;;  %v10799_v6 = vld [vmem:[#allocation14 + $0x1c8] sm:$0xff]  ;;  %v15011_v24 = vcombine.low %v10791_v56, %v10795_v54 }
 0x923   :  { %v10867_v35 = vld [vmem:[#allocation14 + $0x3e8] sm:$0xff] }
 0x924   :  { %v10684_v49 = vrot.slane %v10676_v40, %v17791_v14  ;;  %v10691_v10 = vrot.slane %v10677_v51, %v17791_v14  ;;  %v15020_v40 = vcombine.high %v10799_v6, %v10803_v5  ;;  %v10807_v51 = vld [vmem:[#allocation14 + $0x208] sm:$0xff]  ;;  %v15083_v56 = vcombine.low %v10863_v16, %v10867_v35 }
 0x926   :  { %v10692_v15 = vcombine.high %v10684_v49, %v10684_v49  ;;  %v10693_v57 = vcombine.high %v10691_v10, %v10691_v10  ;;  %v14957_v21 = vrot.slane %v10684_v49, 9  ;;  %v14959_v50 = vrot.slane %v10691_v10, 9 }
 0x928   :  { %v14958_v4 = vrot.slane %v10692_v15, 9  ;;  %v14960_v22 = vrot.slane %v10693_v57, 9  ;;  %v10710_v29 = vmax.f32 %v10684_v49, %v14957_v21  ;;  %v10712_v61 = vmax.f32 %v10691_v10, %v14959_v50  ;;  %v10811_v49 = vld [vmem:[#allocation14 + $0x228] sm:$0xff] }
 0x929   :  { %v15019_v10 = vcombine.low %v10799_v6, %v10803_v5  ;;  %v16725_v21 = vld [vmem:[#allocation16 + $0xc] ss:$16 sps:$4 sm:$0xff]   ;;  %v10752_v6 = vld [vmem:[#allocation14 + $0x50] sm:$0xff] }
 0x92a   :  { %v10711_v20 = vmax.f32 %v10692_v15, %v14958_v4  ;;  %v10713_v0 = vmax.f32 %v10693_v57, %v14960_v22  ;;  %v15028_v15 = vcombine.high %v10807_v51, %v10811_v49  ;;  %v16723_v57 = vld [vmem:[#allocation16 + $0x8] ss:$16 sps:$4 sm:$0xff]   ;;  %13470 = vmatprep.subr.bf16.mxu0 %v16725_v21  ;;  %v15027_v22 = vcombine.low %v10807_v51, %v10811_v49  ;;  %v10756_v5 = vld [vmem:[#allocation14 + $0x70] sm:$0xff] }
 0x92b   :  { %v10815_v50 = vld [vmem:[#allocation14 + $0x248] sm:$0xff]  ;;  %13471 = vmatpush1.bf16.msra.mxu0 %v16723_v57  ;;  %v10760_v51 = vld [vmem:[#allocation14 + $0x90] sm:$0xff] }
 0x92c   :  { %v10714_v27 = vmax.f32 %v10710_v29, %v10711_v20  ;;  %v10715_v44 = vmax.f32 %v10712_v61, %v10713_v0  ;;  %v10819_v4 = vld [vmem:[#allocation14 + $0x268] sm:$0xff]  ;;  %v10764_v49 = vld [vmem:[#allocation14 + $0xb0] sm:$0xff] }
 0x92d   :  { %v15036_v29 = vcombine.high %v10815_v50, %v10819_v4  ;;  %v16726_v20 = vld [vmem:[#allocation16 + $0x28] ss:$16 sps:$4 sm:$0xff]   ;;  %v16728_v61 = vld [vmem:[#allocation16 + $0x2c] ss:$16 sps:$4 sm:$0xff]   ;;  %v14982_v21 = vcombine.high %v10760_v51, %v10764_v49 }
 0x92e   :  { %v10721_v62 = vrot.slane %v10714_v27, %v17796_v25  ;;  %v10729_v2 = vrot.slane %v10715_v44, %v17796_v25  ;;  %v10733_v14 = vrot.slane %v10715_v44, %v20507_v23  ;;  %v10725_v47 = vrot.slane %v10714_v27, %v20507_v23  ;;  %v10823_v0 = vld [vmem:[#allocation14 + $0x288] sm:$0xff]  ;;  %13472 = vmatprep.subr.bf16.mxu0 %v16728_v61 }
 0x92f   :  { %v10827_v27 = vld [vmem:[#allocation14 + $0x2a8] sm:$0xff]  ;;  %v15035_v44 = vcombine.low %v10815_v50, %v10819_v4  ;;  %13473 = vmatpush1.bf16.msra.mxu0 %v16726_v20  ;;  %v10768_v4 = vld [vmem:[#allocation14 + $0xd0] sm:$0xff]  ;;  %v14981_v20 = vcombine.low %v10760_v51, %v10764_v49 }
 0x930   :  { %v10738_v38 = vpack.c.bf16 %v10721_v62, %v10721_v62  ;;  %v10740_v33 = vpack.c.bf16 %v10729_v2, %v10729_v2  ;;  %v10739_v12 = vpack.c.bf16 %v10725_v47, %v10725_v47  ;;  %v10741_v42 = vpack.c.bf16 %v10733_v14, %v10733_v14  ;;  %v16729_v2 = vld [vmem:[#allocation16 + $0x48] ss:$16 sps:$4 sm:$0xff]   ;;  %v16731_v14 = vld [vmem:[#allocation16 + $0x4c] ss:$16 sps:$4 sm:$0xff]   ;;  %v10848_v49 = vld [vmem:[#allocation14 + $0x350] sm:$0xff] }
 0x931   :  { %v15044_v62 = vcombine.high %v10823_v0, %v10827_v27  ;;  %v10831_v47 = vld [vmem:[#allocation14 + $0x2c8] sm:$0xff]  ;;  %13474 = vmatprep.subr.bf16.mxu0 %v16731_v14 }
 0x932   :  { %v10918_v59 = vunpack.c.l.b16 %v10740_v33  ;;  %v10919_v34 = vunpack.c.l.b16 %v10741_v42  ;;  %v10916_v8 = vunpack.c.l.b16 %v10738_v38  ;;  %v10917_v9 = vunpack.c.l.b16 %v10739_v12  ;;  %v10835_v38 = vld [vmem:[#allocation14 + $0x2e8] sm:$0xff] }
 0x933   :  { %v15043_v33 = vcombine.low %v10823_v0, %v10827_v27  ;;  %13475 = vmatpush1.bf16.msra.mxu0 %v16729_v2  ;;  %v15052_v12 = vcombine.high %v10831_v47, %v10835_v38  ;;  %v16732_v42 = vld [vmem:[#allocation16 + $0x68] ss:$16 sps:$4 sm:$0xff]   ;;  %v16755_v57 = vld [vmem:[#allocation16 + $0x12c] ss:$16 sps:$4 sm:$0xff]   ;;  %v10776_v27 = vld [vmem:[#allocation14 + $0x110] sm:$0xff] }
 0x934   :  { %v10920_v60 = vrot.slane %v10918_v59, 7  ;;  %v10922_v26 = vrot.slane %v10919_v34, 7  ;;  %v16734_v59 = vld [vmem:[#allocation16 + $0x6c] ss:$16 sps:$4 sm:$0xff]  }
 0x935   :  { %v10839_v34 = vld [vmem:[#allocation14 + $0x308] sm:$0xff]  ;;  %13476 = vmatprep.subr.bf16.mxu0 %v16734_v59 }
 0x936   :  { %v10923_v28 = vsel %vm4103_vm3, %v10922_v26, %v10917_v9  ;;  %v10921_v13 = vsel %vm4103_vm3, %v10920_v60, %v10916_v8  ;;  %v10843_v8 = vld [vmem:[#allocation14 + $0x328] sm:$0xff]  ;;  %v15051_v60 = vcombine.low %v10831_v47, %v10835_v38  ;;  %v10784_v38 = vld [vmem:[#allocation14 + $0x150] sm:$0xff] }
 0x937   :  { %v20515_v1 = vpack.c.b16 %v10923_v28, %v10923_v28  ;;  %v20517_v3 = vpack.c.b16 %v10921_v13, %v10921_v13  ;;  %13477 = vmatpush1.bf16.msra.mxu0 %v16732_v42  ;;  %v15060_v9 = vcombine.high %v10839_v34, %v10843_v8  ;;  %v16735_v26 = vld [vmem:[#allocation16 + $0x88] ss:$16 sps:$4 sm:$0xff]   ;;  %v15059_v13 = vcombine.low %v10839_v34, %v10843_v8  ;;  %v16761_v50 = vld [vmem:[#allocation16 + $0x14c] ss:$16 sps:$4 sm:$0xff]   ;;  %v10792_v8 = vld [vmem:[#allocation14 + $0x190] sm:$0xff] }
 0x938   :  { %v10851_v28 = vld [vmem:[#allocation14 + $0x368] sm:$0xff]  ;;  %13478 = vmatprep.subr.bf16.mxu0 %v16737_v52 }
 0x939   :  { %11600 = vmatprep.mubr.bf16.mxu1 %v20515_v1  ;;  %v15067_v30 = vcombine.low %v10847_v63, %v10851_v28  ;;  %v16767_v0 = vld [vmem:[#allocation16 + $0x16c] ss:$16 sps:$4 sm:$0xff]  }
 0x93a   :  { %11601 = vmatmul.mubr.bf16.vlgmr.msra.gmra.mrb[104].mxu1 %v20517_v3  ;;  %v16773_v47 = vld [vmem:[#allocation16 + $0x18c] ss:$16 sps:$4 sm:$0xff]  }
 0x93b   :  { %11610 = vmatpush1.bf16.msra.mxu1 %v14963_v55  ;;  %11641 = vmatprep.mubr.bf16.mxu1 %v20515_v1  ;;  %v15004_v55 = vcombine.high %v10783_v43, %v10787_v18  ;;  %v16744_v43 = vld [vmem:[#allocation16 + $0xe8] ss:$16 sps:$4 sm:$0xff]   ;;  %v16746_v18 = vld [vmem:[#allocation16 + $0xec] ss:$16 sps:$4 sm:$0xff]  }
 0x93c   :  { %11611 = vmatprep.subr.bf16.mxu1 %v14972_v19  ;;  %13479 = vmatpush1.bf16.msra.mxu0 %v16735_v26  ;;  %v15068_v19 = vcombine.high %v10847_v63, %v10851_v28  ;;  %v16779_v34 = vld [vmem:[#allocation16 + $0x1ac] ss:$16 sps:$4 sm:$0xff]   ;;  %v10800_v63 = vld [vmem:[#allocation14 + $0x1d0] sm:$0xff] }
 0x93d   :  { %13480 = vmatprep.subr.bf16.mxu0 %v16740_v31  ;;  %v10804_v28 = vld [vmem:[#allocation14 + $0x1f0] sm:$0xff] }
 0x93e   :  { %v10812_v31 = vld [vmem:[#allocation14 + $0x230] sm:$0xff] }
 0x93f   :  { %11612 = vmatpush1.bf16.msra.mxu1 %v14971_v45  ;;  %v10855_v45 = vld [vmem:[#allocation14 + $0x388] sm:$0xff] }
 0x940   :  { %11613 = vmatprep.subr.bf16.mxu1 %v14980_v17  ;;  %v10859_v17 = vld [vmem:[#allocation14 + $0x3a8] sm:$0xff]  ;;  %13481 = vmatpush1.bf16.msra.mxu0 %v16738_v7  ;;  %v10808_v7 = vld [vmem:[#allocation14 + $0x210] sm:$0xff] }
 0x941   :  { %v15076_v53 = vcombine.high %v10855_v45, %v10859_v17 }
 0x943   :  { %11614 = vmatpush1.bf16.msra.mxu1 %v14979_v48  ;;  %v16741_v48 = vld [vmem:[#allocation16 + $0xc8] ss:$16 sps:$4 sm:$0xff]  }
 0x944   :  { %11615 = vmatprep.subr.bf16.mxu1 %v14988_v58  ;;  %v16743_v58 = vld [vmem:[#allocation16 + $0xcc] ss:$16 sps:$4 sm:$0xff]  }
 0x945   :  { %13482 = vmatprep.subr.bf16.mxu0 %v16743_v58  ;;  %v10816_v58 = vld [vmem:[#allocation14 + $0x250] sm:$0xff] }
 0x946   :  { %13483 = vmatpush1.bf16.msra.mxu0 %v16741_v48  ;;  %v16791_v48 = vld [vmem:[#allocation16 + $0x1ec] ss:$16 sps:$4 sm:$0xff]  }
 0x947   :  { %11616 = vmatpush1.bf16.msra.mxu1 %v14987_v32  ;;  %v15075_v32 = vcombine.low %v10855_v45, %v10859_v17  ;;  %13484 = vmatprep.subr.bf16.mxu0 %v16746_v18  ;;  %v16783_v45 = vld [vmem:[#allocation16 + $0x1c8] ss:$16 sps:$4 sm:$0xff]   ;;  %v15021_v17 = vcombine.low %v10800_v63, %v10804_v28  ;;  %v10824_v18 = vld [vmem:[#allocation14 + $0x290] sm:$0xff] }
 0x948   :  { %11617 = vmatprep.subr.bf16.mxu1 %v14996_v37  ;;  %v15084_v37 = vcombine.high %v10863_v16, %v10867_v35  ;;  %v10820_v16 = vld [vmem:[#allocation14 + $0x270] sm:$0xff]  ;;  %v16789_v35 = vld [vmem:[#allocation16 + $0x1e8] ss:$16 sps:$4 sm:$0xff]  }
 0x94a   :  { %13485 = vmatpush1.bf16.msra.mxu0 %v16744_v43  ;;  %v15038_v43 = vcombine.high %v10816_v58, %v10820_v16 }
 0x94b   :  { %11618 = vmatpush1.bf16.msra.mxu1 %v14995_v11  ;;  %v10744_v11 = vld [vmem:[#allocation14 + $0x10] sm:$0xff] }
 0x94c   :  { %11619 = vmatprep.subr.bf16.mxu1 %v15004_v55  ;;  %v10748_v55 = vld [vmem:[#allocation14 + $0x30] sm:$0xff] }
 0x94d   :  { %v14966_v54 = vcombine.high %v10744_v11, %v10748_v55 }
 0x94f   :  { %11620 = vmatpush1.bf16.msra.mxu1 %v15003_v41  ;;  %v16747_v41 = vld [vmem:[#allocation16 + $0x108] ss:$16 sps:$4 sm:$0xff]  }
 0x950   :  { %11621 = vmatprep.subr.bf16.mxu1 %v15012_v39  ;;  %v16749_v39 = vld [vmem:[#allocation16 + $0x10c] ss:$16 sps:$4 sm:$0xff]  }
 0x951   :  { %13486 = vmatprep.subr.bf16.mxu0 %v16749_v39 }
 0x952   :  { %13487 = vmatpush1.bf16.msra.mxu0 %v16747_v41  ;;  %v10836_v41 = vld [vmem:[#allocation14 + $0x2f0] sm:$0xff] }
 0x953   :  { %11622 = vmatpush1.bf16.msra.mxu1 %v15011_v24  ;;  %v14965_v24 = vcombine.low %v10744_v11, %v10748_v55  ;;  %13488 = vmatprep.subr.bf16.mxu0 %v16755_v57  ;;  %v10828_v11 = vld [vmem:[#allocation14 + $0x2b0] sm:$0xff]  ;;  %v15037_v55 = vcombine.low %v10816_v58, %v10820_v16  ;;  %v10805_v58 = vld [vmem:[#allocation14 + $0x1f8] sm:$0xff] }
 0x954   :  { %11623 = vmatprep.subr.bf16.mxu1 %v15020_v40  ;;  %v14974_v40 = vcombine.high %v10752_v6, %v10756_v5  ;;  %v15045_v39 = vcombine.low %v10824_v18, %v10828_v11 }
 0x957   :  { %11624 = vmatpush1.bf16.msra.mxu1 %v15019_v10  ;;  %v16753_v10 = vld [vmem:[#allocation16 + $0x128] ss:$16 sps:$4 sm:$0xff]  }
 0x958   :  { %11625 = vmatprep.subr.bf16.mxu1 %v15028_v15  ;;  %v14973_v15 = vcombine.low %v10752_v6, %v10756_v5  ;;  %13489 = vmatpush1.bf16.msra.mxu0 %v16753_v10  ;;  %v10840_v5 = vld [vmem:[#allocation14 + $0x310] sm:$0xff] }
 0x959   :  { %13490 = vmatprep.subr.bf16.mxu0 %v16761_v50  ;;  %v10852_v10 = vld [vmem:[#allocation14 + $0x370] sm:$0xff] }
 0x95a   :  { %v15070_v57 = vcombine.high %v10848_v49, %v10852_v10  ;;  %v10860_v50 = vld [vmem:[#allocation14 + $0x3b0] sm:$0xff] }
 0x95b   :  { %11626 = vmatpush1.bf16.msra.mxu1 %v15027_v22  ;;  %v10772_v22 = vld [vmem:[#allocation14 + $0xf0] sm:$0xff] }
 0x95c   :  { %11627 = vmatprep.subr.bf16.mxu1 %v15036_v29  ;;  %v16759_v29 = vld [vmem:[#allocation16 + $0x148] ss:$16 sps:$4 sm:$0xff]   ;;  %v14990_v61 = vcombine.high %v10768_v4, %v10772_v22  ;;  %v14989_v2 = vcombine.low %v10768_v4, %v10772_v22  ;;  %v15069_v4 = vcombine.low %v10848_v49, %v10852_v10 }
 0x95d   :  { %13491 = vmatpush1.bf16.msra.mxu0 %v16759_v29  ;;  %v10864_v29 = vld [vmem:[#allocation14 + $0x3d0] sm:$0xff]  ;;  %v10841_v10 = vld [vmem:[#allocation14 + $0x318] sm:$0xff] }
 0x95e   :  { %13492 = vmatprep.subr.bf16.mxu0 %v16767_v0 }
 0x95f   :  { %11628 = vmatpush1.bf16.msra.mxu1 %v15035_v44  ;;  %v10780_v44 = vld [vmem:[#allocation14 + $0x130] sm:$0xff] }
 0x960   :  { %11629 = vmatprep.subr.bf16.mxu1 %v15044_v62  ;;  %v16765_v62 = vld [vmem:[#allocation16 + $0x168] ss:$16 sps:$4 sm:$0xff]   ;;  %v14998_v14 = vcombine.high %v10776_v27, %v10780_v44  ;;  %v14997_v42 = vcombine.low %v10776_v27, %v10780_v44 }
 0x961   :  { %13493 = vmatpush1.bf16.msra.mxu0 %v16765_v62  ;;  %v10745_v27 = vld [vmem:[#allocation14 + $0x18] sm:$0xff] }
 0x962   :  { %13494 = vmatprep.subr.bf16.mxu0 %v16773_v47  ;;  %v10749_v44 = vld [vmem:[#allocation14 + $0x38] sm:$0xff] }
 0x963   :  { %11630 = vmatpush1.bf16.msra.mxu1 %v15043_v33  ;;  %v10788_v33 = vld [vmem:[#allocation14 + $0x170] sm:$0xff]  ;;  %v10757_v47 = vld [vmem:[#allocation14 + $0x78] sm:$0xff] }
 0x964   :  { %11631 = vmatprep.subr.bf16.mxu1 %v15052_v12  ;;  %v16771_v12 = vld [vmem:[#allocation16 + $0x188] ss:$16 sps:$4 sm:$0xff]   ;;  %v15006_v59 = vcombine.high %v10784_v38, %v10788_v33  ;;  %v15005_v26 = vcombine.low %v10784_v38, %v10788_v33  ;;  %v14967_v38 = vcombine.low %v10745_v27, %v10749_v44 }
 0x965   :  { %13495 = vmatpush1.bf16.msra.mxu0 %v16771_v12  ;;  %v10761_v12 = vld [vmem:[#allocation14 + $0x98] sm:$0xff] }
 0x966   :  { %13496 = vmatprep.subr.bf16.mxu0 %v16779_v34 }
 0x967   :  { %11632 = vmatpush1.bf16.msra.mxu1 %v15051_v60  ;;  %v10796_v60 = vld [vmem:[#allocation14 + $0x1b0] sm:$0xff] }
 0x968   :  { %11633 = vmatprep.subr.bf16.mxu1 %v15060_v9  ;;  %v16777_v9 = vld [vmem:[#allocation16 + $0x1a8] ss:$16 sps:$4 sm:$0xff]   ;;  %v15014_v52 = vcombine.high %v10792_v8, %v10796_v60 }
 0x969   :  { %13497 = vmatpush1.bf16.msra.mxu0 %v16777_v9 }
 0x96b   :  { %11634 = vmatpush1.bf16.msra.mxu1 %v15059_v13  ;;  %v15013_v13 = vcombine.low %v10792_v8, %v10796_v60  ;;  %v10769_v8 = vld [vmem:[#allocation14 + $0xd8] sm:$0xff] }
 0x96c   :  { %11635 = vmatprep.subr.bf16.mxu1 %v15068_v19  ;;  %v15022_v19 = vcombine.high %v10800_v63, %v10804_v28  ;;  %v10773_v60 = vld [vmem:[#allocation14 + $0xf8] sm:$0xff] }
 0x96d   :  { %v10781_v63 = vld [vmem:[#allocation14 + $0x138] sm:$0xff]  ;;  %v14991_v28 = vcombine.low %v10769_v8, %v10773_v60 }
 0x96f   :  { %11636 = vmatpush1.bf16.msra.mxu1 %v15067_v30  ;;  %v16785_v30 = vld [vmem:[#allocation16 + $0x1cc] ss:$16 sps:$4 sm:$0xff]  }
 0x970   :  { %11637 = vmatprep.subr.bf16.mxu1 %v15076_v53  ;;  %v15030_v53 = vcombine.high %v10808_v7, %v10812_v31  ;;  %13498 = vmatprep.subr.bf16.mxu0 %v16785_v30 }
 0x971   :  { %13499 = vmatpush1.bf16.msra.mxu0 %v16783_v45  ;;  %v10793_v45 = vld [vmem:[#allocation14 + $0x198] sm:$0xff] }
 0x972   :  { %13500 = vmatprep.subr.bf16.mxu0 %v16791_v48  ;;  %v10801_v48 = vld [vmem:[#allocation14 + $0x1d8] sm:$0xff] }
 0x973   :  { %11638 = vmatpush1.bf16.msra.mxu1 %v15075_v32  ;;  %v15029_v32 = vcombine.low %v10808_v7, %v10812_v31  ;;  %v10789_v7 = vld [vmem:[#allocation14 + $0x178] sm:$0xff] }
 0x974   :  { %11639 = vmatprep.subr.bf16.mxu1 %v15084_v37  ;;  %v16797_v37 = vld [vmem:[#allocation16 + $0x20c] ss:$16 sps:$4 sm:$0xff]  }
 0x975   :  { %13501 = vmatpush1.bf16.msra.mxu0 %v16789_v35  ;;  %v15024_v35 = vcombine.high %v10801_v48, %v10805_v58 }
 0x976   :  { %13511 = vmatprep.subr.bf16.mxu0 %v16797_v37  ;;  %v10813_v37 = vld [vmem:[#allocation14 + $0x238] sm:$0xff] }
 0x977   :  { %11640 = vmatpush1.bf16.msra.mxu1 %v15083_v56  ;;  %v15046_v56 = vcombine.high %v10824_v18, %v10828_v11  ;;  %v10817_v11 = vld [vmem:[#allocation14 + $0x258] sm:$0xff] }
 0x978   :  { %11650 = vmatprep.subr.bf16.mxu1 %v14966_v54  ;;  %v10832_v54 = vld [vmem:[#allocation14 + $0x2d0] sm:$0xff] }
 0x979   :  { %v15054_v6 = vcombine.high %v10832_v54, %v10836_v41 }
 0x97a   :  { %11642 = vmatmul.mubr.bf16.vlgmr.msra.gmra.mrb[108].mxu1 %v20517_v3 }
 0x97b   :  { %11651 = vmatpush1.bf16.msra.mxu1 %v14965_v24  ;;  %11682 = vmatprep.mubr.bf16.mxu1 %v20515_v1  ;;  %v10844_v24 = vld [vmem:[#allocation14 + $0x330] sm:$0xff] }
 0x97c   :  { %11652 = vmatprep.subr.bf16.mxu1 %v14974_v40  ;;  %v15053_v40 = vcombine.low %v10832_v54, %v10836_v41  ;;  %v15062_v51 = vcombine.high %v10840_v5, %v10844_v24  ;;  %v10825_v41 = vld [vmem:[#allocation14 + $0x298] sm:$0xff] }
 0x97f   :  { %11653 = vmatpush1.bf16.msra.mxu1 %v14973_v15  ;;  %v15061_v15 = vcombine.low %v10840_v5, %v10844_v24  ;;  %v10833_v24 = vld [vmem:[#allocation14 + $0x2d8] sm:$0xff] }
 0x980   :  { %11654 = vmatprep.subr.bf16.mxu1 %v14982_v21  ;;  %v10856_v21 = vld [vmem:[#allocation14 + $0x390] sm:$0xff] }
 0x981   :  { %v15078_v22 = vcombine.high %v10856_v21, %v10860_v50 }
 0x983   :  { %11655 = vmatpush1.bf16.msra.mxu1 %v14981_v20  ;;  %v10868_v20 = vld [vmem:[#allocation14 + $0x3f0] sm:$0xff] }
 0x984   :  { %11656 = vmatprep.subr.bf16.mxu1 %v14990_v61  ;;  %v15077_v61 = vcombine.low %v10856_v21, %v10860_v50  ;;  %v15086_v0 = vcombine.high %v10864_v29, %v10868_v20  ;;  %v15085_v62 = vcombine.low %v10864_v29, %v10868_v20  ;;  %v10849_v50 = vld [vmem:[#allocation14 + $0x358] sm:$0xff] }
 0x985   :  { %v10857_v20 = vld [vmem:[#allocation14 + $0x398] sm:$0xff] }
 0x987   :  { %11657 = vmatpush1.bf16.msra.mxu1 %v14989_v2  ;;  %v14968_v2 = vcombine.high %v10745_v27, %v10749_v44  ;;  %v10865_v44 = vld [vmem:[#allocation14 + $0x3d8] sm:$0xff] }
 0x988   :  { %11658 = vmatprep.subr.bf16.mxu1 %v14998_v14  ;;  %v10753_v14 = vld [vmem:[#allocation14 + $0x58] sm:$0xff] }
 0x989   :  { %v14976_v33 = vcombine.high %v10753_v14, %v10757_v47 }
 0x98b   :  { %11659 = vmatpush1.bf16.msra.mxu1 %v14997_v42  ;;  %v10765_v42 = vld [vmem:[#allocation14 + $0xb8] sm:$0xff] }
 0x98c   :  { %11660 = vmatprep.subr.bf16.mxu1 %v15006_v59  ;;  %v14975_v59 = vcombine.low %v10753_v14, %v10757_v47  ;;  %v14984_v34 = vcombine.high %v10761_v12, %v10765_v42  ;;  %v14983_v9 = vcombine.low %v10761_v12, %v10765_v42  ;;  %v16758_v12 = vld [vmem:[#allocation16 + $0x24] ss:$16 sps:$4 sm:$0xff]   ;;  %v16756_v42 = vld [vmem:[#allocation16 + $0x20] ss:$16 sps:$4 sm:$0xff]  }
 0x98f   :  { %11661 = vmatpush1.bf16.msra.mxu1 %v15005_v26  ;;  %v14992_v26 = vcombine.high %v10769_v8, %v10773_v60  ;;  %v16770_v8 = vld [vmem:[#allocation16 + $0x64] ss:$16 sps:$4 sm:$0xff]   ;;  %v16768_v60 = vld [vmem:[#allocation16 + $0x60] ss:$16 sps:$4 sm:$0xff]  }
 0x990   :  { %11662 = vmatprep.subr.bf16.mxu1 %v15014_v52  ;;  %v10777_v52 = vld [vmem:[#allocation14 + $0x118] sm:$0xff] }
 0x991   :  { %v14999_v31 = vcombine.low %v10777_v52, %v10781_v63 }
 0x993   :  { %11663 = vmatpush1.bf16.msra.mxu1 %v15013_v13  ;;  %v15000_v13 = vcombine.high %v10777_v52, %v10781_v63  ;;  %v20533_v52 = vld [vmem:[%s20598_s10] sm:$0xff] }
 0x994   :  { %11664 = vmatprep.subr.bf16.mxu1 %v15022_v19  ;;  %v10785_v19 = vld [vmem:[#allocation14 + $0x158] sm:$0xff]  ;;  %v10875_v63 = vrot.slane %v20533_v52, %v17796_v25 }
 0x995   :  { %v15007_v30 = vcombine.low %v10785_v19, %v10789_v7 }
 0x997   :  { %11665 = vmatpush1.bf16.msra.mxu1 %v15021_v17  ;;  %v10797_v17 = vld [vmem:[#allocation14 + $0x1b8] sm:$0xff] }
 0x998   :  { %11666 = vmatprep.subr.bf16.mxu1 %v15030_v53  ;;  %v15016_v53 = vcombine.high %v10793_v45, %v10797_v17  ;;  %v15015_v16 = vcombine.low %v10793_v45, %v10797_v17 }
 0x99b   :  { %11667 = vmatpush1.bf16.msra.mxu1 %v15029_v32  ;;  %v10809_v32 = vld [vmem:[#allocation14 + $0x218] sm:$0xff] }
 0x99c   :  { %11668 = vmatprep.subr.bf16.mxu1 %v15038_v43  ;;  %v15023_v43 = vcombine.low %v10801_v48, %v10805_v58  ;;  %v15032_v18 = vcombine.high %v10809_v32, %v10813_v37  ;;  %v16794_v58 = vld [vmem:[#allocation16 + $0xe4] ss:$16 sps:$4 sm:$0xff]  }
 0x99f   :  { %11669 = vmatpush1.bf16.msra.mxu1 %v15037_v55  ;;  %v10821_v55 = vld [vmem:[#allocation14 + $0x278] sm:$0xff] }
 0x9a0   :  { %11670 = vmatprep.subr.bf16.mxu1 %v15046_v56  ;;  %v15031_v56 = vcombine.low %v10809_v32, %v10813_v37  ;;  %v15040_v54 = vcombine.high %v10817_v11, %v10821_v55  ;;  %v16792_v32 = vld [vmem:[#allocation16 + $0xe0] ss:$16 sps:$4 sm:$0xff]   ;;  %v16795_v37 = vld [vmem:[#allocation16 + $0x208] ss:$16 sps:$4 sm:$0xff]  }
 0x9a3   :  { %11671 = vmatpush1.bf16.msra.mxu1 %v15045_v39  ;;  %v10829_v39 = vld [vmem:[#allocation14 + $0x2b8] sm:$0xff] }
 0x9a4   :  { %11672 = vmatprep.subr.bf16.mxu1 %v15054_v6  ;;  %v15039_v6 = vcombine.low %v10817_v11, %v10821_v55  ;;  %v15048_v5 = vcombine.high %v10825_v41, %v10829_v39  ;;  %v16803_v11 = vld [vmem:[#allocation16 + $0x22c] ss:$16 sps:$4 sm:$0xff]   ;;  %v16798_v55 = vld [vmem:[#allocation16 + $0x100] ss:$16 sps:$4 sm:$0xff]  }
 0x9a7   :  { %11673 = vmatpush1.bf16.msra.mxu1 %v15053_v40  ;;  %v10837_v40 = vld [vmem:[#allocation14 + $0x2f8] sm:$0xff] }
 0x9a8   :  { %11674 = vmatprep.subr.bf16.mxu1 %v15062_v51  ;;  %v15047_v51 = vcombine.low %v10825_v41, %v10829_v39  ;;  %v15056_v49 = vcombine.high %v10833_v24, %v10837_v40  ;;  %v16809_v41 = vld [vmem:[#allocation16 + $0x24c] ss:$16 sps:$4 sm:$0xff]   ;;  %v16804_v39 = vld [vmem:[#allocation16 + $0x120] ss:$16 sps:$4 sm:$0xff]  }
 0x9ab   :  { %11675 = vmatpush1.bf16.msra.mxu1 %v15061_v15  ;;  %v10845_v15 = vld [vmem:[#allocation14 + $0x338] sm:$0xff] }
 0x9ac   :  { %11676 = vmatprep.subr.bf16.mxu1 %v15070_v57  ;;  %v15055_v57 = vcombine.low %v10833_v24, %v10837_v40  ;;  %v15064_v21 = vcombine.high %v10841_v10, %v10845_v15  ;;  %v16815_v24 = vld [vmem:[#allocation16 + $0x26c] ss:$16 sps:$4 sm:$0xff]   ;;  %v16810_v40 = vld [vmem:[#allocation16 + $0x140] ss:$16 sps:$4 sm:$0xff]  }
 0x9af   :  { %11677 = vmatpush1.bf16.msra.mxu1 %v15069_v4  ;;  %v10853_v4 = vld [vmem:[#allocation14 + $0x378] sm:$0xff] }
 0x9b0   :  { %11678 = vmatprep.subr.bf16.mxu1 %v15078_v22  ;;  %v15063_v22 = vcombine.low %v10841_v10, %v10845_v15  ;;  %v15072_v29 = vcombine.high %v10849_v50, %v10853_v4  ;;  %v16821_v10 = vld [vmem:[#allocation16 + $0x28c] ss:$16 sps:$4 sm:$0xff]   ;;  %v16816_v15 = vld [vmem:[#allocation16 + $0x160] ss:$16 sps:$4 sm:$0xff]  }
 0x9b3   :  { %11679 = vmatpush1.bf16.msra.mxu1 %v15077_v61  ;;  %v10861_v61 = vld [vmem:[#allocation14 + $0x3b8] sm:$0xff] }
 0x9b4   :  { %11680 = vmatprep.subr.bf16.mxu1 %v15086_v0  ;;  %v15071_v0 = vcombine.low %v10849_v50, %v10853_v4  ;;  %v15080_v27 = vcombine.high %v10857_v20, %v10861_v61  ;;  %v16827_v50 = vld [vmem:[#allocation16 + $0x2ac] ss:$16 sps:$4 sm:$0xff]   ;;  %v16822_v4 = vld [vmem:[#allocation16 + $0x180] ss:$16 sps:$4 sm:$0xff]  }
 0x9b7   :  { %11681 = vmatpush1.bf16.msra.mxu1 %v15085_v62  ;;  %v10869_v62 = vld [vmem:[#allocation14 + $0x3f8] sm:$0xff] }
 0x9b8   :  { %11691 = vmatprep.subr.bf16.mxu1 %v14968_v2  ;;  %v15079_v2 = vcombine.low %v10857_v20, %v10861_v61  ;;  %v15088_v14 = vcombine.high %v10865_v44, %v10869_v62  ;;  %v15087_v47 = vcombine.low %v10865_v44, %v10869_v62  ;;  %v16833_v20 = vld [vmem:[#allocation16 + $0x2cc] ss:$16 sps:$4 sm:$0xff]   ;;  %v16828_v61 = vld [vmem:[#allocation16 + $0x1a0] ss:$16 sps:$4 sm:$0xff]  }
 0x9b9   :  { %v16839_v44 = vld [vmem:[#allocation16 + $0x2ec] ss:$16 sps:$4 sm:$0xff]   ;;  %v16834_v62 = vld [vmem:[#allocation16 + $0x1c0] ss:$16 sps:$4 sm:$0xff]  }
 0x9ba   :  { %11683 = vmatmul.mubr.bf16.vlgmr.msra.gmra.mrb[112].mxu1 %v20517_v3 }
 0x9bb   :  { %11692 = vmatpush1.bf16.msra.mxu1 %v14967_v38  ;;  %11723 = vmatprep.mubr.bf16.mxu1 %v20515_v1  ;;  %v15008_v1 = vcombine.high %v10785_v19, %v10789_v7  ;;  %v16752_v38 = vld [vmem:[#allocation16 + $0x4] ss:$16 sps:$4 sm:$0xff]  }
 0x9bc   :  { %11693 = vmatprep.subr.bf16.mxu1 %v14976_v33  ;;  %v16750_v33 = vld [vmem:[#allocation16] ss:$16 sps:$4 sm:$0xff]   ;;  %v16788_v19 = vld [vmem:[#allocation16 + $0xc4] ss:$16 sps:$4 sm:$0xff]  }
 0x9bf   :  { %11694 = vmatpush1.bf16.msra.mxu1 %v14975_v59  ;;  %v16764_v59 = vld [vmem:[#allocation16 + $0x44] ss:$16 sps:$4 sm:$0xff]  }
 0x9c0   :  { %11695 = vmatprep.subr.bf16.mxu1 %v14984_v34  ;;  %v16762_v34 = vld [vmem:[#allocation16 + $0x40] ss:$16 sps:$4 sm:$0xff]  }
 0x9c3   :  { %11696 = vmatpush1.bf16.msra.mxu1 %v14983_v9  ;;  %v16776_v9 = vld [vmem:[#allocation16 + $0x84] ss:$16 sps:$4 sm:$0xff]  }
 0x9c4   :  { %11697 = vmatprep.subr.bf16.mxu1 %v14992_v26  ;;  %v16774_v26 = vld [vmem:[#allocation16 + $0x80] ss:$16 sps:$4 sm:$0xff]  }
 0x9c7   :  { %11698 = vmatpush1.bf16.msra.mxu1 %v14991_v28  ;;  %v16780_v28 = vld [vmem:[#allocation16 + $0xa0] ss:$16 sps:$4 sm:$0xff]  }
 0x9c8   :  { %11699 = vmatprep.subr.bf16.mxu1 %v15000_v13  ;;  %v10879_v13 = vrot.slane %v20533_v52, %v19511_v46 }
 0x9cb   :  { %11700 = vmatpush1.bf16.msra.mxu1 %v14999_v31 }
 0x9cc   :  { %11701 = vmatprep.subr.bf16.mxu1 %v15008_v1 }
 0x9cf   :  { %11702 = vmatpush1.bf16.msra.mxu1 %v15007_v30  ;;  %v16786_v30 = vld [vmem:[#allocation16 + $0xc0] ss:$16 sps:$4 sm:$0xff]  }
 0x9d0   :  { %11703 = vmatprep.subr.bf16.mxu1 %v15016_v53 }
 0x9d3   :  { %11704 = vmatpush1.bf16.msra.mxu1 %v15015_v16 }
 0x9d4   :  { %11705 = vmatprep.subr.bf16.mxu1 %v15024_v35 }
 0x9d7   :  { %11706 = vmatpush1.bf16.msra.mxu1 %v15023_v43 }
 0x9d8   :  { %11707 = vmatprep.subr.bf16.mxu1 %v15032_v18  ;;  %v16800_v18 = vld [vmem:[#allocation16 + $0x104] ss:$16 sps:$4 sm:$0xff]  }
 0x9db   :  { %11708 = vmatpush1.bf16.msra.mxu1 %v15031_v56  ;;  %v16801_v56 = vld [vmem:[#allocation16 + $0x228] ss:$16 sps:$4 sm:$0xff]  }
 0x9dc   :  { %11709 = vmatprep.subr.bf16.mxu1 %v15040_v54  ;;  %v16806_v54 = vld [vmem:[#allocation16 + $0x124] ss:$16 sps:$4 sm:$0xff]  }
 0x9df   :  { %11710 = vmatpush1.bf16.msra.mxu1 %v15039_v6  ;;  %v16807_v6 = vld [vmem:[#allocation16 + $0x248] ss:$16 sps:$4 sm:$0xff]  }
 0x9e0   :  { %11711 = vmatprep.subr.bf16.mxu1 %v15048_v5  ;;  %v16812_v5 = vld [vmem:[#allocation16 + $0x144] ss:$16 sps:$4 sm:$0xff]  }
 0x9e3   :  { %11712 = vmatpush1.bf16.msra.mxu1 %v15047_v51  ;;  %v16813_v51 = vld [vmem:[#allocation16 + $0x268] ss:$16 sps:$4 sm:$0xff]  }
 0x9e4   :  { %11713 = vmatprep.subr.bf16.mxu1 %v15056_v49  ;;  %v16818_v49 = vld [vmem:[#allocation16 + $0x164] ss:$16 sps:$4 sm:$0xff]  }
 0x9e7   :  { %11714 = vmatpush1.bf16.msra.mxu1 %v15055_v57  ;;  %v16819_v57 = vld [vmem:[#allocation16 + $0x288] ss:$16 sps:$4 sm:$0xff]  }
 0x9e8   :  { %11715 = vmatprep.subr.bf16.mxu1 %v15064_v21  ;;  %v16824_v21 = vld [vmem:[#allocation16 + $0x184] ss:$16 sps:$4 sm:$0xff]  }
 0x9eb   :  { %11716 = vmatpush1.bf16.msra.mxu1 %v15063_v22  ;;  %v16825_v22 = vld [vmem:[#allocation16 + $0x2a8] ss:$16 sps:$4 sm:$0xff]  }
 0x9ec   :  { %11717 = vmatprep.subr.bf16.mxu1 %v15072_v29  ;;  %v16830_v29 = vld [vmem:[#allocation16 + $0x1a4] ss:$16 sps:$4 sm:$0xff]  }
 0x9ef   :  { %11718 = vmatpush1.bf16.msra.mxu1 %v15071_v0  ;;  %v16831_v0 = vld [vmem:[#allocation16 + $0x2c8] ss:$16 sps:$4 sm:$0xff]  }
 0x9f0   :  { %11719 = vmatprep.subr.bf16.mxu1 %v15080_v27  ;;  %v16836_v27 = vld [vmem:[#allocation16 + $0x1c4] ss:$16 sps:$4 sm:$0xff]  }
 0x9f3   :  { %11720 = vmatpush1.bf16.msra.mxu1 %v15079_v2  ;;  %v16837_v2 = vld [vmem:[#allocation16 + $0x2e8] ss:$16 sps:$4 sm:$0xff]  }
 0x9f4   :  { %11721 = vmatprep.subr.bf16.mxu1 %v15088_v14  ;;  %v16842_v14 = vld [vmem:[#allocation16 + $0x1e4] ss:$16 sps:$4 sm:$0xff]  }
 0x9f7   :  { %11722 = vmatpush1.bf16.msra.mxu1 %v15087_v47  ;;  %v16845_v47 = vld [vmem:[#allocation16 + $0x30c] ss:$16 sps:$4 sm:$0xff]  }
 0x9f8   :  { %13306 = vmatprep.subr.bf16.mxu1 %v16752_v38  ;;  %v16840_v38 = vld [vmem:[#allocation16 + $0x1e0] ss:$16 sps:$4 sm:$0xff]  }
 0x9fa   :  { %11724 = vmatmul.mubr.bf16.vlgmr.msra.gmra.mrb[116].mxu1 %v20517_v3  ;;  %v16782_v3 = vld [vmem:[#allocation16 + $0xa4] ss:$16 sps:$4 sm:$0xff]  }
 0x9fb   :  { %13307 = vmatpush1.bf16.msra.mxu1 %v16750_v33  ;;  %v16843_v33 = vld [vmem:[#allocation16 + $0x308] ss:$16 sps:$4 sm:$0xff]  }
 0x9fc   :  { %13308 = vmatprep.subr.bf16.mxu1 %v16758_v12  ;;  %v16848_v12 = vld [vmem:[#allocation16 + $0x204] ss:$16 sps:$4 sm:$0xff]  }
 0x9ff   :  { %13309 = vmatpush1.bf16.msra.mxu1 %v16756_v42  ;;  %v16851_v42 = vld [vmem:[#allocation16 + $0x32c] ss:$16 sps:$4 sm:$0xff]  }
 0xa00   :  { %13310 = vmatprep.subr.bf16.mxu1 %v16764_v59  ;;  %v16846_v59 = vld [vmem:[#allocation16 + $0x200] ss:$16 sps:$4 sm:$0xff]  }
 0xa03   :  { %13311 = vmatpush1.bf16.msra.mxu1 %v16762_v34  ;;  %v16849_v34 = vld [vmem:[#allocation16 + $0x328] ss:$16 sps:$4 sm:$0xff]  }
 0xa04   :  { %13312 = vmatprep.subr.bf16.mxu1 %v16770_v8  ;;  %v16854_v8 = vld [vmem:[#allocation16 + $0x224] ss:$16 sps:$4 sm:$0xff]  }
 0xa07   :  { %13313 = vmatpush1.bf16.msra.mxu1 %v16768_v60  ;;  %v16857_v60 = vld [vmem:[#allocation16 + $0x34c] ss:$16 sps:$4 sm:$0xff]  }
 0xa08   :  { %13314 = vmatprep.subr.bf16.mxu1 %v16776_v9  ;;  %v16852_v9 = vld [vmem:[#allocation16 + $0x220] ss:$16 sps:$4 sm:$0xff]  }
 0xa0b   :  { %13315 = vmatpush1.bf16.msra.mxu1 %v16774_v26  ;;  %v16855_v26 = vld [vmem:[#allocation16 + $0x348] ss:$16 sps:$4 sm:$0xff]  }
 0xa0c   :  { %13316 = vmatprep.subr.bf16.mxu1 %v16782_v3  ;;  %v16860_v3 = vld [vmem:[#allocation16 + $0x244] ss:$16 sps:$4 sm:$0xff]  }
 0xa0d   :  { %v11602_v7 = vpop.f32.mrb[104].mxu1 }
 0xa0e   :  { %v11603_v31 = vadd.f32 %v11602_v7, %v10875_v63  ;;  %v11604_v1 = vpop.f32.mrb[105].mxu1  ;;  %v16863_v63 = vld [vmem:[#allocation16 + $0x36c] ss:$16 sps:$4 sm:$0xff]  }
 0xa0f   :  { %v11605_v45 = vadd.f32 %v11604_v1, %v10879_v13  ;;  %13317 = vmatpush1.bf16.msra.mxu1 %v16780_v28  ;;  %v11606_v17 = vpop.f32.mrb[106].mxu1  ;;  %v16858_v28 = vld [vmem:[#allocation16 + $0x240] ss:$16 sps:$4 sm:$0xff]   ;;  %v16861_v13 = vld [vmem:[#allocation16 + $0x368] ss:$16 sps:$4 sm:$0xff]  }
 0xa10   :  { %v11732_v53 = vmax.f32 %v11603_v31, 0.0  ;;  %v11607_v48 = vpop.f32.mrb[107].mxu1  ;;  %13318 = vmatprep.subr.bf16.mxu1 %v16788_v19  ;;  %v16866_v19 = vld [vmem:[#allocation16 + $0x264] ss:$16 sps:$4 sm:$0xff]   ;;  %v16869_v7 = vld [vmem:[#allocation16 + $0x38c] ss:$16 sps:$4 sm:$0xff]  }
 0xa11   :  { %v11733_v16 = vmax.f32 %v11605_v45, 0.0  ;;  %v16864_v31 = vld [vmem:[#allocation16 + $0x260] ss:$16 sps:$4 sm:$0xff]   ;;  %v16867_v1 = vld [vmem:[#allocation16 + $0x388] ss:$16 sps:$4 sm:$0xff]   ;;  %v10886_v48 = vsub.s32 3, %v20632_v36 }
 0xa12   :  { %v20539_v43 = vpack.c.bf16 %v11732_v53, %v11732_v53  ;;  %v16872_v45 = vld [vmem:[#allocation16 + $0x284] ss:$16 sps:$4 sm:$0xff]   ;;  %v16875_v17 = vld [vmem:[#allocation16 + $0x3ac] ss:$16 sps:$4 sm:$0xff]   ;;  %v16873_v53 = vld [vmem:[#allocation16 + $0x3a8] ss:$16 sps:$4 sm:$0xff]  }
 0xa13   :  { %v11741_v35 = vpack.c.bf16 %v11733_v16, %v11733_v16  ;;  %13319 = vmatpush1.bf16.msra.mxu1 %v16786_v30  ;;  %v16870_v30 = vld [vmem:[#allocation16 + $0x280] ss:$16 sps:$4 sm:$0xff]   ;;  %v16881_v16 = vld [vmem:[#allocation16 + $0x3cc] ss:$16 sps:$4 sm:$0xff]  }
 0xa14   :  { %13320 = vmatprep.subr.bf16.mxu1 %v16794_v58  ;;  %v16878_v58 = vld [vmem:[#allocation16 + $0x2a4] ss:$16 sps:$4 sm:$0xff]  }
 0xa15   :  { %13338 = vmatprep.mubr.bf16.mxu1 %v11741_v35  ;;  %13502 = vmatprep.mubr.bf16.mxu0 %v11741_v35  ;;  %v10883_v35 = vrot.slane %v20533_v52, %v20507_v23 }
 0xa16   :  { %13503 = vmatmul.mubr.bf16.vlgmr.msra.gmra.mrb[116].mxu0 %v20539_v43 }
 0xa17   :  { %13321 = vmatpush1.bf16.msra.mxu1 %v16792_v32  ;;  %13512 = vmatpush1.bf16.msra.mxu0 %v16795_v37  ;;  %v10887_v32 = vrot.slane %v20533_v52, %v10886_v48  ;;  %v16876_v37 = vld [vmem:[#allocation16 + $0x2a0] ss:$16 sps:$4 sm:$0xff]  }
 0xa18   :  { %13322 = vmatprep.subr.bf16.mxu1 %v16800_v18  ;;  %13513 = vmatprep.subr.bf16.mxu0 %v16803_v11  ;;  %v16884_v18 = vld [vmem:[#allocation16 + $0x2c4] ss:$16 sps:$4 sm:$0xff]   ;;  %v16887_v11 = vld [vmem:[#allocation16 + $0x3ec] ss:$16 sps:$4 sm:$0xff]  }
 0xa1b   :  { %13323 = vmatpush1.bf16.msra.mxu1 %v16798_v55  ;;  %13514 = vmatpush1.bf16.msra.mxu0 %v16801_v56 }
 0xa1c   :  { %13324 = vmatprep.subr.bf16.mxu1 %v16806_v54  ;;  %13515 = vmatprep.subr.bf16.mxu0 %v16809_v41 }
 0xa1f   :  { %13325 = vmatpush1.bf16.msra.mxu1 %v16804_v39  ;;  %13516 = vmatpush1.bf16.msra.mxu0 %v16807_v6  ;;  %v16882_v6 = vld [vmem:[#allocation16 + $0x2c0] ss:$16 sps:$4 sm:$0xff]  }
 0xa20   :  { %13326 = vmatprep.subr.bf16.mxu1 %v16812_v5  ;;  %13517 = vmatprep.subr.bf16.mxu0 %v16815_v24  ;;  %v16885_v5 = vld [vmem:[#allocation16 + $0x3e8] ss:$16 sps:$4 sm:$0xff]  }
 0xa23   :  { %13327 = vmatpush1.bf16.msra.mxu1 %v16810_v40  ;;  %13518 = vmatpush1.bf16.msra.mxu0 %v16813_v51  ;;  %v16890_v51 = vld [vmem:[#allocation16 + $0x2e4] ss:$16 sps:$4 sm:$0xff]  }
 0xa24   :  { %13328 = vmatprep.subr.bf16.mxu1 %v16818_v49  ;;  %13519 = vmatprep.subr.bf16.mxu0 %v16821_v10  ;;  %v16893_v49 = vld [vmem:[#allocation16 + $0x40c] ss:$16 sps:$4 sm:$0xff]  }
 0xa27   :  { %13329 = vmatpush1.bf16.msra.mxu1 %v16816_v15  ;;  %13520 = vmatpush1.bf16.msra.mxu0 %v16819_v57  ;;  %v16888_v57 = vld [vmem:[#allocation16 + $0x2e0] ss:$16 sps:$4 sm:$0xff]  }
 0xa28   :  { %13330 = vmatprep.subr.bf16.mxu1 %v16824_v21  ;;  %13521 = vmatprep.subr.bf16.mxu0 %v16827_v50  ;;  %v16891_v21 = vld [vmem:[#allocation16 + $0x408] ss:$16 sps:$4 sm:$0xff]  }
 0xa2b   :  { %13331 = vmatpush1.bf16.msra.mxu1 %v16822_v4  ;;  %13522 = vmatpush1.bf16.msra.mxu0 %v16825_v22  ;;  %v16896_v4 = vld [vmem:[#allocation16 + $0x304] ss:$16 sps:$4 sm:$0xff]   ;;  %v16899_v22 = vld [vmem:[#allocation16 + $0x42c] ss:$16 sps:$4 sm:$0xff]  }
 0xa2c   :  { %13332 = vmatprep.subr.bf16.mxu1 %v16830_v29  ;;  %13523 = vmatprep.subr.bf16.mxu0 %v16833_v20  ;;  %v16894_v29 = vld [vmem:[#allocation16 + $0x300] ss:$16 sps:$4 sm:$0xff]   ;;  %v16897_v20 = vld [vmem:[#allocation16 + $0x428] ss:$16 sps:$4 sm:$0xff]  }
 0xa2f   :  { %13333 = vmatpush1.bf16.msra.mxu1 %v16828_v61  ;;  %13524 = vmatpush1.bf16.msra.mxu0 %v16831_v0  ;;  %v16902_v61 = vld [vmem:[#allocation16 + $0x324] ss:$16 sps:$4 sm:$0xff]   ;;  %v16905_v0 = vld [vmem:[#allocation16 + $0x44c] ss:$16 sps:$4 sm:$0xff]  }
 0xa30   :  { %13334 = vmatprep.subr.bf16.mxu1 %v16836_v27  ;;  %13525 = vmatprep.subr.bf16.mxu0 %v16839_v44  ;;  %v16900_v27 = vld [vmem:[#allocation16 + $0x320] ss:$16 sps:$4 sm:$0xff]   ;;  %v16903_v44 = vld [vmem:[#allocation16 + $0x448] ss:$16 sps:$4 sm:$0xff]  }
 0xa33   :  { %13335 = vmatpush1.bf16.msra.mxu1 %v16834_v62  ;;  %13526 = vmatpush1.bf16.msra.mxu0 %v16837_v2  ;;  %v16908_v62 = vld [vmem:[#allocation16 + $0x344] ss:$16 sps:$4 sm:$0xff]   ;;  %v16911_v2 = vld [vmem:[#allocation16 + $0x46c] ss:$16 sps:$4 sm:$0xff]  }
 0xa34   :  { %13336 = vmatprep.subr.bf16.mxu1 %v16842_v14  ;;  %13527 = vmatprep.subr.bf16.mxu0 %v16845_v47  ;;  %v16906_v14 = vld [vmem:[#allocation16 + $0x340] ss:$16 sps:$4 sm:$0xff]   ;;  %v16909_v47 = vld [vmem:[#allocation16 + $0x468] ss:$16 sps:$4 sm:$0xff]  }
 0xa37   :  { %13337 = vmatpush1.bf16.msra.mxu1 %v16840_v38  ;;  %13528 = vmatpush1.bf16.msra.mxu0 %v16843_v33  ;;  %v16914_v38 = vld [vmem:[#allocation16 + $0x364] ss:$16 sps:$4 sm:$0xff]   ;;  %v16917_v33 = vld [vmem:[#allocation16 + $0x48c] ss:$16 sps:$4 sm:$0xff]  }
 0xa38   :  { %13347 = vmatprep.subr.bf16.mxu1 %v16848_v12  ;;  %13529 = vmatprep.subr.bf16.mxu0 %v16851_v42  ;;  %v16912_v12 = vld [vmem:[#allocation16 + $0x360] ss:$16 sps:$4 sm:$0xff]   ;;  %v16915_v42 = vld [vmem:[#allocation16 + $0x488] ss:$16 sps:$4 sm:$0xff]  }
 0xa3a   :  { %13339 = vmatmul.mubr.bf16.vlgmr.msra.gmra.mrb[120].mxu1 %v20539_v43  ;;  %v16879_v43 = vld [vmem:[#allocation16 + $0x3c8] ss:$16 sps:$4 sm:$0xff]  }
 0xa3b   :  { %13348 = vmatpush1.bf16.msra.mxu1 %v16846_v59  ;;  %13530 = vmatpush1.bf16.msra.mxu0 %v16849_v34  ;;  %v16920_v59 = vld [vmem:[#allocation16 + $0x384] ss:$16 sps:$4 sm:$0xff]   ;;  %v16923_v34 = vld [vmem:[#allocation16 + $0x4ac] ss:$16 sps:$4 sm:$0xff]  }
 0xa3c   :  { %13349 = vmatprep.subr.bf16.mxu1 %v16854_v8  ;;  %13531 = vmatprep.subr.bf16.mxu0 %v16857_v60  ;;  %v16918_v8 = vld [vmem:[#allocation16 + $0x380] ss:$16 sps:$4 sm:$0xff]   ;;  %v16921_v60 = vld [vmem:[#allocation16 + $0x4a8] ss:$16 sps:$4 sm:$0xff]  }
 0xa3f   :  { %13350 = vmatpush1.bf16.msra.mxu1 %v16852_v9  ;;  %13532 = vmatpush1.bf16.msra.mxu0 %v16855_v26  ;;  %v16926_v9 = vld [vmem:[#allocation16 + $0x3a4] ss:$16 sps:$4 sm:$0xff]   ;;  %v16929_v26 = vld [vmem:[#allocation16 + $0x4cc] ss:$16 sps:$4 sm:$0xff]  }
 0xa40   :  { %13351 = vmatprep.subr.bf16.mxu1 %v16860_v3  ;;  %13533 = vmatprep.subr.bf16.mxu0 %v16863_v63  ;;  %v16924_v3 = vld [vmem:[#allocation16 + $0x3a0] ss:$16 sps:$4 sm:$0xff]   ;;  %v16927_v63 = vld [vmem:[#allocation16 + $0x4c8] ss:$16 sps:$4 sm:$0xff]  }
 0xa43   :  { %13352 = vmatpush1.bf16.msra.mxu1 %v16858_v28  ;;  %13534 = vmatpush1.bf16.msra.mxu0 %v16861_v13  ;;  %v16932_v28 = vld [vmem:[#allocation16 + $0x3c4] ss:$16 sps:$4 sm:$0xff]   ;;  %v16935_v13 = vld [vmem:[#allocation16 + $0x4ec] ss:$16 sps:$4 sm:$0xff]  }
 0xa44   :  { %13353 = vmatprep.subr.bf16.mxu1 %v16866_v19  ;;  %13535 = vmatprep.subr.bf16.mxu0 %v16869_v7  ;;  %v16930_v19 = vld [vmem:[#allocation16 + $0x3c0] ss:$16 sps:$4 sm:$0xff]   ;;  %v16933_v7 = vld [vmem:[#allocation16 + $0x4e8] ss:$16 sps:$4 sm:$0xff]  }
 0xa47   :  { %13354 = vmatpush1.bf16.msra.mxu1 %v16864_v31  ;;  %13536 = vmatpush1.bf16.msra.mxu0 %v16867_v1  ;;  %v16938_v31 = vld [vmem:[#allocation16 + $0x3e4] ss:$16 sps:$4 sm:$0xff]   ;;  %v16941_v1 = vld [vmem:[#allocation16 + $0x50c] ss:$16 sps:$4 sm:$0xff]  }
 0xa48   :  { %13355 = vmatprep.subr.bf16.mxu1 %v16872_v45  ;;  %13537 = vmatprep.subr.bf16.mxu0 %v16875_v17  ;;  %v16936_v45 = vld [vmem:[#allocation16 + $0x3e0] ss:$16 sps:$4 sm:$0xff]   ;;  %v16939_v17 = vld [vmem:[#allocation16 + $0x508] ss:$16 sps:$4 sm:$0xff]  }
 0xa4b   :  { %13356 = vmatpush1.bf16.msra.mxu1 %v16870_v30  ;;  %13538 = vmatpush1.bf16.msra.mxu0 %v16873_v53  ;;  %v16944_v30 = vld [vmem:[#allocation16 + $0x404] ss:$16 sps:$4 sm:$0xff]   ;;  %v16947_v53 = vld [vmem:[#allocation16 + $0x52c] ss:$16 sps:$4 sm:$0xff]  }
 0xa4c   :  { %13357 = vmatprep.subr.bf16.mxu1 %v16878_v58  ;;  %13539 = vmatprep.subr.bf16.mxu0 %v16881_v16  ;;  %v16942_v58 = vld [vmem:[#allocation16 + $0x400] ss:$16 sps:$4 sm:$0xff]   ;;  %v16945_v16 = vld [vmem:[#allocation16 + $0x528] ss:$16 sps:$4 sm:$0xff]  }
 0xa4d   :  { %v11643_v55 = vpop.f32.mrb[108].mxu1 }
 0xa4e   :  { %v11644_v56 = vadd.f32 %v11643_v55, %v10883_v35  ;;  %v11645_v54 = vpop.f32.mrb[109].mxu1  ;;  %v16950_v35 = vld [vmem:[#allocation16 + $0x424] ss:$16 sps:$4 sm:$0xff]   ;;  %v16954_v55 = vld [vmem:[#allocation16 + $0x440] ss:$16 sps:$4 sm:$0xff]  }
 0xa4f   :  { %v11646_v41 = vadd.f32 %v11645_v54, %v10887_v32  ;;  %v11647_v39 = vpop.f32.mrb[110].mxu1  ;;  %13358 = vmatpush1.bf16.msra.mxu1 %v16876_v37  ;;  %13540 = vmatpush1.bf16.msra.mxu0 %v16879_v43  ;;  %v16953_v32 = vld [vmem:[#allocation16 + $0x54c] ss:$16 sps:$4 sm:$0xff]   ;;  %v16948_v37 = vld [vmem:[#allocation16 + $0x420] ss:$16 sps:$4 sm:$0xff]  }
 0xa50   :  { %v11734_v24 = vmax.f32 %v11644_v56, 0.0  ;;  %v11648_v40 = vpop.f32.mrb[111].mxu1  ;;  %13359 = vmatprep.subr.bf16.mxu1 %v16884_v18  ;;  %13541 = vmatprep.subr.bf16.mxu0 %v16887_v11  ;;  %v16951_v43 = vld [vmem:[#allocation16 + $0x548] ss:$16 sps:$4 sm:$0xff]   ;;  %v16956_v18 = vld [vmem:[#allocation16 + $0x444] ss:$16 sps:$4 sm:$0xff]  }
 0xa51   :  { %v11735_v10 = vmax.f32 %v11646_v41, 0.0  ;;  %v16959_v11 = vld [vmem:[#allocation16 + $0x56c] ss:$16 sps:$4 sm:$0xff]   ;;  %v16957_v56 = vld [vmem:[#allocation16 + $0x568] ss:$16 sps:$4 sm:$0xff]   ;;  %v10890_v40 = vsub.s32 4, %v20632_v36 }
 0xa52   :  { %v20549_v50 = vpack.c.bf16 %v11734_v24, %v11734_v24  ;;  %v16962_v54 = vld [vmem:[#allocation16 + $0x464] ss:$16 sps:$4 sm:$0xff]   ;;  %v16965_v41 = vld [vmem:[#allocation16 + $0x58c] ss:$16 sps:$4 sm:$0xff]   ;;  %v16960_v39 = vld [vmem:[#allocation16 + $0x460] ss:$16 sps:$4 sm:$0xff]  }
 0xa53   :  { %v11743_v15 = vpack.c.bf16 %v11735_v10, %v11735_v10  ;;  %13360 = vmatpush1.bf16.msra.mxu1 %v16882_v6  ;;  %13542 = vmatpush1.bf16.msra.mxu0 %v16885_v5  ;;  %v16963_v6 = vld [vmem:[#allocation16 + $0x588] ss:$16 sps:$4 sm:$0xff]   ;;  %v16968_v5 = vld [vmem:[#allocation16 + $0x484] ss:$16 sps:$4 sm:$0xff]   ;;  %v16971_v24 = vld [vmem:[#allocation16 + $0x5ac] ss:$16 sps:$4 sm:$0xff]  }
 0xa54   :  { %13361 = vmatprep.subr.bf16.mxu1 %v16890_v51  ;;  %13552 = vmatprep.subr.bf16.mxu0 %v16893_v49  ;;  %v16966_v51 = vld [vmem:[#allocation16 + $0x480] ss:$16 sps:$4 sm:$0xff]   ;;  %v16969_v49 = vld [vmem:[#allocation16 + $0x5a8] ss:$16 sps:$4 sm:$0xff]   ;;  %v10894_v10 = vsub.s32 5, %v20632_v36 }
 0xa55   :  { %13379 = vmatprep.mubr.bf16.mxu1 %v11743_v15  ;;  %13543 = vmatprep.mubr.bf16.mxu0 %v11743_v15  ;;  %v16974_v15 = vld [vmem:[#allocation16 + $0x4a4] ss:$16 sps:$4 sm:$0xff]  }
 0xa56   :  { %13544 = vmatmul.mubr.bf16.vlgmr.msra.gmra.mrb[116].mxu0 %v20549_v50 }
 0xa57   :  { %13362 = vmatpush1.bf16.msra.mxu1 %v16888_v57  ;;  %13553 = vmatpush1.bf16.msra.mxu0 %v16891_v21  ;;  %v16977_v57 = vld [vmem:[#allocation16 + $0x5cc] ss:$16 sps:$4 sm:$0xff]   ;;  %v10891_v21 = vrot.slane %v20533_v52, %v10890_v40  ;;  %v17032_v40 = vld [vmem:[#allocation16 + $0x5e0] ss:$16 sps:$4 sm:$0xff]  }
 0xa58   :  { %13363 = vmatprep.subr.bf16.mxu1 %v16896_v4  ;;  %13554 = vmatprep.subr.bf16.mxu0 %v16899_v22  ;;  %v16972_v4 = vld [vmem:[#allocation16 + $0x4a0] ss:$16 sps:$4 sm:$0xff]   ;;  %v16975_v22 = vld [vmem:[#allocation16 + $0x5c8] ss:$16 sps:$4 sm:$0xff]  }
 0xa5b   :  { %13364 = vmatpush1.bf16.msra.mxu1 %v16894_v29  ;;  %13555 = vmatpush1.bf16.msra.mxu0 %v16897_v20  ;;  %v16980_v29 = vld [vmem:[#allocation16 + $0x4c4] ss:$16 sps:$4 sm:$0xff]   ;;  %v16983_v20 = vld [vmem:[#allocation16 + $0x5ec] ss:$16 sps:$4 sm:$0xff]  }
 0xa5c   :  { %13365 = vmatprep.subr.bf16.mxu1 %v16902_v61  ;;  %13556 = vmatprep.subr.bf16.mxu0 %v16905_v0 }
 0xa5f   :  { %13366 = vmatpush1.bf16.msra.mxu1 %v16900_v27  ;;  %13557 = vmatpush1.bf16.msra.mxu0 %v16903_v44 }
 0xa60   :  { %13367 = vmatprep.subr.bf16.mxu1 %v16908_v62  ;;  %13558 = vmatprep.subr.bf16.mxu0 %v16911_v2  ;;  %v16978_v2 = vld [vmem:[#allocation16 + $0x4c0] ss:$16 sps:$4 sm:$0xff]  }
 0xa63   :  { %13368 = vmatpush1.bf16.msra.mxu1 %v16906_v14  ;;  %13559 = vmatpush1.bf16.msra.mxu0 %v16909_v47  ;;  %v16981_v14 = vld [vmem:[#allocation16 + $0x5e8] ss:$16 sps:$4 sm:$0xff]  }
 0xa64   :  { %13369 = vmatprep.subr.bf16.mxu1 %v16914_v38  ;;  %13560 = vmatprep.subr.bf16.mxu0 %v16917_v33  ;;  %v16986_v33 = vld [vmem:[#allocation16 + $0x4e4] ss:$16 sps:$4 sm:$0xff]  }
 0xa67   :  { %13370 = vmatpush1.bf16.msra.mxu1 %v16912_v12  ;;  %13561 = vmatpush1.bf16.msra.mxu0 %v16915_v42  ;;  %v16989_v12 = vld [vmem:[#allocation16 + $0x60c] ss:$16 sps:$4 sm:$0xff]  }
 0xa68   :  { %13371 = vmatprep.subr.bf16.mxu1 %v16920_v59  ;;  %13562 = vmatprep.subr.bf16.mxu0 %v16923_v34  ;;  %v16984_v34 = vld [vmem:[#allocation16 + $0x4e0] ss:$16 sps:$4 sm:$0xff]  }
 0xa6b   :  { %13372 = vmatpush1.bf16.msra.mxu1 %v16918_v8  ;;  %13563 = vmatpush1.bf16.msra.mxu0 %v16921_v60  ;;  %v16987_v8 = vld [vmem:[#allocation16 + $0x608] ss:$16 sps:$4 sm:$0xff]  }
 0xa6c   :  { %13373 = vmatprep.subr.bf16.mxu1 %v16926_v9  ;;  %13564 = vmatprep.subr.bf16.mxu0 %v16929_v26  ;;  %v16992_v9 = vld [vmem:[#allocation16 + $0x504] ss:$16 sps:$4 sm:$0xff]   ;;  %v16995_v26 = vld [vmem:[#allocation16 + $0x62c] ss:$16 sps:$4 sm:$0xff]  }
 0xa6f   :  { %13374 = vmatpush1.bf16.msra.mxu1 %v16924_v3  ;;  %13565 = vmatpush1.bf16.msra.mxu0 %v16927_v63  ;;  %v16990_v3 = vld [vmem:[#allocation16 + $0x500] ss:$16 sps:$4 sm:$0xff]   ;;  %v16993_v63 = vld [vmem:[#allocation16 + $0x628] ss:$16 sps:$4 sm:$0xff]  }
 0xa70   :  { %13375 = vmatprep.subr.bf16.mxu1 %v16932_v28  ;;  %13566 = vmatprep.subr.bf16.mxu0 %v16935_v13  ;;  %v16998_v28 = vld [vmem:[#allocation16 + $0x524] ss:$16 sps:$4 sm:$0xff]   ;;  %v17001_v13 = vld [vmem:[#allocation16 + $0x64c] ss:$16 sps:$4 sm:$0xff]  }
 0xa73   :  { %13376 = vmatpush1.bf16.msra.mxu1 %v16930_v19  ;;  %13567 = vmatpush1.bf16.msra.mxu0 %v16933_v7  ;;  %v16996_v19 = vld [vmem:[#allocation16 + $0x520] ss:$16 sps:$4 sm:$0xff]   ;;  %v16999_v7 = vld [vmem:[#allocation16 + $0x648] ss:$16 sps:$4 sm:$0xff]  }
 0xa74   :  { %13377 = vmatprep.subr.bf16.mxu1 %v16938_v31  ;;  %13568 = vmatprep.subr.bf16.mxu0 %v16941_v1  ;;  %v17004_v31 = vld [vmem:[#allocation16 + $0x544] ss:$16 sps:$4 sm:$0xff]   ;;  %v17007_v1 = vld [vmem:[#allocation16 + $0x66c] ss:$16 sps:$4 sm:$0xff]  }
 0xa77   :  { %13378 = vmatpush1.bf16.msra.mxu1 %v16936_v45  ;;  %13569 = vmatpush1.bf16.msra.mxu0 %v16939_v17  ;;  %v17002_v45 = vld [vmem:[#allocation16 + $0x540] ss:$16 sps:$4 sm:$0xff]   ;;  %v17005_v17 = vld [vmem:[#allocation16 + $0x668] ss:$16 sps:$4 sm:$0xff]  }
 0xa78   :  { %13388 = vmatprep.subr.bf16.mxu1 %v16944_v30  ;;  %13570 = vmatprep.subr.bf16.mxu0 %v16947_v53  ;;  %v17010_v30 = vld [vmem:[#allocation16 + $0x564] ss:$16 sps:$4 sm:$0xff]   ;;  %v17013_v53 = vld [vmem:[#allocation16 + $0x68c] ss:$16 sps:$4 sm:$0xff]  }
 0xa7a   :  { %13380 = vmatmul.mubr.bf16.vlgmr.msra.gmra.mrb[120].mxu1 %v20549_v50  ;;  %v10895_v50 = vrot.slane %v20533_v52, %v10894_v10  ;;  %v17043_v10 = vld [vmem:[#allocation16 + $0x72c] ss:$16 sps:$4 sm:$0xff]  }
 0xa7b   :  { %13389 = vmatpush1.bf16.msra.mxu1 %v16942_v58  ;;  %13571 = vmatpush1.bf16.msra.mxu0 %v16945_v16  ;;  %v17008_v58 = vld [vmem:[#allocation16 + $0x560] ss:$16 sps:$4 sm:$0xff]   ;;  %v17011_v16 = vld [vmem:[#allocation16 + $0x688] ss:$16 sps:$4 sm:$0xff]  }
 0xa7c   :  { %13390 = vmatprep.subr.bf16.mxu1 %v16950_v35  ;;  %13572 = vmatprep.subr.bf16.mxu0 %v16953_v32  ;;  %v17016_v35 = vld [vmem:[#allocation16 + $0x584] ss:$16 sps:$4 sm:$0xff]   ;;  %v17019_v32 = vld [vmem:[#allocation16 + $0x6ac] ss:$16 sps:$4 sm:$0xff]  }
 0xa7f   :  { %13391 = vmatpush1.bf16.msra.mxu1 %v16948_v37  ;;  %13573 = vmatpush1.bf16.msra.mxu0 %v16951_v43  ;;  %v17014_v37 = vld [vmem:[#allocation16 + $0x580] ss:$16 sps:$4 sm:$0xff]   ;;  %v17017_v43 = vld [vmem:[#allocation16 + $0x6a8] ss:$16 sps:$4 sm:$0xff]  }
 0xa80   :  { %13392 = vmatprep.subr.bf16.mxu1 %v16956_v18  ;;  %13574 = vmatprep.subr.bf16.mxu0 %v16959_v11  ;;  %v17022_v18 = vld [vmem:[#allocation16 + $0x5a4] ss:$16 sps:$4 sm:$0xff]   ;;  %v17025_v11 = vld [vmem:[#allocation16 + $0x6cc] ss:$16 sps:$4 sm:$0xff]  }
 0xa83   :  { %13393 = vmatpush1.bf16.msra.mxu1 %v16954_v55  ;;  %13575 = vmatpush1.bf16.msra.mxu0 %v16957_v56  ;;  %v17020_v55 = vld [vmem:[#allocation16 + $0x5a0] ss:$16 sps:$4 sm:$0xff]   ;;  %v17023_v56 = vld [vmem:[#allocation16 + $0x6c8] ss:$16 sps:$4 sm:$0xff]  }
 0xa84   :  { %13394 = vmatprep.subr.bf16.mxu1 %v16962_v54  ;;  %13576 = vmatprep.subr.bf16.mxu0 %v16965_v41  ;;  %v17028_v54 = vld [vmem:[#allocation16 + $0x5c4] ss:$16 sps:$4 sm:$0xff]   ;;  %v17031_v41 = vld [vmem:[#allocation16 + $0x6ec] ss:$16 sps:$4 sm:$0xff]  }
 0xa87   :  { %13395 = vmatpush1.bf16.msra.mxu1 %v16960_v39  ;;  %13577 = vmatpush1.bf16.msra.mxu0 %v16963_v6  ;;  %v17026_v39 = vld [vmem:[#allocation16 + $0x5c0] ss:$16 sps:$4 sm:$0xff]   ;;  %v17029_v6 = vld [vmem:[#allocation16 + $0x6e8] ss:$16 sps:$4 sm:$0xff]  }
 0xa88   :  { %13396 = vmatprep.subr.bf16.mxu1 %v16968_v5  ;;  %13578 = vmatprep.subr.bf16.mxu0 %v16971_v24  ;;  %v17034_v5 = vld [vmem:[#allocation16 + $0x5e4] ss:$16 sps:$4 sm:$0xff]   ;;  %v17037_v24 = vld [vmem:[#allocation16 + $0x70c] ss:$16 sps:$4 sm:$0xff]  }
 0xa8b   :  { %13397 = vmatpush1.bf16.msra.mxu1 %v16966_v51  ;;  %13579 = vmatpush1.bf16.msra.mxu0 %v16969_v49  ;;  %v17035_v51 = vld [vmem:[#allocation16 + $0x708] ss:$16 sps:$4 sm:$0xff]   ;;  %v17040_v49 = vld [vmem:[#allocation16 + $0x604] ss:$16 sps:$4 sm:$0xff]  }
 0xa8c   :  { %13398 = vmatprep.subr.bf16.mxu1 %v16974_v15  ;;  %13580 = vmatprep.subr.bf16.mxu0 %v16977_v57  ;;  %v17038_v15 = vld [vmem:[#allocation16 + $0x600] ss:$16 sps:$4 sm:$0xff]   ;;  %v17041_v57 = vld [vmem:[#allocation16 + $0x728] ss:$16 sps:$4 sm:$0xff]  }
 0xa8d   :  { %v11684_v61 = vpop.f32.mrb[112].mxu1 }
 0xa8e   :  { %v11685_v0 = vadd.f32 %v11684_v61, %v10891_v21  ;;  %v11686_v27 = vpop.f32.mrb[113].mxu1  ;;  %v17046_v21 = vld [vmem:[#allocation16 + $0x624] ss:$16 sps:$4 sm:$0xff]   ;;  %v17050_v61 = vld [vmem:[#allocation16 + $0x640] ss:$16 sps:$4 sm:$0xff]  }
 0xa8f   :  { %v11687_v44 = vadd.f32 %v11686_v27, %v10895_v50  ;;  %v11688_v62 = vpop.f32.mrb[114].mxu1  ;;  %13399 = vmatpush1.bf16.msra.mxu1 %v16972_v4  ;;  %13581 = vmatpush1.bf16.msra.mxu0 %v16975_v22  ;;  %v17049_v50 = vld [vmem:[#allocation16 + $0x74c] ss:$16 sps:$4 sm:$0xff]   ;;  %v17044_v4 = vld [vmem:[#allocation16 + $0x620] ss:$16 sps:$4 sm:$0xff]  }
 0xa90   :  { %v11736_v47 = vmax.f32 %v11685_v0, 0.0  ;;  %v11689_v38 = vpop.f32.mrb[115].mxu1  ;;  %13400 = vmatprep.subr.bf16.mxu1 %v16980_v29  ;;  %13582 = vmatprep.subr.bf16.mxu0 %v16983_v20  ;;  %v17047_v22 = vld [vmem:[#allocation16 + $0x748] ss:$16 sps:$4 sm:$0xff]   ;;  %v17052_v29 = vld [vmem:[#allocation16 + $0x644] ss:$16 sps:$4 sm:$0xff]  }
 0xa91   :  { %v11737_v42 = vmax.f32 %v11687_v44, 0.0  ;;  %v17055_v20 = vld [vmem:[#allocation16 + $0x76c] ss:$16 sps:$4 sm:$0xff]   ;;  %v17053_v0 = vld [vmem:[#allocation16 + $0x768] ss:$16 sps:$4 sm:$0xff]   ;;  %v10898_v38 = vsub.s32 6, %v20632_v36 }
 0xa92   :  { %v20557_v60 = vpack.c.bf16 %v11736_v47, %v11736_v47  ;;  %v17058_v27 = vld [vmem:[#allocation16 + $0x664] ss:$16 sps:$4 sm:$0xff]   ;;  %v17061_v44 = vld [vmem:[#allocation16 + $0x78c] ss:$16 sps:$4 sm:$0xff]   ;;  %v17056_v62 = vld [vmem:[#allocation16 + $0x660] ss:$16 sps:$4 sm:$0xff]  }
 0xa93   :  { %v11745_v59 = vpack.c.bf16 %v11737_v42, %v11737_v42  ;;  %13401 = vmatpush1.bf16.msra.mxu1 %v16978_v2  ;;  %13583 = vmatpush1.bf16.msra.mxu0 %v16981_v14  ;;  %v17059_v2 = vld [vmem:[#allocation16 + $0x788] ss:$16 sps:$4 sm:$0xff]   ;;  %v17064_v14 = vld [vmem:[#allocation16 + $0x684] ss:$16 sps:$4 sm:$0xff]   ;;  %v17067_v47 = vld [vmem:[#allocation16 + $0x7ac] ss:$16 sps:$4 sm:$0xff]  }
 0xa94   :  { %13402 = vmatprep.subr.bf16.mxu1 %v16986_v33  ;;  %13593 = vmatprep.subr.bf16.mxu0 %v16989_v12  ;;  %v17062_v33 = vld [vmem:[#allocation16 + $0x680] ss:$16 sps:$4 sm:$0xff]   ;;  %v17065_v12 = vld [vmem:[#allocation16 + $0x7a8] ss:$16 sps:$4 sm:$0xff]   ;;  %v10902_v42 = vsub.s32 7, %v20632_v36 }
 0xa95   :  { %13420 = vmatprep.mubr.bf16.mxu1 %v11745_v59  ;;  %13584 = vmatprep.mubr.bf16.mxu0 %v11745_v59  ;;  %v17070_v59 = vld [vmem:[#allocation16 + $0x6a4] ss:$16 sps:$4 sm:$0xff]  }
 0xa96   :  { %13585 = vmatmul.mubr.bf16.vlgmr.msra.gmra.mrb[116].mxu0 %v20557_v60 }
 0xa97   :  { %13403 = vmatpush1.bf16.msra.mxu1 %v16984_v34  ;;  %13594 = vmatpush1.bf16.msra.mxu0 %v16987_v8  ;;  %v17073_v34 = vld [vmem:[#allocation16 + $0x7cc] ss:$16 sps:$4 sm:$0xff]   ;;  %v10899_v8 = vrot.slane %v20533_v52, %v10898_v38 }
 0xa98   :  { %13404 = vmatprep.subr.bf16.mxu1 %v16992_v9  ;;  %13595 = vmatprep.subr.bf16.mxu0 %v16995_v26  ;;  %v17068_v9 = vld [vmem:[#allocation16 + $0x6a0] ss:$16 sps:$4 sm:$0xff]   ;;  %v17071_v26 = vld [vmem:[#allocation16 + $0x7c8] ss:$16 sps:$4 sm:$0xff]  }
 0xa9b   :  { %13405 = vmatpush1.bf16.msra.mxu1 %v16990_v3  ;;  %13596 = vmatpush1.bf16.msra.mxu0 %v16993_v63  ;;  %v17076_v3 = vld [vmem:[#allocation16 + $0x6c4] ss:$16 sps:$4 sm:$0xff]   ;;  %v17079_v63 = vld [vmem:[#allocation16 + $0x7ec] ss:$16 sps:$4 sm:$0xff]  }
 0xa9c   :  { %13406 = vmatprep.subr.bf16.mxu1 %v16998_v28  ;;  %13597 = vmatprep.subr.bf16.mxu0 %v17001_v13 }
 0xa9f   :  { %13407 = vmatpush1.bf16.msra.mxu1 %v16996_v19  ;;  %13598 = vmatpush1.bf16.msra.mxu0 %v16999_v7 }
 0xaa0   :  { %13408 = vmatprep.subr.bf16.mxu1 %v17004_v31  ;;  %13599 = vmatprep.subr.bf16.mxu0 %v17007_v1  ;;  %v17074_v1 = vld [vmem:[#allocation16 + $0x6c0] ss:$16 sps:$4 sm:$0xff]  }
 0xaa3   :  { %13409 = vmatpush1.bf16.msra.mxu1 %v17002_v45  ;;  %13600 = vmatpush1.bf16.msra.mxu0 %v17005_v17  ;;  %v17077_v45 = vld [vmem:[#allocation16 + $0x7e8] ss:$16 sps:$4 sm:$0xff]  }
 0xaa4   :  { %13410 = vmatprep.subr.bf16.mxu1 %v17010_v30  ;;  %13601 = vmatprep.subr.bf16.mxu0 %v17013_v53 }
 0xaa7   :  { %13411 = vmatpush1.bf16.msra.mxu1 %v17008_v58  ;;  %13602 = vmatpush1.bf16.msra.mxu0 %v17011_v16  ;;  %v17080_v16 = vld [vmem:[#allocation16 + $0x6e0] ss:$16 sps:$4 sm:$0xff]  }
 0xaa8   :  { %13412 = vmatprep.subr.bf16.mxu1 %v17016_v35  ;;  %13603 = vmatprep.subr.bf16.mxu0 %v17019_v32  ;;  %v17085_v32 = vld [vmem:[#allocation16 + $0x704] ss:$16 sps:$4 sm:$0xff]  }
 0xaab   :  { %13413 = vmatpush1.bf16.msra.mxu1 %v17014_v37  ;;  %13604 = vmatpush1.bf16.msra.mxu0 %v17017_v43  ;;  %v17083_v37 = vld [vmem:[#allocation16 + $0x700] ss:$16 sps:$4 sm:$0xff]   ;;  %v17088_v43 = vld [vmem:[#allocation16 + $0x724] ss:$16 sps:$4 sm:$0xff]  }
 0xaac   :  { %13414 = vmatprep.subr.bf16.mxu1 %v17022_v18  ;;  %13605 = vmatprep.subr.bf16.mxu0 %v17025_v11  ;;  %v17086_v18 = vld [vmem:[#allocation16 + $0x720] ss:$16 sps:$4 sm:$0xff]   ;;  %v17091_v11 = vld [vmem:[#allocation16 + $0x744] ss:$16 sps:$4 sm:$0xff]  }
 0xaaf   :  { %13415 = vmatpush1.bf16.msra.mxu1 %v17020_v55  ;;  %13606 = vmatpush1.bf16.msra.mxu0 %v17023_v56  ;;  %v17089_v55 = vld [vmem:[#allocation16 + $0x740] ss:$16 sps:$4 sm:$0xff]   ;;  %v17094_v56 = vld [vmem:[#allocation16 + $0x764] ss:$16 sps:$4 sm:$0xff]  }
 0xab0   :  { %13416 = vmatprep.subr.bf16.mxu1 %v17028_v54  ;;  %13607 = vmatprep.subr.bf16.mxu0 %v17031_v41  ;;  %v17092_v54 = vld [vmem:[#allocation16 + $0x760] ss:$16 sps:$4 sm:$0xff]   ;;  %v17097_v41 = vld [vmem:[#allocation16 + $0x784] ss:$16 sps:$4 sm:$0xff]  }
 0xab3   :  { %13417 = vmatpush1.bf16.msra.mxu1 %v17026_v39  ;;  %13608 = vmatpush1.bf16.msra.mxu0 %v17029_v6  ;;  %v17095_v39 = vld [vmem:[#allocation16 + $0x780] ss:$16 sps:$4 sm:$0xff]   ;;  %v17100_v6 = vld [vmem:[#allocation16 + $0x7a4] ss:$16 sps:$4 sm:$0xff]  }
 0xab4   :  { %13418 = vmatprep.subr.bf16.mxu1 %v17034_v5  ;;  %13609 = vmatprep.subr.bf16.mxu0 %v17037_v24  ;;  %v17098_v5 = vld [vmem:[#allocation16 + $0x7a0] ss:$16 sps:$4 sm:$0xff]   ;;  %v17103_v24 = vld [vmem:[#allocation16 + $0x7c4] ss:$16 sps:$4 sm:$0xff]  }
 0xab7   :  { %13419 = vmatpush1.bf16.msra.mxu1 %v17032_v40  ;;  %13610 = vmatpush1.bf16.msra.mxu0 %v17035_v51  ;;  %v17101_v40 = vld [vmem:[#allocation16 + $0x7c0] ss:$16 sps:$4 sm:$0xff]   ;;  %v17106_v51 = vld [vmem:[#allocation16 + $0x7e4] ss:$16 sps:$4 sm:$0xff]  }
 0xab8   :  { %13429 = vmatprep.subr.bf16.mxu1 %v17040_v49  ;;  %13611 = vmatprep.subr.bf16.mxu0 %v17043_v10  ;;  %v17104_v49 = vld [vmem:[#allocation16 + $0x7e0] ss:$16 sps:$4 sm:$0xff]  }
 0xab9   :  { %v17107_v10 = vld [vmem:[#allocation17 + $0x40] sm:$0xff]  }
 0xaba   :  { %13421 = vmatmul.mubr.bf16.vlgmr.msra.gmra.mrb[120].mxu1 %v20557_v60  ;;  %v10903_v60 = vrot.slane %v20533_v52, %v10902_v42  ;;  %v17082_v52 = vld [vmem:[#allocation16 + $0x6e4] ss:$16 sps:$4 sm:$0xff]  }
 0xabb   :  { %13430 = vmatpush1.bf16.msra.mxu1 %v17038_v15  ;;  %13612 = vmatpush1.bf16.msra.mxu0 %v17041_v57  ;;  %v17108_v15 = vld [vmem:[#allocation17] sm:$0xff]   ;;  %v17109_v57 = vld [vmem:[#allocation17 + $0x48] sm:$0xff]  }
 0xabc   :  { %13431 = vmatprep.subr.bf16.mxu1 %v17046_v21  ;;  %13613 = vmatprep.subr.bf16.mxu0 %v17049_v50  ;;  %v17110_v21 = vld [vmem:[#allocation17 + $0x8] sm:$0xff]   ;;  %v17111_v50 = vld [vmem:[#allocation17 + $0x50] sm:$0xff]  }
 0xabf   :  { %13432 = vmatpush1.bf16.msra.mxu1 %v17044_v4  ;;  %13614 = vmatpush1.bf16.msra.mxu0 %v17047_v22  ;;  %v17112_v4 = vld [vmem:[#allocation17 + $0x10] sm:$0xff]   ;;  %v17113_v22 = vld [vmem:[#allocation17 + $0x58] sm:$0xff]  }
 0xac0   :  { %13433 = vmatprep.subr.bf16.mxu1 %v17052_v29  ;;  %13615 = vmatprep.subr.bf16.mxu0 %v17055_v20  ;;  %v17114_v29 = vld [vmem:[#allocation17 + $0x18] sm:$0xff]   ;;  %v17115_v20 = vld [vmem:[#allocation17 + $0x60] sm:$0xff]  }
 0xac3   :  { %13434 = vmatpush1.bf16.msra.mxu1 %v17050_v61  ;;  %13616 = vmatpush1.bf16.msra.mxu0 %v17053_v0  ;;  %v17116_v61 = vld [vmem:[#allocation17 + $0x20] sm:$0xff]   ;;  %v17117_v0 = vld [vmem:[#allocation17 + $0x68] sm:$0xff]  }
 0xac4   :  { %13435 = vmatprep.subr.bf16.mxu1 %v17058_v27  ;;  %13617 = vmatprep.subr.bf16.mxu0 %v17061_v44  ;;  %v17118_v27 = vld [vmem:[#allocation17 + $0x28] sm:$0xff]   ;;  %v17119_v44 = vld [vmem:[#allocation17 + $0x70] sm:$0xff]  }
 0xac7   :  { %13436 = vmatpush1.bf16.msra.mxu1 %v17056_v62  ;;  %13618 = vmatpush1.bf16.msra.mxu0 %v17059_v2  ;;  %v17120_v62 = vld [vmem:[#allocation17 + $0x30] sm:$0xff]   ;;  %v17121_v2 = vld [vmem:[#allocation17 + $0x78] sm:$0xff]  }
 0xac8   :  { %13437 = vmatprep.subr.bf16.mxu1 %v17064_v14  ;;  %13619 = vmatprep.subr.bf16.mxu0 %v17067_v47  ;;  %v17122_v14 = vld [vmem:[#allocation17 + $0x38] sm:$0xff]   ;;  %v17123_v47 = vld [vmem:[#allocation17 + $0xc0] sm:$0xff]  }
 0xacb   :  { %13438 = vmatpush1.bf16.msra.mxu1 %v17062_v33  ;;  %13620 = vmatpush1.bf16.msra.mxu0 %v17065_v12 }
 0xacc   :  { %13439 = vmatprep.subr.bf16.mxu1 %v17070_v59  ;;  %13621 = vmatprep.subr.bf16.mxu0 %v17073_v34  ;;  %v12004_v59 = vld [vmem:[%s20600_s12] sm:$0xf] }
 0xacd   :  { %v11725_v28 = vpop.f32.mrb[116].mxu1  ;;  %v12021_v34 = vrot.slane %v12004_v59, %v10886_v48  ;;  %v17128_v48 = vld [vmem:[#allocation17 + $0x90] sm:$0xff]  }
 0xace   :  { %v11726_v13 = vadd.f32 %v11725_v28, %v10899_v8  ;;  %v11727_v19 = vpop.f32.mrb[117].mxu1  ;;  %v12009_v8 = vrot.slane %v12004_v59, %v17796_v25  ;;  %v17126_v25 = vld [vmem:[#allocation17 + $0x88] sm:$0xff]  }
 0xacf   :  { %v11728_v7 = vadd.f32 %v11727_v19, %v10903_v60  ;;  %v11729_v31 = vpop.f32.mrb[118].mxu1  ;;  %13440 = vmatpush1.bf16.msra.mxu1 %v17068_v9  ;;  %13622 = vmatpush1.bf16.msra.mxu0 %v17071_v26  ;;  %v12013_v60 = vrot.slane %v12004_v59, %v19511_v46  ;;  %v17127_v46 = vld [vmem:[#allocation17 + $0xd0] sm:$0xff]  }
 0xad0   :  { %v11738_v17 = vmax.f32 %v11726_v13, 0.0  ;;  %v11730_v30 = vpop.f32.mrb[119].mxu1  ;;  %13441 = vmatprep.subr.bf16.mxu1 %v17076_v3  ;;  %13623 = vmatprep.subr.bf16.mxu0 %v17079_v63 }
 0xad1   :  { %v11739_v53 = vmax.f32 %v11728_v7, 0.0 }
 0xad2   :  { %v11746_v35 = vpack.c.bf16 %v11738_v17, %v11738_v17  ;;  %v17124_v17 = vld [vmem:[#allocation17 + $0x80] sm:$0xff]  }
 0xad3   :  { %v11747_v58 = vpack.c.bf16 %v11739_v53, %v11739_v53  ;;  %13442 = vmatpush1.bf16.msra.mxu1 %v17074_v1  ;;  %13624 = vmatpush1.bf16.msra.mxu0 %v17077_v45  ;;  %v17129_v53 = vld [vmem:[#allocation17 + $0xd8] sm:$0xff]  }
 0xad4   :  { %13443 = vmatprep.subr.bf16.mxu1 %v17082_v52  ;;  %v17125_v52 = vld [vmem:[#allocation17 + $0xc8] sm:$0xff]  }
 0xad5   :  { %13461 = vmatprep.mubr.bf16.mxu1 %v11747_v58  ;;  %13625 = vmatprep.mubr.bf16.mxu0 %v11747_v58  ;;  %v17130_v58 = vld [vmem:[#allocation17 + $0x98] sm:$0xff]  }
 0xad6   :  { %13626 = vmatmul.mubr.bf16.vlgmr.msra.gmra.mrb[116].mxu0 %v11746_v35 }
 0xad7   :  { %13444 = vmatpush1.bf16.msra.mxu1 %v17080_v16  ;;  %v17131_v16 = vld [vmem:[#allocation17 + $0xe0] sm:$0xff]  }
 0xad8   :  { %13445 = vmatprep.subr.bf16.mxu1 %v17085_v32  ;;  %v17133_v32 = vld [vmem:[#allocation17 + $0xe8] sm:$0xff]  }
 0xadb   :  { %13446 = vmatpush1.bf16.msra.mxu1 %v17083_v37  ;;  %v17134_v37 = vld [vmem:[#allocation17 + $0xa8] sm:$0xff]  }
 0xadc   :  { %13447 = vmatprep.subr.bf16.mxu1 %v17088_v43  ;;  %v12017_v43 = vrot.slane %v12004_v59, %v20507_v23  ;;  %v15345_v23 = vld [vmem:[%s20602_s14] ss:$0 sm:$0xff] }
 0xadf   :  { %13448 = vmatpush1.bf16.msra.mxu1 %v17086_v18  ;;  %v17135_v18 = vld [vmem:[#allocation17 + $0xf0] sm:$0xff]  }
 0xae0   :  { %13449 = vmatprep.subr.bf16.mxu1 %v17091_v11  ;;  %v17136_v11 = vld [vmem:[#allocation17 + $0xb0] sm:$0xff]  }
 0xae3   :  { %13450 = vmatpush1.bf16.msra.mxu1 %v17089_v55 }
 0xae4   :  { %13451 = vmatprep.subr.bf16.mxu1 %v17094_v56  ;;  %v17137_v56 = vld [vmem:[#allocation17 + $0xf8] sm:$0xff]  }
 0xae7   :  { %13452 = vmatpush1.bf16.msra.mxu1 %v17092_v54  ;;  %v17138_v54 = vld [vmem:[#allocation17 + $0xb8] sm:$0xff]  }
 0xae8   :  { %13453 = vmatprep.subr.bf16.mxu1 %v17097_v41 }
 0xaeb   :  { %13454 = vmatpush1.bf16.msra.mxu1 %v17095_v39 }
 0xaec   :  { %13455 = vmatprep.subr.bf16.mxu1 %v17100_v6 }
 0xaef   :  { %13456 = vmatpush1.bf16.msra.mxu1 %v17098_v5 }
 0xaf0   :  { %13457 = vmatprep.subr.bf16.mxu1 %v17103_v24 }
 0xaf3   :  { %13458 = vmatpush1.bf16.msra.mxu1 %v17101_v40 }
 0xaf4   :  { %13459 = vmatprep.subr.bf16.mxu1 %v17106_v51 }
 0xaf7   :  { %13460 = vmatpush1.bf16.msra.mxu1 %v17104_v49 }
 0xaf8   :  { %15684 = vmatprep.subr.bf16.mxu1 %v17107_v10 }
 0xafa   :  { %13462 = vmatmul.mubr.bf16.vlgmr.msra.gmra.mrb[120].mxu1 %v11746_v35  ;;  %v17132_v35 = vld [vmem:[#allocation17 + $0xa0] sm:$0xff]  }
 0xafb   :  { %15685 = vmatpush3.bf16.msra.mxu1 %v17108_v15 }
 0xafc   :  { %15686 = vmatprep.subr.bf16.mxu1 %v17109_v57 }
 0xaff   :  { %15687 = vmatpush3.bf16.msra.mxu1 %v17110_v21 }
 0xb00   :  { %15688 = vmatprep.subr.bf16.mxu1 %v17111_v50 }
 0xb03   :  { %15689 = vmatpush3.bf16.msra.mxu1 %v17112_v4 }
 0xb04   :  { %15690 = vmatprep.subr.bf16.mxu1 %v17113_v22 }
 0xb07   :  { %15691 = vmatpush3.bf16.msra.mxu1 %v17114_v29 }
 0xb08   :  { %15692 = vmatprep.subr.bf16.mxu1 %v17115_v20 }
 0xb0b   :  { %15693 = vmatpush3.bf16.msra.mxu1 %v17116_v61 }
 0xb0c   :  { %15694 = vmatprep.subr.bf16.mxu1 %v17117_v0 }
 0xb0f   :  { %15695 = vmatpush3.bf16.msra.mxu1 %v17118_v27 }
 0xb10   :  { %15696 = vmatprep.subr.bf16.mxu1 %v17119_v44 }
 0xb13   :  { %15697 = vmatpush3.bf16.msra.mxu1 %v17120_v62 }
 0xb14   :  { %15698 = vmatprep.subr.bf16.mxu1 %v17121_v2 }
 0xb17   :  { %15699 = vmatpush3.bf16.msra.mxu1 %v17122_v14 }
 0xb18   :  { %15706 = vmatprep.subr.bf16.mxu1 %v17123_v47 }
 0xba9   :  { %v13627_v38 = vpop.f32.mrb[116].mxu0 }
 0xbaa   :  { %v13629_v33 = vpop.f32.mrb[117].mxu0  ;;  %v15840_v55 = vadd.f32 %v13627_v38, %v12017_v43 }
 0xbab   :  { %v13631_v12 = vpop.f32.mrb[118].mxu0  ;;  %v15841_v9 = vadd.f32 %v13629_v33, %v12021_v34 }
 0xbac   :  { %v13632_v42 = vpop.f32.mrb[119].mxu0  ;;  %v13636_v41 = vmax.f32 %v15840_v55, 0.0 }
 0xbad   :  { %v13637_v31 = vmax.f32 %v15841_v9, 0.0 }
 0xbae   :  { %v13640_v39 = vpack.c.bf16 %v13636_v41, %v13636_v41 }
 0xbaf   :  { %v13641_v36 = vpack.c.bf16 %v13637_v31, %v13637_v31 }
 0xbcd   :  { %v13463_v26 = vpop.f32.mrb[120].mxu1 }
 0xbce   :  { %v15838_v3 = vadd.f32 %v13463_v26, %v12009_v8  ;;  %v13465_v63 = vpop.f32.mrb[121].mxu1 }
 0xbcf   :  { %v15839_v28 = vadd.f32 %v13465_v63, %v12013_v60  ;;  %v13467_v13 = vpop.f32.mrb[122].mxu1 }
 0xbd0   :  { %v13634_v19 = vmax.f32 %v15838_v3, 0.0  ;;  %v13468_v7 = vpop.f32.mrb[123].mxu1 }
 0xbd1   :  { %v13635_v1 = vmax.f32 %v15839_v28, 0.0 }
 0xbd2   :  { %v13638_v30 = vpack.c.bf16 %v13634_v19, %v13634_v19 }
 0xbd3   :  { %v13639_v45 = vpack.c.bf16 %v13635_v1, %v13635_v1 }
 0xbd5   :  { %13937 = vmatprep.mubr.bf16.mxu1 %v13639_v45 }
 0xbd6   :  { %13938 = vmatmul.mubr.bf16.vlgmr.msra.gmra.mrb[124].mxu1 %v13638_v30 }
 0xbd7   :  { %15707 = vmatpush3.bf16.msra.mxu1 %v17124_v17  ;;  %13977 = vmatprep.mubr.bf16.mxu1 %v13641_v36 }
 0xbd8   :  { %15708 = vmatprep.subr.bf16.mxu1 %v17125_v52 }
 0xbdb   :  { %15709 = vmatpush3.bf16.msra.mxu1 %v17126_v25 }
 0xbdc   :  { %15710 = vmatprep.subr.bf16.mxu1 %v17127_v46 }
 0xbdf   :  { %15711 = vmatpush3.bf16.msra.mxu1 %v17128_v48 }
 0xbe0   :  { %15712 = vmatprep.subr.bf16.mxu1 %v17129_v53 }
 0xbe3   :  { %15713 = vmatpush3.bf16.msra.mxu1 %v17130_v58 }
 0xbe4   :  { %15714 = vmatprep.subr.bf16.mxu1 %v17131_v16 }
 0xbe7   :  { %15715 = vmatpush3.bf16.msra.mxu1 %v17132_v35 }
 0xbe8   :  { %15716 = vmatprep.subr.bf16.mxu1 %v17133_v32 }
 0xbeb   :  { %15717 = vmatpush3.bf16.msra.mxu1 %v17134_v37 }
 0xbec   :  { %15718 = vmatprep.subr.bf16.mxu1 %v17135_v18 }
 0xbef   :  { %15719 = vmatpush3.bf16.msra.mxu1 %v17136_v11 }
 0xbf0   :  { %15720 = vmatprep.subr.bf16.mxu1 %v17137_v56 }
 0xbf3   :  { %15721 = vmatpush3.bf16.msra.mxu1 %v17138_v54 }
 0xbf6   :  { %13978 = vmatmul.mubr.bf16.vlgmr.msra.gmra.mrb[128].mxu1 %v13640_v39 }
 0xca9   :  { %v15700_v6 = vpop.f32.mrb[124].mxu1 }
 0xcaa   :  { %v15701_v5 = vpop.f32.mrb[125].mxu1 }
 0xcab   :  { %v15702_v24 = vadd.f32 %v15701_v5, %v15700_v6  ;;  %v15703_v40 = vpop.f32.mrb[126].mxu1 }
 0xcac   :  { %v15704_v51 = vpop.f32.mrb[127].mxu1 }
 0xcad   :  { %v13940_v15 = vadd.f32 %v15702_v24, %v15345_v23 }
 0xcc9   :  { %v15722_v49 = vpop.f32.mrb[128].mxu1 }
 0xcca   :  { %v15723_v10 = vpop.f32.mrb[129].mxu1 }
 0xccb   :  { %v15724_v57 = vadd.f32 %v15723_v10, %v15722_v49  ;;  %v15725_v21 = vpop.f32.mrb[130].mxu1 }
 0xccc   :  { %v15726_v50 = vpop.f32.mrb[131].mxu1 }
 0xccd   :  { %v13980_v4 = vadd.f32 %v15724_v57, %v13940_v15 }
 0xccf   :  { %13985 = vst [vmem:[#allocation19] sm:$0x3] %v13980_v4 }
 0xcd0   :  { %17340 = shalt.err (!%p17337_p12)
}
 0xcd1   :  { %s17341_s5 = scalar_lea.hbm %s20603_s15, 32 }
 0xcd2   :  { %p17342_p13 = scmp.ne.s32.totalorder %s20603_s15, %s17341_s5  ;;  %p17345_p0 = scmp.lt.u32.totalorder %s17341_s5, %s20603_s15 }
 0xcd4   :  { %p17347_p1 = pnand %p17345_p0, %p17342_p13 }
 0xcd6   :  { %17350 = shalt.err (!%p17347_p1)
}
 0xcd7   :  { %13995 = dma.vmem_to_hbm [thread:$0]  %s13993_s30, 32, %s20603_s15, [#allocation7]  }
 0xcd8   :  { %17361 = dma.done.wait [#allocation7], 32  }
 0xcd9   :  { %17362 = vsyncadd [#allocation7], 4294967264 }
 0xcda   :  { %13999 = vsyncpa [#allocation6], 1 }
 0xcdb   :  { %14000 = vsyncpa [#allocation9], 1 }
 0xcdc   :  { %14001 = vsyncpa [#allocation12], 1 }
 0xcdd   :  { %14002 = vsyncpa [#allocation15], 1 }
 0xcde   :  { %14003 = vsyncpa [#allocation18], 1 }
 0xcdf   :  { %14004 = vsyncpa [#allocation7], 1 }

</bundles_post_ra>
